<compile_context>
chip_gen: v7x
topology: tpu7x:2x2x1
jax: 0.10.0
libtpu: 0.0.40
codegen_flags: <defaults>
</compile_context>

<pallas_src>
import functools

import numpy as np
import jax
import jax.numpy as jnp
from jax.experimental import pallas as pl
from jax.experimental.pallas import tpu as pltpu


# ----------------------------------------------------------------------------
# Kernel 1: conv-as-GEMM.  o = act(W @ X + b), per-output-channel (row) bias.
#   W: [OC, K]     (K = taps * C, full block, VMEM resident)
#   X: [K,  N]     (N = B*OH*OW, lane-dense, split into `n_blocks` column tiles)
#   b: [OC, 1]
#   o: [OC, N]
# ----------------------------------------------------------------------------

def _conv_gemm_kernel(w_ref, x_ref, b_ref, o_ref, *, act):
    r = jnp.dot(w_ref[...], x_ref[...], preferred_element_type=jnp.float32)
    r = r + b_ref[...]
    if act == "relu":
        r = jnp.maximum(r, 0.0)
    elif act == "sigmoid":
        r = jax.nn.sigmoid(r)
    o_ref[...] = r.astype(o_ref.dtype)


def conv_gemm(w2d, x2d, b2d, act, n_blocks=2):
    OC, K = w2d.shape
    K2, N = x2d.shape
    assert K == K2, (K, K2)
    if N % n_blocks != 0 or (N // n_blocks) % 128 != 0:
        n_blocks = 1
    tn = N // n_blocks
    return pl.pallas_call(
        functools.partial(_conv_gemm_kernel, act=act),
        out_shape=jax.ShapeDtypeStruct((OC, N), jnp.float32),
        grid_spec=pltpu.PrefetchScalarGridSpec(
            num_scalar_prefetch=0,
            grid=(n_blocks,),
            in_specs=[
                pl.BlockSpec((OC, K), lambda j: (0, 0)),   # weight, VMEM resident
                pl.BlockSpec((K, tn), lambda j: (0, j)),   # window matrix tile
                pl.BlockSpec((OC, 1), lambda j: (0, 0)),   # per-row bias
            ],
            out_specs=pl.BlockSpec((OC, tn), lambda j: (0, j)),
        ),
        compiler_params=pltpu.CompilerParams(
            dimension_semantics=("parallel",)),   # 2 tiles -> both v7x TCs
    )(w2d, x2d, b2d)


# ----------------------------------------------------------------------------
# Conv wrappers: build the tiny tap-stacked window matrices in XLA (fused
# slices, never more than ~600 KB), call the GEMM kernel, reshape back.
# ----------------------------------------------------------------------------

def conv2d_s2(x_cm, w2d, b2d, act):
    """3x3 / stride-2 / pad-1 conv.  x_cm: [C, B, H, W] channel-major,
    w2d: [OC, 9C] (column order (i*3+j)*C + c).  Returns [OC, B, H//2, W//2]."""
    C, B, H, W = x_cm.shape
    OC = w2d.shape[0]
    OH, OW = H // 2, W // 2
    xp = jnp.pad(x_cm, ((0, 0), (0, 0), (1, 1), (1, 1)))
    cols = []
    for i in range(3):
        for j in range(3):
            win = xp[:, :, i:i + 2 * OH:2, j:j + 2 * OW:2]      # [C, B, OH, OW]
            cols.append(win.reshape(C, B * OH * OW))
    x2d = jnp.concatenate(cols, axis=0)                          # [9C, N]
    out2d = conv_gemm(w2d, x2d, b2d, act)                        # [OC, N]
    return out2d.reshape(OC, B, OH, OW)


def conv_transpose2d_s2(x_cm, wbig, bbig, act):
    """3x3 / stride-2 / pad-1 / output_padding-1 transposed conv (PyTorch
    semantics), sub-pixel GEMM formulation.  x_cm: [C, B, H, W],
    wbig: [4*OC, 4*C] block-sparse sub-pixel weight.  Returns [OC, B, 2H, 2W]."""
    C, B, H, W = x_cm.shape
    OC = wbig.shape[0] // 4
    xe = jnp.pad(x_cm, ((0, 0), (0, 0), (0, 1), (0, 1)))         # append zero row/col
    wins = []
    for dp in (0, 1):
        for dq in (0, 1):
            wins.append(xe[:, :, dp:dp + H, dq:dq + W].reshape(C, B * H * W))
    xbig = jnp.concatenate(wins, axis=0)                          # [4C, N]
    y = conv_gemm(wbig, xbig, bbig, act)                          # [4*OC, N]
    # Interleave parity planes: out[oc,b,2p+dy,2q+dx] = y[(2dy+dx)*OC+oc, b,p,q]
    y = y.reshape(2, 2, OC, B, H, W)
    y = jnp.transpose(y, (2, 3, 4, 0, 5, 1)).reshape(OC, B, 2 * H, 2 * W)
    return y


# ----------------------------------------------------------------------------
# Kernel 2: enc_fc GEMM (K streamed in 8192-wide slabs, bf16 operands, f32
# accumulator) with the whole classifier head fused into the finalize step.
# ----------------------------------------------------------------------------

def _encfc_classifier_kernel(a_ref, w_ref, b_ref, wc1_ref, bc1_ref,
                             wc2_ref, bc2_ref, feat_ref, logit_ref, acc_ref):
    @pl.when(pl.program_id(0) == 0)
    def _init():
        acc_ref[...] = jnp.zeros_like(acc_ref)

    acc_ref[...] += jnp.dot(a_ref[...], w_ref[...],
                            preferred_element_type=jnp.float32)

    @pl.when(pl.program_id(0) == pl.num_programs(0) - 1)
    def _finalize():
        f = jnp.maximum(acc_ref[...] + b_ref[...], 0.0)           # features, f32
        feat_ref[...] = f.astype(feat_ref.dtype)
        h = jnp.maximum(
            jnp.dot(f, wc1_ref[...], preferred_element_type=jnp.float32)
            + bc1_ref[...], 0.0)
        logit_ref[...] = (jnp.dot(h, wc2_ref[...],
                                  preferred_element_type=jnp.float32)
                          + bc2_ref[...])


def encoder_fc_and_classifier(flat_bf16, p, tk=8192):
    B, K = flat_bf16.shape
    nF = p["enc_fc_b2"].shape[1]      # 128
    nH = p["cls1_b2"].shape[1]        # 64
    nC = p["cls2_b2"].shape[1]        # 5
    feat, logits = pl.pallas_call(
        _encfc_classifier_kernel,
        out_shape=(jax.ShapeDtypeStruct((B, nF), jnp.bfloat16),
                   jax.ShapeDtypeStruct((B, nC), jnp.float32)),
        grid_spec=pltpu.PrefetchScalarGridSpec(
            num_scalar_prefetch=0,
            grid=(K // tk,),
            in_specs=[
                pl.BlockSpec((B, tk), lambda k: (0, k)),
                pl.BlockSpec((tk, nF), lambda k: (k, 0)),
                pl.BlockSpec((1, nF), lambda k: (0, 0)),
                pl.BlockSpec((nF, nH), lambda k: (0, 0)),
                pl.BlockSpec((1, nH), lambda k: (0, 0)),
                pl.BlockSpec((nH, nC), lambda k: (0, 0)),
                pl.BlockSpec((1, nC), lambda k: (0, 0)),
            ],
            out_specs=(pl.BlockSpec((B, nF), lambda k: (0, 0)),
                       pl.BlockSpec((B, nC), lambda k: (0, 0))),
            scratch_shapes=[pltpu.VMEM((B, nF), jnp.float32)],
        ),
        compiler_params=pltpu.CompilerParams(
            dimension_semantics=("arbitrary",)),
    )(flat_bf16, p["enc_fc_wT"], p["enc_fc_b2"],
      p["cls1_wT"], p["cls1_b2"], p["cls2_wT"], p["cls2_b2"])
    return feat, logits


# ----------------------------------------------------------------------------
# Kernel 3: dec_fc GEMM (N split into 8192-wide parallel tiles; K=128 single
# step so no accumulator scratch needed).
# ----------------------------------------------------------------------------

def _decfc_kernel(a_ref, w_ref, b_ref, o_ref):
    o_ref[...] = (jnp.dot(a_ref[...], w_ref[...],
                          preferred_element_type=jnp.float32)
                  + b_ref[...]).astype(o_ref.dtype)


def decoder_fc(feat_bf16, p, tn=8192):
    B, K = feat_bf16.shape
    N = p["dec_fc_wT"].shape[1]
    return pl.pallas_call(
        _decfc_kernel,
        out_shape=jax.ShapeDtypeStruct((B, N), jnp.float32),
        grid_spec=pltpu.PrefetchScalarGridSpec(
            num_scalar_prefetch=0,
            grid=(N // tn,),
            in_specs=[
                pl.BlockSpec((B, K), lambda j: (0, 0)),
                pl.BlockSpec((K, tn), lambda j: (0, j)),
                pl.BlockSpec((1, tn), lambda j: (0, j)),
            ],
            out_specs=pl.BlockSpec((B, tn), lambda j: (0, j)),
        ),
        compiler_params=pltpu.CompilerParams(
            dimension_semantics=("parallel",)),
    )(feat_bf16, p["dec_fc_wT"], p["dec_fc_b2"])


# ------------------------------ parameter prep ------------------------------

def init_params(key):
    ks = jax.random.split(key, 16)

    def rnd(k, shape, scale):
        return jax.random.normal(k, shape, jnp.float32) * scale

    return {
        "enc_conv1_w": rnd(ks[0], (8, 1, 3, 3), 0.1),
        "enc_conv1_b": rnd(ks[1], (8,), 0.1),
        "enc_conv2_w": rnd(ks[2], (16, 8, 3, 3), 0.1),
        "enc_conv2_b": rnd(ks[3], (16,), 0.1),
        "enc_fc_w":    rnd(ks[4], (128, 16 * 32 * 32), 0.01),
        "enc_fc_b":    rnd(ks[5], (128,), 0.01),
        "dec_fc_w":    rnd(ks[6], (16 * 32 * 32, 128), 0.01),
        "dec_fc_b":    rnd(ks[7], (16 * 32 * 32,), 0.01),
        "dec_convt1_w": rnd(ks[8], (16, 8, 3, 3), 0.1),   # ConvTranspose2d: (IC, OC, KH, KW)
        "dec_convt1_b": rnd(ks[9], (8,), 0.1),
        "dec_convt2_w": rnd(ks[10], (8, 1, 3, 3), 0.1),
        "dec_convt2_b": rnd(ks[11], (1,), 0.1),
        "cls_fc1_w":   rnd(ks[12], (64, 128), 0.1),
        "cls_fc1_b":   rnd(ks[13], (64,), 0.1),
        "cls_fc2_w":   rnd(ks[14], (5, 64), 0.1),
        "cls_fc2_b":   rnd(ks[15], (5,), 0.1),
    }


def _conv_w_to_gemm(w):
    """[OC, C, 3, 3] (torch Conv2d) -> [OC, 9C], column order (i*3+j)*C + c."""
    OC, C = w.shape[0], w.shape[1]
    return jnp.transpose(w, (0, 2, 3, 1)).reshape(OC, 9 * C).astype(jnp.float32)


# (output parity d, window shift dp) -> kernel index along that axis, for the
# stride-2 / pad-1 / output_padding-1 sub-pixel decomposition.
_KMAP = {(0, 0): 1, (1, 1): 0, (1, 0): 2}


def _convt_w_to_gemm(w_t):
    """[C, OC, 3, 3] (torch ConvTranspose2d) -> block-sparse [4*OC, 4*C]:
    row block r = 2*dy+dx (output parity), col block s = 2*dp+dq (input shift)."""
    C, OC = int(w_t.shape[0]), int(w_t.shape[1])
    w_np = np.asarray(jax.device_get(w_t), dtype=np.float32)
    big = np.zeros((4 * OC, 4 * C), dtype=np.float32)
    for dy in (0, 1):
        for dx in (0, 1):
            r = 2 * dy + dx
            for dp in (0, 1):
                for dq in (0, 1):
                    ki = _KMAP.get((dy, dp))
                    kj = _KMAP.get((dx, dq))
                    if ki is None or kj is None:
                        continue
                    s = 2 * dp + dq
                    big[r * OC:(r + 1) * OC, s * C:(s + 1) * C] = w_np[:, :, ki, kj].T
    return jnp.asarray(big)


def prepare_params(p):
    """One-time weight re-layout outside the forward pass: conv weights in GEMM
    orientation, conv-transpose weights in block-sparse sub-pixel form, FC
    weights transposed + pre-cast to bf16, biases reshaped for broadcasting."""
    q = {}
    q["conv1_w"] = _conv_w_to_gemm(p["enc_conv1_w"])                       # [8, 9]
    q["conv1_b"] = p["enc_conv1_b"].reshape(-1, 1).astype(jnp.float32)
    q["conv2_w"] = _conv_w_to_gemm(p["enc_conv2_w"])                       # [16, 72]
    q["conv2_b"] = p["enc_conv2_b"].reshape(-1, 1).astype(jnp.float32)
    q["enc_fc_wT"] = p["enc_fc_w"].T.astype(jnp.bfloat16)                  # [16384, 128]
    q["enc_fc_b2"] = p["enc_fc_b"].reshape(1, -1).astype(jnp.float32)
    q["dec_fc_wT"] = p["dec_fc_w"].T.astype(jnp.bfloat16)                  # [128, 16384]
    q["dec_fc_b2"] = p["dec_fc_b"].reshape(1, -1).astype(jnp.float32)
    q["convt1_w"] = _convt_w_to_gemm(p["dec_convt1_w"])                    # [32, 64]
    q["convt1_b"] = jnp.tile(p["dec_convt1_b"], 4).reshape(-1, 1).astype(jnp.float32)
    q["convt2_w"] = _convt_w_to_gemm(p["dec_convt2_w"])                    # [4, 32]
    q["convt2_b"] = jnp.tile(p["dec_convt2_b"], 4).reshape(-1, 1).astype(jnp.float32)
    q["cls1_wT"] = p["cls_fc1_w"].T.astype(jnp.float32)                    # [128, 64]
    q["cls1_b2"] = p["cls_fc1_b"].reshape(1, -1).astype(jnp.float32)
    q["cls2_wT"] = p["cls_fc2_w"].T.astype(jnp.float32)                    # [64, 5]
    q["cls2_b2"] = p["cls_fc2_b"].reshape(1, -1).astype(jnp.float32)
    return q


# -------------------------------- forward -----------------------------------

def wifi_detector_forward(params, x):
    """x: [B, 1, 128, 128] (NCHW).  Returns (reconstruction [B,1,128,128],
    logits [B,5]) with the same semantics as the PyTorch WifiDetector."""
    p = params
    B = x.shape[0]

    # ---- encoder ----
    h = jnp.transpose(x.astype(jnp.float32), (1, 0, 2, 3))                 # [1, B, 128, 128]
    h = conv2d_s2(h, p["conv1_w"], p["conv1_b"], act="relu")               # [8, B, 64, 64]
    h = conv2d_s2(h, p["conv2_w"], p["conv2_b"], act="relu")               # [16, B, 32, 32]
    flat = jnp.transpose(h, (1, 0, 2, 3)).reshape(B, 16 * 32 * 32)         # torch flatten order
    feat_bf16, logits = encoder_fc_and_classifier(flat.astype(jnp.bfloat16), p)

    # ---- decoder ----
    d = decoder_fc(feat_bf16, p)                                           # [B, 16384]
    d = jnp.transpose(d.reshape(B, 16, 32, 32), (1, 0, 2, 3))              # [16, B, 32, 32]
    d = conv_transpose2d_s2(d, p["convt1_w"], p["convt1_b"], act="relu")   # [8, B, 64, 64]
    r = conv_transpose2d_s2(d, p["convt2_w"], p["convt2_b"], act="sigmoid")  # [1, B, 128, 128]
    reconstruction = jnp.transpose(r, (1, 0, 2, 3))                        # [B, 1, 128, 128]

    return reconstruction, logits


if __name__ == "__main__":
    key = jax.random.PRNGKey(0)
    pkey, xkey = jax.random.split(key)
    params = prepare_params(init_params(pkey))
    # Input spatial size is pinned to 128x128 by the Linear(16*32*32, 128) layer.
    x = jax.random.uniform(xkey, (2, 1, 128, 128), jnp.float32)

    fwd = jax.jit(wifi_detector_forward)
    reconstruction, logits = fwd(params, x)
    jax.block_until_ready((reconstruction, logits))

    assert reconstruction.shape == (2, 1, 128, 128), reconstruction.shape
    assert logits.shape == (2, 5), logits.shape
    assert reconstruction.dtype == jnp.float32 and logits.dtype == jnp.float32
    assert bool(jnp.all((reconstruction >= 0.0) & (reconstruction <= 1.0)))
    assert bool(jnp.all(jnp.isfinite(logits)))
    print("KERNEL_OK")
</pallas_src>

<mosaic_0001>
module attributes {stable_mosaic.version = 11 : i64} {
  func.func @_conv_gemm_kernel(%arg0: i32, %arg1: memref<8x9xf32, #tpu.memory_space<vmem>>, %arg2: memref<9x4096xf32, #tpu.memory_space<vmem>>, %arg3: memref<8x1xf32, #tpu.memory_space<vmem>>, %arg4: memref<8x4096xf32, #tpu.memory_space<vmem>>) attributes {dimension_semantics = [#tpu.dimension_semantics<parallel>], iteration_bounds = array<i64: 2>, scalar_prefetch = 0 : i64, scratch_operands = 0 : i64, tpu.core_type = #tpu.core_type<tc>, window_params = [{pipeline_mode = #tpu.pipeline_mode<synchronous>, transform_indices = @transform_0, window_bounds = array<i64: 8, 9>}, {transform_indices = @transform_1, window_bounds = array<i64: 9, 4096>}, {pipeline_mode = #tpu.pipeline_mode<synchronous>, transform_indices = @transform_2, window_bounds = array<i64: 8, 1>}, {transform_indices = @transform_3, window_bounds = array<i64: 8, 4096>}]} {
    %c0 = arith.constant 0 : index
    %c0_0 = arith.constant 0 : index
    %0 = vector.load %arg1[%c0, %c0_0] : memref<8x9xf32, #tpu.memory_space<vmem>>, vector<8x9xf32>
    %c0_1 = arith.constant 0 : index
    %c0_2 = arith.constant 0 : index
    %1 = vector.load %arg2[%c0_1, %c0_2] : memref<9x4096xf32, #tpu.memory_space<vmem>>, vector<9x4096xf32>
    %cst = arith.constant dense<0.000000e+00> : vector<8x4096xf32>
    %2 = tpu.matmul %0, %1, %cst {dimension_numbers = #tpu.dot_dimension_numbers<[1], [0], [0], [1], [0, 0, 1, 1], [], []>} : vector<8x9xf32>, vector<9x4096xf32>, vector<8x4096xf32> -> vector<8x4096xf32>
    %c0_3 = arith.constant 0 : index
    %c0_4 = arith.constant 0 : index
    %3 = vector.load %arg3[%c0_3, %c0_4] : memref<8x1xf32, #tpu.memory_space<vmem>>, vector<8x1xf32>
    %4 = vector.broadcast %3 : vector<8x1xf32> to vector<8x4096xf32>
    %5 = arith.addf %2, %4 : vector<8x4096xf32>
    %cst_5 = arith.constant 0.000000e+00 : f32
    %6 = vector.broadcast %cst_5 : f32 to vector<8x4096xf32>
    %7 = arith.maximumf %5, %6 : vector<8x4096xf32>
    %c0_6 = arith.constant 0 : index
    %c0_7 = arith.constant 0 : index
    %8 = vector.load %arg4[%c0_6, %c0_7] : memref<8x4096xf32, #tpu.memory_space<vmem>>, vector<8x4096xf32>
    tpu.vector_store %arg4[%c0_6, %c0_7], %7 {strides = array<i32>} : memref<8x4096xf32, #tpu.memory_space<vmem>>, vector<8x4096xf32>,
    return
  }
  func.func @transform_0(%arg0: i32) -> (i32, i32) {
    %c0_i32 = arith.constant 0 : i32
    %c0_i32_0 = arith.constant 0 : i32
    %c0_i32_1 = arith.constant 0 : i32
    return %c0_i32, %c0_i32_0 : i32, i32
  }
  func.func @transform_1(%arg0: i32) -> (i32, i32) {
    %c0_i32 = arith.constant 0 : i32
    %c0_i32_0 = arith.constant 0 : i32
    return %c0_i32, %arg0 : i32, i32
  }
  func.func @transform_2(%arg0: i32) -> (i32, i32) {
    %c0_i32 = arith.constant 0 : i32
    %c0_i32_0 = arith.constant 0 : i32
    %c0_i32_1 = arith.constant 0 : i32
    return %c0_i32, %c0_i32_0 : i32, i32
  }
  func.func @transform_3(%arg0: i32) -> (i32, i32) {
    %c0_i32 = arith.constant 0 : i32
    %c0_i32_0 = arith.constant 0 : i32
    return %c0_i32, %arg0 : i32, i32
  }
}

module attributes {stable_mosaic.version = 11 : i64} {
  func.func @_conv_gemm_kernel(%arg0: i32, %arg1: memref<16x72xf32, #tpu.memory_space<vmem>>, %arg2: memref<72x1024xf32, #tpu.memory_space<vmem>>, %arg3: memref<16x1xf32, #tpu.memory_space<vmem>>, %arg4: memref<16x1024xf32, #tpu.memory_space<vmem>>) attributes {dimension_semantics = [#tpu.dimension_semantics<parallel>], iteration_bounds = array<i64: 2>, scalar_prefetch = 0 : i64, scratch_operands = 0 : i64, tpu.core_type = #tpu.core_type<tc>, window_params = [{pipeline_mode = #tpu.pipeline_mode<synchronous>, transform_indices = @transform_0, window_bounds = array<i64: 16, 72>}, {transform_indices = @transform_1, window_bounds = array<i64: 72, 1024>}, {pipeline_mode = #tpu.pipeline_mode<synchronous>, transform_indices = @transform_2, window_bounds = array<i64: 16, 1>}, {transform_indices = @transform_3, window_bounds = array<i64: 16, 1024>}]} {
    %c0 = arith.constant 0 : index
    %c0_0 = arith.constant 0 : index
    %0 = vector.load %arg1[%c0, %c0_0] : memref<16x72xf32, #tpu.memory_space<vmem>>, vector<16x72xf32>
    %c0_1 = arith.constant 0 : index
    %c0_2 = arith.constant 0 : index
    %1 = vector.load %arg2[%c0_1, %c0_2] : memref<72x1024xf32, #tpu.memory_space<vmem>>, vector<72x1024xf32>
    %cst = arith.constant dense<0.000000e+00> : vector<16x1024xf32>
    %2 = tpu.matmul %0, %1, %cst {dimension_numbers = #tpu.dot_dimension_numbers<[1], [0], [0], [1], [0, 0, 1, 1], [], []>} : vector<16x72xf32>, vector<72x1024xf32>, vector<16x1024xf32> -> vector<16x1024xf32>
    %c0_3 = arith.constant 0 : index
    %c0_4 = arith.constant 0 : index
    %3 = vector.load %arg3[%c0_3, %c0_4] : memref<16x1xf32, #tpu.memory_space<vmem>>, vector<16x1xf32>
    %4 = vector.broadcast %3 : vector<16x1xf32> to vector<16x1024xf32>
    %5 = arith.addf %2, %4 : vector<16x1024xf32>
    %cst_5 = arith.constant 0.000000e+00 : f32
    %6 = vector.broadcast %cst_5 : f32 to vector<16x1024xf32>
    %7 = arith.maximumf %5, %6 : vector<16x1024xf32>
    %c0_6 = arith.constant 0 : index
    %c0_7 = arith.constant 0 : index
    %8 = vector.load %arg4[%c0_6, %c0_7] : memref<16x1024xf32, #tpu.memory_space<vmem>>, vector<16x1024xf32>
    tpu.vector_store %arg4[%c0_6, %c0_7], %7 {strides = array<i32>} : memref<16x1024xf32, #tpu.memory_space<vmem>>, vector<16x1024xf32>,
    return
  }
  func.func @transform_0(%arg0: i32) -> (i32, i32) {
    %c0_i32 = arith.constant 0 : i32
    %c0_i32_0 = arith.constant 0 : i32
    %c0_i32_1 = arith.constant 0 : i32
    return %c0_i32, %c0_i32_0 : i32, i32
  }
  func.func @transform_1(%arg0: i32) -> (i32, i32) {
    %c0_i32 = arith.constant 0 : i32
    %c0_i32_0 = arith.constant 0 : i32
    return %c0_i32, %arg0 : i32, i32
  }
  func.func @transform_2(%arg0: i32) -> (i32, i32) {
    %c0_i32 = arith.constant 0 : i32
    %c0_i32_0 = arith.constant 0 : i32
    %c0_i32_1 = arith.constant 0 : i32
    return %c0_i32, %c0_i32_0 : i32, i32
  }
  func.func @transform_3(%arg0: i32) -> (i32, i32) {
    %c0_i32 = arith.constant 0 : i32
    %c0_i32_0 = arith.constant 0 : i32
    return %c0_i32, %arg0 : i32, i32
  }
}

module attributes {stable_mosaic.version = 11 : i64} {
  func.func @_encfc_classifier_kernel(%arg0: i32, %arg1: memref<2x8192xbf16, #tpu.memory_space<vmem>>, %arg2: memref<8192x128xbf16, #tpu.memory_space<vmem>>, %arg3: memref<1x128xf32, #tpu.memory_space<vmem>>, %arg4: memref<128x64xf32, #tpu.memory_space<vmem>>, %arg5: memref<1x64xf32, #tpu.memory_space<vmem>>, %arg6: memref<64x5xf32, #tpu.memory_space<vmem>>, %arg7: memref<1x5xf32, #tpu.memory_space<vmem>>, %arg8: memref<2x128xbf16, #tpu.memory_space<vmem>>, %arg9: memref<2x5xf32, #tpu.memory_space<vmem>>, %arg10: memref<2x128xf32, #tpu.memory_space<vmem>>) attributes {dimension_semantics = [#tpu.dimension_semantics<arbitrary>], iteration_bounds = array<i64: 2>, scalar_prefetch = 0 : i64, scratch_operands = 1 : i64, tpu.core_type = #tpu.core_type<tc>, window_params = [{transform_indices = @transform_0, window_bounds = array<i64: 2, 8192>}, {transform_indices = @transform_1, window_bounds = array<i64: 8192, 128>}, {pipeline_mode = #tpu.pipeline_mode<synchronous>, transform_indices = @transform_2, window_bounds = array<i64: 1, 128>}, {pipeline_mode = #tpu.pipeline_mode<synchronous>, transform_indices = @transform_3, window_bounds = array<i64: 128, 64>}, {pipeline_mode = #tpu.pipeline_mode<synchronous>, transform_indices = @transform_4, window_bounds = array<i64: 1, 64>}, {pipeline_mode = #tpu.pipeline_mode<synchronous>, transform_indices = @transform_5, window_bounds = array<i64: 64, 5>}, {pipeline_mode = #tpu.pipeline_mode<synchronous>, transform_indices = @transform_6, window_bounds = array<i64: 1, 5>}, {pipeline_mode = #tpu.pipeline_mode<synchronous>, transform_indices = @transform_7, window_bounds = array<i64: 2, 128>}, {pipeline_mode = #tpu.pipeline_mode<synchronous>, transform_indices = @transform_8, window_bounds = array<i64: 2, 5>}]} {
    %c0_i32 = arith.constant 0 : i32
    %0 = arith.cmpi eq, %arg0, %c0_i32 : i32
    %1 = arith.extui %0 : i1 to i32
    %c0_i32_0 = arith.constant 0 : i32
    %2 = arith.cmpi ne, %1, %c0_i32_0 : i32
    scf.if %2 {
      %cst_9 = arith.constant 0.000000e+00 : f32
      %12 = vector.broadcast %cst_9 : f32 to vector<2x128xf32>
      %c0_10 = arith.constant 0 : index
      %c0_11 = arith.constant 0 : index
      %13 = vector.load %arg10[%c0_10, %c0_11] : memref<2x128xf32, #tpu.memory_space<vmem>>, vector<2x128xf32>
      tpu.vector_store %arg10[%c0_10, %c0_11], %12 {strides = array<i32>} : memref<2x128xf32, #tpu.memory_space<vmem>>, vector<2x128xf32>,
    } else {
    }
    %c0 = arith.constant 0 : index
    %c0_1 = arith.constant 0 : index
    %3 = vector.load %arg10[%c0, %c0_1] : memref<2x128xf32, #tpu.memory_space<vmem>>, vector<2x128xf32>
    %c0_2 = arith.constant 0 : index
    %c0_3 = arith.constant 0 : index
    %4 = vector.load %arg1[%c0_2, %c0_3] : memref<2x8192xbf16, #tpu.memory_space<vmem>>, vector<2x8192xbf16>
    %c0_4 = arith.constant 0 : index
    %c0_5 = arith.constant 0 : index
    %5 = vector.load %arg2[%c0_4, %c0_5] : memref<8192x128xbf16, #tpu.memory_space<vmem>>, vector<8192x128xbf16>
    %cst = arith.constant dense<0.000000e+00> : vector<2x128xf32>
    %6 = tpu.matmul %4, %5, %cst {dimension_numbers = #tpu.dot_dimension_numbers<[1], [0], [0], [1], [0, 0, 1, 1], [], []>} : vector<2x8192xbf16>, vector<8192x128xbf16>, vector<2x128xf32> -> vector<2x128xf32>
    %7 = arith.addf %3, %6 : vector<2x128xf32>
    %c0_6 = arith.constant 0 : index
    %c0_7 = arith.constant 0 : index
    %8 = vector.load %arg10[%c0_6, %c0_7] : memref<2x128xf32, #tpu.memory_space<vmem>>, vector<2x128xf32>
    tpu.vector_store %arg10[%c0_6, %c0_7], %7 {strides = array<i32>} : memref<2x128xf32, #tpu.memory_space<vmem>>, vector<2x128xf32>,
    %c1_i32 = arith.constant 1 : i32
    %9 = arith.cmpi eq, %arg0, %c1_i32 : i32
    %10 = arith.extui %9 : i1 to i32
    %c0_i32_8 = arith.constant 0 : i32
    %11 = arith.cmpi ne, %10, %c0_i32_8 : i32
    scf.if %11 {
      %c0_9 = arith.constant 0 : index
      %c0_10 = arith.constant 0 : index
      %12 = vector.load %arg10[%c0_9, %c0_10] : memref<2x128xf32, #tpu.memory_space<vmem>>, vector<2x128xf32>
      %c0_11 = arith.constant 0 : index
      %c0_12 = arith.constant 0 : index
      %13 = vector.load %arg3[%c0_11, %c0_12] : memref<1x128xf32, #tpu.memory_space<vmem>>, vector<1x128xf32>
      %14 = vector.broadcast %13 : vector<1x128xf32> to vector<2x128xf32>
      %15 = arith.addf %12, %14 : vector<2x128xf32>
      %cst_13 = arith.constant 0.000000e+00 : f32
      %16 = vector.broadcast %cst_13 : f32 to vector<2x128xf32>
      %17 = arith.maximumf %15, %16 : vector<2x128xf32>
      %18 = arith.truncf %17 : vector<2x128xf32> to vector<2x128xbf16>
      %c0_14 = arith.constant 0 : index
      %c0_15 = arith.constant 0 : index
      %19 = vector.load %arg8[%c0_14, %c0_15] : memref<2x128xbf16, #tpu.memory_space<vmem>>, vector<2x128xbf16>
      tpu.vector_store %arg8[%c0_14, %c0_15], %18 {strides = array<i32>} : memref<2x128xbf16, #tpu.memory_space<vmem>>, vector<2x128xbf16>,
      %c0_16 = arith.constant 0 : index
      %c0_17 = arith.constant 0 : index
      %20 = vector.load %arg4[%c0_16, %c0_17] : memref<128x64xf32, #tpu.memory_space<vmem>>, vector<128x64xf32>
      %cst_18 = arith.constant dense<0.000000e+00> : vector<2x64xf32>
      %21 = tpu.matmul %17, %20, %cst_18 {dimension_numbers = #tpu.dot_dimension_numbers<[1], [0], [0], [1], [0, 0, 1, 1], [], []>} : vector<2x128xf32>, vector<128x64xf32>, vector<2x64xf32> -> vector<2x64xf32>
      %c0_19 = arith.constant 0 : index
      %c0_20 = arith.constant 0 : index
      %22 = vector.load %arg5[%c0_19, %c0_20] : memref<1x64xf32, #tpu.memory_space<vmem>>, vector<1x64xf32>
      %23 = vector.broadcast %22 : vector<1x64xf32> to vector<2x64xf32>
      %24 = arith.addf %21, %23 : vector<2x64xf32>
      %cst_21 = arith.constant 0.000000e+00 : f32
      %25 = vector.broadcast %cst_21 : f32 to vector<2x64xf32>
      %26 = arith.maximumf %24, %25 : vector<2x64xf32>
      %c0_22 = arith.constant 0 : index
      %c0_23 = arith.constant 0 : index
      %27 = vector.load %arg6[%c0_22, %c0_23] : memref<64x5xf32, #tpu.memory_space<vmem>>, vector<64x5xf32>
      %cst_24 = arith.constant dense<0.000000e+00> : vector<2x5xf32>
      %28 = tpu.matmul %26, %27, %cst_24 {dimension_numbers = #tpu.dot_dimension_numbers<[1], [0], [0], [1], [0, 0, 1, 1], [], []>} : vector<2x64xf32>, vector<64x5xf32>, vector<2x5xf32> -> vector<2x5xf32>
      %c0_25 = arith.constant 0 : index
      %c0_26 = arith.constant 0 : index
      %29 = vector.load %arg7[%c0_25, %c0_26] : memref<1x5xf32, #tpu.memory_space<vmem>>, vector<1x5xf32>
      %30 = vector.broadcast %29 : vector<1x5xf32> to vector<2x5xf32>
      %31 = arith.addf %28, %30 : vector<2x5xf32>
      %c0_27 = arith.constant 0 : index
      %c0_28 = arith.constant 0 : index
      %32 = vector.load %arg9[%c0_27, %c0_28] : memref<2x5xf32, #tpu.memory_space<vmem>>, vector<2x5xf32>
      tpu.vector_store %arg9[%c0_27, %c0_28], %31 {strides = array<i32>} : memref<2x5xf32, #tpu.memory_space<vmem>>, vector<2x5xf32>,
    } else {
    }
    return
  }
  func.func @transform_0(%arg0: i32) -> (i32, i32) {
    %c0_i32 = arith.constant 0 : i32
    %c0_i32_0 = arith.constant 0 : i32
    return %c0_i32, %arg0 : i32, i32
  }
  func.func @transform_1(%arg0: i32) -> (i32, i32) {
    %c0_i32 = arith.constant 0 : i32
    %c0_i32_0 = arith.constant 0 : i32
    return %arg0, %c0_i32 : i32, i32
  }
  func.func @transform_2(%arg0: i32) -> (i32, i32) {
    %c0_i32 = arith.constant 0 : i32
    %c0_i32_0 = arith.constant 0 : i32
    %c0_i32_1 = arith.constant 0 : i32
    return %c0_i32, %c0_i32_0 : i32, i32
  }
  func.func @transform_3(%arg0: i32) -> (i32, i32) {
    %c0_i32 = arith.constant 0 : i32
    %c0_i32_0 = arith.constant 0 : i32
    %c0_i32_1 = arith.constant 0 : i32
    return %c0_i32, %c0_i32_0 : i32, i32
  }
  func.func @transform_4(%arg0: i32) -> (i32, i32) {
    %c0_i32 = arith.constant 0 : i32
    %c0_i32_0 = arith.constant 0 : i32
    %c0_i32_1 = arith.constant 0 : i32
    return %c0_i32, %c0_i32_0 : i32, i32
  }
  func.func @transform_5(%arg0: i32) -> (i32, i32) {
    %c0_i32 = arith.constant 0 : i32
    %c0_i32_0 = arith.constant 0 : i32
    %c0_i32_1 = arith.constant 0 : i32
    return %c0_i32, %c0_i32_0 : i32, i32
  }
  func.func @transform_6(%arg0: i32) -> (i32, i32) {
    %c0_i32 = arith.constant 0 : i32
    %c0_i32_0 = arith.constant 0 : i32
    %c0_i32_1 = arith.constant 0 : i32
    return %c0_i32, %c0_i32_0 : i32, i32
  }
  func.func @transform_7(%arg0: i32) -> (i32, i32) {
    %c0_i32 = arith.constant 0 : i32
    %c0_i32_0 = arith.constant 0 : i32
    %c0_i32_1 = arith.constant 0 : i32
    return %c0_i32, %c0_i32_0 : i32, i32
  }
  func.func @transform_8(%arg0: i32) -> (i32, i32) {
    %c0_i32 = arith.constant 0 : i32
    %c0_i32_0 = arith.constant 0 : i32
    %c0_i32_1 = arith.constant 0 : i32
    return %c0_i32, %c0_i32_0 : i32, i32
  }
}

module attributes {stable_mosaic.version = 11 : i64} {
  func.func @_decfc_kernel(%arg0: i32, %arg1: memref<2x128xbf16, #tpu.memory_space<vmem>>, %arg2: memref<128x8192xbf16, #tpu.memory_space<vmem>>, %arg3: memref<1x8192xf32, #tpu.memory_space<vmem>>, %arg4: memref<2x8192xf32, #tpu.memory_space<vmem>>) attributes {dimension_semantics = [#tpu.dimension_semantics<parallel>], iteration_bounds = array<i64: 2>, scalar_prefetch = 0 : i64, scratch_operands = 0 : i64, tpu.core_type = #tpu.core_type<tc>, window_params = [{pipeline_mode = #tpu.pipeline_mode<synchronous>, transform_indices = @transform_0, window_bounds = array<i64: 2, 128>}, {transform_indices = @transform_1, window_bounds = array<i64: 128, 8192>}, {transform_indices = @transform_2, window_bounds = array<i64: 1, 8192>}, {transform_indices = @transform_3, window_bounds = array<i64: 2, 8192>}]} {
    %c0 = arith.constant 0 : index
    %c0_0 = arith.constant 0 : index
    %0 = vector.load %arg1[%c0, %c0_0] : memref<2x128xbf16, #tpu.memory_space<vmem>>, vector<2x128xbf16>
    %c0_1 = arith.constant 0 : index
    %c0_2 = arith.constant 0 : index
    %1 = vector.load %arg2[%c0_1, %c0_2] : memref<128x8192xbf16, #tpu.memory_space<vmem>>, vector<128x8192xbf16>
    %cst = arith.constant dense<0.000000e+00> : vector<2x8192xf32>
    %2 = tpu.matmul %0, %1, %cst {dimension_numbers = #tpu.dot_dimension_numbers<[1], [0], [0], [1], [0, 0, 1, 1], [], []>} : vector<2x128xbf16>, vector<128x8192xbf16>, vector<2x8192xf32> -> vector<2x8192xf32>
    %c0_3 = arith.constant 0 : index
    %c0_4 = arith.constant 0 : index
    %3 = vector.load %arg3[%c0_3, %c0_4] : memref<1x8192xf32, #tpu.memory_space<vmem>>, vector<1x8192xf32>
    %4 = vector.broadcast %3 : vector<1x8192xf32> to vector<2x8192xf32>
    %5 = arith.addf %2, %4 : vector<2x8192xf32>
    %c0_5 = arith.constant 0 : index
    %c0_6 = arith.constant 0 : index
    %6 = vector.load %arg4[%c0_5, %c0_6] : memref<2x8192xf32, #tpu.memory_space<vmem>>, vector<2x8192xf32>
    tpu.vector_store %arg4[%c0_5, %c0_6], %5 {strides = array<i32>} : memref<2x8192xf32, #tpu.memory_space<vmem>>, vector<2x8192xf32>,
    return
  }
  func.func @transform_0(%arg0: i32) -> (i32, i32) {
    %c0_i32 = arith.constant 0 : i32
    %c0_i32_0 = arith.constant 0 : i32
    %c0_i32_1 = arith.constant 0 : i32
    return %c0_i32, %c0_i32_0 : i32, i32
  }
  func.func @transform_1(%arg0: i32) -> (i32, i32) {
    %c0_i32 = arith.constant 0 : i32
    %c0_i32_0 = arith.constant 0 : i32
    return %c0_i32, %arg0 : i32, i32
  }
  func.func @transform_2(%arg0: i32) -> (i32, i32) {
    %c0_i32 = arith.constant 0 : i32
    %c0_i32_0 = arith.constant 0 : i32
    return %c0_i32, %arg0 : i32, i32
  }
  func.func @transform_3(%arg0: i32) -> (i32, i32) {
    %c0_i32 = arith.constant 0 : i32
    %c0_i32_0 = arith.constant 0 : i32
    return %c0_i32, %arg0 : i32, i32
  }
}

module attributes {stable_mosaic.version = 11 : i64} {
  func.func @_conv_gemm_kernel(%arg0: i32, %arg1: memref<32x64xf32, #tpu.memory_space<vmem>>, %arg2: memref<64x1024xf32, #tpu.memory_space<vmem>>, %arg3: memref<32x1xf32, #tpu.memory_space<vmem>>, %arg4: memref<32x1024xf32, #tpu.memory_space<vmem>>) attributes {dimension_semantics = [#tpu.dimension_semantics<parallel>], iteration_bounds = array<i64: 2>, scalar_prefetch = 0 : i64, scratch_operands = 0 : i64, tpu.core_type = #tpu.core_type<tc>, window_params = [{pipeline_mode = #tpu.pipeline_mode<synchronous>, transform_indices = @transform_0, window_bounds = array<i64: 32, 64>}, {transform_indices = @transform_1, window_bounds = array<i64: 64, 1024>}, {pipeline_mode = #tpu.pipeline_mode<synchronous>, transform_indices = @transform_2, window_bounds = array<i64: 32, 1>}, {transform_indices = @transform_3, window_bounds = array<i64: 32, 1024>}]} {
    %c0 = arith.constant 0 : index
    %c0_0 = arith.constant 0 : index
    %0 = vector.load %arg1[%c0, %c0_0] : memref<32x64xf32, #tpu.memory_space<vmem>>, vector<32x64xf32>
    %c0_1 = arith.constant 0 : index
    %c0_2 = arith.constant 0 : index
    %1 = vector.load %arg2[%c0_1, %c0_2] : memref<64x1024xf32, #tpu.memory_space<vmem>>, vector<64x1024xf32>
    %cst = arith.constant dense<0.000000e+00> : vector<32x1024xf32>
    %2 = tpu.matmul %0, %1, %cst {dimension_numbers = #tpu.dot_dimension_numbers<[1], [0], [0], [1], [0, 0, 1, 1], [], []>} : vector<32x64xf32>, vector<64x1024xf32>, vector<32x1024xf32> -> vector<32x1024xf32>
    %c0_3 = arith.constant 0 : index
    %c0_4 = arith.constant 0 : index
    %3 = vector.load %arg3[%c0_3, %c0_4] : memref<32x1xf32, #tpu.memory_space<vmem>>, vector<32x1xf32>
    %4 = vector.broadcast %3 : vector<32x1xf32> to vector<32x1024xf32>
    %5 = arith.addf %2, %4 : vector<32x1024xf32>
    %cst_5 = arith.constant 0.000000e+00 : f32
    %6 = vector.broadcast %cst_5 : f32 to vector<32x1024xf32>
    %7 = arith.maximumf %5, %6 : vector<32x1024xf32>
    %c0_6 = arith.constant 0 : index
    %c0_7 = arith.constant 0 : index
    %8 = vector.load %arg4[%c0_6, %c0_7] : memref<32x1024xf32, #tpu.memory_space<vmem>>, vector<32x1024xf32>
    tpu.vector_store %arg4[%c0_6, %c0_7], %7 {strides = array<i32>} : memref<32x1024xf32, #tpu.memory_space<vmem>>, vector<32x1024xf32>,
    return
  }
  func.func @transform_0(%arg0: i32) -> (i32, i32) {
    %c0_i32 = arith.constant 0 : i32
    %c0_i32_0 = arith.constant 0 : i32
    %c0_i32_1 = arith.constant 0 : i32
    return %c0_i32, %c0_i32_0 : i32, i32
  }
  func.func @transform_1(%arg0: i32) -> (i32, i32) {
    %c0_i32 = arith.constant 0 : i32
    %c0_i32_0 = arith.constant 0 : i32
    return %c0_i32, %arg0 : i32, i32
  }
  func.func @transform_2(%arg0: i32) -> (i32, i32) {
    %c0_i32 = arith.constant 0 : i32
    %c0_i32_0 = arith.constant 0 : i32
    %c0_i32_1 = arith.constant 0 : i32
    return %c0_i32, %c0_i32_0 : i32, i32
  }
  func.func @transform_3(%arg0: i32) -> (i32, i32) {
    %c0_i32 = arith.constant 0 : i32
    %c0_i32_0 = arith.constant 0 : i32
    return %c0_i32, %arg0 : i32, i32
  }
}

module attributes {stable_mosaic.version = 11 : i64} {
  func.func @_conv_gemm_kernel(%arg0: i32, %arg1: memref<4x32xf32, #tpu.memory_space<vmem>>, %arg2: memref<32x4096xf32, #tpu.memory_space<vmem>>, %arg3: memref<4x1xf32, #tpu.memory_space<vmem>>, %arg4: memref<4x4096xf32, #tpu.memory_space<vmem>>) attributes {dimension_semantics = [#tpu.dimension_semantics<parallel>], iteration_bounds = array<i64: 2>, scalar_prefetch = 0 : i64, scratch_operands = 0 : i64, tpu.core_type = #tpu.core_type<tc>, window_params = [{pipeline_mode = #tpu.pipeline_mode<synchronous>, transform_indices = @transform_0, window_bounds = array<i64: 4, 32>}, {transform_indices = @transform_1, window_bounds = array<i64: 32, 4096>}, {pipeline_mode = #tpu.pipeline_mode<synchronous>, transform_indices = @transform_2, window_bounds = array<i64: 4, 1>}, {transform_indices = @transform_3, window_bounds = array<i64: 4, 4096>}]} {
    %c0 = arith.constant 0 : index
    %c0_0 = arith.constant 0 : index
    %0 = vector.load %arg1[%c0, %c0_0] : memref<4x32xf32, #tpu.memory_space<vmem>>, vector<4x32xf32>
    %c0_1 = arith.constant 0 : index
    %c0_2 = arith.constant 0 : index
    %1 = vector.load %arg2[%c0_1, %c0_2] : memref<32x4096xf32, #tpu.memory_space<vmem>>, vector<32x4096xf32>
    %cst = arith.constant dense<0.000000e+00> : vector<4x4096xf32>
    %2 = tpu.matmul %0, %1, %cst {dimension_numbers = #tpu.dot_dimension_numbers<[1], [0], [0], [1], [0, 0, 1, 1], [], []>} : vector<4x32xf32>, vector<32x4096xf32>, vector<4x4096xf32> -> vector<4x4096xf32>
    %c0_3 = arith.constant 0 : index
    %c0_4 = arith.constant 0 : index
    %3 = vector.load %arg3[%c0_3, %c0_4] : memref<4x1xf32, #tpu.memory_space<vmem>>, vector<4x1xf32>
    %4 = vector.broadcast %3 : vector<4x1xf32> to vector<4x4096xf32>
    %5 = arith.addf %2, %4 : vector<4x4096xf32>
    %6 = arith.negf %5 : vector<4x4096xf32>
    %7 = math.exp %6 : vector<4x4096xf32>
    %cst_5 = arith.constant 1.000000e+00 : f32
    %8 = vector.broadcast %cst_5 : f32 to vector<4x4096xf32>
    %9 = arith.addf %8, %7 : vector<4x4096xf32>
    %10 = arith.divf %8, %9 : vector<4x4096xf32>
    %c0_6 = arith.constant 0 : index
    %c0_7 = arith.constant 0 : index
    %11 = vector.load %arg4[%c0_6, %c0_7] : memref<4x4096xf32, #tpu.memory_space<vmem>>, vector<4x4096xf32>
    tpu.vector_store %arg4[%c0_6, %c0_7], %10 {strides = array<i32>} : memref<4x4096xf32, #tpu.memory_space<vmem>>, vector<4x4096xf32>,
    return
  }
  func.func @transform_0(%arg0: i32) -> (i32, i32) {
    %c0_i32 = arith.constant 0 : i32
    %c0_i32_0 = arith.constant 0 : i32
    %c0_i32_1 = arith.constant 0 : i32
    return %c0_i32, %c0_i32_0 : i32, i32
  }
  func.func @transform_1(%arg0: i32) -> (i32, i32) {
    %c0_i32 = arith.constant 0 : i32
    %c0_i32_0 = arith.constant 0 : i32
    return %c0_i32, %arg0 : i32, i32
  }
  func.func @transform_2(%arg0: i32) -> (i32, i32) {
    %c0_i32 = arith.constant 0 : i32
    %c0_i32_0 = arith.constant 0 : i32
    %c0_i32_1 = arith.constant 0 : i32
    return %c0_i32, %c0_i32_0 : i32, i32
  }
  func.func @transform_3(%arg0: i32) -> (i32, i32) {
    %c0_i32 = arith.constant 0 : i32
    %c0_i32_0 = arith.constant 0 : i32
    return %c0_i32, %arg0 : i32, i32
  }
}

</mosaic_0001>

<bundles_post_ra>
// kernel: wifi_detector_forward.6
= control target key start
LH: loop header
LB: loop body
LE: loop exit
PB: predicated region body
PF: predicated region fallthrough
CT: control target
= control target key end

     0   :  { %8 = vsyncpa [#allocation3], 0  ;;  %s2057_s12 = smov 0   ;;  %s2059_s13 = smov 0   ;;  %s2542_s0 = inlined_call_operand.hbm [shape: f32[8,9], index: 0, kind: input, shape index: {}]   ;;  %s2543_s1 = inlined_call_operand.vmem [shape: f32[9,8192], index: 1, kind: input, shape index: {}]   ;;  %s2544_s2 = inlined_call_operand.vmem [shape: f32[8,1], index: 2, kind: input, shape index: {}]   ;;  %s2545_s3 = inlined_call_operand.vmem [shape: f32[8,8192], index: 3, kind: output, shape index: {}]  }
   0x1   :  { %s2061_s14 = smov 0  }
   0x2 LB: > { %s1778_s15 = sadd.s32 4294967295, %s2031_s14   ;;  %s2074_s16 = sadd.s32 1, %s2031_s14   ;;  %s2031_s14 = sphi %s2061_s14, %s2560_s14   ;;  %s2027_s13 = sphi %s2059_s13, %s2559_s13   ;;  %s2023_s12 = sphi %s2057_s12, %s2558_s12  }
   0x3   : > { %s39_s17 = ssub.s32 %s2031_s14, %s2074_s16  ;;  %s42_s18 = sadd.s32 1, %s2027_s13 }
   0x4   : > { %p40_p0 = scmp.eq.s32.totalorder %s39_s17, 0  ;;  %p49_p1 = scmp.ne.s32.totalorder %s2027_s13, %s2023_s12 }
   0x5   : > { %p50_p2 = scmp.eq.s32.totalorder %s2031_s14, 0  ;;  %p1780_p3 = scmp.ge.s32.totalorder %s2031_s14, 1 }
   0x6   : > { %s2084_s19 = scalar_select %p40_p0, %s2027_s13, %s42_s18  }
   0x7   : > { %p2086_p4 = por %p50_p2, %p49_p1  ;;  %p113_p5 = scmp.lt.s32.totalorder %s2031_s14, 3 }
   0x8   : > { %p2093_p6 = scmp.eq.s32.totalorder %s1778_s15, 0  ;;  %s2033_s23 = smov [#allocation2]  }
   0x9   : > { %s2549_s20 = scalar_select %p2086_p4, 1, 0 }
   0xa   : > { %s2550_s21 = scalar_select %p2093_p6, 1, 0 }
   0xb   : > { %p2097_p7 = pnand %p1780_p3, %p113_p5  ;;  %s126_s24 = sshll.u32 %s2033_s23, 4  ;;  %s127_s24 = int_to_ptr.vmem [resolvable:$true] %s126_s24 }
   0xc   : > { %s1977_s28 = scalar_lea.hbm %s2542_s0, 128 }
   0xd   : > { %s2551_s22 = scalar_select %p2097_p7, 1, 0 }
   0xe   : > { %p1942_p8 = pneg %p2097_p7  ;;  %p1978_p10 = scmp.ne.s32.totalorder %s2542_s0, %s1977_s28 }
   0xf   : > { %p1984_p0 = scmp.lt.u32.totalorder %s1977_s28, %s2542_s0 }
  0x10   : > { %p2105_p9 = pnand %p2093_p6, %p1942_p8 }
  0x12   : > { %p1979_p11 = pneg %p2105_p9 }
  0x14   : > { %p1980_p12 = pnand %p1979_p11, %p1978_p10 }
  0x16   : > { %p1981_p13 = pneg %p1980_p12 }
  0x18   : > { %p1986_p1 = pnand %p1984_p0, %p1981_p13 }
  0x1a   : > { %1989 = shalt.err (!%p1986_p1)
}
  0x1b   : > { %s1990_s6 = scalar_lea.vmem %s127_s24, 128  ;;  %p1998_p8 = scmp.lt.s32.totalorder %s127_s24, %s127_s24 }
  0x1c   : > { %p1991_p2 = scmp.ne.s32.totalorder %s127_s24, %s1990_s6  ;;  %p1999_p6 = scmp.lt.s32.totalorder %s1990_s6, %s1990_s6 }
  0x1e   : > { %p1993_p3 = pnand %p1991_p2, %p1979_p11  ;;  %p2000_p7 = por %p1999_p6, %p1998_p8 }
  0x20   : > { %p1994_p5 = pneg %p1993_p3 }
  0x22   : > { %p2001_p4 = pnand %p2000_p7, %p1994_p5 }
  0x24   : > { %2004 = shalt.err (!%p2001_p4)
}
  0x25   : > { %1945 = dma.hbm_to_vmem [thread:$0]  (!%p2105_p9), %s2542_s0, 128, %s127_s24, [#allocation3]  }
  0x26   : > { %p1782_p10 = scmp.ge.s32.totalorder %s2031_s14, 2 }
  0x27   : > { %p2553_p12 = scmp.ne.s32.totalorder (!%p1782_p10), %s2549_s20, 0 }
  0x28   : > { %136 = sbr.rel (%p1782_p10) target bundleno = 83 (0x53), region = 24 }
  0x2f   : > { %139 = sbr.rel (!%p2553_p12) target bundleno = 83 (0x53), region = 28  ;;  %s141_s9 = sand.u32 (%p2553_p12), 1, %s2027_s13  }
  0x30   : > { %s1841_s10 = sshll.u32 (%p2553_p12), %s2031_s14, 8  ;;  %s1783_s11 = sshll.u32 (%p2553_p12), %s141_s9, 9 }
  0x31   : > { %s2133_s23 = scalar_lea.vmem (%p2553_p12), %s2543_s1, %s1841_s10  ;;  %s2138_s20 = scalar_lea.vmem (%p2553_p12), [#allocation4], %s1783_s11 }
  0x32   : > { %v159_v0 = vld [vmem:[%s2133_s23] sm:$0xff] (%p2553_p12)  ;;  %v161_v1 = vld [vmem:[%s2133_s23 + $0x8] sm:$0xff] (%p2553_p12)  ;;  %v163_v2 = vld [vmem:[%s2133_s23 + $0x10] sm:$0xff] (%p2553_p12) }
  0x33   : > { %160 = vst [vmem:[%s2138_s20] sm:$0xff] (%p2553_p12), %v159_v0  ;;  %162 = vst [vmem:[%s2138_s20 + $0x8] sm:$0xff] (%p2553_p12), %v161_v1  ;;  %v165_v3 = vld [vmem:[%s2133_s23 + $0x18] sm:$0xff] (%p2553_p12)  ;;  %v167_v4 = vld [vmem:[%s2133_s23 + $0x20] sm:$0xff] (%p2553_p12) }
  0x34   : > { %164 = vst [vmem:[%s2138_s20 + $0x10] sm:$0xff] (%p2553_p12), %v163_v2  ;;  %v169_v5 = vld [vmem:[%s2133_s23 + $0x28] sm:$0xff] (%p2553_p12)  ;;  %166 = vst [vmem:[%s2138_s20 + $0x18] sm:$0xff] (%p2553_p12), %v165_v3  ;;  %v171_v6 = vld [vmem:[%s2133_s23 + $0x30] sm:$0xff] (%p2553_p12) }
  0x35   : > { %168 = vst [vmem:[%s2138_s20 + $0x20] sm:$0xff] (%p2553_p12), %v167_v4  ;;  %170 = vst [vmem:[%s2138_s20 + $0x28] sm:$0xff] (%p2553_p12), %v169_v5  ;;  %v173_v7 = vld [vmem:[%s2133_s23 + $0x38] sm:$0xff] (%p2553_p12)  ;;  %v175_v8 = vld [vmem:[%s2133_s23 + $0x40] sm:$0xff] (%p2553_p12) }
  0x36   : > { %172 = vst [vmem:[%s2138_s20 + $0x30] sm:$0xff] %v171_v6  ;;  %174 = vst [vmem:[%s2138_s20 + $0x38] sm:$0xff] %v173_v7  ;;  %v177_v9 = vld [vmem:[%s2133_s23 + $0x48] sm:$0xff]  ;;  %v179_v10 = vld [vmem:[%s2133_s23 + $0x50] sm:$0xff] }
  0x37   : > { %176 = vst [vmem:[%s2138_s20 + $0x40] sm:$0xff] %v175_v8  ;;  %v181_v11 = vld [vmem:[%s2133_s23 + $0x58] sm:$0xff]  ;;  %178 = vst [vmem:[%s2138_s20 + $0x48] sm:$0xff] %v177_v9  ;;  %v183_v12 = vld [vmem:[%s2133_s23 + $0x60] sm:$0xff] }
  0x38   : > { %180 = vst [vmem:[%s2138_s20 + $0x50] sm:$0xff] %v179_v10  ;;  %182 = vst [vmem:[%s2138_s20 + $0x58] sm:$0xff] %v181_v11  ;;  %v185_v13 = vld [vmem:[%s2133_s23 + $0x68] sm:$0xff]  ;;  %v187_v14 = vld [vmem:[%s2133_s23 + $0x70] sm:$0xff] }
  0x39   : > { %184 = vst [vmem:[%s2138_s20 + $0x60] sm:$0xff] %v183_v12  ;;  %186 = vst [vmem:[%s2138_s20 + $0x68] sm:$0xff] %v185_v13  ;;  %v189_v15 = vld [vmem:[%s2133_s23 + $0x78] sm:$0xff]  ;;  %v191_v16 = vld [vmem:[%s2133_s23 + $0x80] sm:$0xff] }
  0x3a   : > { %188 = vst [vmem:[%s2138_s20 + $0x70] sm:$0xff] %v187_v14  ;;  %v193_v17 = vld [vmem:[%s2133_s23 + $0x88] sm:$0xff]  ;;  %190 = vst [vmem:[%s2138_s20 + $0x78] sm:$0xff] %v189_v15  ;;  %v195_v18 = vld [vmem:[%s2133_s23 + $0x90] sm:$0xff] }
  0x3b   : > { %192 = vst [vmem:[%s2138_s20 + $0x80] sm:$0xff] %v191_v16  ;;  %194 = vst [vmem:[%s2138_s20 + $0x88] sm:$0xff] %v193_v17  ;;  %v197_v19 = vld [vmem:[%s2133_s23 + $0x98] sm:$0xff]  ;;  %v199_v20 = vld [vmem:[%s2133_s23 + $0xa0] sm:$0xff] }
  0x3c   : > { %196 = vst [vmem:[%s2138_s20 + $0x90] sm:$0xff] %v195_v18  ;;  %198 = vst [vmem:[%s2138_s20 + $0x98] sm:$0xff] %v197_v19  ;;  %v201_v21 = vld [vmem:[%s2133_s23 + $0xa8] sm:$0xff]  ;;  %v203_v22 = vld [vmem:[%s2133_s23 + $0xb0] sm:$0xff] }
  0x3d   : > { %200 = vst [vmem:[%s2138_s20 + $0xa0] sm:$0xff] %v199_v20  ;;  %v205_v23 = vld [vmem:[%s2133_s23 + $0xb8] sm:$0xff]  ;;  %202 = vst [vmem:[%s2138_s20 + $0xa8] sm:$0xff] %v201_v21  ;;  %v207_v24 = vld [vmem:[%s2133_s23 + $0xc0] sm:$0xff] }
  0x3e   : > { %204 = vst [vmem:[%s2138_s20 + $0xb0] sm:$0xff] %v203_v22  ;;  %206 = vst [vmem:[%s2138_s20 + $0xb8] sm:$0xff] %v205_v23  ;;  %v209_v25 = vld [vmem:[%s2133_s23 + $0xc8] sm:$0xff]  ;;  %v211_v26 = vld [vmem:[%s2133_s23 + $0xd0] sm:$0xff] }
  0x3f   : > { %208 = vst [vmem:[%s2138_s20 + $0xc0] sm:$0xff] %v207_v24  ;;  %210 = vst [vmem:[%s2138_s20 + $0xc8] sm:$0xff] %v209_v25  ;;  %v213_v27 = vld [vmem:[%s2133_s23 + $0xd8] sm:$0xff]  ;;  %v215_v28 = vld [vmem:[%s2133_s23 + $0xe0] sm:$0xff] }
  0x40   : > { %212 = vst [vmem:[%s2138_s20 + $0xd0] sm:$0xff] %v211_v26  ;;  %v217_v29 = vld [vmem:[%s2133_s23 + $0xe8] sm:$0xff]  ;;  %214 = vst [vmem:[%s2138_s20 + $0xd8] sm:$0xff] %v213_v27  ;;  %v219_v30 = vld [vmem:[%s2133_s23 + $0xf0] sm:$0xff] }
  0x41   : > { %216 = vst [vmem:[%s2138_s20 + $0xe0] sm:$0xff] %v215_v28  ;;  %218 = vst [vmem:[%s2138_s20 + $0xe8] sm:$0xff] %v217_v29  ;;  %v221_v31 = vld [vmem:[%s2133_s23 + $0xf8] sm:$0xff]  ;;  %v223_v32 = vld [vmem:[%s2133_s23 + $0x200] sm:$0xff] }
  0x42   : > { %220 = vst [vmem:[%s2138_s20 + $0xf0] sm:$0xff] %v219_v30  ;;  %222 = vst [vmem:[%s2138_s20 + $0xf8] sm:$0xff] %v221_v31  ;;  %v225_v33 = vld [vmem:[%s2133_s23 + $0x208] sm:$0xff]  ;;  %v227_v34 = vld [vmem:[%s2133_s23 + $0x210] sm:$0xff] }
  0x43   : > { %224 = vst [vmem:[%s2138_s20 + $0x100] sm:$0xff] %v223_v32  ;;  %v229_v35 = vld [vmem:[%s2133_s23 + $0x218] sm:$0xff]  ;;  %226 = vst [vmem:[%s2138_s20 + $0x108] sm:$0xff] %v225_v33  ;;  %v231_v36 = vld [vmem:[%s2133_s23 + $0x220] sm:$0xff] }
  0x44   : > { %228 = vst [vmem:[%s2138_s20 + $0x110] sm:$0xff] %v227_v34  ;;  %230 = vst [vmem:[%s2138_s20 + $0x118] sm:$0xff] %v229_v35  ;;  %v233_v37 = vld [vmem:[%s2133_s23 + $0x228] sm:$0xff]  ;;  %v235_v38 = vld [vmem:[%s2133_s23 + $0x230] sm:$0xff] }
  0x45   : > { %232 = vst [vmem:[%s2138_s20 + $0x120] sm:$0xff] %v231_v36  ;;  %234 = vst [vmem:[%s2138_s20 + $0x128] sm:$0xff] %v233_v37  ;;  %v237_v39 = vld [vmem:[%s2133_s23 + $0x238] sm:$0xff]  ;;  %v239_v40 = vld [vmem:[%s2133_s23 + $0x240] sm:$0xff] }
  0x46   : > { %236 = vst [vmem:[%s2138_s20 + $0x130] sm:$0xff] %v235_v38  ;;  %v241_v41 = vld [vmem:[%s2133_s23 + $0x248] sm:$0xff]  ;;  %238 = vst [vmem:[%s2138_s20 + $0x138] sm:$0xff] %v237_v39  ;;  %v243_v42 = vld [vmem:[%s2133_s23 + $0x250] sm:$0xff] }
  0x47   : > { %240 = vst [vmem:[%s2138_s20 + $0x140] sm:$0xff] %v239_v40  ;;  %242 = vst [vmem:[%s2138_s20 + $0x148] sm:$0xff] %v241_v41  ;;  %v245_v43 = vld [vmem:[%s2133_s23 + $0x258] sm:$0xff]  ;;  %v247_v44 = vld [vmem:[%s2133_s23 + $0x260] sm:$0xff] }
  0x48   : > { %244 = vst [vmem:[%s2138_s20 + $0x150] sm:$0xff] %v243_v42  ;;  %246 = vst [vmem:[%s2138_s20 + $0x158] sm:$0xff] %v245_v43  ;;  %v249_v45 = vld [vmem:[%s2133_s23 + $0x268] sm:$0xff]  ;;  %v251_v46 = vld [vmem:[%s2133_s23 + $0x270] sm:$0xff] }
  0x49   : > { %248 = vst [vmem:[%s2138_s20 + $0x160] sm:$0xff] %v247_v44  ;;  %v253_v47 = vld [vmem:[%s2133_s23 + $0x278] sm:$0xff]  ;;  %250 = vst [vmem:[%s2138_s20 + $0x168] sm:$0xff] %v249_v45  ;;  %v255_v48 = vld [vmem:[%s2133_s23 + $0x280] sm:$0xff] }
  0x4a   : > { %252 = vst [vmem:[%s2138_s20 + $0x170] sm:$0xff] %v251_v46  ;;  %254 = vst [vmem:[%s2138_s20 + $0x178] sm:$0xff] %v253_v47  ;;  %v257_v49 = vld [vmem:[%s2133_s23 + $0x288] sm:$0xff]  ;;  %v259_v50 = vld [vmem:[%s2133_s23 + $0x290] sm:$0xff] }
  0x4b   : > { %256 = vst [vmem:[%s2138_s20 + $0x180] sm:$0xff] %v255_v48  ;;  %258 = vst [vmem:[%s2138_s20 + $0x188] sm:$0xff] %v257_v49  ;;  %v261_v51 = vld [vmem:[%s2133_s23 + $0x298] sm:$0xff]  ;;  %v263_v52 = vld [vmem:[%s2133_s23 + $0x2a0] sm:$0xff] }
  0x4c   : > { %260 = vst [vmem:[%s2138_s20 + $0x190] sm:$0xff] %v259_v50  ;;  %v265_v53 = vld [vmem:[%s2133_s23 + $0x2a8] sm:$0xff]  ;;  %262 = vst [vmem:[%s2138_s20 + $0x198] sm:$0xff] %v261_v51  ;;  %v267_v54 = vld [vmem:[%s2133_s23 + $0x2b0] sm:$0xff] }
  0x4d   : > { %264 = vst [vmem:[%s2138_s20 + $0x1a0] sm:$0xff] %v263_v52  ;;  %266 = vst [vmem:[%s2138_s20 + $0x1a8] sm:$0xff] %v265_v53  ;;  %v269_v55 = vld [vmem:[%s2133_s23 + $0x2b8] sm:$0xff]  ;;  %v271_v56 = vld [vmem:[%s2133_s23 + $0x2c0] sm:$0xff] }
  0x4e   : > { %268 = vst [vmem:[%s2138_s20 + $0x1b0] sm:$0xff] %v267_v54  ;;  %270 = vst [vmem:[%s2138_s20 + $0x1b8] sm:$0xff] %v269_v55  ;;  %v273_v57 = vld [vmem:[%s2133_s23 + $0x2c8] sm:$0xff]  ;;  %v275_v58 = vld [vmem:[%s2133_s23 + $0x2d0] sm:$0xff] }
  0x4f   : > { %272 = vst [vmem:[%s2138_s20 + $0x1c0] sm:$0xff] %v271_v56  ;;  %v277_v59 = vld [vmem:[%s2133_s23 + $0x2d8] sm:$0xff]  ;;  %274 = vst [vmem:[%s2138_s20 + $0x1c8] sm:$0xff] %v273_v57  ;;  %v279_v60 = vld [vmem:[%s2133_s23 + $0x2e0] sm:$0xff] }
  0x50   : > { %276 = vst [vmem:[%s2138_s20 + $0x1d0] sm:$0xff] %v275_v58  ;;  %278 = vst [vmem:[%s2138_s20 + $0x1d8] sm:$0xff] %v277_v59  ;;  %v281_v61 = vld [vmem:[%s2133_s23 + $0x2e8] sm:$0xff]  ;;  %v283_v62 = vld [vmem:[%s2133_s23 + $0x2f0] sm:$0xff] }
  0x51   : > { %280 = vst [vmem:[%s2138_s20 + $0x1e0] sm:$0xff] %v279_v60  ;;  %282 = vst [vmem:[%s2138_s20 + $0x1e8] sm:$0xff] %v281_v61  ;;  %v285_v63 = vld [vmem:[%s2133_s23 + $0x2f8] sm:$0xff] }
  0x52   : > { %284 = vst [vmem:[%s2138_s20 + $0x1f0] sm:$0xff] %v283_v62  ;;  %286 = vst [vmem:[%s2138_s20 + $0x1f8] sm:$0xff] %v285_v63 }
  0x53 PF: > { %p2554_p4 = scmp.ne.s32.totalorder %s2551_s22, 0 }
  0x54   : > { %p2555_p6 = scmp.ne.s32.totalorder (!%p2554_p4), %s2550_s21, 0 }
  0x55   : > { %295 = sbr.rel (%p2554_p4) target bundleno = 351 (0x15f), region = 51 }
  0x5c   : > { %2018 = dma.done.wait (%p2555_p6), [#allocation3], 128  }
  0x5d   : > { %2020 = vsyncadd (%p2555_p6), [#allocation3], 4294967168  ;;  %s302_s24 = sand.u32 1, %s2023_s12   ;;  %v2034_v0 = vmov 0.0   ;;  %v2035_v1 = vmov 0   ;;  %vm407_vm0 = vcmask 1040384  }
  0x5e   : > { %s1788_s25 = sshll.u32 %s302_s24, 9  ;;  %568 = vmatprep.mubr.f32.mxu0 %v2034_v0  ;;  %639 = vmatprep.mubr.f32.mxu1 %v2034_v0  ;;  %vm2036_vm1 = vmmov 1   ;;  %v2288_v14 = vld [vmem:[#allocation2] sm:$0xff]  ;;  %vm403_vm3 = vcmask 72704   ;;  %s1789_s26 = sshll.u32 %s1778_s15, 5 }
  0x5f   : > { %1976 = vset.pattern.permute.xlu0 %v2035_v1  ;;  %vm2274_vm2 = vmpackc.low %vm407_vm0, %vm2036_vm1  ;;  %s2278_s22 = scalar_lea.vmem [#allocation4], %s1788_s25  ;;  %p327_p7 = scmp.lt.s32.totalorder %s1789_s26, 63 }
  0x60   : > { %v334_v3 = vld [vmem:[%s2278_s22 + $0x8] sm:$0xff]  ;;  %v336_v5 = vld [vmem:[%s2278_s22 + $0x18] sm:$0xff]  ;;  %v333_v8 = vld [vmem:[%s2278_s22] sm:$0xff] }
  0x61   : > { %v366_v4 = vld [vmem:[%s2278_s22 + $0x108] sm:$0x1]  ;;  %v368_v7 = vld [vmem:[%s2278_s22 + $0x118] sm:$0x1]  ;;  %v365_v9 = vld [vmem:[%s2278_s22 + $0x100] sm:$0x1] }
  0x62   : > { %v1842_v6 = vpack.c.bf16 %v366_v4, %v334_v3  ;;  %v1848_v10 = vpack.c.bf16 %v368_v7, %v336_v5  ;;  %v1845_v11 = vpack.c.bf16 %v365_v9, %v333_v8  ;;  %v335_v12 = vld [vmem:[%s2278_s22 + $0x10] sm:$0xff]  ;;  %v338_v16 = vld [vmem:[%s2278_s22 + $0x28] sm:$0xff]  ;;  %v340_v18 = vld [vmem:[%s2278_s22 + $0x38] sm:$0xff]  ;;  %s2562_s26 = smov (!%p327_p7, %s1789_s26), 63 }
  0x63   : > { %v367_v13 = vld [vmem:[%s2278_s22 + $0x110] sm:$0x1]  ;;  %v370_v17 = vld [vmem:[%s2278_s22 + $0x128] sm:$0x1]  ;;  %v372_v20 = vld [vmem:[%s2278_s22 + $0x138] sm:$0x1] }
  0x64   : > { %1844 = vmatprep.subr.msk.bf16.mxu0 %vm2274_vm2, %v1842_v6  ;;  %v1851_v15 = vpack.c.bf16 %v367_v13, %v335_v12  ;;  %1850 = vmatprep.subr.msk.bf16.mxu1 %vm2274_vm2, %v1848_v10  ;;  %v1854_v19 = vpack.c.bf16 %v370_v17, %v338_v16  ;;  %v337_v21 = vld [vmem:[%s2278_s22 + $0x20] sm:$0xff]  ;;  %v1860_v23 = vpack.c.bf16 %v372_v20, %v340_v18  ;;  %v339_v25 = vld [vmem:[%s2278_s22 + $0x30] sm:$0xff]  ;;  %v342_v27 = vld [vmem:[%s2278_s22 + $0x48] sm:$0xff]  ;;  %s1790_s27 = sshll.u32 %s2562_s26, 3 }
  0x65   : > { %1847 = vmatpush1.bf16.msk.msra.mxu0 %vm2274_vm2, %v1845_v11  ;;  %v369_v22 = vld [vmem:[%s2278_s22 + $0x120] sm:$0x1]  ;;  %v371_v26 = vld [vmem:[%s2278_s22 + $0x130] sm:$0x1]  ;;  %v374_v29 = vld [vmem:[%s2278_s22 + $0x148] sm:$0x1]  ;;  %s2467_s30 = scalar_lea.vmem %s2545_s3, %s1790_s27 }
  0x66   : > { %1853 = vmatpush1.bf16.msk.msra.mxu1 %vm2274_vm2, %v1851_v15  ;;  %v1857_v24 = vpack.c.bf16 %v369_v22, %v337_v21  ;;  %1856 = vmatprep.subr.msk.bf16.mxu0 %vm2274_vm2, %v1854_v19  ;;  %v1863_v28 = vpack.c.bf16 %v371_v26, %v339_v25  ;;  %v344_v30 = vld [vmem:[%s2278_s22 + $0x58] sm:$0xff]  ;;  %v1866_v32 = vpack.c.bf16 %v374_v29, %v342_v27  ;;  %v341_v34 = vld [vmem:[%s2278_s22 + $0x40] sm:$0xff]  ;;  %v343_v36 = vld [vmem:[%s2278_s22 + $0x50] sm:$0xff] }
  0x67   : > { %v376_v31 = vld [vmem:[%s2278_s22 + $0x158] sm:$0x1]  ;;  %1862 = vmatprep.subr.msk.bf16.mxu1 %vm2274_vm2, %v1860_v23  ;;  %v373_v35 = vld [vmem:[%s2278_s22 + $0x140] sm:$0x1]  ;;  %v375_v38 = vld [vmem:[%s2278_s22 + $0x150] sm:$0x1] }
  0x68   : > { %1793 = vmatmul.mubr.msk.f32.vlgmr.msra.gmra.mrb[0].mxu0 %vm403_vm3, %v2288_v14  ;;  %v1872_v33 = vpack.c.bf16 %v376_v31, %v344_v30  ;;  %v1869_v37 = vpack.c.bf16 %v373_v35, %v341_v34  ;;  %v346_v39 = vld [vmem:[%s2278_s22 + $0x68] sm:$0xff]  ;;  %v1875_v41 = vpack.c.bf16 %v375_v38, %v343_v36  ;;  %v348_v42 = vld [vmem:[%s2278_s22 + $0x78] sm:$0xff]  ;;  %v345_v44 = vld [vmem:[%s2278_s22 + $0x60] sm:$0xff] }
  0x69   : > { %1796 = vmatmul.mubr.msk.f32.vlgmr.msra.gmra.mrb[0].mxu1 %vm403_vm3, %v2288_v14  ;;  %1859 = vmatpush1.bf16.msk.msra.mxu0 %vm2274_vm2, %v1857_v24  ;;  %v378_v40 = vld [vmem:[%s2278_s22 + $0x168] sm:$0x1]  ;;  %v380_v43 = vld [vmem:[%s2278_s22 + $0x178] sm:$0x1]  ;;  %v377_v46 = vld [vmem:[%s2278_s22 + $0x160] sm:$0x1] }
  0x6a   : > { %1865 = vmatpush1.bf16.msk.msra.mxu1 %vm2274_vm2, %v1863_v28  ;;  %710 = vmatprep.mubr.f32.mxu0 %v2034_v0  ;;  %v1878_v45 = vpack.c.bf16 %v378_v40, %v346_v39  ;;  %v347_v47 = vld [vmem:[%s2278_s22 + $0x70] sm:$0xff]  ;;  %v1884_v49 = vpack.c.bf16 %v380_v43, %v348_v42  ;;  %v350_v50 = vld [vmem:[%s2278_s22 + $0x88] sm:$0xff]  ;;  %v1881_v52 = vpack.c.bf16 %v377_v46, %v345_v44  ;;  %v352_v53 = vld [vmem:[%s2278_s22 + $0x98] sm:$0xff] }
  0x6b   : > { %781 = vmatprep.mubr.f32.mxu1 %v2034_v0  ;;  %1868 = vmatprep.subr.msk.bf16.mxu0 %vm2274_vm2, %v1866_v32  ;;  %v379_v48 = vld [vmem:[%s2278_s22 + $0x170] sm:$0x1]  ;;  %v382_v51 = vld [vmem:[%s2278_s22 + $0x188] sm:$0x1]  ;;  %v384_v54 = vld [vmem:[%s2278_s22 + $0x198] sm:$0x1] }
  0x6c   : > { %1799 = vmatmul.mubr.msk.f32.vlgmr.msra.gmra.mrb[2].mxu0 %vm403_vm3, %v2288_v14  ;;  %1874 = vmatprep.subr.msk.bf16.mxu1 %vm2274_vm2, %v1872_v33  ;;  %v1887_v55 = vpack.c.bf16 %v379_v48, %v347_v47  ;;  %v349_v56 = vld [vmem:[%s2278_s22 + $0x80] sm:$0xff]  ;;  %v1890_v58 = vpack.c.bf16 %v382_v51, %v350_v50  ;;  %v351_v59 = vld [vmem:[%s2278_s22 + $0x90] sm:$0xff]  ;;  %v1896_v61 = vpack.c.bf16 %v384_v54, %v352_v53  ;;  %v354_v62 = vld [vmem:[%s2278_s22 + $0xa8] sm:$0xff] }
  0x6d   : > { %1802 = vmatmul.mubr.msk.f32.vlgmr.msra.gmra.mrb[2].mxu1 %vm403_vm3, %v2288_v14  ;;  %1871 = vmatpush1.bf16.msk.msra.mxu0 %vm2274_vm2, %v1869_v37  ;;  %v381_v57 = vld [vmem:[%s2278_s22 + $0x180] sm:$0x1]  ;;  %v383_v60 = vld [vmem:[%s2278_s22 + $0x190] sm:$0x1]  ;;  %v386_v63 = vld [vmem:[%s2278_s22 + $0x1a8] sm:$0x1] }
  0x6e   : > { %1877 = vmatpush1.bf16.msk.msra.mxu1 %vm2274_vm2, %v1875_v41  ;;  %852 = vmatprep.mubr.f32.mxu0 %v2034_v0  ;;  %v1893_v1 = vpack.c.bf16 %v381_v57, %v349_v56  ;;  %v356_v3 = vld [vmem:[%s2278_s22 + $0xb8] sm:$0xff]  ;;  %v1899_v5 = vpack.c.bf16 %v383_v60, %v351_v59  ;;  %v353_v6 = vld [vmem:[%s2278_s22 + $0xa0] sm:$0xff]  ;;  %v1902_v8 = vpack.c.bf16 %v386_v63, %v354_v62  ;;  %v355_v9 = vld [vmem:[%s2278_s22 + $0xb0] sm:$0xff] }
  0x6f   : > { %923 = vmatprep.mubr.f32.mxu1 %v2034_v0  ;;  %1880 = vmatprep.subr.msk.bf16.mxu0 %vm2274_vm2, %v1878_v45  ;;  %v388_v4 = vld [vmem:[%s2278_s22 + $0x1b8] sm:$0x1]  ;;  %v385_v7 = vld [vmem:[%s2278_s22 + $0x1a0] sm:$0x1]  ;;  %v387_v10 = vld [vmem:[%s2278_s22 + $0x1b0] sm:$0x1] }
  0x70   : > { %1805 = vmatmul.mubr.msk.f32.vlgmr.msra.gmra.mrb[4].mxu0 %vm403_vm3, %v2288_v14  ;;  %1886 = vmatprep.subr.msk.bf16.mxu1 %vm2274_vm2, %v1884_v49  ;;  %v1908_v11 = vpack.c.bf16 %v388_v4, %v356_v3  ;;  %v358_v12 = vld [vmem:[%s2278_s22 + $0xc8] sm:$0xff]  ;;  %v1905_v15 = vpack.c.bf16 %v385_v7, %v353_v6  ;;  %v360_v16 = vld [vmem:[%s2278_s22 + $0xd8] sm:$0xff]  ;;  %v1911_v18 = vpack.c.bf16 %v387_v10, %v355_v9  ;;  %v357_v19 = vld [vmem:[%s2278_s22 + $0xc0] sm:$0xff] }
  0x71   : > { %1808 = vmatmul.mubr.msk.f32.vlgmr.msra.gmra.mrb[4].mxu1 %vm403_vm3, %v2288_v14  ;;  %1883 = vmatpush1.bf16.msk.msra.mxu0 %vm2274_vm2, %v1881_v52  ;;  %v390_v13 = vld [vmem:[%s2278_s22 + $0x1c8] sm:$0x1]  ;;  %v392_v17 = vld [vmem:[%s2278_s22 + $0x1d8] sm:$0x1]  ;;  %v389_v20 = vld [vmem:[%s2278_s22 + $0x1c0] sm:$0x1] }
  0x72   : > { %1889 = vmatpush1.bf16.msk.msra.mxu1 %vm2274_vm2, %v1887_v55  ;;  %994 = vmatprep.mubr.f32.mxu0 %v2034_v0  ;;  %v1914_v21 = vpack.c.bf16 %v390_v13, %v358_v12  ;;  %v359_v22 = vld [vmem:[%s2278_s22 + $0xd0] sm:$0xff]  ;;  %v1920_v24 = vpack.c.bf16 %v392_v17, %v360_v16  ;;  %v362_v25 = vld [vmem:[%s2278_s22 + $0xe8] sm:$0xff]  ;;  %v1917_v27 = vpack.c.bf16 %v389_v20, %v357_v19  ;;  %v364_v28 = vld [vmem:[%s2278_s22 + $0xf8] sm:$0xff] }
  0x73   : > { %1065 = vmatprep.mubr.f32.mxu1 %v2034_v0  ;;  %1892 = vmatprep.subr.msk.bf16.mxu0 %vm2274_vm2, %v1890_v58  ;;  %v391_v23 = vld [vmem:[%s2278_s22 + $0x1d0] sm:$0x1]  ;;  %v394_v26 = vld [vmem:[%s2278_s22 + $0x1e8] sm:$0x1]  ;;  %v396_v29 = vld [vmem:[%s2278_s22 + $0x1f8] sm:$0x1] }
  0x74   : > { %1811 = vmatmul.mubr.msk.f32.vlgmr.msra.gmra.mrb[6].mxu0 %vm403_vm3, %v2288_v14  ;;  %1898 = vmatprep.subr.msk.bf16.mxu1 %vm2274_vm2, %v1896_v61  ;;  %v1923_v30 = vpack.c.bf16 %v391_v23, %v359_v22  ;;  %v361_v31 = vld [vmem:[%s2278_s22 + $0xe0] sm:$0xff]  ;;  %v1926_v33 = vpack.c.bf16 %v394_v26, %v362_v25  ;;  %v363_v34 = vld [vmem:[%s2278_s22 + $0xf0] sm:$0xff]  ;;  %v1932_v36 = vpack.c.bf16 %v396_v29, %v364_v28  ;;  %v397_v39 = vld [vmem:[%s2544_s2] sm:$0xff] }
  0x75   : > { %1814 = vmatmul.mubr.msk.f32.vlgmr.msra.gmra.mrb[6].mxu1 %vm403_vm3, %v2288_v14  ;;  %1895 = vmatpush1.bf16.msk.msra.mxu0 %vm2274_vm2, %v1893_v1  ;;  %v393_v32 = vld [vmem:[%s2278_s22 + $0x1e0] sm:$0x1]  ;;  %v395_v35 = vld [vmem:[%s2278_s22 + $0x1f0] sm:$0x1] }
  0x76   : > { %1901 = vmatpush1.bf16.msk.msra.mxu1 %vm2274_vm2, %v1899_v5  ;;  %1136 = vmatprep.mubr.f32.mxu0 %v2034_v0  ;;  %v1929_v37 = vpack.c.bf16 %v393_v32, %v361_v31  ;;  %v1935_v38 = vpack.c.bf16 %v395_v35, %v363_v34 }
  0x77   : > { %1207 = vmatprep.mubr.f32.mxu1 %v2034_v0  ;;  %1904 = vmatprep.subr.msk.bf16.mxu0 %vm2274_vm2, %v1902_v8 }
  0x78   : > { %1817 = vmatmul.mubr.msk.f32.vlgmr.msra.gmra.mrb[8].mxu0 %vm403_vm3, %v2288_v14  ;;  %1910 = vmatprep.subr.msk.bf16.mxu1 %vm2274_vm2, %v1908_v11 }
  0x79   : > { %1820 = vmatmul.mubr.msk.f32.vlgmr.msra.gmra.mrb[8].mxu1 %vm403_vm3, %v2288_v14  ;;  %1907 = vmatpush1.bf16.msk.msra.mxu0 %vm2274_vm2, %v1905_v15 }
  0x7a   : > { %1913 = vmatpush1.bf16.msk.msra.mxu1 %vm2274_vm2, %v1911_v18  ;;  %1278 = vmatprep.mubr.f32.mxu0 %v2034_v0 }
  0x7b   : > { %1349 = vmatprep.mubr.f32.mxu1 %v2034_v0  ;;  %1916 = vmatprep.subr.msk.bf16.mxu0 %vm2274_vm2, %v1914_v21 }
  0x7c   : > { %1823 = vmatmul.mubr.msk.f32.vlgmr.msra.gmra.mrb[10].mxu0 %vm403_vm3, %v2288_v14  ;;  %1922 = vmatprep.subr.msk.bf16.mxu1 %vm2274_vm2, %v1920_v24 }
  0x7d   : > { %1826 = vmatmul.mubr.msk.f32.vlgmr.msra.gmra.mrb[10].mxu1 %vm403_vm3, %v2288_v14  ;;  %1919 = vmatpush1.bf16.msk.msra.mxu0 %vm2274_vm2, %v1917_v27 }
  0x7e   : > { %1925 = vmatpush1.bf16.msk.msra.mxu1 %vm2274_vm2, %v1923_v30  ;;  %1420 = vmatprep.mubr.f32.mxu0 %v2034_v0 }
  0x7f   : > { %1491 = vmatprep.mubr.f32.mxu1 %v2034_v0  ;;  %1928 = vmatprep.subr.msk.bf16.mxu0 %vm2274_vm2, %v1926_v33 }
  0x80   : > { %1829 = vmatmul.mubr.msk.f32.vlgmr.msra.gmra.mrb[12].mxu0 %vm403_vm3, %v2288_v14  ;;  %1934 = vmatprep.subr.msk.bf16.mxu1 %vm2274_vm2, %v1932_v36 }
  0x81   : > { %1832 = vmatmul.mubr.msk.f32.vlgmr.msra.gmra.mrb[12].mxu1 %vm403_vm3, %v2288_v14  ;;  %1931 = vmatpush1.bf16.msk.msra.mxu0 %vm2274_vm2, %v1929_v37 }
  0x82   : > { %1937 = vmatpush1.bf16.msk.msra.mxu1 %vm2274_vm2, %v1935_v38  ;;  %1562 = vmatprep.mubr.f32.mxu0 %v2034_v0 }
  0x83   : > { %1633 = vmatprep.mubr.f32.mxu1 %v2034_v0  ;;  %400 = vperm.xlu0 %1976, %v397_v39  }
  0x84   : > { %1835 = vmatmul.mubr.msk.f32.vlgmr.msra.gmra.mrb[14].mxu0 %vm403_vm3, %v2288_v14 }
  0x85   : > { %1838 = vmatmul.mubr.msk.f32.vlgmr.msra.gmra.mrb[14].mxu1 %vm403_vm3, %v2288_v14 }
 0x102   : > { %v2461_v40 = vpop.permute.xlu0 %400 }
 0x13b   : > { %v570_v2 = vpop.f32.mrb[0].mxu0 }
 0x13c   : > { %v641_v41 = vpop.f32.mrb[0].mxu1  ;;  %v571_v42 = vadd.f32 %v570_v2, %v2461_v40  ;;  %v572_v43 = vpop.f32.mrb[1].mxu0 }
 0x13d   : > { %v642_v0 = vadd.f32 %v641_v41, %v2461_v40  ;;  %v573_v14 = vadd.f32 %v572_v43, %v2461_v40  ;;  %v643_v44 = vpop.f32.mrb[1].mxu1 }
 0x13e   : > { %v1640_v45 = vmax.f32 %v571_v42, 0.0  ;;  %v644_v46 = vadd.f32 %v643_v44, %v2461_v40 }
 0x13f   : > { %v1642_v47 = vmax.f32 %v642_v0, 0.0  ;;  %v1641_v48 = vmax.f32 %v573_v14, 0.0  ;;  %v712_v49 = vpop.f32.mrb[2].mxu0 }
 0x140   : > { %1672 = vst [vmem:[%s2467_s30] sm:$0xff] %v1640_v45  ;;  %v1643_v50 = vmax.f32 %v644_v46, 0.0  ;;  %v713_v51 = vadd.f32 %v712_v49, %v2461_v40  ;;  %v783_v52 = vpop.f32.mrb[2].mxu1  ;;  %v714_v53 = vpop.f32.mrb[3].mxu0 }
 0x141   : > { %1674 = vst [vmem:[%s2467_s30 + $0x10] sm:$0xff] %v1642_v47  ;;  %1673 = vst [vmem:[%s2467_s30 + $0x8] sm:$0xff] %v1641_v48  ;;  %v784_v54 = vadd.f32 %v783_v52, %v2461_v40  ;;  %v715_v55 = vadd.f32 %v714_v53, %v2461_v40  ;;  %v785_v56 = vpop.f32.mrb[3].mxu1 }
 0x142   : > { %1675 = vst [vmem:[%s2467_s30 + $0x18] sm:$0xff] %v1643_v50  ;;  %v1644_v57 = vmax.f32 %v713_v51, 0.0  ;;  %v786_v58 = vadd.f32 %v785_v56, %v2461_v40 }
 0x143   : > { %v1646_v59 = vmax.f32 %v784_v54, 0.0  ;;  %v1645_v60 = vmax.f32 %v715_v55, 0.0  ;;  %v854_v61 = vpop.f32.mrb[4].mxu0 }
 0x144   : > { %1676 = vst [vmem:[%s2467_s30 + $0x20] sm:$0xff] %v1644_v57  ;;  %v1647_v62 = vmax.f32 %v786_v58, 0.0  ;;  %v855_v63 = vadd.f32 %v854_v61, %v2461_v40  ;;  %v925_v1 = vpop.f32.mrb[4].mxu1  ;;  %v856_v3 = vpop.f32.mrb[5].mxu0 }
 0x145   : > { %1678 = vst [vmem:[%s2467_s30 + $0x30] sm:$0xff] %v1646_v59  ;;  %1677 = vst [vmem:[%s2467_s30 + $0x28] sm:$0xff] %v1645_v60  ;;  %v926_v4 = vadd.f32 %v925_v1, %v2461_v40  ;;  %v857_v5 = vadd.f32 %v856_v3, %v2461_v40  ;;  %v927_v6 = vpop.f32.mrb[5].mxu1 }
 0x146   : > { %1679 = vst [vmem:[%s2467_s30 + $0x38] sm:$0xff] %v1647_v62  ;;  %v1648_v7 = vmax.f32 %v855_v63, 0.0  ;;  %v928_v8 = vadd.f32 %v927_v6, %v2461_v40 }
 0x147   : > { %v1650_v9 = vmax.f32 %v926_v4, 0.0  ;;  %v1649_v10 = vmax.f32 %v857_v5, 0.0  ;;  %v996_v11 = vpop.f32.mrb[6].mxu0 }
 0x148   : > { %1680 = vst [vmem:[%s2467_s30 + $0x40] sm:$0xff] %v1648_v7  ;;  %v1651_v12 = vmax.f32 %v928_v8, 0.0  ;;  %v997_v13 = vadd.f32 %v996_v11, %v2461_v40  ;;  %v1067_v15 = vpop.f32.mrb[6].mxu1  ;;  %v998_v16 = vpop.f32.mrb[7].mxu0 }
 0x149   : > { %1682 = vst [vmem:[%s2467_s30 + $0x50] sm:$0xff] %v1650_v9  ;;  %1681 = vst [vmem:[%s2467_s30 + $0x48] sm:$0xff] %v1649_v10  ;;  %v1068_v17 = vadd.f32 %v1067_v15, %v2461_v40  ;;  %v999_v18 = vadd.f32 %v998_v16, %v2461_v40  ;;  %v1069_v19 = vpop.f32.mrb[7].mxu1 }
 0x14a   : > { %1683 = vst [vmem:[%s2467_s30 + $0x58] sm:$0xff] %v1651_v12  ;;  %v1652_v20 = vmax.f32 %v997_v13, 0.0  ;;  %v1070_v21 = vadd.f32 %v1069_v19, %v2461_v40 }
 0x14b   : > { %v1654_v22 = vmax.f32 %v1068_v17, 0.0  ;;  %v1653_v23 = vmax.f32 %v999_v18, 0.0  ;;  %v1138_v24 = vpop.f32.mrb[8].mxu0 }
 0x14c   : > { %1684 = vst [vmem:[%s2467_s30 + $0x60] sm:$0xff] %v1652_v20  ;;  %v1655_v25 = vmax.f32 %v1070_v21, 0.0  ;;  %v1139_v26 = vadd.f32 %v1138_v24, %v2461_v40  ;;  %v1209_v27 = vpop.f32.mrb[8].mxu1  ;;  %v1140_v28 = vpop.f32.mrb[9].mxu0 }
 0x14d   : > { %1686 = vst [vmem:[%s2467_s30 + $0x70] sm:$0xff] %v1654_v22  ;;  %1685 = vst [vmem:[%s2467_s30 + $0x68] sm:$0xff] %v1653_v23  ;;  %v1210_v29 = vadd.f32 %v1209_v27, %v2461_v40  ;;  %v1141_v30 = vadd.f32 %v1140_v28, %v2461_v40  ;;  %v1211_v31 = vpop.f32.mrb[9].mxu1 }
 0x14e   : > { %1687 = vst [vmem:[%s2467_s30 + $0x78] sm:$0xff] %v1655_v25  ;;  %v1656_v32 = vmax.f32 %v1139_v26, 0.0  ;;  %v1212_v33 = vadd.f32 %v1211_v31, %v2461_v40 }
 0x14f   : > { %v1658_v34 = vmax.f32 %v1210_v29, 0.0  ;;  %v1657_v35 = vmax.f32 %v1141_v30, 0.0  ;;  %v1280_v36 = vpop.f32.mrb[10].mxu0 }
 0x150   : > { %1688 = vst [vmem:[%s2467_s30 + $0x80] sm:$0xff] %v1656_v32  ;;  %v1659_v37 = vmax.f32 %v1212_v33, 0.0  ;;  %v1281_v38 = vadd.f32 %v1280_v36, %v2461_v40  ;;  %v1351_v39 = vpop.f32.mrb[10].mxu1  ;;  %v1282_v2 = vpop.f32.mrb[11].mxu0 }
 0x151   : > { %1690 = vst [vmem:[%s2467_s30 + $0x90] sm:$0xff] %v1658_v34  ;;  %1689 = vst [vmem:[%s2467_s30 + $0x88] sm:$0xff] %v1657_v35  ;;  %v1352_v41 = vadd.f32 %v1351_v39, %v2461_v40  ;;  %v1283_v42 = vadd.f32 %v1282_v2, %v2461_v40  ;;  %v1353_v43 = vpop.f32.mrb[11].mxu1 }
 0x152   : > { %1691 = vst [vmem:[%s2467_s30 + $0x98] sm:$0xff] %v1659_v37  ;;  %v1660_v0 = vmax.f32 %v1281_v38, 0.0  ;;  %v1354_v14 = vadd.f32 %v1353_v43, %v2461_v40 }
 0x153   : > { %v1662_v44 = vmax.f32 %v1352_v41, 0.0  ;;  %v1661_v45 = vmax.f32 %v1283_v42, 0.0  ;;  %v1422_v46 = vpop.f32.mrb[12].mxu0 }
 0x154   : > { %1692 = vst [vmem:[%s2467_s30 + $0xa0] sm:$0xff] %v1660_v0  ;;  %v1663_v47 = vmax.f32 %v1354_v14, 0.0  ;;  %v1423_v48 = vadd.f32 %v1422_v46, %v2461_v40  ;;  %v1493_v49 = vpop.f32.mrb[12].mxu1  ;;  %v1424_v50 = vpop.f32.mrb[13].mxu0 }
 0x155   : > { %1694 = vst [vmem:[%s2467_s30 + $0xb0] sm:$0xff] %v1662_v44  ;;  %1693 = vst [vmem:[%s2467_s30 + $0xa8] sm:$0xff] %v1661_v45  ;;  %v1494_v51 = vadd.f32 %v1493_v49, %v2461_v40  ;;  %v1425_v52 = vadd.f32 %v1424_v50, %v2461_v40  ;;  %v1495_v53 = vpop.f32.mrb[13].mxu1 }
 0x156   : > { %1695 = vst [vmem:[%s2467_s30 + $0xb8] sm:$0xff] %v1663_v47  ;;  %v1664_v54 = vmax.f32 %v1423_v48, 0.0  ;;  %v1496_v55 = vadd.f32 %v1495_v53, %v2461_v40 }
 0x157   : > { %v1666_v56 = vmax.f32 %v1494_v51, 0.0  ;;  %v1665_v57 = vmax.f32 %v1425_v52, 0.0  ;;  %v1564_v58 = vpop.f32.mrb[14].mxu0 }
 0x158   : > { %1696 = vst [vmem:[%s2467_s30 + $0xc0] sm:$0xff] %v1664_v54  ;;  %v1667_v59 = vmax.f32 %v1496_v55, 0.0  ;;  %v1565_v60 = vadd.f32 %v1564_v58, %v2461_v40  ;;  %v1635_v61 = vpop.f32.mrb[14].mxu1  ;;  %v1566_v62 = vpop.f32.mrb[15].mxu0 }
 0x159   : > { %1698 = vst [vmem:[%s2467_s30 + $0xd0] sm:$0xff] %v1666_v56  ;;  %1697 = vst [vmem:[%s2467_s30 + $0xc8] sm:$0xff] %v1665_v57  ;;  %v1636_v63 = vadd.f32 %v1635_v61, %v2461_v40  ;;  %v1567_v1 = vadd.f32 %v1566_v62, %v2461_v40  ;;  %v1637_v3 = vpop.f32.mrb[15].mxu1 }
 0x15a   : > { %1699 = vst [vmem:[%s2467_s30 + $0xd8] sm:$0xff] %v1667_v59  ;;  %v1668_v4 = vmax.f32 %v1565_v60, 0.0  ;;  %v1638_v5 = vadd.f32 %v1637_v3, %v2461_v40 }
 0x15b   : > { %v1670_v6 = vmax.f32 %v1636_v63, 0.0  ;;  %v1669_v7 = vmax.f32 %v1567_v1, 0.0 }
 0x15c   : > { %1700 = vst [vmem:[%s2467_s30 + $0xe0] sm:$0xff] %v1668_v4  ;;  %v1671_v8 = vmax.f32 %v1638_v5, 0.0 }
 0x15d   : > { %1702 = vst [vmem:[%s2467_s30 + $0xf0] sm:$0xff] %v1670_v6  ;;  %1701 = vst [vmem:[%s2467_s30 + $0xe8] sm:$0xff] %v1669_v7 }
 0x15e   : > { %1703 = vst [vmem:[%s2467_s30 + $0xf8] sm:$0xff] %v1671_v8 }
 0x15f PF: > { %p11_p9 = scmp.ge.s32.totalorder %s2074_s16, 4   ;;  %s2558_s12 = smov %s2027_s13 }
 0x160   : > { %s2559_s13 = smov %s2084_s19  ;;  %s2560_s14 = smov %s2074_s16 }
 0x161   :  { %13 = sbr.rel (!%p11_p9) target bundleno = 2 (0x2), region = 95 }
 0x168   :  { %1726 = vsyncpa [#allocation3], 1 }
 0x169   :  { %1728 = vsyncpa [#allocation3 + $0x1], 1 }

// kernel: wifi_detector_forward.7
= control target key start
LH: loop header
LB: loop body
LE: loop exit
PB: predicated region body
PF: predicated region fallthrough
CT: control target
= control target key end

     0   :  { %s1037_s12 = smov 0   ;;  %s1039_s13 = smov 0   ;;  %s1391_s0 = inlined_call_operand.vmem [shape: f32[16,72], index: 0, kind: input, shape index: {}]   ;;  %s1392_s1 = inlined_call_operand.vmem [shape: f32[72,2048], index: 1, kind: input, shape index: {}]   ;;  %s1393_s2 = inlined_call_operand.vmem [shape: f32[16,1], index: 2, kind: input, shape index: {}]   ;;  %s1394_s3 = inlined_call_operand.vmem [shape: f32[16,2048], index: 3, kind: output, shape index: {}]  }
   0x1   :  { %s1041_s14 = smov 0  }
   0x2 LB: > { %s875_s15 = sadd.s32 4294967295, %s1013_s14   ;;  %s1054_s16 = sadd.s32 1, %s1013_s14   ;;  %s1013_s14 = sphi %s1041_s14, %s1398_s14   ;;  %s1009_s13 = sphi %s1039_s13, %s1397_s13   ;;  %s1005_s12 = sphi %s1037_s12, %s1396_s12  }
   0x3   : > { %s38_s17 = ssub.s32 %s1013_s14, %s1054_s16  ;;  %s41_s18 = sadd.s32 1, %s1009_s13 }
   0x4   : > { %p39_p0 = scmp.eq.s32.totalorder %s38_s17, 0  ;;  %p48_p1 = scmp.ne.s32.totalorder %s1009_s13, %s1005_s12 }
   0x5   : > { %p49_p2 = scmp.eq.s32.totalorder %s1013_s14, 0  ;;  %p99_p3 = scmp.eq.s32.totalorder %s875_s15, 1 }
   0x6   : > { %s1065_s19 = scalar_select %p39_p0, %s1009_s13, %s41_s18  }
   0x7   : > { %p50_p4 = por %p49_p2, %p48_p1  ;;  %p1067_p5 = por %p99_p3, %p48_p1 }
   0x8   : > { %p878_p6 = scmp.ge.s32.totalorder %s1013_s14, 2 }
   0xa   : > { %127 = sbr.rel (%p878_p6) target bundleno = 58 (0x3a), region = 24 }
  0x11   : > { %130 = sbr.rel (!%p50_p4) target bundleno = 58 (0x3a), region = 28  ;;  %s132_s21 = sand.u32 (%p50_p4), 1, %s1009_s13  }
  0x12   : > { %s896_s22 = sshll.u32 (%p50_p4), %s1013_s14, 6  ;;  %s962_s23 = smul.u32 (%p50_p4), 576, %s132_s21 }
  0x13   : > { %s1077_s26 = scalar_lea.vmem (%p50_p4), %s1392_s1, %s896_s22 }
  0x14   : > { %v150_v0 = vld [vmem:[%s1077_s26] sm:$0xff] (%p50_p4)  ;;  %v152_v1 = vld [vmem:[%s1077_s26 + $0x8] sm:$0xff] (%p50_p4)  ;;  %v154_v2 = vld [vmem:[%s1077_s26 + $0x10] sm:$0xff] (%p50_p4)  ;;  %s1085_s27 = scalar_lea.vmem (%p50_p4), [#allocation2], %s962_s23 }
  0x15   : > { %v156_v3 = vld [vmem:[%s1077_s26 + $0x18] sm:$0xff] (%p50_p4)  ;;  %v158_v4 = vld [vmem:[%s1077_s26 + $0x20] sm:$0xff] (%p50_p4)  ;;  %v160_v5 = vld [vmem:[%s1077_s26 + $0x28] sm:$0xff] (%p50_p4)  ;;  %151 = vst [vmem:[%s1085_s27] sm:$0xff] (%p50_p4), %v150_v0 }
  0x16   : > { %153 = vst [vmem:[%s1085_s27 + $0x8] sm:$0xff] (%p50_p4), %v152_v1  ;;  %155 = vst [vmem:[%s1085_s27 + $0x10] sm:$0xff] (%p50_p4), %v154_v2  ;;  %v162_v6 = vld [vmem:[%s1077_s26 + $0x30] sm:$0xff] (%p50_p4)  ;;  %v164_v7 = vld [vmem:[%s1077_s26 + $0x38] sm:$0xff] (%p50_p4) }
  0x17   : > { %157 = vst [vmem:[%s1085_s27 + $0x18] sm:$0xff] (%p50_p4), %v156_v3  ;;  %159 = vst [vmem:[%s1085_s27 + $0x20] sm:$0xff] (%p50_p4), %v158_v4  ;;  %v166_v8 = vld [vmem:[%s1077_s26 + $0x80] sm:$0xff] (%p50_p4)  ;;  %v168_v9 = vld [vmem:[%s1077_s26 + $0x88] sm:$0xff] (%p50_p4) }
  0x18   : > { %161 = vst [vmem:[%s1085_s27 + $0x28] sm:$0xff] %v160_v5  ;;  %163 = vst [vmem:[%s1085_s27 + $0x30] sm:$0xff] %v162_v6  ;;  %v170_v10 = vld [vmem:[%s1077_s26 + $0x90] sm:$0xff]  ;;  %v172_v11 = vld [vmem:[%s1077_s26 + $0x98] sm:$0xff] }
  0x19   : > { %165 = vst [vmem:[%s1085_s27 + $0x38] sm:$0xff] %v164_v7  ;;  %167 = vst [vmem:[%s1085_s27 + $0x40] sm:$0xff] %v166_v8  ;;  %v174_v12 = vld [vmem:[%s1077_s26 + $0xa0] sm:$0xff]  ;;  %v176_v13 = vld [vmem:[%s1077_s26 + $0xa8] sm:$0xff] }
  0x1a   : > { %169 = vst [vmem:[%s1085_s27 + $0x48] sm:$0xff] %v168_v9  ;;  %171 = vst [vmem:[%s1085_s27 + $0x50] sm:$0xff] %v170_v10  ;;  %v178_v14 = vld [vmem:[%s1077_s26 + $0xb0] sm:$0xff]  ;;  %v180_v15 = vld [vmem:[%s1077_s26 + $0xb8] sm:$0xff] }
  0x1b   : > { %173 = vst [vmem:[%s1085_s27 + $0x58] sm:$0xff] %v172_v11  ;;  %175 = vst [vmem:[%s1085_s27 + $0x60] sm:$0xff] %v174_v12  ;;  %v182_v16 = vld [vmem:[%s1077_s26 + $0x100] sm:$0xff]  ;;  %v184_v17 = vld [vmem:[%s1077_s26 + $0x108] sm:$0xff] }
  0x1c   : > { %177 = vst [vmem:[%s1085_s27 + $0x68] sm:$0xff] %v176_v13  ;;  %179 = vst [vmem:[%s1085_s27 + $0x70] sm:$0xff] %v178_v14  ;;  %v186_v18 = vld [vmem:[%s1077_s26 + $0x110] sm:$0xff]  ;;  %v188_v19 = vld [vmem:[%s1077_s26 + $0x118] sm:$0xff] }
  0x1d   : > { %181 = vst [vmem:[%s1085_s27 + $0x78] sm:$0xff] %v180_v15  ;;  %183 = vst [vmem:[%s1085_s27 + $0x80] sm:$0xff] %v182_v16  ;;  %v190_v20 = vld [vmem:[%s1077_s26 + $0x120] sm:$0xff]  ;;  %v192_v21 = vld [vmem:[%s1077_s26 + $0x128] sm:$0xff] }
  0x1e   : > { %185 = vst [vmem:[%s1085_s27 + $0x88] sm:$0xff] %v184_v17  ;;  %187 = vst [vmem:[%s1085_s27 + $0x90] sm:$0xff] %v186_v18  ;;  %v194_v22 = vld [vmem:[%s1077_s26 + $0x130] sm:$0xff]  ;;  %v196_v23 = vld [vmem:[%s1077_s26 + $0x138] sm:$0xff] }
  0x1f   : > { %189 = vst [vmem:[%s1085_s27 + $0x98] sm:$0xff] %v188_v19  ;;  %191 = vst [vmem:[%s1085_s27 + $0xa0] sm:$0xff] %v190_v20  ;;  %v198_v24 = vld [vmem:[%s1077_s26 + $0x180] sm:$0xff]  ;;  %v200_v25 = vld [vmem:[%s1077_s26 + $0x188] sm:$0xff] }
  0x20   : > { %193 = vst [vmem:[%s1085_s27 + $0xa8] sm:$0xff] %v192_v21  ;;  %195 = vst [vmem:[%s1085_s27 + $0xb0] sm:$0xff] %v194_v22  ;;  %v202_v26 = vld [vmem:[%s1077_s26 + $0x190] sm:$0xff]  ;;  %v204_v27 = vld [vmem:[%s1077_s26 + $0x198] sm:$0xff] }
  0x21   : > { %197 = vst [vmem:[%s1085_s27 + $0xb8] sm:$0xff] %v196_v23  ;;  %199 = vst [vmem:[%s1085_s27 + $0xc0] sm:$0xff] %v198_v24  ;;  %v206_v28 = vld [vmem:[%s1077_s26 + $0x1a0] sm:$0xff]  ;;  %v208_v29 = vld [vmem:[%s1077_s26 + $0x1a8] sm:$0xff] }
  0x22   : > { %201 = vst [vmem:[%s1085_s27 + $0xc8] sm:$0xff] %v200_v25  ;;  %203 = vst [vmem:[%s1085_s27 + $0xd0] sm:$0xff] %v202_v26  ;;  %v210_v30 = vld [vmem:[%s1077_s26 + $0x1b0] sm:$0xff]  ;;  %v212_v31 = vld [vmem:[%s1077_s26 + $0x1b8] sm:$0xff] }
  0x23   : > { %205 = vst [vmem:[%s1085_s27 + $0xd8] sm:$0xff] %v204_v27  ;;  %207 = vst [vmem:[%s1085_s27 + $0xe0] sm:$0xff] %v206_v28  ;;  %v214_v32 = vld [vmem:[%s1077_s26 + $0x200] sm:$0xff]  ;;  %v216_v33 = vld [vmem:[%s1077_s26 + $0x208] sm:$0xff] }
  0x24   : > { %209 = vst [vmem:[%s1085_s27 + $0xe8] sm:$0xff] %v208_v29  ;;  %211 = vst [vmem:[%s1085_s27 + $0xf0] sm:$0xff] %v210_v30  ;;  %v218_v34 = vld [vmem:[%s1077_s26 + $0x210] sm:$0xff]  ;;  %v220_v35 = vld [vmem:[%s1077_s26 + $0x218] sm:$0xff] }
  0x25   : > { %213 = vst [vmem:[%s1085_s27 + $0xf8] sm:$0xff] %v212_v31  ;;  %215 = vst [vmem:[%s1085_s27 + $0x100] sm:$0xff] %v214_v32  ;;  %v222_v36 = vld [vmem:[%s1077_s26 + $0x220] sm:$0xff]  ;;  %v224_v37 = vld [vmem:[%s1077_s26 + $0x228] sm:$0xff] }
  0x26   : > { %217 = vst [vmem:[%s1085_s27 + $0x108] sm:$0xff] %v216_v33  ;;  %219 = vst [vmem:[%s1085_s27 + $0x110] sm:$0xff] %v218_v34  ;;  %v226_v38 = vld [vmem:[%s1077_s26 + $0x230] sm:$0xff]  ;;  %v228_v39 = vld [vmem:[%s1077_s26 + $0x238] sm:$0xff] }
  0x27   : > { %221 = vst [vmem:[%s1085_s27 + $0x118] sm:$0xff] %v220_v35  ;;  %223 = vst [vmem:[%s1085_s27 + $0x120] sm:$0xff] %v222_v36  ;;  %v230_v40 = vld [vmem:[%s1077_s26 + $0x280] sm:$0xff]  ;;  %v232_v41 = vld [vmem:[%s1077_s26 + $0x288] sm:$0xff] }
  0x28   : > { %225 = vst [vmem:[%s1085_s27 + $0x128] sm:$0xff] %v224_v37  ;;  %227 = vst [vmem:[%s1085_s27 + $0x130] sm:$0xff] %v226_v38  ;;  %v234_v42 = vld [vmem:[%s1077_s26 + $0x290] sm:$0xff]  ;;  %v236_v43 = vld [vmem:[%s1077_s26 + $0x298] sm:$0xff] }
  0x29   : > { %229 = vst [vmem:[%s1085_s27 + $0x138] sm:$0xff] %v228_v39  ;;  %231 = vst [vmem:[%s1085_s27 + $0x140] sm:$0xff] %v230_v40  ;;  %v238_v44 = vld [vmem:[%s1077_s26 + $0x2a0] sm:$0xff]  ;;  %v240_v45 = vld [vmem:[%s1077_s26 + $0x2a8] sm:$0xff] }
  0x2a   : > { %233 = vst [vmem:[%s1085_s27 + $0x148] sm:$0xff] %v232_v41  ;;  %235 = vst [vmem:[%s1085_s27 + $0x150] sm:$0xff] %v234_v42  ;;  %v242_v46 = vld [vmem:[%s1077_s26 + $0x2b0] sm:$0xff]  ;;  %v244_v47 = vld [vmem:[%s1077_s26 + $0x2b8] sm:$0xff] }
  0x2b   : > { %237 = vst [vmem:[%s1085_s27 + $0x158] sm:$0xff] %v236_v43  ;;  %239 = vst [vmem:[%s1085_s27 + $0x160] sm:$0xff] %v238_v44  ;;  %v246_v48 = vld [vmem:[%s1077_s26 + $0x300] sm:$0xff]  ;;  %v248_v49 = vld [vmem:[%s1077_s26 + $0x308] sm:$0xff] }
  0x2c   : > { %241 = vst [vmem:[%s1085_s27 + $0x168] sm:$0xff] %v240_v45  ;;  %243 = vst [vmem:[%s1085_s27 + $0x170] sm:$0xff] %v242_v46  ;;  %v250_v50 = vld [vmem:[%s1077_s26 + $0x310] sm:$0xff]  ;;  %v252_v51 = vld [vmem:[%s1077_s26 + $0x318] sm:$0xff] }
  0x2d   : > { %245 = vst [vmem:[%s1085_s27 + $0x178] sm:$0xff] %v244_v47  ;;  %247 = vst [vmem:[%s1085_s27 + $0x180] sm:$0xff] %v246_v48  ;;  %v254_v52 = vld [vmem:[%s1077_s26 + $0x320] sm:$0xff]  ;;  %v256_v53 = vld [vmem:[%s1077_s26 + $0x328] sm:$0xff] }
  0x2e   : > { %249 = vst [vmem:[%s1085_s27 + $0x188] sm:$0xff] %v248_v49  ;;  %251 = vst [vmem:[%s1085_s27 + $0x190] sm:$0xff] %v250_v50  ;;  %v258_v54 = vld [vmem:[%s1077_s26 + $0x330] sm:$0xff]  ;;  %v260_v55 = vld [vmem:[%s1077_s26 + $0x338] sm:$0xff] }
  0x2f   : > { %253 = vst [vmem:[%s1085_s27 + $0x198] sm:$0xff] %v252_v51  ;;  %255 = vst [vmem:[%s1085_s27 + $0x1a0] sm:$0xff] %v254_v52  ;;  %v262_v56 = vld [vmem:[%s1077_s26 + $0x380] sm:$0xff]  ;;  %v264_v57 = vld [vmem:[%s1077_s26 + $0x388] sm:$0xff] }
  0x30   : > { %257 = vst [vmem:[%s1085_s27 + $0x1a8] sm:$0xff] %v256_v53  ;;  %259 = vst [vmem:[%s1085_s27 + $0x1b0] sm:$0xff] %v258_v54  ;;  %v266_v58 = vld [vmem:[%s1077_s26 + $0x390] sm:$0xff]  ;;  %v268_v59 = vld [vmem:[%s1077_s26 + $0x398] sm:$0xff] }
  0x31   : > { %261 = vst [vmem:[%s1085_s27 + $0x1b8] sm:$0xff] %v260_v55  ;;  %263 = vst [vmem:[%s1085_s27 + $0x1c0] sm:$0xff] %v262_v56  ;;  %v270_v60 = vld [vmem:[%s1077_s26 + $0x3a0] sm:$0xff]  ;;  %v272_v61 = vld [vmem:[%s1077_s26 + $0x3a8] sm:$0xff] }
  0x32   : > { %265 = vst [vmem:[%s1085_s27 + $0x1c8] sm:$0xff] %v264_v57  ;;  %267 = vst [vmem:[%s1085_s27 + $0x1d0] sm:$0xff] %v266_v58  ;;  %v274_v62 = vld [vmem:[%s1077_s26 + $0x3b0] sm:$0xff]  ;;  %v276_v63 = vld [vmem:[%s1077_s26 + $0x3b8] sm:$0xff] }
  0x33   : > { %269 = vst [vmem:[%s1085_s27 + $0x1d8] sm:$0xff] %v268_v59  ;;  %271 = vst [vmem:[%s1085_s27 + $0x1e0] sm:$0xff] %v270_v60  ;;  %v278_v0 = vld [vmem:[%s1077_s26 + $0x400] sm:$0xff]  ;;  %v280_v1 = vld [vmem:[%s1077_s26 + $0x408] sm:$0xff] }
  0x34   : > { %273 = vst [vmem:[%s1085_s27 + $0x1e8] sm:$0xff] %v272_v61  ;;  %275 = vst [vmem:[%s1085_s27 + $0x1f0] sm:$0xff] %v274_v62  ;;  %v282_v2 = vld [vmem:[%s1077_s26 + $0x410] sm:$0xff]  ;;  %v284_v3 = vld [vmem:[%s1077_s26 + $0x418] sm:$0xff] }
  0x35   : > { %277 = vst [vmem:[%s1085_s27 + $0x1f8] sm:$0xff] %v276_v63  ;;  %279 = vst [vmem:[%s1085_s27 + $0x200] sm:$0xff] %v278_v0  ;;  %v286_v4 = vld [vmem:[%s1077_s26 + $0x420] sm:$0xff]  ;;  %v288_v5 = vld [vmem:[%s1077_s26 + $0x428] sm:$0xff] }
  0x36   : > { %281 = vst [vmem:[%s1085_s27 + $0x208] sm:$0xff] %v280_v1  ;;  %283 = vst [vmem:[%s1085_s27 + $0x210] sm:$0xff] %v282_v2  ;;  %v290_v6 = vld [vmem:[%s1077_s26 + $0x430] sm:$0xff]  ;;  %v292_v7 = vld [vmem:[%s1077_s26 + $0x438] sm:$0xff] }
  0x37   : > { %285 = vst [vmem:[%s1085_s27 + $0x218] sm:$0xff] %v284_v3  ;;  %287 = vst [vmem:[%s1085_s27 + $0x220] sm:$0xff] %v286_v4 }
  0x38   : > { %289 = vst [vmem:[%s1085_s27 + $0x228] sm:$0xff] %v288_v5  ;;  %291 = vst [vmem:[%s1085_s27 + $0x230] sm:$0xff] %v290_v6 }
  0x39   : > { %293 = vst [vmem:[%s1085_s27 + $0x238] sm:$0xff] %v292_v7 }
  0x3a PF: > { %p881_p7 = scmp.ge.s32.totalorder %s1013_s14, 1  ;;  %p298_p8 = scmp.lt.s32.totalorder %s1013_s14, 3 }
  0x3c   : > { %p299_p9 = pnand %p881_p7, %p298_p8 }
  0x3d   : > { %s305_s28 = sand.u32 (!%p299_p9), 1, %s1005_s12   ;;  %v1015_v8 = vmov (!%p299_p9), 0.0   ;;  %v403_v9 = vld [vmem:[%s1393_s2] sm:$0xff] (!%p299_p9)  ;;  %v1016_v10 = vmov (!%p299_p9), 0   ;;  %v404_v11 = vld [vmem:[%s1393_s2 + $0x8] sm:$0xff] (!%p299_p9)  ;;  %vm415_vm0 = vcmask (!%p299_p9), 588800  }
  0x3e   : > { %302 = sbr.rel (%p299_p9) target bundleno = 338 (0x152), region = 51  ;;  %486 = vmatprep.mubr.f32.mxu0 (!%p299_p9), %v1015_v8  ;;  %563 = vmatprep.mubr.f32.mxu1 (!%p299_p9), %v1015_v8  ;;  %v1282_v3 = vld [vmem:[%s1391_s0] sm:$0xff] (!%p299_p9)  ;;  %s882_s17 = sshll.u32 (!%p299_p9), %s305_s28, 7 }
  0x3f   : > { %s963_s29 = smul.u32 (!%p299_p9), 576, %s305_s28  ;;  %990 = vset.pattern.permute.xlu0 (!%p299_p9), %v1016_v10  ;;  %s1340_s18 = scalar_lea.vmem (!%p299_p9), [#allocation3], %s882_s17 }
  0x40   : > { %407 = vperm.xlu0 (!%p299_p9), %990, %v403_v9  }
  0x41   : > { %s1238_s7 = scalar_lea.vmem (!%p299_p9), [#allocation2], %s963_s29 }
  0x42   : > { %v332_v12 = vld [vmem:[%s1238_s7 + $0x8] sm:$0xff] (!%p299_p9)  ;;  %v334_v14 = vld [vmem:[%s1238_s7 + $0x18] sm:$0xff] (!%p299_p9)  ;;  %v331_v17 = vld [vmem:[%s1238_s7] sm:$0xff] (!%p299_p9) }
  0x43   : > { %v340_v13 = vld [vmem:[%s1238_s7 + $0x48] sm:$0xff] (!%p299_p9)  ;;  %v342_v16 = vld [vmem:[%s1238_s7 + $0x58] sm:$0xff] (!%p299_p9)  ;;  %v339_v18 = vld [vmem:[%s1238_s7 + $0x40] sm:$0xff] (!%p299_p9) }
  0x44   : > { %v898_v15 = vpack.c.bf16 (!%p299_p9), %v340_v13, %v332_v12  ;;  %v914_v19 = vpack.c.bf16 (!%p299_p9), %v342_v16, %v334_v14  ;;  %v900_v20 = vpack.c.bf16 (!%p299_p9), %v339_v18, %v331_v17  ;;  %v333_v21 = vld [vmem:[%s1238_s7 + $0x10] sm:$0xff] (!%p299_p9)  ;;  %v348_v23 = vld [vmem:[%s1238_s7 + $0x88] sm:$0xff] (!%p299_p9)  ;;  %v350_v26 = vld [vmem:[%s1238_s7 + $0x98] sm:$0xff] (!%p299_p9)  ;;  %412 = vperm.xlu0 (!%p299_p9), %990, %v404_v11  }
  0x45   : > { %v341_v22 = vld [vmem:[%s1238_s7 + $0x50] sm:$0xff]  ;;  %v356_v25 = vld [vmem:[%s1238_s7 + $0xc8] sm:$0xff]  ;;  %v358_v27 = vld [vmem:[%s1238_s7 + $0xd8] sm:$0xff]  ;;  %s897_s12 = sshll.u32 (%p1067_p5), %s875_s15, 6 }
  0x46   : > { %899 = vmatprep.subr.bf16.mxu0 %v898_v15  ;;  %v916_v24 = vpack.c.bf16 %v341_v22, %v333_v21  ;;  %915 = vmatprep.subr.bf16.mxu1 %v914_v19  ;;  %v902_v28 = vpack.c.bf16 %v356_v25, %v348_v23  ;;  %v918_v29 = vpack.c.bf16 %v358_v27, %v350_v26  ;;  %v347_v30 = vld [vmem:[%s1238_s7 + $0x80] sm:$0xff]  ;;  %v349_v32 = vld [vmem:[%s1238_s7 + $0x90] sm:$0xff]  ;;  %v364_v35 = vld [vmem:[%s1238_s7 + $0x108] sm:$0xff]  ;;  %s771_s20 = scalar_lea.vmem (%p1067_p5), %s1394_s3, %s897_s12 }
  0x47   : > { %901 = vmatpush1.bf16.msra.mxu0 %v900_v20  ;;  %v355_v31 = vld [vmem:[%s1238_s7 + $0xc0] sm:$0xff]  ;;  %v357_v34 = vld [vmem:[%s1238_s7 + $0xd0] sm:$0xff]  ;;  %v372_v36 = vld [vmem:[%s1238_s7 + $0x148] sm:$0xff] }
  0x48   : > { %917 = vmatpush1.bf16.msra.mxu1 %v916_v24  ;;  %v904_v33 = vpack.c.bf16 %v355_v31, %v347_v30  ;;  %903 = vmatprep.subr.bf16.mxu0 %v902_v28  ;;  %v920_v37 = vpack.c.bf16 %v357_v34, %v349_v32  ;;  %v906_v38 = vpack.c.bf16 %v372_v36, %v364_v35  ;;  %v366_v39 = vld [vmem:[%s1238_s7 + $0x118] sm:$0xff]  ;;  %v363_v41 = vld [vmem:[%s1238_s7 + $0x100] sm:$0xff]  ;;  %v365_v44 = vld [vmem:[%s1238_s7 + $0x110] sm:$0xff] }
  0x49   : > { %919 = vmatprep.subr.bf16.mxu1 %v918_v29  ;;  %v374_v40 = vld [vmem:[%s1238_s7 + $0x158] sm:$0xff]  ;;  %v371_v43 = vld [vmem:[%s1238_s7 + $0x140] sm:$0xff]  ;;  %v373_v45 = vld [vmem:[%s1238_s7 + $0x150] sm:$0xff] }
  0x4a   : > { %v922_v42 = vpack.c.bf16 %v374_v40, %v366_v39  ;;  %v908_v46 = vpack.c.bf16 %v371_v43, %v363_v41  ;;  %v380_v47 = vld [vmem:[%s1238_s7 + $0x188] sm:$0xff]  ;;  %v382_v49 = vld [vmem:[%s1238_s7 + $0x198] sm:$0xff]  ;;  %v924_v50 = vpack.c.bf16 %v373_v45, %v365_v44  ;;  %v379_v53 = vld [vmem:[%s1238_s7 + $0x180] sm:$0xff] }
  0x4b   : > { %905 = vmatpush1.bf16.msra.mxu0 %v904_v33  ;;  %v388_v48 = vld [vmem:[%s1238_s7 + $0x1c8] sm:$0xff]  ;;  %v390_v52 = vld [vmem:[%s1238_s7 + $0x1d8] sm:$0xff]  ;;  %v387_v54 = vld [vmem:[%s1238_s7 + $0x1c0] sm:$0xff] }
  0x4c   : > { %921 = vmatpush1.bf16.msra.mxu1 %v920_v37  ;;  %907 = vmatprep.subr.bf16.mxu0 %v906_v38  ;;  %v910_v51 = vpack.c.bf16 %v388_v48, %v380_v47  ;;  %v926_v55 = vpack.c.bf16 %v390_v52, %v382_v49  ;;  %v381_v56 = vld [vmem:[%s1238_s7 + $0x190] sm:$0xff]  ;;  %v912_v58 = vpack.c.bf16 %v387_v54, %v379_v53  ;;  %v396_v60 = vld [vmem:[%s1238_s7 + $0x208] sm:$0xff]  ;;  %v398_v61 = vld [vmem:[%s1238_s7 + $0x218] sm:$0xff] }
  0x4d   : > { %923 = vmatprep.subr.bf16.mxu1 %v922_v42  ;;  %v389_v57 = vld [vmem:[%s1238_s7 + $0x1d0] sm:$0xff]  ;;  %v336_v62 = vld [vmem:[%s1238_s7 + $0x28] sm:$0xff]  ;;  %v395_v63 = vld [vmem:[%s1238_s7 + $0x200] sm:$0xff] }
  0x4e   : > { %v928_v59 = vpack.c.bf16 %v389_v57, %v381_v56  ;;  %v344_v0 = vld [vmem:[%s1238_s7 + $0x68] sm:$0xff]  ;;  %v338_v1 = vld [vmem:[%s1238_s7 + $0x38] sm:$0xff]  ;;  %v335_v4 = vld [vmem:[%s1238_s7 + $0x20] sm:$0xff] }
  0x4f   : > { %909 = vmatpush1.bf16.msra.mxu0 %v908_v46  ;;  %v346_v2 = vld [vmem:[%s1238_s7 + $0x78] sm:$0xff]  ;;  %v343_v5 = vld [vmem:[%s1238_s7 + $0x60] sm:$0xff]  ;;  %v337_v6 = vld [vmem:[%s1238_s7 + $0x30] sm:$0xff]  ;;  %v930_v12 = vpack.c.bf16 %v344_v0, %v336_v62 }
  0x50   : > { %925 = vmatpush1.bf16.msra.mxu1 %v924_v50  ;;  %911 = vmatprep.subr.bf16.mxu0 %v910_v51  ;;  %v345_v7 = vld [vmem:[%s1238_s7 + $0x70] sm:$0xff]  ;;  %v352_v9 = vld [vmem:[%s1238_s7 + $0xa8] sm:$0xff]  ;;  %v354_v13 = vld [vmem:[%s1238_s7 + $0xb8] sm:$0xff]  ;;  %v946_v15 = vpack.c.bf16 %v346_v2, %v338_v1  ;;  %v932_v16 = vpack.c.bf16 %v343_v5, %v335_v4 }
  0x51   : > { %927 = vmatprep.subr.bf16.mxu1 %v926_v55  ;;  %v360_v10 = vld [vmem:[%s1238_s7 + $0xe8] sm:$0xff]  ;;  %v397_v11 = vld [vmem:[%s1238_s7 + $0x210] sm:$0xff]  ;;  %v362_v14 = vld [vmem:[%s1238_s7 + $0xf8] sm:$0xff]  ;;  %v948_v17 = vpack.c.bf16 %v345_v7, %v337_v6 }
  0x52   : > { %v934_v18 = vpack.c.bf16 %v360_v10, %v352_v9  ;;  %v351_v19 = vld [vmem:[%s1238_s7 + $0xa0] sm:$0xff]  ;;  %v353_v21 = vld [vmem:[%s1238_s7 + $0xb0] sm:$0xff]  ;;  %v950_v22 = vpack.c.bf16 %v362_v14, %v354_v13  ;;  %v368_v24 = vld [vmem:[%s1238_s7 + $0x128] sm:$0xff] }
  0x53   : > { %913 = vmatpush1.bf16.msra.mxu0 %v912_v58  ;;  %v359_v20 = vld [vmem:[%s1238_s7 + $0xe0] sm:$0xff]  ;;  %v361_v23 = vld [vmem:[%s1238_s7 + $0xf0] sm:$0xff]  ;;  %v376_v25 = vld [vmem:[%s1238_s7 + $0x168] sm:$0xff] }
  0x54   : > { %929 = vmatpush1.bf16.msra.mxu1 %v928_v59  ;;  %438 = vmatprep.subr.mxu0 %v396_v60  ;;  %v370_v26 = vld [vmem:[%s1238_s7 + $0x138] sm:$0xff]  ;;  %v936_v28 = vpack.c.bf16 %v359_v20, %v351_v19  ;;  %v330_v29 = vld [vmem:[%s1391_s0 + $0x8] sm:$0xff]  ;;  %v952_v30 = vpack.c.bf16 %v361_v23, %v353_v21  ;;  %v938_v31 = vpack.c.bf16 %v376_v25, %v368_v24  ;;  %v367_v32 = vld [vmem:[%s1238_s7 + $0x120] sm:$0xff] }
  0x55   : > { %515 = vmatprep.subr.mxu1 %v398_v61  ;;  %v378_v27 = vld [vmem:[%s1238_s7 + $0x178] sm:$0xff]  ;;  %v375_v33 = vld [vmem:[%s1238_s7 + $0x160] sm:$0xff]  ;;  %v369_v34 = vld [vmem:[%s1238_s7 + $0x130] sm:$0xff] }
  0x56   : > { %v954_v35 = vpack.c.bf16 %v378_v27, %v370_v26  ;;  %v377_v36 = vld [vmem:[%s1238_s7 + $0x170] sm:$0xff]  ;;  %v384_v37 = vld [vmem:[%s1238_s7 + $0x1a8] sm:$0xff]  ;;  %v386_v39 = vld [vmem:[%s1238_s7 + $0x1b8] sm:$0xff]  ;;  %v940_v41 = vpack.c.bf16 %v375_v33, %v367_v32 }
  0x57   : > { %439 = vmatpush1.msra.mxu0 %v395_v63  ;;  %v392_v38 = vld [vmem:[%s1238_s7 + $0x1e8] sm:$0xff]  ;;  %v394_v40 = vld [vmem:[%s1238_s7 + $0x1f8] sm:$0xff]  ;;  %v956_v42 = vpack.c.bf16 %v377_v36, %v369_v34  ;;  %v383_v44 = vld [vmem:[%s1238_s7 + $0x1a0] sm:$0xff] }
  0x58   : > { %516 = vmatpush1.msra.mxu1 %v397_v11  ;;  %883 = vmatmul.mubr.msk.f32.vlgmr.msra.gmra.mrb[0].mxu0 %vm415_vm0, %v1282_v3  ;;  %v942_v43 = vpack.c.bf16 %v392_v38, %v384_v37  ;;  %v391_v45 = vld [vmem:[%s1238_s7 + $0x1e0] sm:$0xff]  ;;  %v958_v46 = vpack.c.bf16 %v394_v40, %v386_v39  ;;  %v385_v47 = vld [vmem:[%s1238_s7 + $0x1b0] sm:$0xff]  ;;  %v400_v51 = vld [vmem:[%s1238_s7 + $0x228] sm:$0xff] }
  0x59   : > { %885 = vmatmul.mubr.msk.f32.vlgmr.msra.gmra.mrb[0].mxu1 %vm415_vm0, %v1282_v3  ;;  %931 = vmatprep.subr.bf16.mxu0 %v930_v12  ;;  %v393_v48 = vld [vmem:[%s1238_s7 + $0x1f0] sm:$0xff]  ;;  %v944_v49 = vpack.c.bf16 %v391_v45, %v383_v44  ;;  %v402_v52 = vld [vmem:[%s1238_s7 + $0x238] sm:$0xff]  ;;  %v399_v53 = vld [vmem:[%s1238_s7 + $0x220] sm:$0xff] }
  0x5a   : > { %947 = vmatprep.subr.bf16.mxu1 %v946_v15  ;;  %933 = vmatpush1.bf16.msra.mxu0 %v932_v16  ;;  %v960_v50 = vpack.c.bf16 %v393_v48, %v385_v47  ;;  %v401_v54 = vld [vmem:[%s1238_s7 + $0x230] sm:$0xff] }
  0x5b   : > { %949 = vmatpush1.bf16.msra.mxu1 %v948_v17  ;;  %935 = vmatprep.subr.bf16.mxu0 %v934_v18 }
  0x5c   : > { %951 = vmatprep.subr.bf16.mxu1 %v950_v22  ;;  %492 = vmatprep.mubr.f32.mxu0 %v1015_v8 }
  0x5d   : > { %569 = vmatprep.mubr.f32.mxu1 %v1015_v8  ;;  %884 = vmatmul.mubr.msk.f32.gmra.mrb[2].mxu0 %vm415_vm0, %v330_v29 }
  0x5e   : > { %937 = vmatpush1.bf16.msra.mxu0 %v936_v28  ;;  %886 = vmatmul.mubr.msk.f32.gmra.mrb[2].mxu1 %vm415_vm0, %v330_v29 }
  0x5f   : > { %953 = vmatpush1.bf16.msra.mxu1 %v952_v30  ;;  %939 = vmatprep.subr.bf16.mxu0 %v938_v31 }
  0x60   : > { %955 = vmatprep.subr.bf16.mxu1 %v954_v35  ;;  %640 = vmatprep.mubr.f32.mxu0 %v1015_v8 }
  0x61   : > { %717 = vmatprep.mubr.f32.mxu1 %v1015_v8 }
  0x62   : > { %941 = vmatpush1.bf16.msra.mxu0 %v940_v41 }
  0x63   : > { %957 = vmatpush1.bf16.msra.mxu1 %v956_v42  ;;  %943 = vmatprep.subr.bf16.mxu0 %v942_v43 }
  0x64   : > { %959 = vmatprep.subr.bf16.mxu1 %v958_v46 }
  0x66   : > { %945 = vmatpush1.bf16.msra.mxu0 %v944_v49 }
  0x67   : > { %961 = vmatpush1.bf16.msra.mxu1 %v960_v50  ;;  %592 = vmatprep.subr.mxu0 %v400_v51 }
  0x68   : > { %669 = vmatprep.subr.mxu1 %v402_v52 }
  0x6a   : > { %593 = vmatpush1.msra.mxu0 %v399_v53 }
  0x6b   : > { %670 = vmatpush1.msra.mxu1 %v401_v54  ;;  %887 = vmatmul.mubr.msk.f32.vlgmr.msra.gmra.mrb[4].mxu0 %vm415_vm0, %v1282_v3 }
  0x6c   : > { %889 = vmatmul.mubr.msk.f32.vlgmr.msra.gmra.mrb[4].mxu1 %vm415_vm0, %v1282_v3  ;;  %646 = vmatprep.mubr.f32.mxu0 %v1015_v8 }
  0x6d   : > { %723 = vmatprep.mubr.f32.mxu1 %v1015_v8 }
  0x6f   : > { %888 = vmatmul.mubr.msk.f32.gmra.mrb[6].mxu0 %vm415_vm0, %v330_v29 }
  0x70   : > { %890 = vmatmul.mubr.msk.f32.gmra.mrb[6].mxu1 %vm415_vm0, %v330_v29 }
  0xbf   : > { %v408_v55 = vpop.permute.xlu0 %407 }
  0xc3   : > { %v413_v1 = vpop.permute.xlu0 %412 }
 0x12b   : > { %v488_v56 = vpop.f32.mrb[0].mxu0 }
 0x12c   : > { %v565_v57 = vpop.f32.mrb[0].mxu1  ;;  %v489_v58 = vadd.f32 %v488_v56, %v408_v55  ;;  %v490_v59 = vpop.f32.mrb[1].mxu0 }
 0x12d   : > { %v566_v60 = vadd.f32 %v565_v57, %v408_v55  ;;  %v491_v61 = vadd.f32 %v490_v59, %v408_v55  ;;  %v567_v62 = vpop.f32.mrb[1].mxu1 }
 0x12e   : > { %v730_v63 = vmax.f32 %v489_v58, 0.0  ;;  %v568_v0 = vadd.f32 %v567_v62, %v408_v55 }
 0x12f   : > { %v732_v2 = vmax.f32 %v566_v60, 0.0  ;;  %v731_v3 = vmax.f32 %v491_v61, 0.0 }
 0x130   : > { %746 = vst [vmem:[%s1340_s18] sm:$0xff] %v730_v63  ;;  %v733_v8 = vmax.f32 %v568_v0, 0.0  ;;  %v494_v4 = vpop.f32.mrb[2].mxu0 }
 0x131   : > { %748 = vst [vmem:[%s1340_s18 + $0x10] sm:$0xff] %v732_v2  ;;  %747 = vst [vmem:[%s1340_s18 + $0x8] sm:$0xff] %v731_v3  ;;  %v571_v5 = vpop.f32.mrb[2].mxu1  ;;  %v495_v6 = vadd.f32 %v494_v4, %v413_v1  ;;  %v496_v7 = vpop.f32.mrb[3].mxu0 }
 0x132   : > { %749 = vst [vmem:[%s1340_s18 + $0x18] sm:$0xff] %v733_v8  ;;  %v572_v9 = vadd.f32 %v571_v5, %v413_v1  ;;  %v497_v10 = vadd.f32 %v496_v7, %v413_v1  ;;  %v573_v11 = vpop.f32.mrb[3].mxu1 }
 0x133   : > { %v738_v12 = vmax.f32 %v495_v6, 0.0  ;;  %v574_v13 = vadd.f32 %v573_v11, %v413_v1 }
 0x134   : > { %v740_v14 = vmax.f32 %v572_v9, 0.0  ;;  %v739_v15 = vmax.f32 %v497_v10, 0.0 }
 0x135   : > { %754 = vst [vmem:[%s1340_s18 + $0x40] sm:$0xff] %v738_v12  ;;  %v741_v16 = vmax.f32 %v574_v13, 0.0 }
 0x136   : > { %756 = vst [vmem:[%s1340_s18 + $0x50] sm:$0xff] %v740_v14  ;;  %755 = vst [vmem:[%s1340_s18 + $0x48] sm:$0xff] %v739_v15 }
 0x137   : > { %757 = vst [vmem:[%s1340_s18 + $0x58] sm:$0xff] %v741_v16  ;;  %v784_v41 = vld [vmem:[%s1340_s18] sm:$0xff] (%p1067_p5) }
 0x138   : > { %v786_v42 = vld [vmem:[%s1340_s18 + $0x8] sm:$0xff] (%p1067_p5)  ;;  %v788_v43 = vld [vmem:[%s1340_s18 + $0x10] sm:$0xff] (%p1067_p5)  ;;  %785 = vst [vmem:[%s771_s20] sm:$0xff] (%p1067_p5), %v784_v41 }
 0x139   : > { %v790_v44 = vld [vmem:[%s1340_s18 + $0x18] sm:$0xff] (%p1067_p5)  ;;  %787 = vst [vmem:[%s771_s20 + $0x8] sm:$0xff] (%p1067_p5), %v786_v42  ;;  %789 = vst [vmem:[%s771_s20 + $0x10] sm:$0xff] (%p1067_p5), %v788_v43 }
 0x13a   : > { %791 = vst [vmem:[%s771_s20 + $0x18] sm:$0xff] (%p1067_p5), %v790_v44 }
 0x13c   : > { %v800_v49 = vld [vmem:[%s1340_s18 + $0x40] sm:$0xff] (%p1067_p5) }
 0x13d   : > { %801 = vst [vmem:[%s771_s20 + $0x80] sm:$0xff] (%p1067_p5), %v800_v49  ;;  %v802_v50 = vld [vmem:[%s1340_s18 + $0x48] sm:$0xff] (%p1067_p5)  ;;  %v804_v51 = vld [vmem:[%s1340_s18 + $0x50] sm:$0xff] (%p1067_p5) }
 0x13e   : > { %v642_v17 = vpop.f32.mrb[4].mxu0  ;;  %v806_v52 = vld [vmem:[%s1340_s18 + $0x58] sm:$0xff] (%p1067_p5)  ;;  %803 = vst [vmem:[%s771_s20 + $0x88] sm:$0xff] (%p1067_p5), %v802_v50  ;;  %805 = vst [vmem:[%s771_s20 + $0x90] sm:$0xff] (%p1067_p5), %v804_v51 }
 0x13f   : > { %v643_v18 = vadd.f32 %v642_v17, %v408_v55  ;;  %v719_v19 = vpop.f32.mrb[4].mxu1  ;;  %v644_v20 = vpop.f32.mrb[5].mxu0  ;;  %807 = vst [vmem:[%s771_s20 + $0x98] sm:$0xff] (%p1067_p5), %v806_v52 }
 0x140   : > { %v720_v21 = vadd.f32 %v719_v19, %v408_v55  ;;  %v645_v22 = vadd.f32 %v644_v20, %v408_v55  ;;  %v721_v23 = vpop.f32.mrb[5].mxu1 }
 0x141   : > { %v734_v24 = vmax.f32 %v643_v18, 0.0  ;;  %v722_v25 = vadd.f32 %v721_v23, %v408_v55 }
 0x142   : > { %v736_v26 = vmax.f32 %v720_v21, 0.0  ;;  %v735_v27 = vmax.f32 %v645_v22, 0.0  ;;  %v648_v28 = vpop.f32.mrb[6].mxu0 }
 0x143   : > { %750 = vst [vmem:[%s1340_s18 + $0x20] sm:$0xff] %v734_v24  ;;  %v737_v29 = vmax.f32 %v722_v25, 0.0  ;;  %v649_v30 = vadd.f32 %v648_v28, %v413_v1  ;;  %v725_v31 = vpop.f32.mrb[6].mxu1  ;;  %v650_v32 = vpop.f32.mrb[7].mxu0  ;;  %768 = sbr.rel (!%p1067_p5) target bundleno = 338 (0x152), region = 59 }
 0x144   : > { %752 = vst [vmem:[%s1340_s18 + $0x30] sm:$0xff] %v736_v26  ;;  %751 = vst [vmem:[%s1340_s18 + $0x28] sm:$0xff] %v735_v27  ;;  %v726_v33 = vadd.f32 %v725_v31, %v413_v1  ;;  %v651_v34 = vadd.f32 %v650_v32, %v413_v1  ;;  %v727_v35 = vpop.f32.mrb[7].mxu1 }
 0x145   : > { %753 = vst [vmem:[%s1340_s18 + $0x38] sm:$0xff] %v737_v29  ;;  %v742_v36 = vmax.f32 %v649_v30, 0.0  ;;  %v728_v37 = vadd.f32 %v727_v35, %v413_v1 }
 0x146   : > { %v744_v38 = vmax.f32 %v726_v33, 0.0  ;;  %v743_v39 = vmax.f32 %v651_v34, 0.0 }
 0x147   : > { %758 = vst [vmem:[%s1340_s18 + $0x60] sm:$0xff] %v742_v36  ;;  %v745_v40 = vmax.f32 %v728_v37, 0.0 }
 0x148   : > { %760 = vst [vmem:[%s1340_s18 + $0x70] sm:$0xff] %v744_v38  ;;  %759 = vst [vmem:[%s1340_s18 + $0x68] sm:$0xff] %v743_v39 }
 0x149   : > { %761 = vst [vmem:[%s1340_s18 + $0x78] sm:$0xff] %v745_v40 }
 0x14a   : > { %v792_v45 = vld [vmem:[%s1340_s18 + $0x20] sm:$0xff] }
 0x14b   : > { %v794_v46 = vld [vmem:[%s1340_s18 + $0x28] sm:$0xff]  ;;  %793 = vst [vmem:[%s771_s20 + $0x20] sm:$0xff] %v792_v45  ;;  %v796_v47 = vld [vmem:[%s1340_s18 + $0x30] sm:$0xff] }
 0x14c   : > { %795 = vst [vmem:[%s771_s20 + $0x28] sm:$0xff] %v794_v46  ;;  %v798_v48 = vld [vmem:[%s1340_s18 + $0x38] sm:$0xff]  ;;  %797 = vst [vmem:[%s771_s20 + $0x30] sm:$0xff] %v796_v47 }
 0x14d   : > { %799 = vst [vmem:[%s771_s20 + $0x38] sm:$0xff] %v798_v48 }
 0x14e   : > { %v808_v53 = vld [vmem:[%s1340_s18 + $0x60] sm:$0xff] }
 0x14f   : > { %v810_v54 = vld [vmem:[%s1340_s18 + $0x68] sm:$0xff]  ;;  %v812_v55 = vld [vmem:[%s1340_s18 + $0x70] sm:$0xff]  ;;  %809 = vst [vmem:[%s771_s20 + $0xa0] sm:$0xff] %v808_v53 }
 0x150   : > { %811 = vst [vmem:[%s771_s20 + $0xa8] sm:$0xff] %v810_v54  ;;  %813 = vst [vmem:[%s771_s20 + $0xb0] sm:$0xff] %v812_v55  ;;  %v814_v56 = vld [vmem:[%s1340_s18 + $0x78] sm:$0xff] }
 0x151   : > { %815 = vst [vmem:[%s771_s20 + $0xb8] sm:$0xff] %v814_v56 }
 0x152 PF: > { %p10_p10 = scmp.ge.s32.totalorder %s1054_s16, 4   ;;  %s1396_s12 = smov %s1009_s13 }
 0x153   : > { %s1397_s13 = smov %s1065_s19  ;;  %s1398_s14 = smov %s1054_s16 }
 0x154   :  { %12 = sbr.rel (!%p10_p10) target bundleno = 2 (0x2), region = 113 }

// kernel: wifi_detector_forward.9
= control target key start
LH: loop header
LB: loop body
LE: loop exit
PB: predicated region body
PF: predicated region fallthrough
CT: control target
= control target key end

     0   :  { %s6997_s12 = smov 0   ;;  %s6999_s13 = smov 0   ;;  %s8882_s0 = inlined_call_operand.vmem [shape: bf16[2,128], index: 0, kind: input, shape index: {}]   ;;  %s8883_s1 = inlined_call_operand.vmem [shape: bf16[128,16384], index: 1, kind: input, shape index: {}]   ;;  %s8884_s2 = inlined_call_operand.vmem [shape: f32[1,16384], index: 2, kind: input, shape index: {}]   ;;  %s8885_s3 = inlined_call_operand.vmem [shape: f32[2,16384], index: 3, kind: output, shape index: {}]  }
   0x1   :  { %s7001_s14 = smov 0  }
   0x2 LB: > { %s6395_s15 = sadd.s32 4294967295, %s6973_s14   ;;  %s7014_s16 = sadd.s32 1, %s6973_s14   ;;  %s6973_s14 = sphi %s7001_s14, %s8888_s14   ;;  %s6969_s13 = sphi %s6999_s13, %s8887_s13   ;;  %s6965_s12 = sphi %s6997_s12, %s8886_s12  }
   0x3   : > { %s38_s17 = ssub.s32 %s6973_s14, %s7014_s16  ;;  %s41_s18 = sadd.s32 1, %s6969_s13 }
   0x4   : > { %p39_p0 = scmp.eq.s32.totalorder %s38_s17, 0  ;;  %p48_p1 = scmp.ne.s32.totalorder %s6969_s13, %s6965_s12 }
   0x5   : > { %p49_p2 = scmp.eq.s32.totalorder %s6973_s14, 0  ;;  %p6398_p4 = scmp.ge.s32.totalorder %s6973_s14, 2 }
   0x6   : > { %s7023_s19 = scalar_select %p39_p0, %s6969_s13, %s41_s18  }
   0x7   : > { %p50_p3 = por %p49_p2, %p48_p1  ;;  %129 = sbr.rel (%p6398_p4) target bundleno = 274 (0x112), region = 20 }
   0xe   : > { %132 = sbr.rel (!%p50_p3) target bundleno = 274 (0x112), region = 24  ;;  %s134_s20 = sand.u32 (%p50_p3), 1, %s6969_s13  }
   0xf   : > { %s6921_s21 = sshll.u32 (%p50_p3), %s6973_s14, 8  ;;  %s6399_s22 = sshll.u32 (%p50_p3), %s134_s20, 12 }
  0x10   : > { %s7031_s25 = scalar_lea.vmem (%p50_p3), %s8883_s1, %s6921_s21  ;;  %s7036_s26 = scalar_lea.vmem (%p50_p3), [#allocation2], %s6399_s22 }
  0x11   : > { %v152_v0 = vld [vmem:[%s7031_s25] sm:$0xff] (%p50_p3)  ;;  %v154_v1 = vld [vmem:[%s7031_s25 + $0x8] sm:$0xff] (%p50_p3)  ;;  %v156_v2 = vld [vmem:[%s7031_s25 + $0x10] sm:$0xff] (%p50_p3) }
  0x12   : > { %153 = vst [vmem:[%s7036_s26] sm:$0xff] (%p50_p3), %v152_v0  ;;  %155 = vst [vmem:[%s7036_s26 + $0x8] sm:$0xff] (%p50_p3), %v154_v1  ;;  %v158_v3 = vld [vmem:[%s7031_s25 + $0x18] sm:$0xff] (%p50_p3)  ;;  %v160_v4 = vld [vmem:[%s7031_s25 + $0x20] sm:$0xff] (%p50_p3) }
  0x13   : > { %157 = vst [vmem:[%s7036_s26 + $0x10] sm:$0xff] (%p50_p3), %v156_v2  ;;  %v162_v5 = vld [vmem:[%s7031_s25 + $0x28] sm:$0xff] (%p50_p3)  ;;  %159 = vst [vmem:[%s7036_s26 + $0x18] sm:$0xff] (%p50_p3), %v158_v3  ;;  %v164_v6 = vld [vmem:[%s7031_s25 + $0x30] sm:$0xff] (%p50_p3) }
  0x14   : > { %161 = vst [vmem:[%s7036_s26 + $0x20] sm:$0xff] (%p50_p3), %v160_v4  ;;  %163 = vst [vmem:[%s7036_s26 + $0x28] sm:$0xff] (%p50_p3), %v162_v5  ;;  %v166_v7 = vld [vmem:[%s7031_s25 + $0x38] sm:$0xff] (%p50_p3)  ;;  %v168_v8 = vld [vmem:[%s7031_s25 + $0x40] sm:$0xff] (%p50_p3) }
  0x15   : > { %165 = vst [vmem:[%s7036_s26 + $0x30] sm:$0xff] %v164_v6  ;;  %167 = vst [vmem:[%s7036_s26 + $0x38] sm:$0xff] %v166_v7  ;;  %v170_v9 = vld [vmem:[%s7031_s25 + $0x48] sm:$0xff]  ;;  %v172_v10 = vld [vmem:[%s7031_s25 + $0x50] sm:$0xff] }
  0x16   : > { %169 = vst [vmem:[%s7036_s26 + $0x40] sm:$0xff] %v168_v8  ;;  %v174_v11 = vld [vmem:[%s7031_s25 + $0x58] sm:$0xff]  ;;  %171 = vst [vmem:[%s7036_s26 + $0x48] sm:$0xff] %v170_v9  ;;  %v176_v12 = vld [vmem:[%s7031_s25 + $0x60] sm:$0xff] }
  0x17   : > { %173 = vst [vmem:[%s7036_s26 + $0x50] sm:$0xff] %v172_v10  ;;  %175 = vst [vmem:[%s7036_s26 + $0x58] sm:$0xff] %v174_v11  ;;  %v178_v13 = vld [vmem:[%s7031_s25 + $0x68] sm:$0xff]  ;;  %v180_v14 = vld [vmem:[%s7031_s25 + $0x70] sm:$0xff] }
  0x18   : > { %177 = vst [vmem:[%s7036_s26 + $0x60] sm:$0xff] %v176_v12  ;;  %179 = vst [vmem:[%s7036_s26 + $0x68] sm:$0xff] %v178_v13  ;;  %v182_v15 = vld [vmem:[%s7031_s25 + $0x78] sm:$0xff]  ;;  %v184_v16 = vld [vmem:[%s7031_s25 + $0x80] sm:$0xff] }
  0x19   : > { %181 = vst [vmem:[%s7036_s26 + $0x70] sm:$0xff] %v180_v14  ;;  %v186_v17 = vld [vmem:[%s7031_s25 + $0x88] sm:$0xff]  ;;  %183 = vst [vmem:[%s7036_s26 + $0x78] sm:$0xff] %v182_v15  ;;  %v188_v18 = vld [vmem:[%s7031_s25 + $0x90] sm:$0xff] }
  0x1a   : > { %185 = vst [vmem:[%s7036_s26 + $0x80] sm:$0xff] %v184_v16  ;;  %187 = vst [vmem:[%s7036_s26 + $0x88] sm:$0xff] %v186_v17  ;;  %v190_v19 = vld [vmem:[%s7031_s25 + $0x98] sm:$0xff]  ;;  %v192_v20 = vld [vmem:[%s7031_s25 + $0xa0] sm:$0xff] }
  0x1b   : > { %189 = vst [vmem:[%s7036_s26 + $0x90] sm:$0xff] %v188_v18  ;;  %191 = vst [vmem:[%s7036_s26 + $0x98] sm:$0xff] %v190_v19  ;;  %v194_v21 = vld [vmem:[%s7031_s25 + $0xa8] sm:$0xff]  ;;  %v196_v22 = vld [vmem:[%s7031_s25 + $0xb0] sm:$0xff] }
  0x1c   : > { %193 = vst [vmem:[%s7036_s26 + $0xa0] sm:$0xff] %v192_v20  ;;  %v198_v23 = vld [vmem:[%s7031_s25 + $0xb8] sm:$0xff]  ;;  %195 = vst [vmem:[%s7036_s26 + $0xa8] sm:$0xff] %v194_v21  ;;  %v200_v24 = vld [vmem:[%s7031_s25 + $0xc0] sm:$0xff] }
  0x1d   : > { %197 = vst [vmem:[%s7036_s26 + $0xb0] sm:$0xff] %v196_v22  ;;  %199 = vst [vmem:[%s7036_s26 + $0xb8] sm:$0xff] %v198_v23  ;;  %v202_v25 = vld [vmem:[%s7031_s25 + $0xc8] sm:$0xff]  ;;  %v204_v26 = vld [vmem:[%s7031_s25 + $0xd0] sm:$0xff] }
  0x1e   : > { %201 = vst [vmem:[%s7036_s26 + $0xc0] sm:$0xff] %v200_v24  ;;  %203 = vst [vmem:[%s7036_s26 + $0xc8] sm:$0xff] %v202_v25  ;;  %v206_v27 = vld [vmem:[%s7031_s25 + $0xd8] sm:$0xff]  ;;  %v208_v28 = vld [vmem:[%s7031_s25 + $0xe0] sm:$0xff] }
  0x1f   : > { %205 = vst [vmem:[%s7036_s26 + $0xd0] sm:$0xff] %v204_v26  ;;  %v210_v29 = vld [vmem:[%s7031_s25 + $0xe8] sm:$0xff]  ;;  %207 = vst [vmem:[%s7036_s26 + $0xd8] sm:$0xff] %v206_v27  ;;  %v212_v30 = vld [vmem:[%s7031_s25 + $0xf0] sm:$0xff] }
  0x20   : > { %209 = vst [vmem:[%s7036_s26 + $0xe0] sm:$0xff] %v208_v28  ;;  %211 = vst [vmem:[%s7036_s26 + $0xe8] sm:$0xff] %v210_v29  ;;  %v214_v31 = vld [vmem:[%s7031_s25 + $0xf8] sm:$0xff]  ;;  %v216_v32 = vld [vmem:[%s7031_s25 + $0x200] sm:$0xff] }
  0x21   : > { %213 = vst [vmem:[%s7036_s26 + $0xf0] sm:$0xff] %v212_v30  ;;  %215 = vst [vmem:[%s7036_s26 + $0xf8] sm:$0xff] %v214_v31  ;;  %v218_v33 = vld [vmem:[%s7031_s25 + $0x208] sm:$0xff]  ;;  %v220_v34 = vld [vmem:[%s7031_s25 + $0x210] sm:$0xff] }
  0x22   : > { %217 = vst [vmem:[%s7036_s26 + $0x100] sm:$0xff] %v216_v32  ;;  %v222_v35 = vld [vmem:[%s7031_s25 + $0x218] sm:$0xff]  ;;  %219 = vst [vmem:[%s7036_s26 + $0x108] sm:$0xff] %v218_v33  ;;  %v224_v36 = vld [vmem:[%s7031_s25 + $0x220] sm:$0xff] }
  0x23   : > { %221 = vst [vmem:[%s7036_s26 + $0x110] sm:$0xff] %v220_v34  ;;  %223 = vst [vmem:[%s7036_s26 + $0x118] sm:$0xff] %v222_v35  ;;  %v226_v37 = vld [vmem:[%s7031_s25 + $0x228] sm:$0xff]  ;;  %v228_v38 = vld [vmem:[%s7031_s25 + $0x230] sm:$0xff] }
  0x24   : > { %225 = vst [vmem:[%s7036_s26 + $0x120] sm:$0xff] %v224_v36  ;;  %227 = vst [vmem:[%s7036_s26 + $0x128] sm:$0xff] %v226_v37  ;;  %v230_v39 = vld [vmem:[%s7031_s25 + $0x238] sm:$0xff]  ;;  %v232_v40 = vld [vmem:[%s7031_s25 + $0x240] sm:$0xff] }
  0x25   : > { %229 = vst [vmem:[%s7036_s26 + $0x130] sm:$0xff] %v228_v38  ;;  %v234_v41 = vld [vmem:[%s7031_s25 + $0x248] sm:$0xff]  ;;  %231 = vst [vmem:[%s7036_s26 + $0x138] sm:$0xff] %v230_v39  ;;  %v236_v42 = vld [vmem:[%s7031_s25 + $0x250] sm:$0xff] }
  0x26   : > { %233 = vst [vmem:[%s7036_s26 + $0x140] sm:$0xff] %v232_v40  ;;  %235 = vst [vmem:[%s7036_s26 + $0x148] sm:$0xff] %v234_v41  ;;  %v238_v43 = vld [vmem:[%s7031_s25 + $0x258] sm:$0xff]  ;;  %v240_v44 = vld [vmem:[%s7031_s25 + $0x260] sm:$0xff] }
  0x27   : > { %237 = vst [vmem:[%s7036_s26 + $0x150] sm:$0xff] %v236_v42  ;;  %239 = vst [vmem:[%s7036_s26 + $0x158] sm:$0xff] %v238_v43  ;;  %v242_v45 = vld [vmem:[%s7031_s25 + $0x268] sm:$0xff]  ;;  %v244_v46 = vld [vmem:[%s7031_s25 + $0x270] sm:$0xff] }
  0x28   : > { %241 = vst [vmem:[%s7036_s26 + $0x160] sm:$0xff] %v240_v44  ;;  %v246_v47 = vld [vmem:[%s7031_s25 + $0x278] sm:$0xff]  ;;  %243 = vst [vmem:[%s7036_s26 + $0x168] sm:$0xff] %v242_v45  ;;  %v248_v48 = vld [vmem:[%s7031_s25 + $0x280] sm:$0xff] }
  0x29   : > { %245 = vst [vmem:[%s7036_s26 + $0x170] sm:$0xff] %v244_v46  ;;  %247 = vst [vmem:[%s7036_s26 + $0x178] sm:$0xff] %v246_v47  ;;  %v250_v49 = vld [vmem:[%s7031_s25 + $0x288] sm:$0xff]  ;;  %v252_v50 = vld [vmem:[%s7031_s25 + $0x290] sm:$0xff] }
  0x2a   : > { %249 = vst [vmem:[%s7036_s26 + $0x180] sm:$0xff] %v248_v48  ;;  %251 = vst [vmem:[%s7036_s26 + $0x188] sm:$0xff] %v250_v49  ;;  %v254_v51 = vld [vmem:[%s7031_s25 + $0x298] sm:$0xff]  ;;  %v256_v52 = vld [vmem:[%s7031_s25 + $0x2a0] sm:$0xff] }
  0x2b   : > { %253 = vst [vmem:[%s7036_s26 + $0x190] sm:$0xff] %v252_v50  ;;  %v258_v53 = vld [vmem:[%s7031_s25 + $0x2a8] sm:$0xff]  ;;  %255 = vst [vmem:[%s7036_s26 + $0x198] sm:$0xff] %v254_v51  ;;  %v260_v54 = vld [vmem:[%s7031_s25 + $0x2b0] sm:$0xff] }
  0x2c   : > { %257 = vst [vmem:[%s7036_s26 + $0x1a0] sm:$0xff] %v256_v52  ;;  %259 = vst [vmem:[%s7036_s26 + $0x1a8] sm:$0xff] %v258_v53  ;;  %v262_v55 = vld [vmem:[%s7031_s25 + $0x2b8] sm:$0xff]  ;;  %v264_v56 = vld [vmem:[%s7031_s25 + $0x2c0] sm:$0xff] }
  0x2d   : > { %261 = vst [vmem:[%s7036_s26 + $0x1b0] sm:$0xff] %v260_v54  ;;  %263 = vst [vmem:[%s7036_s26 + $0x1b8] sm:$0xff] %v262_v55  ;;  %v266_v57 = vld [vmem:[%s7031_s25 + $0x2c8] sm:$0xff]  ;;  %v268_v58 = vld [vmem:[%s7031_s25 + $0x2d0] sm:$0xff] }
  0x2e   : > { %265 = vst [vmem:[%s7036_s26 + $0x1c0] sm:$0xff] %v264_v56  ;;  %v270_v59 = vld [vmem:[%s7031_s25 + $0x2d8] sm:$0xff]  ;;  %267 = vst [vmem:[%s7036_s26 + $0x1c8] sm:$0xff] %v266_v57  ;;  %v272_v60 = vld [vmem:[%s7031_s25 + $0x2e0] sm:$0xff] }
  0x2f   : > { %269 = vst [vmem:[%s7036_s26 + $0x1d0] sm:$0xff] %v268_v58  ;;  %271 = vst [vmem:[%s7036_s26 + $0x1d8] sm:$0xff] %v270_v59  ;;  %v274_v61 = vld [vmem:[%s7031_s25 + $0x2e8] sm:$0xff]  ;;  %v276_v62 = vld [vmem:[%s7031_s25 + $0x2f0] sm:$0xff] }
  0x30   : > { %273 = vst [vmem:[%s7036_s26 + $0x1e0] sm:$0xff] %v272_v60  ;;  %275 = vst [vmem:[%s7036_s26 + $0x1e8] sm:$0xff] %v274_v61  ;;  %v278_v63 = vld [vmem:[%s7031_s25 + $0x2f8] sm:$0xff]  ;;  %v280_v0 = vld [vmem:[%s7031_s25 + $0x400] sm:$0xff] }
  0x31   : > { %277 = vst [vmem:[%s7036_s26 + $0x1f0] sm:$0xff] %v276_v62  ;;  %v282_v1 = vld [vmem:[%s7031_s25 + $0x408] sm:$0xff]  ;;  %279 = vst [vmem:[%s7036_s26 + $0x1f8] sm:$0xff] %v278_v63  ;;  %v284_v2 = vld [vmem:[%s7031_s25 + $0x410] sm:$0xff] }
  0x32   : > { %281 = vst [vmem:[%s7036_s26 + $0x200] sm:$0xff] %v280_v0  ;;  %283 = vst [vmem:[%s7036_s26 + $0x208] sm:$0xff] %v282_v1  ;;  %v286_v3 = vld [vmem:[%s7031_s25 + $0x418] sm:$0xff]  ;;  %v288_v4 = vld [vmem:[%s7031_s25 + $0x420] sm:$0xff] }
  0x33   : > { %285 = vst [vmem:[%s7036_s26 + $0x210] sm:$0xff] %v284_v2  ;;  %287 = vst [vmem:[%s7036_s26 + $0x218] sm:$0xff] %v286_v3  ;;  %v290_v5 = vld [vmem:[%s7031_s25 + $0x428] sm:$0xff]  ;;  %v292_v6 = vld [vmem:[%s7031_s25 + $0x430] sm:$0xff] }
  0x34   : > { %289 = vst [vmem:[%s7036_s26 + $0x220] sm:$0xff] %v288_v4  ;;  %v294_v7 = vld [vmem:[%s7031_s25 + $0x438] sm:$0xff]  ;;  %291 = vst [vmem:[%s7036_s26 + $0x228] sm:$0xff] %v290_v5  ;;  %v296_v8 = vld [vmem:[%s7031_s25 + $0x440] sm:$0xff] }
  0x35   : > { %293 = vst [vmem:[%s7036_s26 + $0x230] sm:$0xff] %v292_v6  ;;  %295 = vst [vmem:[%s7036_s26 + $0x238] sm:$0xff] %v294_v7  ;;  %v298_v9 = vld [vmem:[%s7031_s25 + $0x448] sm:$0xff]  ;;  %v300_v10 = vld [vmem:[%s7031_s25 + $0x450] sm:$0xff] }
  0x36   : > { %297 = vst [vmem:[%s7036_s26 + $0x240] sm:$0xff] %v296_v8  ;;  %299 = vst [vmem:[%s7036_s26 + $0x248] sm:$0xff] %v298_v9  ;;  %v302_v11 = vld [vmem:[%s7031_s25 + $0x458] sm:$0xff]  ;;  %v304_v12 = vld [vmem:[%s7031_s25 + $0x460] sm:$0xff] }
  0x37   : > { %301 = vst [vmem:[%s7036_s26 + $0x250] sm:$0xff] %v300_v10  ;;  %v306_v13 = vld [vmem:[%s7031_s25 + $0x468] sm:$0xff]  ;;  %303 = vst [vmem:[%s7036_s26 + $0x258] sm:$0xff] %v302_v11  ;;  %v308_v14 = vld [vmem:[%s7031_s25 + $0x470] sm:$0xff] }
  0x38   : > { %305 = vst [vmem:[%s7036_s26 + $0x260] sm:$0xff] %v304_v12  ;;  %307 = vst [vmem:[%s7036_s26 + $0x268] sm:$0xff] %v306_v13  ;;  %v310_v15 = vld [vmem:[%s7031_s25 + $0x478] sm:$0xff]  ;;  %v312_v16 = vld [vmem:[%s7031_s25 + $0x480] sm:$0xff] }
  0x39   : > { %309 = vst [vmem:[%s7036_s26 + $0x270] sm:$0xff] %v308_v14  ;;  %311 = vst [vmem:[%s7036_s26 + $0x278] sm:$0xff] %v310_v15  ;;  %v314_v17 = vld [vmem:[%s7031_s25 + $0x488] sm:$0xff]  ;;  %v316_v18 = vld [vmem:[%s7031_s25 + $0x490] sm:$0xff] }
  0x3a   : > { %313 = vst [vmem:[%s7036_s26 + $0x280] sm:$0xff] %v312_v16  ;;  %v318_v19 = vld [vmem:[%s7031_s25 + $0x498] sm:$0xff]  ;;  %315 = vst [vmem:[%s7036_s26 + $0x288] sm:$0xff] %v314_v17  ;;  %v320_v20 = vld [vmem:[%s7031_s25 + $0x4a0] sm:$0xff] }
  0x3b   : > { %317 = vst [vmem:[%s7036_s26 + $0x290] sm:$0xff] %v316_v18  ;;  %319 = vst [vmem:[%s7036_s26 + $0x298] sm:$0xff] %v318_v19  ;;  %v322_v21 = vld [vmem:[%s7031_s25 + $0x4a8] sm:$0xff]  ;;  %v324_v22 = vld [vmem:[%s7031_s25 + $0x4b0] sm:$0xff] }
  0x3c   : > { %321 = vst [vmem:[%s7036_s26 + $0x2a0] sm:$0xff] %v320_v20  ;;  %323 = vst [vmem:[%s7036_s26 + $0x2a8] sm:$0xff] %v322_v21  ;;  %v326_v23 = vld [vmem:[%s7031_s25 + $0x4b8] sm:$0xff]  ;;  %v328_v24 = vld [vmem:[%s7031_s25 + $0x4c0] sm:$0xff] }
  0x3d   : > { %325 = vst [vmem:[%s7036_s26 + $0x2b0] sm:$0xff] %v324_v22  ;;  %v330_v25 = vld [vmem:[%s7031_s25 + $0x4c8] sm:$0xff]  ;;  %327 = vst [vmem:[%s7036_s26 + $0x2b8] sm:$0xff] %v326_v23  ;;  %v332_v26 = vld [vmem:[%s7031_s25 + $0x4d0] sm:$0xff] }
  0x3e   : > { %329 = vst [vmem:[%s7036_s26 + $0x2c0] sm:$0xff] %v328_v24  ;;  %331 = vst [vmem:[%s7036_s26 + $0x2c8] sm:$0xff] %v330_v25  ;;  %v334_v27 = vld [vmem:[%s7031_s25 + $0x4d8] sm:$0xff]  ;;  %v336_v28 = vld [vmem:[%s7031_s25 + $0x4e0] sm:$0xff] }
  0x3f   : > { %333 = vst [vmem:[%s7036_s26 + $0x2d0] sm:$0xff] %v332_v26  ;;  %335 = vst [vmem:[%s7036_s26 + $0x2d8] sm:$0xff] %v334_v27  ;;  %v338_v29 = vld [vmem:[%s7031_s25 + $0x4e8] sm:$0xff]  ;;  %v340_v30 = vld [vmem:[%s7031_s25 + $0x4f0] sm:$0xff] }
  0x40   : > { %337 = vst [vmem:[%s7036_s26 + $0x2e0] sm:$0xff] %v336_v28  ;;  %v342_v31 = vld [vmem:[%s7031_s25 + $0x4f8] sm:$0xff]  ;;  %339 = vst [vmem:[%s7036_s26 + $0x2e8] sm:$0xff] %v338_v29  ;;  %v344_v32 = vld [vmem:[%s7031_s25 + $0x600] sm:$0xff] }
  0x41   : > { %341 = vst [vmem:[%s7036_s26 + $0x2f0] sm:$0xff] %v340_v30  ;;  %343 = vst [vmem:[%s7036_s26 + $0x2f8] sm:$0xff] %v342_v31  ;;  %v346_v33 = vld [vmem:[%s7031_s25 + $0x608] sm:$0xff]  ;;  %v348_v34 = vld [vmem:[%s7031_s25 + $0x610] sm:$0xff] }
  0x42   : > { %345 = vst [vmem:[%s7036_s26 + $0x300] sm:$0xff] %v344_v32  ;;  %347 = vst [vmem:[%s7036_s26 + $0x308] sm:$0xff] %v346_v33  ;;  %v350_v35 = vld [vmem:[%s7031_s25 + $0x618] sm:$0xff]  ;;  %v352_v36 = vld [vmem:[%s7031_s25 + $0x620] sm:$0xff] }
  0x43   : > { %349 = vst [vmem:[%s7036_s26 + $0x310] sm:$0xff] %v348_v34  ;;  %v354_v37 = vld [vmem:[%s7031_s25 + $0x628] sm:$0xff]  ;;  %351 = vst [vmem:[%s7036_s26 + $0x318] sm:$0xff] %v350_v35  ;;  %v356_v38 = vld [vmem:[%s7031_s25 + $0x630] sm:$0xff] }
  0x44   : > { %353 = vst [vmem:[%s7036_s26 + $0x320] sm:$0xff] %v352_v36  ;;  %355 = vst [vmem:[%s7036_s26 + $0x328] sm:$0xff] %v354_v37  ;;  %v358_v39 = vld [vmem:[%s7031_s25 + $0x638] sm:$0xff]  ;;  %v360_v40 = vld [vmem:[%s7031_s25 + $0x640] sm:$0xff] }
  0x45   : > { %357 = vst [vmem:[%s7036_s26 + $0x330] sm:$0xff] %v356_v38  ;;  %359 = vst [vmem:[%s7036_s26 + $0x338] sm:$0xff] %v358_v39  ;;  %v362_v41 = vld [vmem:[%s7031_s25 + $0x648] sm:$0xff]  ;;  %v364_v42 = vld [vmem:[%s7031_s25 + $0x650] sm:$0xff] }
  0x46   : > { %361 = vst [vmem:[%s7036_s26 + $0x340] sm:$0xff] %v360_v40  ;;  %v366_v43 = vld [vmem:[%s7031_s25 + $0x658] sm:$0xff]  ;;  %363 = vst [vmem:[%s7036_s26 + $0x348] sm:$0xff] %v362_v41  ;;  %v368_v44 = vld [vmem:[%s7031_s25 + $0x660] sm:$0xff] }
  0x47   : > { %365 = vst [vmem:[%s7036_s26 + $0x350] sm:$0xff] %v364_v42  ;;  %367 = vst [vmem:[%s7036_s26 + $0x358] sm:$0xff] %v366_v43  ;;  %v370_v45 = vld [vmem:[%s7031_s25 + $0x668] sm:$0xff]  ;;  %v372_v46 = vld [vmem:[%s7031_s25 + $0x670] sm:$0xff] }
  0x48   : > { %369 = vst [vmem:[%s7036_s26 + $0x360] sm:$0xff] %v368_v44  ;;  %371 = vst [vmem:[%s7036_s26 + $0x368] sm:$0xff] %v370_v45  ;;  %v374_v47 = vld [vmem:[%s7031_s25 + $0x678] sm:$0xff]  ;;  %v376_v48 = vld [vmem:[%s7031_s25 + $0x680] sm:$0xff] }
  0x49   : > { %373 = vst [vmem:[%s7036_s26 + $0x370] sm:$0xff] %v372_v46  ;;  %v378_v49 = vld [vmem:[%s7031_s25 + $0x688] sm:$0xff]  ;;  %375 = vst [vmem:[%s7036_s26 + $0x378] sm:$0xff] %v374_v47  ;;  %v380_v50 = vld [vmem:[%s7031_s25 + $0x690] sm:$0xff] }
  0x4a   : > { %377 = vst [vmem:[%s7036_s26 + $0x380] sm:$0xff] %v376_v48  ;;  %379 = vst [vmem:[%s7036_s26 + $0x388] sm:$0xff] %v378_v49  ;;  %v382_v51 = vld [vmem:[%s7031_s25 + $0x698] sm:$0xff]  ;;  %v384_v52 = vld [vmem:[%s7031_s25 + $0x6a0] sm:$0xff] }
  0x4b   : > { %381 = vst [vmem:[%s7036_s26 + $0x390] sm:$0xff] %v380_v50  ;;  %383 = vst [vmem:[%s7036_s26 + $0x398] sm:$0xff] %v382_v51  ;;  %v386_v53 = vld [vmem:[%s7031_s25 + $0x6a8] sm:$0xff]  ;;  %v388_v54 = vld [vmem:[%s7031_s25 + $0x6b0] sm:$0xff] }
  0x4c   : > { %385 = vst [vmem:[%s7036_s26 + $0x3a0] sm:$0xff] %v384_v52  ;;  %v390_v55 = vld [vmem:[%s7031_s25 + $0x6b8] sm:$0xff]  ;;  %387 = vst [vmem:[%s7036_s26 + $0x3a8] sm:$0xff] %v386_v53  ;;  %v392_v56 = vld [vmem:[%s7031_s25 + $0x6c0] sm:$0xff] }
  0x4d   : > { %389 = vst [vmem:[%s7036_s26 + $0x3b0] sm:$0xff] %v388_v54  ;;  %391 = vst [vmem:[%s7036_s26 + $0x3b8] sm:$0xff] %v390_v55  ;;  %v394_v57 = vld [vmem:[%s7031_s25 + $0x6c8] sm:$0xff]  ;;  %v396_v58 = vld [vmem:[%s7031_s25 + $0x6d0] sm:$0xff] }
  0x4e   : > { %393 = vst [vmem:[%s7036_s26 + $0x3c0] sm:$0xff] %v392_v56  ;;  %395 = vst [vmem:[%s7036_s26 + $0x3c8] sm:$0xff] %v394_v57  ;;  %v398_v59 = vld [vmem:[%s7031_s25 + $0x6d8] sm:$0xff]  ;;  %v400_v60 = vld [vmem:[%s7031_s25 + $0x6e0] sm:$0xff] }
  0x4f   : > { %397 = vst [vmem:[%s7036_s26 + $0x3d0] sm:$0xff] %v396_v58  ;;  %v402_v61 = vld [vmem:[%s7031_s25 + $0x6e8] sm:$0xff]  ;;  %399 = vst [vmem:[%s7036_s26 + $0x3d8] sm:$0xff] %v398_v59  ;;  %v404_v62 = vld [vmem:[%s7031_s25 + $0x6f0] sm:$0xff] }
  0x50   : > { %401 = vst [vmem:[%s7036_s26 + $0x3e0] sm:$0xff] %v400_v60  ;;  %403 = vst [vmem:[%s7036_s26 + $0x3e8] sm:$0xff] %v402_v61  ;;  %v406_v63 = vld [vmem:[%s7031_s25 + $0x6f8] sm:$0xff]  ;;  %v408_v0 = vld [vmem:[%s7031_s25 + $0x800] sm:$0xff] }
  0x51   : > { %405 = vst [vmem:[%s7036_s26 + $0x3f0] sm:$0xff] %v404_v62  ;;  %407 = vst [vmem:[%s7036_s26 + $0x3f8] sm:$0xff] %v406_v63  ;;  %v410_v1 = vld [vmem:[%s7031_s25 + $0x808] sm:$0xff]  ;;  %v412_v2 = vld [vmem:[%s7031_s25 + $0x810] sm:$0xff] }
  0x52   : > { %409 = vst [vmem:[%s7036_s26 + $0x400] sm:$0xff] %v408_v0  ;;  %v414_v3 = vld [vmem:[%s7031_s25 + $0x818] sm:$0xff]  ;;  %411 = vst [vmem:[%s7036_s26 + $0x408] sm:$0xff] %v410_v1  ;;  %v416_v4 = vld [vmem:[%s7031_s25 + $0x820] sm:$0xff] }
  0x53   : > { %413 = vst [vmem:[%s7036_s26 + $0x410] sm:$0xff] %v412_v2  ;;  %415 = vst [vmem:[%s7036_s26 + $0x418] sm:$0xff] %v414_v3  ;;  %v418_v5 = vld [vmem:[%s7031_s25 + $0x828] sm:$0xff]  ;;  %v420_v6 = vld [vmem:[%s7031_s25 + $0x830] sm:$0xff] }
  0x54   : > { %417 = vst [vmem:[%s7036_s26 + $0x420] sm:$0xff] %v416_v4  ;;  %419 = vst [vmem:[%s7036_s26 + $0x428] sm:$0xff] %v418_v5  ;;  %v422_v7 = vld [vmem:[%s7031_s25 + $0x838] sm:$0xff]  ;;  %v424_v8 = vld [vmem:[%s7031_s25 + $0x840] sm:$0xff] }
  0x55   : > { %421 = vst [vmem:[%s7036_s26 + $0x430] sm:$0xff] %v420_v6  ;;  %v426_v9 = vld [vmem:[%s7031_s25 + $0x848] sm:$0xff]  ;;  %423 = vst [vmem:[%s7036_s26 + $0x438] sm:$0xff] %v422_v7  ;;  %v428_v10 = vld [vmem:[%s7031_s25 + $0x850] sm:$0xff] }
  0x56   : > { %425 = vst [vmem:[%s7036_s26 + $0x440] sm:$0xff] %v424_v8  ;;  %427 = vst [vmem:[%s7036_s26 + $0x448] sm:$0xff] %v426_v9  ;;  %v430_v11 = vld [vmem:[%s7031_s25 + $0x858] sm:$0xff]  ;;  %v432_v12 = vld [vmem:[%s7031_s25 + $0x860] sm:$0xff] }
  0x57   : > { %429 = vst [vmem:[%s7036_s26 + $0x450] sm:$0xff] %v428_v10  ;;  %431 = vst [vmem:[%s7036_s26 + $0x458] sm:$0xff] %v430_v11  ;;  %v434_v13 = vld [vmem:[%s7031_s25 + $0x868] sm:$0xff]  ;;  %v436_v14 = vld [vmem:[%s7031_s25 + $0x870] sm:$0xff] }
  0x58   : > { %433 = vst [vmem:[%s7036_s26 + $0x460] sm:$0xff] %v432_v12  ;;  %v438_v15 = vld [vmem:[%s7031_s25 + $0x878] sm:$0xff]  ;;  %435 = vst [vmem:[%s7036_s26 + $0x468] sm:$0xff] %v434_v13  ;;  %v440_v16 = vld [vmem:[%s7031_s25 + $0x880] sm:$0xff] }
  0x59   : > { %437 = vst [vmem:[%s7036_s26 + $0x470] sm:$0xff] %v436_v14  ;;  %439 = vst [vmem:[%s7036_s26 + $0x478] sm:$0xff] %v438_v15  ;;  %v442_v17 = vld [vmem:[%s7031_s25 + $0x888] sm:$0xff]  ;;  %v444_v18 = vld [vmem:[%s7031_s25 + $0x890] sm:$0xff] }
  0x5a   : > { %441 = vst [vmem:[%s7036_s26 + $0x480] sm:$0xff] %v440_v16  ;;  %443 = vst [vmem:[%s7036_s26 + $0x488] sm:$0xff] %v442_v17  ;;  %v446_v19 = vld [vmem:[%s7031_s25 + $0x898] sm:$0xff]  ;;  %v448_v20 = vld [vmem:[%s7031_s25 + $0x8a0] sm:$0xff] }
  0x5b   : > { %445 = vst [vmem:[%s7036_s26 + $0x490] sm:$0xff] %v444_v18  ;;  %v450_v21 = vld [vmem:[%s7031_s25 + $0x8a8] sm:$0xff]  ;;  %447 = vst [vmem:[%s7036_s26 + $0x498] sm:$0xff] %v446_v19  ;;  %v452_v22 = vld [vmem:[%s7031_s25 + $0x8b0] sm:$0xff] }
  0x5c   : > { %449 = vst [vmem:[%s7036_s26 + $0x4a0] sm:$0xff] %v448_v20  ;;  %451 = vst [vmem:[%s7036_s26 + $0x4a8] sm:$0xff] %v450_v21  ;;  %v454_v23 = vld [vmem:[%s7031_s25 + $0x8b8] sm:$0xff]  ;;  %v456_v24 = vld [vmem:[%s7031_s25 + $0x8c0] sm:$0xff] }
  0x5d   : > { %453 = vst [vmem:[%s7036_s26 + $0x4b0] sm:$0xff] %v452_v22  ;;  %455 = vst [vmem:[%s7036_s26 + $0x4b8] sm:$0xff] %v454_v23  ;;  %v458_v25 = vld [vmem:[%s7031_s25 + $0x8c8] sm:$0xff]  ;;  %v460_v26 = vld [vmem:[%s7031_s25 + $0x8d0] sm:$0xff] }
  0x5e   : > { %457 = vst [vmem:[%s7036_s26 + $0x4c0] sm:$0xff] %v456_v24  ;;  %v462_v27 = vld [vmem:[%s7031_s25 + $0x8d8] sm:$0xff]  ;;  %459 = vst [vmem:[%s7036_s26 + $0x4c8] sm:$0xff] %v458_v25  ;;  %v464_v28 = vld [vmem:[%s7031_s25 + $0x8e0] sm:$0xff] }
  0x5f   : > { %461 = vst [vmem:[%s7036_s26 + $0x4d0] sm:$0xff] %v460_v26  ;;  %463 = vst [vmem:[%s7036_s26 + $0x4d8] sm:$0xff] %v462_v27  ;;  %v466_v29 = vld [vmem:[%s7031_s25 + $0x8e8] sm:$0xff]  ;;  %v468_v30 = vld [vmem:[%s7031_s25 + $0x8f0] sm:$0xff] }
  0x60   : > { %465 = vst [vmem:[%s7036_s26 + $0x4e0] sm:$0xff] %v464_v28  ;;  %467 = vst [vmem:[%s7036_s26 + $0x4e8] sm:$0xff] %v466_v29  ;;  %v470_v31 = vld [vmem:[%s7031_s25 + $0x8f8] sm:$0xff]  ;;  %v472_v32 = vld [vmem:[%s7031_s25 + $0xa00] sm:$0xff] }
  0x61   : > { %469 = vst [vmem:[%s7036_s26 + $0x4f0] sm:$0xff] %v468_v30  ;;  %v474_v33 = vld [vmem:[%s7031_s25 + $0xa08] sm:$0xff]  ;;  %471 = vst [vmem:[%s7036_s26 + $0x4f8] sm:$0xff] %v470_v31  ;;  %v476_v34 = vld [vmem:[%s7031_s25 + $0xa10] sm:$0xff] }
  0x62   : > { %473 = vst [vmem:[%s7036_s26 + $0x500] sm:$0xff] %v472_v32  ;;  %475 = vst [vmem:[%s7036_s26 + $0x508] sm:$0xff] %v474_v33  ;;  %v478_v35 = vld [vmem:[%s7031_s25 + $0xa18] sm:$0xff]  ;;  %v480_v36 = vld [vmem:[%s7031_s25 + $0xa20] sm:$0xff] }
  0x63   : > { %477 = vst [vmem:[%s7036_s26 + $0x510] sm:$0xff] %v476_v34  ;;  %479 = vst [vmem:[%s7036_s26 + $0x518] sm:$0xff] %v478_v35  ;;  %v482_v37 = vld [vmem:[%s7031_s25 + $0xa28] sm:$0xff]  ;;  %v484_v38 = vld [vmem:[%s7031_s25 + $0xa30] sm:$0xff] }
  0x64   : > { %481 = vst [vmem:[%s7036_s26 + $0x520] sm:$0xff] %v480_v36  ;;  %v486_v39 = vld [vmem:[%s7031_s25 + $0xa38] sm:$0xff]  ;;  %483 = vst [vmem:[%s7036_s26 + $0x528] sm:$0xff] %v482_v37  ;;  %v488_v40 = vld [vmem:[%s7031_s25 + $0xa40] sm:$0xff] }
  0x65   : > { %485 = vst [vmem:[%s7036_s26 + $0x530] sm:$0xff] %v484_v38  ;;  %487 = vst [vmem:[%s7036_s26 + $0x538] sm:$0xff] %v486_v39  ;;  %v490_v41 = vld [vmem:[%s7031_s25 + $0xa48] sm:$0xff]  ;;  %v492_v42 = vld [vmem:[%s7031_s25 + $0xa50] sm:$0xff] }
  0x66   : > { %489 = vst [vmem:[%s7036_s26 + $0x540] sm:$0xff] %v488_v40  ;;  %491 = vst [vmem:[%s7036_s26 + $0x548] sm:$0xff] %v490_v41  ;;  %v494_v43 = vld [vmem:[%s7031_s25 + $0xa58] sm:$0xff]  ;;  %v496_v44 = vld [vmem:[%s7031_s25 + $0xa60] sm:$0xff] }
  0x67   : > { %493 = vst [vmem:[%s7036_s26 + $0x550] sm:$0xff] %v492_v42  ;;  %v498_v45 = vld [vmem:[%s7031_s25 + $0xa68] sm:$0xff]  ;;  %495 = vst [vmem:[%s7036_s26 + $0x558] sm:$0xff] %v494_v43  ;;  %v500_v46 = vld [vmem:[%s7031_s25 + $0xa70] sm:$0xff] }
  0x68   : > { %497 = vst [vmem:[%s7036_s26 + $0x560] sm:$0xff] %v496_v44  ;;  %499 = vst [vmem:[%s7036_s26 + $0x568] sm:$0xff] %v498_v45  ;;  %v502_v47 = vld [vmem:[%s7031_s25 + $0xa78] sm:$0xff]  ;;  %v504_v48 = vld [vmem:[%s7031_s25 + $0xa80] sm:$0xff] }
  0x69   : > { %501 = vst [vmem:[%s7036_s26 + $0x570] sm:$0xff] %v500_v46  ;;  %503 = vst [vmem:[%s7036_s26 + $0x578] sm:$0xff] %v502_v47  ;;  %v506_v49 = vld [vmem:[%s7031_s25 + $0xa88] sm:$0xff]  ;;  %v508_v50 = vld [vmem:[%s7031_s25 + $0xa90] sm:$0xff] }
  0x6a   : > { %505 = vst [vmem:[%s7036_s26 + $0x580] sm:$0xff] %v504_v48  ;;  %v510_v51 = vld [vmem:[%s7031_s25 + $0xa98] sm:$0xff]  ;;  %507 = vst [vmem:[%s7036_s26 + $0x588] sm:$0xff] %v506_v49  ;;  %v512_v52 = vld [vmem:[%s7031_s25 + $0xaa0] sm:$0xff] }
  0x6b   : > { %509 = vst [vmem:[%s7036_s26 + $0x590] sm:$0xff] %v508_v50  ;;  %511 = vst [vmem:[%s7036_s26 + $0x598] sm:$0xff] %v510_v51  ;;  %v514_v53 = vld [vmem:[%s7031_s25 + $0xaa8] sm:$0xff]  ;;  %v516_v54 = vld [vmem:[%s7031_s25 + $0xab0] sm:$0xff] }
  0x6c   : > { %513 = vst [vmem:[%s7036_s26 + $0x5a0] sm:$0xff] %v512_v52  ;;  %515 = vst [vmem:[%s7036_s26 + $0x5a8] sm:$0xff] %v514_v53  ;;  %v518_v55 = vld [vmem:[%s7031_s25 + $0xab8] sm:$0xff]  ;;  %v520_v56 = vld [vmem:[%s7031_s25 + $0xac0] sm:$0xff] }
  0x6d   : > { %517 = vst [vmem:[%s7036_s26 + $0x5b0] sm:$0xff] %v516_v54  ;;  %v522_v57 = vld [vmem:[%s7031_s25 + $0xac8] sm:$0xff]  ;;  %519 = vst [vmem:[%s7036_s26 + $0x5b8] sm:$0xff] %v518_v55  ;;  %v524_v58 = vld [vmem:[%s7031_s25 + $0xad0] sm:$0xff] }
  0x6e   : > { %521 = vst [vmem:[%s7036_s26 + $0x5c0] sm:$0xff] %v520_v56  ;;  %523 = vst [vmem:[%s7036_s26 + $0x5c8] sm:$0xff] %v522_v57  ;;  %v526_v59 = vld [vmem:[%s7031_s25 + $0xad8] sm:$0xff]  ;;  %v528_v60 = vld [vmem:[%s7031_s25 + $0xae0] sm:$0xff] }
  0x6f   : > { %525 = vst [vmem:[%s7036_s26 + $0x5d0] sm:$0xff] %v524_v58  ;;  %527 = vst [vmem:[%s7036_s26 + $0x5d8] sm:$0xff] %v526_v59  ;;  %v530_v61 = vld [vmem:[%s7031_s25 + $0xae8] sm:$0xff]  ;;  %v532_v62 = vld [vmem:[%s7031_s25 + $0xaf0] sm:$0xff] }
  0x70   : > { %529 = vst [vmem:[%s7036_s26 + $0x5e0] sm:$0xff] %v528_v60  ;;  %v534_v63 = vld [vmem:[%s7031_s25 + $0xaf8] sm:$0xff]  ;;  %531 = vst [vmem:[%s7036_s26 + $0x5e8] sm:$0xff] %v530_v61  ;;  %v536_v0 = vld [vmem:[%s7031_s25 + $0xc00] sm:$0xff] }
  0x71   : > { %533 = vst [vmem:[%s7036_s26 + $0x5f0] sm:$0xff] %v532_v62  ;;  %535 = vst [vmem:[%s7036_s26 + $0x5f8] sm:$0xff] %v534_v63  ;;  %v538_v1 = vld [vmem:[%s7031_s25 + $0xc08] sm:$0xff]  ;;  %v540_v2 = vld [vmem:[%s7031_s25 + $0xc10] sm:$0xff] }
  0x72   : > { %537 = vst [vmem:[%s7036_s26 + $0x600] sm:$0xff] %v536_v0  ;;  %539 = vst [vmem:[%s7036_s26 + $0x608] sm:$0xff] %v538_v1  ;;  %v542_v3 = vld [vmem:[%s7031_s25 + $0xc18] sm:$0xff]  ;;  %v544_v4 = vld [vmem:[%s7031_s25 + $0xc20] sm:$0xff] }
  0x73   : > { %541 = vst [vmem:[%s7036_s26 + $0x610] sm:$0xff] %v540_v2  ;;  %v546_v5 = vld [vmem:[%s7031_s25 + $0xc28] sm:$0xff]  ;;  %543 = vst [vmem:[%s7036_s26 + $0x618] sm:$0xff] %v542_v3  ;;  %v548_v6 = vld [vmem:[%s7031_s25 + $0xc30] sm:$0xff] }
  0x74   : > { %545 = vst [vmem:[%s7036_s26 + $0x620] sm:$0xff] %v544_v4  ;;  %547 = vst [vmem:[%s7036_s26 + $0x628] sm:$0xff] %v546_v5  ;;  %v550_v7 = vld [vmem:[%s7031_s25 + $0xc38] sm:$0xff]  ;;  %v552_v8 = vld [vmem:[%s7031_s25 + $0xc40] sm:$0xff] }
  0x75   : > { %549 = vst [vmem:[%s7036_s26 + $0x630] sm:$0xff] %v548_v6  ;;  %551 = vst [vmem:[%s7036_s26 + $0x638] sm:$0xff] %v550_v7  ;;  %v554_v9 = vld [vmem:[%s7031_s25 + $0xc48] sm:$0xff]  ;;  %v556_v10 = vld [vmem:[%s7031_s25 + $0xc50] sm:$0xff] }
  0x76   : > { %553 = vst [vmem:[%s7036_s26 + $0x640] sm:$0xff] %v552_v8  ;;  %v558_v11 = vld [vmem:[%s7031_s25 + $0xc58] sm:$0xff]  ;;  %555 = vst [vmem:[%s7036_s26 + $0x648] sm:$0xff] %v554_v9  ;;  %v560_v12 = vld [vmem:[%s7031_s25 + $0xc60] sm:$0xff] }
  0x77   : > { %557 = vst [vmem:[%s7036_s26 + $0x650] sm:$0xff] %v556_v10  ;;  %559 = vst [vmem:[%s7036_s26 + $0x658] sm:$0xff] %v558_v11  ;;  %v562_v13 = vld [vmem:[%s7031_s25 + $0xc68] sm:$0xff]  ;;  %v564_v14 = vld [vmem:[%s7031_s25 + $0xc70] sm:$0xff] }
  0x78   : > { %561 = vst [vmem:[%s7036_s26 + $0x660] sm:$0xff] %v560_v12  ;;  %563 = vst [vmem:[%s7036_s26 + $0x668] sm:$0xff] %v562_v13  ;;  %v566_v15 = vld [vmem:[%s7031_s25 + $0xc78] sm:$0xff]  ;;  %v568_v16 = vld [vmem:[%s7031_s25 + $0xc80] sm:$0xff] }
  0x79   : > { %565 = vst [vmem:[%s7036_s26 + $0x670] sm:$0xff] %v564_v14  ;;  %v570_v17 = vld [vmem:[%s7031_s25 + $0xc88] sm:$0xff]  ;;  %567 = vst [vmem:[%s7036_s26 + $0x678] sm:$0xff] %v566_v15  ;;  %v572_v18 = vld [vmem:[%s7031_s25 + $0xc90] sm:$0xff] }
  0x7a   : > { %569 = vst [vmem:[%s7036_s26 + $0x680] sm:$0xff] %v568_v16  ;;  %571 = vst [vmem:[%s7036_s26 + $0x688] sm:$0xff] %v570_v17  ;;  %v574_v19 = vld [vmem:[%s7031_s25 + $0xc98] sm:$0xff]  ;;  %v576_v20 = vld [vmem:[%s7031_s25 + $0xca0] sm:$0xff] }
  0x7b   : > { %573 = vst [vmem:[%s7036_s26 + $0x690] sm:$0xff] %v572_v18  ;;  %575 = vst [vmem:[%s7036_s26 + $0x698] sm:$0xff] %v574_v19  ;;  %v578_v21 = vld [vmem:[%s7031_s25 + $0xca8] sm:$0xff]  ;;  %v580_v22 = vld [vmem:[%s7031_s25 + $0xcb0] sm:$0xff] }
  0x7c   : > { %577 = vst [vmem:[%s7036_s26 + $0x6a0] sm:$0xff] %v576_v20  ;;  %v582_v23 = vld [vmem:[%s7031_s25 + $0xcb8] sm:$0xff]  ;;  %579 = vst [vmem:[%s7036_s26 + $0x6a8] sm:$0xff] %v578_v21  ;;  %v584_v24 = vld [vmem:[%s7031_s25 + $0xcc0] sm:$0xff] }
  0x7d   : > { %581 = vst [vmem:[%s7036_s26 + $0x6b0] sm:$0xff] %v580_v22  ;;  %583 = vst [vmem:[%s7036_s26 + $0x6b8] sm:$0xff] %v582_v23  ;;  %v586_v25 = vld [vmem:[%s7031_s25 + $0xcc8] sm:$0xff]  ;;  %v588_v26 = vld [vmem:[%s7031_s25 + $0xcd0] sm:$0xff] }
  0x7e   : > { %585 = vst [vmem:[%s7036_s26 + $0x6c0] sm:$0xff] %v584_v24  ;;  %587 = vst [vmem:[%s7036_s26 + $0x6c8] sm:$0xff] %v586_v25  ;;  %v590_v27 = vld [vmem:[%s7031_s25 + $0xcd8] sm:$0xff]  ;;  %v592_v28 = vld [vmem:[%s7031_s25 + $0xce0] sm:$0xff] }
  0x7f   : > { %589 = vst [vmem:[%s7036_s26 + $0x6d0] sm:$0xff] %v588_v26  ;;  %v594_v29 = vld [vmem:[%s7031_s25 + $0xce8] sm:$0xff]  ;;  %591 = vst [vmem:[%s7036_s26 + $0x6d8] sm:$0xff] %v590_v27  ;;  %v596_v30 = vld [vmem:[%s7031_s25 + $0xcf0] sm:$0xff] }
  0x80   : > { %593 = vst [vmem:[%s7036_s26 + $0x6e0] sm:$0xff] %v592_v28  ;;  %595 = vst [vmem:[%s7036_s26 + $0x6e8] sm:$0xff] %v594_v29  ;;  %v598_v31 = vld [vmem:[%s7031_s25 + $0xcf8] sm:$0xff]  ;;  %v600_v32 = vld [vmem:[%s7031_s25 + $0xe00] sm:$0xff] }
  0x81   : > { %597 = vst [vmem:[%s7036_s26 + $0x6f0] sm:$0xff] %v596_v30  ;;  %599 = vst [vmem:[%s7036_s26 + $0x6f8] sm:$0xff] %v598_v31  ;;  %v602_v33 = vld [vmem:[%s7031_s25 + $0xe08] sm:$0xff]  ;;  %v604_v34 = vld [vmem:[%s7031_s25 + $0xe10] sm:$0xff] }
  0x82   : > { %601 = vst [vmem:[%s7036_s26 + $0x700] sm:$0xff] %v600_v32  ;;  %v606_v35 = vld [vmem:[%s7031_s25 + $0xe18] sm:$0xff]  ;;  %603 = vst [vmem:[%s7036_s26 + $0x708] sm:$0xff] %v602_v33  ;;  %v608_v36 = vld [vmem:[%s7031_s25 + $0xe20] sm:$0xff] }
  0x83   : > { %605 = vst [vmem:[%s7036_s26 + $0x710] sm:$0xff] %v604_v34  ;;  %607 = vst [vmem:[%s7036_s26 + $0x718] sm:$0xff] %v606_v35  ;;  %v610_v37 = vld [vmem:[%s7031_s25 + $0xe28] sm:$0xff]  ;;  %v612_v38 = vld [vmem:[%s7031_s25 + $0xe30] sm:$0xff] }
  0x84   : > { %609 = vst [vmem:[%s7036_s26 + $0x720] sm:$0xff] %v608_v36  ;;  %611 = vst [vmem:[%s7036_s26 + $0x728] sm:$0xff] %v610_v37  ;;  %v614_v39 = vld [vmem:[%s7031_s25 + $0xe38] sm:$0xff]  ;;  %v616_v40 = vld [vmem:[%s7031_s25 + $0xe40] sm:$0xff] }
  0x85   : > { %613 = vst [vmem:[%s7036_s26 + $0x730] sm:$0xff] %v612_v38  ;;  %v618_v41 = vld [vmem:[%s7031_s25 + $0xe48] sm:$0xff]  ;;  %615 = vst [vmem:[%s7036_s26 + $0x738] sm:$0xff] %v614_v39  ;;  %v620_v42 = vld [vmem:[%s7031_s25 + $0xe50] sm:$0xff] }
  0x86   : > { %617 = vst [vmem:[%s7036_s26 + $0x740] sm:$0xff] %v616_v40  ;;  %619 = vst [vmem:[%s7036_s26 + $0x748] sm:$0xff] %v618_v41  ;;  %v622_v43 = vld [vmem:[%s7031_s25 + $0xe58] sm:$0xff]  ;;  %v624_v44 = vld [vmem:[%s7031_s25 + $0xe60] sm:$0xff] }
  0x87   : > { %621 = vst [vmem:[%s7036_s26 + $0x750] sm:$0xff] %v620_v42  ;;  %623 = vst [vmem:[%s7036_s26 + $0x758] sm:$0xff] %v622_v43  ;;  %v626_v45 = vld [vmem:[%s7031_s25 + $0xe68] sm:$0xff]  ;;  %v628_v46 = vld [vmem:[%s7031_s25 + $0xe70] sm:$0xff] }
  0x88   : > { %625 = vst [vmem:[%s7036_s26 + $0x760] sm:$0xff] %v624_v44  ;;  %v630_v47 = vld [vmem:[%s7031_s25 + $0xe78] sm:$0xff]  ;;  %627 = vst [vmem:[%s7036_s26 + $0x768] sm:$0xff] %v626_v45  ;;  %v632_v48 = vld [vmem:[%s7031_s25 + $0xe80] sm:$0xff] }
  0x89   : > { %629 = vst [vmem:[%s7036_s26 + $0x770] sm:$0xff] %v628_v46  ;;  %631 = vst [vmem:[%s7036_s26 + $0x778] sm:$0xff] %v630_v47  ;;  %v634_v49 = vld [vmem:[%s7031_s25 + $0xe88] sm:$0xff]  ;;  %v636_v50 = vld [vmem:[%s7031_s25 + $0xe90] sm:$0xff] }
  0x8a   : > { %633 = vst [vmem:[%s7036_s26 + $0x780] sm:$0xff] %v632_v48  ;;  %635 = vst [vmem:[%s7036_s26 + $0x788] sm:$0xff] %v634_v49  ;;  %v638_v51 = vld [vmem:[%s7031_s25 + $0xe98] sm:$0xff]  ;;  %v640_v52 = vld [vmem:[%s7031_s25 + $0xea0] sm:$0xff] }
  0x8b   : > { %637 = vst [vmem:[%s7036_s26 + $0x790] sm:$0xff] %v636_v50  ;;  %v642_v53 = vld [vmem:[%s7031_s25 + $0xea8] sm:$0xff]  ;;  %639 = vst [vmem:[%s7036_s26 + $0x798] sm:$0xff] %v638_v51  ;;  %v644_v54 = vld [vmem:[%s7031_s25 + $0xeb0] sm:$0xff] }
  0x8c   : > { %641 = vst [vmem:[%s7036_s26 + $0x7a0] sm:$0xff] %v640_v52  ;;  %643 = vst [vmem:[%s7036_s26 + $0x7a8] sm:$0xff] %v642_v53  ;;  %v646_v55 = vld [vmem:[%s7031_s25 + $0xeb8] sm:$0xff]  ;;  %v648_v56 = vld [vmem:[%s7031_s25 + $0xec0] sm:$0xff] }
  0x8d   : > { %645 = vst [vmem:[%s7036_s26 + $0x7b0] sm:$0xff] %v644_v54  ;;  %647 = vst [vmem:[%s7036_s26 + $0x7b8] sm:$0xff] %v646_v55  ;;  %v650_v57 = vld [vmem:[%s7031_s25 + $0xec8] sm:$0xff]  ;;  %v652_v58 = vld [vmem:[%s7031_s25 + $0xed0] sm:$0xff] }
  0x8e   : > { %649 = vst [vmem:[%s7036_s26 + $0x7c0] sm:$0xff] %v648_v56  ;;  %v654_v59 = vld [vmem:[%s7031_s25 + $0xed8] sm:$0xff]  ;;  %651 = vst [vmem:[%s7036_s26 + $0x7c8] sm:$0xff] %v650_v57  ;;  %v656_v60 = vld [vmem:[%s7031_s25 + $0xee0] sm:$0xff] }
  0x8f   : > { %653 = vst [vmem:[%s7036_s26 + $0x7d0] sm:$0xff] %v652_v58  ;;  %655 = vst [vmem:[%s7036_s26 + $0x7d8] sm:$0xff] %v654_v59  ;;  %v658_v61 = vld [vmem:[%s7031_s25 + $0xee8] sm:$0xff]  ;;  %v660_v62 = vld [vmem:[%s7031_s25 + $0xef0] sm:$0xff] }
  0x90   : > { %657 = vst [vmem:[%s7036_s26 + $0x7e0] sm:$0xff] %v656_v60  ;;  %659 = vst [vmem:[%s7036_s26 + $0x7e8] sm:$0xff] %v658_v61  ;;  %v662_v63 = vld [vmem:[%s7031_s25 + $0xef8] sm:$0xff]  ;;  %v664_v0 = vld [vmem:[%s7031_s25 + $0x1000] sm:$0xff] }
  0x91   : > { %661 = vst [vmem:[%s7036_s26 + $0x7f0] sm:$0xff] %v660_v62  ;;  %v666_v1 = vld [vmem:[%s7031_s25 + $0x1008] sm:$0xff]  ;;  %663 = vst [vmem:[%s7036_s26 + $0x7f8] sm:$0xff] %v662_v63  ;;  %v668_v2 = vld [vmem:[%s7031_s25 + $0x1010] sm:$0xff] }
  0x92   : > { %665 = vst [vmem:[%s7036_s26 + $0x800] sm:$0xff] %v664_v0  ;;  %667 = vst [vmem:[%s7036_s26 + $0x808] sm:$0xff] %v666_v1  ;;  %v670_v3 = vld [vmem:[%s7031_s25 + $0x1018] sm:$0xff]  ;;  %v672_v4 = vld [vmem:[%s7031_s25 + $0x1020] sm:$0xff] }
  0x93   : > { %669 = vst [vmem:[%s7036_s26 + $0x810] sm:$0xff] %v668_v2  ;;  %671 = vst [vmem:[%s7036_s26 + $0x818] sm:$0xff] %v670_v3  ;;  %v674_v5 = vld [vmem:[%s7031_s25 + $0x1028] sm:$0xff]  ;;  %v676_v6 = vld [vmem:[%s7031_s25 + $0x1030] sm:$0xff] }
  0x94   : > { %673 = vst [vmem:[%s7036_s26 + $0x820] sm:$0xff] %v672_v4  ;;  %v678_v7 = vld [vmem:[%s7031_s25 + $0x1038] sm:$0xff]  ;;  %675 = vst [vmem:[%s7036_s26 + $0x828] sm:$0xff] %v674_v5  ;;  %v680_v8 = vld [vmem:[%s7031_s25 + $0x1040] sm:$0xff] }
  0x95   : > { %677 = vst [vmem:[%s7036_s26 + $0x830] sm:$0xff] %v676_v6  ;;  %679 = vst [vmem:[%s7036_s26 + $0x838] sm:$0xff] %v678_v7  ;;  %v682_v9 = vld [vmem:[%s7031_s25 + $0x1048] sm:$0xff]  ;;  %v684_v10 = vld [vmem:[%s7031_s25 + $0x1050] sm:$0xff] }
  0x96   : > { %681 = vst [vmem:[%s7036_s26 + $0x840] sm:$0xff] %v680_v8  ;;  %683 = vst [vmem:[%s7036_s26 + $0x848] sm:$0xff] %v682_v9  ;;  %v686_v11 = vld [vmem:[%s7031_s25 + $0x1058] sm:$0xff]  ;;  %v688_v12 = vld [vmem:[%s7031_s25 + $0x1060] sm:$0xff] }
  0x97   : > { %685 = vst [vmem:[%s7036_s26 + $0x850] sm:$0xff] %v684_v10  ;;  %v690_v13 = vld [vmem:[%s7031_s25 + $0x1068] sm:$0xff]  ;;  %687 = vst [vmem:[%s7036_s26 + $0x858] sm:$0xff] %v686_v11  ;;  %v692_v14 = vld [vmem:[%s7031_s25 + $0x1070] sm:$0xff] }
  0x98   : > { %689 = vst [vmem:[%s7036_s26 + $0x860] sm:$0xff] %v688_v12  ;;  %691 = vst [vmem:[%s7036_s26 + $0x868] sm:$0xff] %v690_v13  ;;  %v694_v15 = vld [vmem:[%s7031_s25 + $0x1078] sm:$0xff]  ;;  %v696_v16 = vld [vmem:[%s7031_s25 + $0x1080] sm:$0xff] }
  0x99   : > { %693 = vst [vmem:[%s7036_s26 + $0x870] sm:$0xff] %v692_v14  ;;  %695 = vst [vmem:[%s7036_s26 + $0x878] sm:$0xff] %v694_v15  ;;  %v698_v17 = vld [vmem:[%s7031_s25 + $0x1088] sm:$0xff]  ;;  %v700_v18 = vld [vmem:[%s7031_s25 + $0x1090] sm:$0xff] }
  0x9a   : > { %697 = vst [vmem:[%s7036_s26 + $0x880] sm:$0xff] %v696_v16  ;;  %v702_v19 = vld [vmem:[%s7031_s25 + $0x1098] sm:$0xff]  ;;  %699 = vst [vmem:[%s7036_s26 + $0x888] sm:$0xff] %v698_v17  ;;  %v704_v20 = vld [vmem:[%s7031_s25 + $0x10a0] sm:$0xff] }
  0x9b   : > { %701 = vst [vmem:[%s7036_s26 + $0x890] sm:$0xff] %v700_v18  ;;  %703 = vst [vmem:[%s7036_s26 + $0x898] sm:$0xff] %v702_v19  ;;  %v706_v21 = vld [vmem:[%s7031_s25 + $0x10a8] sm:$0xff]  ;;  %v708_v22 = vld [vmem:[%s7031_s25 + $0x10b0] sm:$0xff] }
  0x9c   : > { %705 = vst [vmem:[%s7036_s26 + $0x8a0] sm:$0xff] %v704_v20  ;;  %707 = vst [vmem:[%s7036_s26 + $0x8a8] sm:$0xff] %v706_v21  ;;  %v710_v23 = vld [vmem:[%s7031_s25 + $0x10b8] sm:$0xff]  ;;  %v712_v24 = vld [vmem:[%s7031_s25 + $0x10c0] sm:$0xff] }
  0x9d   : > { %709 = vst [vmem:[%s7036_s26 + $0x8b0] sm:$0xff] %v708_v22  ;;  %v714_v25 = vld [vmem:[%s7031_s25 + $0x10c8] sm:$0xff]  ;;  %711 = vst [vmem:[%s7036_s26 + $0x8b8] sm:$0xff] %v710_v23  ;;  %v716_v26 = vld [vmem:[%s7031_s25 + $0x10d0] sm:$0xff] }
  0x9e   : > { %713 = vst [vmem:[%s7036_s26 + $0x8c0] sm:$0xff] %v712_v24  ;;  %715 = vst [vmem:[%s7036_s26 + $0x8c8] sm:$0xff] %v714_v25  ;;  %v718_v27 = vld [vmem:[%s7031_s25 + $0x10d8] sm:$0xff]  ;;  %v720_v28 = vld [vmem:[%s7031_s25 + $0x10e0] sm:$0xff] }
  0x9f   : > { %717 = vst [vmem:[%s7036_s26 + $0x8d0] sm:$0xff] %v716_v26  ;;  %719 = vst [vmem:[%s7036_s26 + $0x8d8] sm:$0xff] %v718_v27  ;;  %v722_v29 = vld [vmem:[%s7031_s25 + $0x10e8] sm:$0xff]  ;;  %v724_v30 = vld [vmem:[%s7031_s25 + $0x10f0] sm:$0xff] }
  0xa0   : > { %721 = vst [vmem:[%s7036_s26 + $0x8e0] sm:$0xff] %v720_v28  ;;  %v726_v31 = vld [vmem:[%s7031_s25 + $0x10f8] sm:$0xff]  ;;  %723 = vst [vmem:[%s7036_s26 + $0x8e8] sm:$0xff] %v722_v29  ;;  %v728_v32 = vld [vmem:[%s7031_s25 + $0x1200] sm:$0xff] }
  0xa1   : > { %725 = vst [vmem:[%s7036_s26 + $0x8f0] sm:$0xff] %v724_v30  ;;  %727 = vst [vmem:[%s7036_s26 + $0x8f8] sm:$0xff] %v726_v31  ;;  %v730_v33 = vld [vmem:[%s7031_s25 + $0x1208] sm:$0xff]  ;;  %v732_v34 = vld [vmem:[%s7031_s25 + $0x1210] sm:$0xff] }
  0xa2   : > { %729 = vst [vmem:[%s7036_s26 + $0x900] sm:$0xff] %v728_v32  ;;  %731 = vst [vmem:[%s7036_s26 + $0x908] sm:$0xff] %v730_v33  ;;  %v734_v35 = vld [vmem:[%s7031_s25 + $0x1218] sm:$0xff]  ;;  %v736_v36 = vld [vmem:[%s7031_s25 + $0x1220] sm:$0xff] }
  0xa3   : > { %733 = vst [vmem:[%s7036_s26 + $0x910] sm:$0xff] %v732_v34  ;;  %v738_v37 = vld [vmem:[%s7031_s25 + $0x1228] sm:$0xff]  ;;  %735 = vst [vmem:[%s7036_s26 + $0x918] sm:$0xff] %v734_v35  ;;  %v740_v38 = vld [vmem:[%s7031_s25 + $0x1230] sm:$0xff] }
  0xa4   : > { %737 = vst [vmem:[%s7036_s26 + $0x920] sm:$0xff] %v736_v36  ;;  %739 = vst [vmem:[%s7036_s26 + $0x928] sm:$0xff] %v738_v37  ;;  %v742_v39 = vld [vmem:[%s7031_s25 + $0x1238] sm:$0xff]  ;;  %v744_v40 = vld [vmem:[%s7031_s25 + $0x1240] sm:$0xff] }
  0xa5   : > { %741 = vst [vmem:[%s7036_s26 + $0x930] sm:$0xff] %v740_v38  ;;  %743 = vst [vmem:[%s7036_s26 + $0x938] sm:$0xff] %v742_v39  ;;  %v746_v41 = vld [vmem:[%s7031_s25 + $0x1248] sm:$0xff]  ;;  %v748_v42 = vld [vmem:[%s7031_s25 + $0x1250] sm:$0xff] }
  0xa6   : > { %745 = vst [vmem:[%s7036_s26 + $0x940] sm:$0xff] %v744_v40  ;;  %v750_v43 = vld [vmem:[%s7031_s25 + $0x1258] sm:$0xff]  ;;  %747 = vst [vmem:[%s7036_s26 + $0x948] sm:$0xff] %v746_v41  ;;  %v752_v44 = vld [vmem:[%s7031_s25 + $0x1260] sm:$0xff] }
  0xa7   : > { %749 = vst [vmem:[%s7036_s26 + $0x950] sm:$0xff] %v748_v42  ;;  %751 = vst [vmem:[%s7036_s26 + $0x958] sm:$0xff] %v750_v43  ;;  %v754_v45 = vld [vmem:[%s7031_s25 + $0x1268] sm:$0xff]  ;;  %v756_v46 = vld [vmem:[%s7031_s25 + $0x1270] sm:$0xff] }
  0xa8   : > { %753 = vst [vmem:[%s7036_s26 + $0x960] sm:$0xff] %v752_v44  ;;  %755 = vst [vmem:[%s7036_s26 + $0x968] sm:$0xff] %v754_v45  ;;  %v758_v47 = vld [vmem:[%s7031_s25 + $0x1278] sm:$0xff]  ;;  %v760_v48 = vld [vmem:[%s7031_s25 + $0x1280] sm:$0xff] }
  0xa9   : > { %757 = vst [vmem:[%s7036_s26 + $0x970] sm:$0xff] %v756_v46  ;;  %v762_v49 = vld [vmem:[%s7031_s25 + $0x1288] sm:$0xff]  ;;  %759 = vst [vmem:[%s7036_s26 + $0x978] sm:$0xff] %v758_v47  ;;  %v764_v50 = vld [vmem:[%s7031_s25 + $0x1290] sm:$0xff] }
  0xaa   : > { %761 = vst [vmem:[%s7036_s26 + $0x980] sm:$0xff] %v760_v48  ;;  %763 = vst [vmem:[%s7036_s26 + $0x988] sm:$0xff] %v762_v49  ;;  %v766_v51 = vld [vmem:[%s7031_s25 + $0x1298] sm:$0xff]  ;;  %v768_v52 = vld [vmem:[%s7031_s25 + $0x12a0] sm:$0xff] }
  0xab   : > { %765 = vst [vmem:[%s7036_s26 + $0x990] sm:$0xff] %v764_v50  ;;  %767 = vst [vmem:[%s7036_s26 + $0x998] sm:$0xff] %v766_v51  ;;  %v770_v53 = vld [vmem:[%s7031_s25 + $0x12a8] sm:$0xff]  ;;  %v772_v54 = vld [vmem:[%s7031_s25 + $0x12b0] sm:$0xff] }
  0xac   : > { %769 = vst [vmem:[%s7036_s26 + $0x9a0] sm:$0xff] %v768_v52  ;;  %v774_v55 = vld [vmem:[%s7031_s25 + $0x12b8] sm:$0xff]  ;;  %771 = vst [vmem:[%s7036_s26 + $0x9a8] sm:$0xff] %v770_v53  ;;  %v776_v56 = vld [vmem:[%s7031_s25 + $0x12c0] sm:$0xff] }
  0xad   : > { %773 = vst [vmem:[%s7036_s26 + $0x9b0] sm:$0xff] %v772_v54  ;;  %775 = vst [vmem:[%s7036_s26 + $0x9b8] sm:$0xff] %v774_v55  ;;  %v778_v57 = vld [vmem:[%s7031_s25 + $0x12c8] sm:$0xff]  ;;  %v780_v58 = vld [vmem:[%s7031_s25 + $0x12d0] sm:$0xff] }
  0xae   : > { %777 = vst [vmem:[%s7036_s26 + $0x9c0] sm:$0xff] %v776_v56  ;;  %779 = vst [vmem:[%s7036_s26 + $0x9c8] sm:$0xff] %v778_v57  ;;  %v782_v59 = vld [vmem:[%s7031_s25 + $0x12d8] sm:$0xff]  ;;  %v784_v60 = vld [vmem:[%s7031_s25 + $0x12e0] sm:$0xff] }
  0xaf   : > { %781 = vst [vmem:[%s7036_s26 + $0x9d0] sm:$0xff] %v780_v58  ;;  %v786_v61 = vld [vmem:[%s7031_s25 + $0x12e8] sm:$0xff]  ;;  %783 = vst [vmem:[%s7036_s26 + $0x9d8] sm:$0xff] %v782_v59  ;;  %v788_v62 = vld [vmem:[%s7031_s25 + $0x12f0] sm:$0xff] }
  0xb0   : > { %785 = vst [vmem:[%s7036_s26 + $0x9e0] sm:$0xff] %v784_v60  ;;  %787 = vst [vmem:[%s7036_s26 + $0x9e8] sm:$0xff] %v786_v61  ;;  %v790_v63 = vld [vmem:[%s7031_s25 + $0x12f8] sm:$0xff]  ;;  %v792_v0 = vld [vmem:[%s7031_s25 + $0x1400] sm:$0xff] }
  0xb1   : > { %789 = vst [vmem:[%s7036_s26 + $0x9f0] sm:$0xff] %v788_v62  ;;  %791 = vst [vmem:[%s7036_s26 + $0x9f8] sm:$0xff] %v790_v63  ;;  %v794_v1 = vld [vmem:[%s7031_s25 + $0x1408] sm:$0xff]  ;;  %v796_v2 = vld [vmem:[%s7031_s25 + $0x1410] sm:$0xff] }
  0xb2   : > { %793 = vst [vmem:[%s7036_s26 + $0xa00] sm:$0xff] %v792_v0  ;;  %v798_v3 = vld [vmem:[%s7031_s25 + $0x1418] sm:$0xff]  ;;  %795 = vst [vmem:[%s7036_s26 + $0xa08] sm:$0xff] %v794_v1  ;;  %v800_v4 = vld [vmem:[%s7031_s25 + $0x1420] sm:$0xff] }
  0xb3   : > { %797 = vst [vmem:[%s7036_s26 + $0xa10] sm:$0xff] %v796_v2  ;;  %799 = vst [vmem:[%s7036_s26 + $0xa18] sm:$0xff] %v798_v3  ;;  %v802_v5 = vld [vmem:[%s7031_s25 + $0x1428] sm:$0xff]  ;;  %v804_v6 = vld [vmem:[%s7031_s25 + $0x1430] sm:$0xff] }
  0xb4   : > { %801 = vst [vmem:[%s7036_s26 + $0xa20] sm:$0xff] %v800_v4  ;;  %803 = vst [vmem:[%s7036_s26 + $0xa28] sm:$0xff] %v802_v5  ;;  %v806_v7 = vld [vmem:[%s7031_s25 + $0x1438] sm:$0xff]  ;;  %v808_v8 = vld [vmem:[%s7031_s25 + $0x1440] sm:$0xff] }
  0xb5   : > { %805 = vst [vmem:[%s7036_s26 + $0xa30] sm:$0xff] %v804_v6  ;;  %v810_v9 = vld [vmem:[%s7031_s25 + $0x1448] sm:$0xff]  ;;  %807 = vst [vmem:[%s7036_s26 + $0xa38] sm:$0xff] %v806_v7  ;;  %v812_v10 = vld [vmem:[%s7031_s25 + $0x1450] sm:$0xff] }
  0xb6   : > { %809 = vst [vmem:[%s7036_s26 + $0xa40] sm:$0xff] %v808_v8  ;;  %811 = vst [vmem:[%s7036_s26 + $0xa48] sm:$0xff] %v810_v9  ;;  %v814_v11 = vld [vmem:[%s7031_s25 + $0x1458] sm:$0xff]  ;;  %v816_v12 = vld [vmem:[%s7031_s25 + $0x1460] sm:$0xff] }
  0xb7   : > { %813 = vst [vmem:[%s7036_s26 + $0xa50] sm:$0xff] %v812_v10  ;;  %815 = vst [vmem:[%s7036_s26 + $0xa58] sm:$0xff] %v814_v11  ;;  %v818_v13 = vld [vmem:[%s7031_s25 + $0x1468] sm:$0xff]  ;;  %v820_v14 = vld [vmem:[%s7031_s25 + $0x1470] sm:$0xff] }
  0xb8   : > { %817 = vst [vmem:[%s7036_s26 + $0xa60] sm:$0xff] %v816_v12  ;;  %v822_v15 = vld [vmem:[%s7031_s25 + $0x1478] sm:$0xff]  ;;  %819 = vst [vmem:[%s7036_s26 + $0xa68] sm:$0xff] %v818_v13  ;;  %v824_v16 = vld [vmem:[%s7031_s25 + $0x1480] sm:$0xff] }
  0xb9   : > { %821 = vst [vmem:[%s7036_s26 + $0xa70] sm:$0xff] %v820_v14  ;;  %823 = vst [vmem:[%s7036_s26 + $0xa78] sm:$0xff] %v822_v15  ;;  %v826_v17 = vld [vmem:[%s7031_s25 + $0x1488] sm:$0xff]  ;;  %v828_v18 = vld [vmem:[%s7031_s25 + $0x1490] sm:$0xff] }
  0xba   : > { %825 = vst [vmem:[%s7036_s26 + $0xa80] sm:$0xff] %v824_v16  ;;  %827 = vst [vmem:[%s7036_s26 + $0xa88] sm:$0xff] %v826_v17  ;;  %v830_v19 = vld [vmem:[%s7031_s25 + $0x1498] sm:$0xff]  ;;  %v832_v20 = vld [vmem:[%s7031_s25 + $0x14a0] sm:$0xff] }
  0xbb   : > { %829 = vst [vmem:[%s7036_s26 + $0xa90] sm:$0xff] %v828_v18  ;;  %v834_v21 = vld [vmem:[%s7031_s25 + $0x14a8] sm:$0xff]  ;;  %831 = vst [vmem:[%s7036_s26 + $0xa98] sm:$0xff] %v830_v19  ;;  %v836_v22 = vld [vmem:[%s7031_s25 + $0x14b0] sm:$0xff] }
  0xbc   : > { %833 = vst [vmem:[%s7036_s26 + $0xaa0] sm:$0xff] %v832_v20  ;;  %835 = vst [vmem:[%s7036_s26 + $0xaa8] sm:$0xff] %v834_v21  ;;  %v838_v23 = vld [vmem:[%s7031_s25 + $0x14b8] sm:$0xff]  ;;  %v840_v24 = vld [vmem:[%s7031_s25 + $0x14c0] sm:$0xff] }
  0xbd   : > { %837 = vst [vmem:[%s7036_s26 + $0xab0] sm:$0xff] %v836_v22  ;;  %839 = vst [vmem:[%s7036_s26 + $0xab8] sm:$0xff] %v838_v23  ;;  %v842_v25 = vld [vmem:[%s7031_s25 + $0x14c8] sm:$0xff]  ;;  %v844_v26 = vld [vmem:[%s7031_s25 + $0x14d0] sm:$0xff] }
  0xbe   : > { %841 = vst [vmem:[%s7036_s26 + $0xac0] sm:$0xff] %v840_v24  ;;  %v846_v27 = vld [vmem:[%s7031_s25 + $0x14d8] sm:$0xff]  ;;  %843 = vst [vmem:[%s7036_s26 + $0xac8] sm:$0xff] %v842_v25  ;;  %v848_v28 = vld [vmem:[%s7031_s25 + $0x14e0] sm:$0xff] }
  0xbf   : > { %845 = vst [vmem:[%s7036_s26 + $0xad0] sm:$0xff] %v844_v26  ;;  %847 = vst [vmem:[%s7036_s26 + $0xad8] sm:$0xff] %v846_v27  ;;  %v850_v29 = vld [vmem:[%s7031_s25 + $0x14e8] sm:$0xff]  ;;  %v852_v30 = vld [vmem:[%s7031_s25 + $0x14f0] sm:$0xff] }
  0xc0   : > { %849 = vst [vmem:[%s7036_s26 + $0xae0] sm:$0xff] %v848_v28  ;;  %851 = vst [vmem:[%s7036_s26 + $0xae8] sm:$0xff] %v850_v29  ;;  %v854_v31 = vld [vmem:[%s7031_s25 + $0x14f8] sm:$0xff]  ;;  %v856_v32 = vld [vmem:[%s7031_s25 + $0x1600] sm:$0xff] }
  0xc1   : > { %853 = vst [vmem:[%s7036_s26 + $0xaf0] sm:$0xff] %v852_v30  ;;  %v858_v33 = vld [vmem:[%s7031_s25 + $0x1608] sm:$0xff]  ;;  %855 = vst [vmem:[%s7036_s26 + $0xaf8] sm:$0xff] %v854_v31  ;;  %v860_v34 = vld [vmem:[%s7031_s25 + $0x1610] sm:$0xff] }
  0xc2   : > { %857 = vst [vmem:[%s7036_s26 + $0xb00] sm:$0xff] %v856_v32  ;;  %859 = vst [vmem:[%s7036_s26 + $0xb08] sm:$0xff] %v858_v33  ;;  %v862_v35 = vld [vmem:[%s7031_s25 + $0x1618] sm:$0xff]  ;;  %v864_v36 = vld [vmem:[%s7031_s25 + $0x1620] sm:$0xff] }
  0xc3   : > { %861 = vst [vmem:[%s7036_s26 + $0xb10] sm:$0xff] %v860_v34  ;;  %863 = vst [vmem:[%s7036_s26 + $0xb18] sm:$0xff] %v862_v35  ;;  %v866_v37 = vld [vmem:[%s7031_s25 + $0x1628] sm:$0xff]  ;;  %v868_v38 = vld [vmem:[%s7031_s25 + $0x1630] sm:$0xff] }
  0xc4   : > { %865 = vst [vmem:[%s7036_s26 + $0xb20] sm:$0xff] %v864_v36  ;;  %v870_v39 = vld [vmem:[%s7031_s25 + $0x1638] sm:$0xff]  ;;  %867 = vst [vmem:[%s7036_s26 + $0xb28] sm:$0xff] %v866_v37  ;;  %v872_v40 = vld [vmem:[%s7031_s25 + $0x1640] sm:$0xff] }
  0xc5   : > { %869 = vst [vmem:[%s7036_s26 + $0xb30] sm:$0xff] %v868_v38  ;;  %871 = vst [vmem:[%s7036_s26 + $0xb38] sm:$0xff] %v870_v39  ;;  %v874_v41 = vld [vmem:[%s7031_s25 + $0x1648] sm:$0xff]  ;;  %v876_v42 = vld [vmem:[%s7031_s25 + $0x1650] sm:$0xff] }
  0xc6   : > { %873 = vst [vmem:[%s7036_s26 + $0xb40] sm:$0xff] %v872_v40  ;;  %875 = vst [vmem:[%s7036_s26 + $0xb48] sm:$0xff] %v874_v41  ;;  %v878_v43 = vld [vmem:[%s7031_s25 + $0x1658] sm:$0xff]  ;;  %v880_v44 = vld [vmem:[%s7031_s25 + $0x1660] sm:$0xff] }
  0xc7   : > { %877 = vst [vmem:[%s7036_s26 + $0xb50] sm:$0xff] %v876_v42  ;;  %v882_v45 = vld [vmem:[%s7031_s25 + $0x1668] sm:$0xff]  ;;  %879 = vst [vmem:[%s7036_s26 + $0xb58] sm:$0xff] %v878_v43  ;;  %v884_v46 = vld [vmem:[%s7031_s25 + $0x1670] sm:$0xff] }
  0xc8   : > { %881 = vst [vmem:[%s7036_s26 + $0xb60] sm:$0xff] %v880_v44  ;;  %883 = vst [vmem:[%s7036_s26 + $0xb68] sm:$0xff] %v882_v45  ;;  %v886_v47 = vld [vmem:[%s7031_s25 + $0x1678] sm:$0xff]  ;;  %v888_v48 = vld [vmem:[%s7031_s25 + $0x1680] sm:$0xff] }
  0xc9   : > { %885 = vst [vmem:[%s7036_s26 + $0xb70] sm:$0xff] %v884_v46  ;;  %887 = vst [vmem:[%s7036_s26 + $0xb78] sm:$0xff] %v886_v47  ;;  %v890_v49 = vld [vmem:[%s7031_s25 + $0x1688] sm:$0xff]  ;;  %v892_v50 = vld [vmem:[%s7031_s25 + $0x1690] sm:$0xff] }
  0xca   : > { %889 = vst [vmem:[%s7036_s26 + $0xb80] sm:$0xff] %v888_v48  ;;  %v894_v51 = vld [vmem:[%s7031_s25 + $0x1698] sm:$0xff]  ;;  %891 = vst [vmem:[%s7036_s26 + $0xb88] sm:$0xff] %v890_v49  ;;  %v896_v52 = vld [vmem:[%s7031_s25 + $0x16a0] sm:$0xff] }
  0xcb   : > { %893 = vst [vmem:[%s7036_s26 + $0xb90] sm:$0xff] %v892_v50  ;;  %895 = vst [vmem:[%s7036_s26 + $0xb98] sm:$0xff] %v894_v51  ;;  %v898_v53 = vld [vmem:[%s7031_s25 + $0x16a8] sm:$0xff]  ;;  %v900_v54 = vld [vmem:[%s7031_s25 + $0x16b0] sm:$0xff] }
  0xcc   : > { %897 = vst [vmem:[%s7036_s26 + $0xba0] sm:$0xff] %v896_v52  ;;  %899 = vst [vmem:[%s7036_s26 + $0xba8] sm:$0xff] %v898_v53  ;;  %v902_v55 = vld [vmem:[%s7031_s25 + $0x16b8] sm:$0xff]  ;;  %v904_v56 = vld [vmem:[%s7031_s25 + $0x16c0] sm:$0xff] }
  0xcd   : > { %901 = vst [vmem:[%s7036_s26 + $0xbb0] sm:$0xff] %v900_v54  ;;  %v906_v57 = vld [vmem:[%s7031_s25 + $0x16c8] sm:$0xff]  ;;  %903 = vst [vmem:[%s7036_s26 + $0xbb8] sm:$0xff] %v902_v55  ;;  %v908_v58 = vld [vmem:[%s7031_s25 + $0x16d0] sm:$0xff] }
  0xce   : > { %905 = vst [vmem:[%s7036_s26 + $0xbc0] sm:$0xff] %v904_v56  ;;  %907 = vst [vmem:[%s7036_s26 + $0xbc8] sm:$0xff] %v906_v57  ;;  %v910_v59 = vld [vmem:[%s7031_s25 + $0x16d8] sm:$0xff]  ;;  %v912_v60 = vld [vmem:[%s7031_s25 + $0x16e0] sm:$0xff] }
  0xcf   : > { %909 = vst [vmem:[%s7036_s26 + $0xbd0] sm:$0xff] %v908_v58  ;;  %911 = vst [vmem:[%s7036_s26 + $0xbd8] sm:$0xff] %v910_v59  ;;  %v914_v61 = vld [vmem:[%s7031_s25 + $0x16e8] sm:$0xff]  ;;  %v916_v62 = vld [vmem:[%s7031_s25 + $0x16f0] sm:$0xff] }
  0xd0   : > { %913 = vst [vmem:[%s7036_s26 + $0xbe0] sm:$0xff] %v912_v60  ;;  %v918_v63 = vld [vmem:[%s7031_s25 + $0x16f8] sm:$0xff]  ;;  %915 = vst [vmem:[%s7036_s26 + $0xbe8] sm:$0xff] %v914_v61  ;;  %v920_v0 = vld [vmem:[%s7031_s25 + $0x1800] sm:$0xff] }
  0xd1   : > { %917 = vst [vmem:[%s7036_s26 + $0xbf0] sm:$0xff] %v916_v62  ;;  %919 = vst [vmem:[%s7036_s26 + $0xbf8] sm:$0xff] %v918_v63  ;;  %v922_v1 = vld [vmem:[%s7031_s25 + $0x1808] sm:$0xff]  ;;  %v924_v2 = vld [vmem:[%s7031_s25 + $0x1810] sm:$0xff] }
  0xd2   : > { %921 = vst [vmem:[%s7036_s26 + $0xc00] sm:$0xff] %v920_v0  ;;  %923 = vst [vmem:[%s7036_s26 + $0xc08] sm:$0xff] %v922_v1  ;;  %v926_v3 = vld [vmem:[%s7031_s25 + $0x1818] sm:$0xff]  ;;  %v928_v4 = vld [vmem:[%s7031_s25 + $0x1820] sm:$0xff] }
  0xd3   : > { %925 = vst [vmem:[%s7036_s26 + $0xc10] sm:$0xff] %v924_v2  ;;  %v930_v5 = vld [vmem:[%s7031_s25 + $0x1828] sm:$0xff]  ;;  %927 = vst [vmem:[%s7036_s26 + $0xc18] sm:$0xff] %v926_v3  ;;  %v932_v6 = vld [vmem:[%s7031_s25 + $0x1830] sm:$0xff] }
  0xd4   : > { %929 = vst [vmem:[%s7036_s26 + $0xc20] sm:$0xff] %v928_v4  ;;  %931 = vst [vmem:[%s7036_s26 + $0xc28] sm:$0xff] %v930_v5  ;;  %v934_v7 = vld [vmem:[%s7031_s25 + $0x1838] sm:$0xff]  ;;  %v936_v8 = vld [vmem:[%s7031_s25 + $0x1840] sm:$0xff] }
  0xd5   : > { %933 = vst [vmem:[%s7036_s26 + $0xc30] sm:$0xff] %v932_v6  ;;  %935 = vst [vmem:[%s7036_s26 + $0xc38] sm:$0xff] %v934_v7  ;;  %v938_v9 = vld [vmem:[%s7031_s25 + $0x1848] sm:$0xff]  ;;  %v940_v10 = vld [vmem:[%s7031_s25 + $0x1850] sm:$0xff] }
  0xd6   : > { %937 = vst [vmem:[%s7036_s26 + $0xc40] sm:$0xff] %v936_v8  ;;  %v942_v11 = vld [vmem:[%s7031_s25 + $0x1858] sm:$0xff]  ;;  %939 = vst [vmem:[%s7036_s26 + $0xc48] sm:$0xff] %v938_v9  ;;  %v944_v12 = vld [vmem:[%s7031_s25 + $0x1860] sm:$0xff] }
  0xd7   : > { %941 = vst [vmem:[%s7036_s26 + $0xc50] sm:$0xff] %v940_v10  ;;  %943 = vst [vmem:[%s7036_s26 + $0xc58] sm:$0xff] %v942_v11  ;;  %v946_v13 = vld [vmem:[%s7031_s25 + $0x1868] sm:$0xff]  ;;  %v948_v14 = vld [vmem:[%s7031_s25 + $0x1870] sm:$0xff] }
  0xd8   : > { %945 = vst [vmem:[%s7036_s26 + $0xc60] sm:$0xff] %v944_v12  ;;  %947 = vst [vmem:[%s7036_s26 + $0xc68] sm:$0xff] %v946_v13  ;;  %v950_v15 = vld [vmem:[%s7031_s25 + $0x1878] sm:$0xff]  ;;  %v952_v16 = vld [vmem:[%s7031_s25 + $0x1880] sm:$0xff] }
  0xd9   : > { %949 = vst [vmem:[%s7036_s26 + $0xc70] sm:$0xff] %v948_v14  ;;  %v954_v17 = vld [vmem:[%s7031_s25 + $0x1888] sm:$0xff]  ;;  %951 = vst [vmem:[%s7036_s26 + $0xc78] sm:$0xff] %v950_v15  ;;  %v956_v18 = vld [vmem:[%s7031_s25 + $0x1890] sm:$0xff] }
  0xda   : > { %953 = vst [vmem:[%s7036_s26 + $0xc80] sm:$0xff] %v952_v16  ;;  %955 = vst [vmem:[%s7036_s26 + $0xc88] sm:$0xff] %v954_v17  ;;  %v958_v19 = vld [vmem:[%s7031_s25 + $0x1898] sm:$0xff]  ;;  %v960_v20 = vld [vmem:[%s7031_s25 + $0x18a0] sm:$0xff] }
  0xdb   : > { %957 = vst [vmem:[%s7036_s26 + $0xc90] sm:$0xff] %v956_v18  ;;  %959 = vst [vmem:[%s7036_s26 + $0xc98] sm:$0xff] %v958_v19  ;;  %v962_v21 = vld [vmem:[%s7031_s25 + $0x18a8] sm:$0xff]  ;;  %v964_v22 = vld [vmem:[%s7031_s25 + $0x18b0] sm:$0xff] }
  0xdc   : > { %961 = vst [vmem:[%s7036_s26 + $0xca0] sm:$0xff] %v960_v20  ;;  %v966_v23 = vld [vmem:[%s7031_s25 + $0x18b8] sm:$0xff]  ;;  %963 = vst [vmem:[%s7036_s26 + $0xca8] sm:$0xff] %v962_v21  ;;  %v968_v24 = vld [vmem:[%s7031_s25 + $0x18c0] sm:$0xff] }
  0xdd   : > { %965 = vst [vmem:[%s7036_s26 + $0xcb0] sm:$0xff] %v964_v22  ;;  %967 = vst [vmem:[%s7036_s26 + $0xcb8] sm:$0xff] %v966_v23  ;;  %v970_v25 = vld [vmem:[%s7031_s25 + $0x18c8] sm:$0xff]  ;;  %v972_v26 = vld [vmem:[%s7031_s25 + $0x18d0] sm:$0xff] }
  0xde   : > { %969 = vst [vmem:[%s7036_s26 + $0xcc0] sm:$0xff] %v968_v24  ;;  %971 = vst [vmem:[%s7036_s26 + $0xcc8] sm:$0xff] %v970_v25  ;;  %v974_v27 = vld [vmem:[%s7031_s25 + $0x18d8] sm:$0xff]  ;;  %v976_v28 = vld [vmem:[%s7031_s25 + $0x18e0] sm:$0xff] }
  0xdf   : > { %973 = vst [vmem:[%s7036_s26 + $0xcd0] sm:$0xff] %v972_v26  ;;  %v978_v29 = vld [vmem:[%s7031_s25 + $0x18e8] sm:$0xff]  ;;  %975 = vst [vmem:[%s7036_s26 + $0xcd8] sm:$0xff] %v974_v27  ;;  %v980_v30 = vld [vmem:[%s7031_s25 + $0x18f0] sm:$0xff] }
  0xe0   : > { %977 = vst [vmem:[%s7036_s26 + $0xce0] sm:$0xff] %v976_v28  ;;  %979 = vst [vmem:[%s7036_s26 + $0xce8] sm:$0xff] %v978_v29  ;;  %v982_v31 = vld [vmem:[%s7031_s25 + $0x18f8] sm:$0xff]  ;;  %v984_v32 = vld [vmem:[%s7031_s25 + $0x1a00] sm:$0xff] }
  0xe1   : > { %981 = vst [vmem:[%s7036_s26 + $0xcf0] sm:$0xff] %v980_v30  ;;  %983 = vst [vmem:[%s7036_s26 + $0xcf8] sm:$0xff] %v982_v31  ;;  %v986_v33 = vld [vmem:[%s7031_s25 + $0x1a08] sm:$0xff]  ;;  %v988_v34 = vld [vmem:[%s7031_s25 + $0x1a10] sm:$0xff] }
  0xe2   : > { %985 = vst [vmem:[%s7036_s26 + $0xd00] sm:$0xff] %v984_v32  ;;  %v990_v35 = vld [vmem:[%s7031_s25 + $0x1a18] sm:$0xff]  ;;  %987 = vst [vmem:[%s7036_s26 + $0xd08] sm:$0xff] %v986_v33  ;;  %v992_v36 = vld [vmem:[%s7031_s25 + $0x1a20] sm:$0xff] }
  0xe3   : > { %989 = vst [vmem:[%s7036_s26 + $0xd10] sm:$0xff] %v988_v34  ;;  %991 = vst [vmem:[%s7036_s26 + $0xd18] sm:$0xff] %v990_v35  ;;  %v994_v37 = vld [vmem:[%s7031_s25 + $0x1a28] sm:$0xff]  ;;  %v996_v38 = vld [vmem:[%s7031_s25 + $0x1a30] sm:$0xff] }
  0xe4   : > { %993 = vst [vmem:[%s7036_s26 + $0xd20] sm:$0xff] %v992_v36  ;;  %995 = vst [vmem:[%s7036_s26 + $0xd28] sm:$0xff] %v994_v37  ;;  %v998_v39 = vld [vmem:[%s7031_s25 + $0x1a38] sm:$0xff]  ;;  %v1000_v40 = vld [vmem:[%s7031_s25 + $0x1a40] sm:$0xff] }
  0xe5   : > { %997 = vst [vmem:[%s7036_s26 + $0xd30] sm:$0xff] %v996_v38  ;;  %v1002_v41 = vld [vmem:[%s7031_s25 + $0x1a48] sm:$0xff]  ;;  %999 = vst [vmem:[%s7036_s26 + $0xd38] sm:$0xff] %v998_v39  ;;  %v1004_v42 = vld [vmem:[%s7031_s25 + $0x1a50] sm:$0xff] }
  0xe6   : > { %1001 = vst [vmem:[%s7036_s26 + $0xd40] sm:$0xff] %v1000_v40  ;;  %1003 = vst [vmem:[%s7036_s26 + $0xd48] sm:$0xff] %v1002_v41  ;;  %v1006_v43 = vld [vmem:[%s7031_s25 + $0x1a58] sm:$0xff]  ;;  %v1008_v44 = vld [vmem:[%s7031_s25 + $0x1a60] sm:$0xff] }
  0xe7   : > { %1005 = vst [vmem:[%s7036_s26 + $0xd50] sm:$0xff] %v1004_v42  ;;  %1007 = vst [vmem:[%s7036_s26 + $0xd58] sm:$0xff] %v1006_v43  ;;  %v1010_v45 = vld [vmem:[%s7031_s25 + $0x1a68] sm:$0xff]  ;;  %v1012_v46 = vld [vmem:[%s7031_s25 + $0x1a70] sm:$0xff] }
  0xe8   : > { %1009 = vst [vmem:[%s7036_s26 + $0xd60] sm:$0xff] %v1008_v44  ;;  %v1014_v47 = vld [vmem:[%s7031_s25 + $0x1a78] sm:$0xff]  ;;  %1011 = vst [vmem:[%s7036_s26 + $0xd68] sm:$0xff] %v1010_v45  ;;  %v1016_v48 = vld [vmem:[%s7031_s25 + $0x1a80] sm:$0xff] }
  0xe9   : > { %1013 = vst [vmem:[%s7036_s26 + $0xd70] sm:$0xff] %v1012_v46  ;;  %1015 = vst [vmem:[%s7036_s26 + $0xd78] sm:$0xff] %v1014_v47  ;;  %v1018_v49 = vld [vmem:[%s7031_s25 + $0x1a88] sm:$0xff]  ;;  %v1020_v50 = vld [vmem:[%s7031_s25 + $0x1a90] sm:$0xff] }
  0xea   : > { %1017 = vst [vmem:[%s7036_s26 + $0xd80] sm:$0xff] %v1016_v48  ;;  %1019 = vst [vmem:[%s7036_s26 + $0xd88] sm:$0xff] %v1018_v49  ;;  %v1022_v51 = vld [vmem:[%s7031_s25 + $0x1a98] sm:$0xff]  ;;  %v1024_v52 = vld [vmem:[%s7031_s25 + $0x1aa0] sm:$0xff] }
  0xeb   : > { %1021 = vst [vmem:[%s7036_s26 + $0xd90] sm:$0xff] %v1020_v50  ;;  %v1026_v53 = vld [vmem:[%s7031_s25 + $0x1aa8] sm:$0xff]  ;;  %1023 = vst [vmem:[%s7036_s26 + $0xd98] sm:$0xff] %v1022_v51  ;;  %v1028_v54 = vld [vmem:[%s7031_s25 + $0x1ab0] sm:$0xff] }
  0xec   : > { %1025 = vst [vmem:[%s7036_s26 + $0xda0] sm:$0xff] %v1024_v52  ;;  %1027 = vst [vmem:[%s7036_s26 + $0xda8] sm:$0xff] %v1026_v53  ;;  %v1030_v55 = vld [vmem:[%s7031_s25 + $0x1ab8] sm:$0xff]  ;;  %v1032_v56 = vld [vmem:[%s7031_s25 + $0x1ac0] sm:$0xff] }
  0xed   : > { %1029 = vst [vmem:[%s7036_s26 + $0xdb0] sm:$0xff] %v1028_v54  ;;  %1031 = vst [vmem:[%s7036_s26 + $0xdb8] sm:$0xff] %v1030_v55  ;;  %v1034_v57 = vld [vmem:[%s7031_s25 + $0x1ac8] sm:$0xff]  ;;  %v1036_v58 = vld [vmem:[%s7031_s25 + $0x1ad0] sm:$0xff] }
  0xee   : > { %1033 = vst [vmem:[%s7036_s26 + $0xdc0] sm:$0xff] %v1032_v56  ;;  %v1038_v59 = vld [vmem:[%s7031_s25 + $0x1ad8] sm:$0xff]  ;;  %1035 = vst [vmem:[%s7036_s26 + $0xdc8] sm:$0xff] %v1034_v57  ;;  %v1040_v60 = vld [vmem:[%s7031_s25 + $0x1ae0] sm:$0xff] }
  0xef   : > { %1037 = vst [vmem:[%s7036_s26 + $0xdd0] sm:$0xff] %v1036_v58  ;;  %1039 = vst [vmem:[%s7036_s26 + $0xdd8] sm:$0xff] %v1038_v59  ;;  %v1042_v61 = vld [vmem:[%s7031_s25 + $0x1ae8] sm:$0xff]  ;;  %v1044_v62 = vld [vmem:[%s7031_s25 + $0x1af0] sm:$0xff] }
  0xf0   : > { %1041 = vst [vmem:[%s7036_s26 + $0xde0] sm:$0xff] %v1040_v60  ;;  %1043 = vst [vmem:[%s7036_s26 + $0xde8] sm:$0xff] %v1042_v61  ;;  %v1046_v63 = vld [vmem:[%s7031_s25 + $0x1af8] sm:$0xff]  ;;  %v1048_v0 = vld [vmem:[%s7031_s25 + $0x1c00] sm:$0xff] }
  0xf1   : > { %1045 = vst [vmem:[%s7036_s26 + $0xdf0] sm:$0xff] %v1044_v62  ;;  %v1050_v1 = vld [vmem:[%s7031_s25 + $0x1c08] sm:$0xff]  ;;  %1047 = vst [vmem:[%s7036_s26 + $0xdf8] sm:$0xff] %v1046_v63  ;;  %v1052_v2 = vld [vmem:[%s7031_s25 + $0x1c10] sm:$0xff] }
  0xf2   : > { %1049 = vst [vmem:[%s7036_s26 + $0xe00] sm:$0xff] %v1048_v0  ;;  %1051 = vst [vmem:[%s7036_s26 + $0xe08] sm:$0xff] %v1050_v1  ;;  %v1054_v3 = vld [vmem:[%s7031_s25 + $0x1c18] sm:$0xff]  ;;  %v1056_v4 = vld [vmem:[%s7031_s25 + $0x1c20] sm:$0xff] }
  0xf3   : > { %1053 = vst [vmem:[%s7036_s26 + $0xe10] sm:$0xff] %v1052_v2  ;;  %1055 = vst [vmem:[%s7036_s26 + $0xe18] sm:$0xff] %v1054_v3  ;;  %v1058_v5 = vld [vmem:[%s7031_s25 + $0x1c28] sm:$0xff]  ;;  %v1060_v6 = vld [vmem:[%s7031_s25 + $0x1c30] sm:$0xff] }
  0xf4   : > { %1057 = vst [vmem:[%s7036_s26 + $0xe20] sm:$0xff] %v1056_v4  ;;  %v1062_v7 = vld [vmem:[%s7031_s25 + $0x1c38] sm:$0xff]  ;;  %1059 = vst [vmem:[%s7036_s26 + $0xe28] sm:$0xff] %v1058_v5  ;;  %v1064_v8 = vld [vmem:[%s7031_s25 + $0x1c40] sm:$0xff] }
  0xf5   : > { %1061 = vst [vmem:[%s7036_s26 + $0xe30] sm:$0xff] %v1060_v6  ;;  %1063 = vst [vmem:[%s7036_s26 + $0xe38] sm:$0xff] %v1062_v7  ;;  %v1066_v9 = vld [vmem:[%s7031_s25 + $0x1c48] sm:$0xff]  ;;  %v1068_v10 = vld [vmem:[%s7031_s25 + $0x1c50] sm:$0xff] }
  0xf6   : > { %1065 = vst [vmem:[%s7036_s26 + $0xe40] sm:$0xff] %v1064_v8  ;;  %1067 = vst [vmem:[%s7036_s26 + $0xe48] sm:$0xff] %v1066_v9  ;;  %v1070_v11 = vld [vmem:[%s7031_s25 + $0x1c58] sm:$0xff]  ;;  %v1072_v12 = vld [vmem:[%s7031_s25 + $0x1c60] sm:$0xff] }
  0xf7   : > { %1069 = vst [vmem:[%s7036_s26 + $0xe50] sm:$0xff] %v1068_v10  ;;  %v1074_v13 = vld [vmem:[%s7031_s25 + $0x1c68] sm:$0xff]  ;;  %1071 = vst [vmem:[%s7036_s26 + $0xe58] sm:$0xff] %v1070_v11  ;;  %v1076_v14 = vld [vmem:[%s7031_s25 + $0x1c70] sm:$0xff] }
  0xf8   : > { %1073 = vst [vmem:[%s7036_s26 + $0xe60] sm:$0xff] %v1072_v12  ;;  %1075 = vst [vmem:[%s7036_s26 + $0xe68] sm:$0xff] %v1074_v13  ;;  %v1078_v15 = vld [vmem:[%s7031_s25 + $0x1c78] sm:$0xff]  ;;  %v1080_v16 = vld [vmem:[%s7031_s25 + $0x1c80] sm:$0xff] }
  0xf9   : > { %1077 = vst [vmem:[%s7036_s26 + $0xe70] sm:$0xff] %v1076_v14  ;;  %1079 = vst [vmem:[%s7036_s26 + $0xe78] sm:$0xff] %v1078_v15  ;;  %v1082_v17 = vld [vmem:[%s7031_s25 + $0x1c88] sm:$0xff]  ;;  %v1084_v18 = vld [vmem:[%s7031_s25 + $0x1c90] sm:$0xff] }
  0xfa   : > { %1081 = vst [vmem:[%s7036_s26 + $0xe80] sm:$0xff] %v1080_v16  ;;  %v1086_v19 = vld [vmem:[%s7031_s25 + $0x1c98] sm:$0xff]  ;;  %1083 = vst [vmem:[%s7036_s26 + $0xe88] sm:$0xff] %v1082_v17  ;;  %v1088_v20 = vld [vmem:[%s7031_s25 + $0x1ca0] sm:$0xff] }
  0xfb   : > { %1085 = vst [vmem:[%s7036_s26 + $0xe90] sm:$0xff] %v1084_v18  ;;  %1087 = vst [vmem:[%s7036_s26 + $0xe98] sm:$0xff] %v1086_v19  ;;  %v1090_v21 = vld [vmem:[%s7031_s25 + $0x1ca8] sm:$0xff]  ;;  %v1092_v22 = vld [vmem:[%s7031_s25 + $0x1cb0] sm:$0xff] }
  0xfc   : > { %1089 = vst [vmem:[%s7036_s26 + $0xea0] sm:$0xff] %v1088_v20  ;;  %1091 = vst [vmem:[%s7036_s26 + $0xea8] sm:$0xff] %v1090_v21  ;;  %v1094_v23 = vld [vmem:[%s7031_s25 + $0x1cb8] sm:$0xff]  ;;  %v1096_v24 = vld [vmem:[%s7031_s25 + $0x1cc0] sm:$0xff] }
  0xfd   : > { %1093 = vst [vmem:[%s7036_s26 + $0xeb0] sm:$0xff] %v1092_v22  ;;  %v1098_v25 = vld [vmem:[%s7031_s25 + $0x1cc8] sm:$0xff]  ;;  %1095 = vst [vmem:[%s7036_s26 + $0xeb8] sm:$0xff] %v1094_v23  ;;  %v1100_v26 = vld [vmem:[%s7031_s25 + $0x1cd0] sm:$0xff] }
  0xfe   : > { %1097 = vst [vmem:[%s7036_s26 + $0xec0] sm:$0xff] %v1096_v24  ;;  %1099 = vst [vmem:[%s7036_s26 + $0xec8] sm:$0xff] %v1098_v25  ;;  %v1102_v27 = vld [vmem:[%s7031_s25 + $0x1cd8] sm:$0xff]  ;;  %v1104_v28 = vld [vmem:[%s7031_s25 + $0x1ce0] sm:$0xff] }
  0xff   : > { %1101 = vst [vmem:[%s7036_s26 + $0xed0] sm:$0xff] %v1100_v26  ;;  %1103 = vst [vmem:[%s7036_s26 + $0xed8] sm:$0xff] %v1102_v27  ;;  %v1106_v29 = vld [vmem:[%s7031_s25 + $0x1ce8] sm:$0xff]  ;;  %v1108_v30 = vld [vmem:[%s7031_s25 + $0x1cf0] sm:$0xff] }
 0x100   : > { %1105 = vst [vmem:[%s7036_s26 + $0xee0] sm:$0xff] %v1104_v28  ;;  %v1110_v31 = vld [vmem:[%s7031_s25 + $0x1cf8] sm:$0xff]  ;;  %1107 = vst [vmem:[%s7036_s26 + $0xee8] sm:$0xff] %v1106_v29  ;;  %v1112_v32 = vld [vmem:[%s7031_s25 + $0x1e00] sm:$0xff] }
 0x101   : > { %1109 = vst [vmem:[%s7036_s26 + $0xef0] sm:$0xff] %v1108_v30  ;;  %1111 = vst [vmem:[%s7036_s26 + $0xef8] sm:$0xff] %v1110_v31  ;;  %v1114_v33 = vld [vmem:[%s7031_s25 + $0x1e08] sm:$0xff]  ;;  %v1116_v34 = vld [vmem:[%s7031_s25 + $0x1e10] sm:$0xff] }
 0x102   : > { %1113 = vst [vmem:[%s7036_s26 + $0xf00] sm:$0xff] %v1112_v32  ;;  %1115 = vst [vmem:[%s7036_s26 + $0xf08] sm:$0xff] %v1114_v33  ;;  %v1118_v35 = vld [vmem:[%s7031_s25 + $0x1e18] sm:$0xff]  ;;  %v1120_v36 = vld [vmem:[%s7031_s25 + $0x1e20] sm:$0xff] }
 0x103   : > { %1117 = vst [vmem:[%s7036_s26 + $0xf10] sm:$0xff] %v1116_v34  ;;  %v1122_v37 = vld [vmem:[%s7031_s25 + $0x1e28] sm:$0xff]  ;;  %1119 = vst [vmem:[%s7036_s26 + $0xf18] sm:$0xff] %v1118_v35  ;;  %v1124_v38 = vld [vmem:[%s7031_s25 + $0x1e30] sm:$0xff] }
 0x104   : > { %1121 = vst [vmem:[%s7036_s26 + $0xf20] sm:$0xff] %v1120_v36  ;;  %1123 = vst [vmem:[%s7036_s26 + $0xf28] sm:$0xff] %v1122_v37  ;;  %v1126_v39 = vld [vmem:[%s7031_s25 + $0x1e38] sm:$0xff]  ;;  %v1128_v40 = vld [vmem:[%s7031_s25 + $0x1e40] sm:$0xff] }
 0x105   : > { %1125 = vst [vmem:[%s7036_s26 + $0xf30] sm:$0xff] %v1124_v38  ;;  %1127 = vst [vmem:[%s7036_s26 + $0xf38] sm:$0xff] %v1126_v39  ;;  %v1130_v41 = vld [vmem:[%s7031_s25 + $0x1e48] sm:$0xff]  ;;  %v1132_v42 = vld [vmem:[%s7031_s25 + $0x1e50] sm:$0xff] }
 0x106   : > { %1129 = vst [vmem:[%s7036_s26 + $0xf40] sm:$0xff] %v1128_v40  ;;  %v1134_v43 = vld [vmem:[%s7031_s25 + $0x1e58] sm:$0xff]  ;;  %1131 = vst [vmem:[%s7036_s26 + $0xf48] sm:$0xff] %v1130_v41  ;;  %v1136_v44 = vld [vmem:[%s7031_s25 + $0x1e60] sm:$0xff] }
 0x107   : > { %1133 = vst [vmem:[%s7036_s26 + $0xf50] sm:$0xff] %v1132_v42  ;;  %1135 = vst [vmem:[%s7036_s26 + $0xf58] sm:$0xff] %v1134_v43  ;;  %v1138_v45 = vld [vmem:[%s7031_s25 + $0x1e68] sm:$0xff]  ;;  %v1140_v46 = vld [vmem:[%s7031_s25 + $0x1e70] sm:$0xff] }
 0x108   : > { %1137 = vst [vmem:[%s7036_s26 + $0xf60] sm:$0xff] %v1136_v44  ;;  %1139 = vst [vmem:[%s7036_s26 + $0xf68] sm:$0xff] %v1138_v45  ;;  %v1142_v47 = vld [vmem:[%s7031_s25 + $0x1e78] sm:$0xff]  ;;  %v1144_v48 = vld [vmem:[%s7031_s25 + $0x1e80] sm:$0xff] }
 0x109   : > { %1141 = vst [vmem:[%s7036_s26 + $0xf70] sm:$0xff] %v1140_v46  ;;  %v1146_v49 = vld [vmem:[%s7031_s25 + $0x1e88] sm:$0xff]  ;;  %1143 = vst [vmem:[%s7036_s26 + $0xf78] sm:$0xff] %v1142_v47  ;;  %v1148_v50 = vld [vmem:[%s7031_s25 + $0x1e90] sm:$0xff] }
 0x10a   : > { %1145 = vst [vmem:[%s7036_s26 + $0xf80] sm:$0xff] %v1144_v48  ;;  %1147 = vst [vmem:[%s7036_s26 + $0xf88] sm:$0xff] %v1146_v49  ;;  %v1150_v51 = vld [vmem:[%s7031_s25 + $0x1e98] sm:$0xff]  ;;  %v1152_v52 = vld [vmem:[%s7031_s25 + $0x1ea0] sm:$0xff] }
 0x10b   : > { %1149 = vst [vmem:[%s7036_s26 + $0xf90] sm:$0xff] %v1148_v50  ;;  %1151 = vst [vmem:[%s7036_s26 + $0xf98] sm:$0xff] %v1150_v51  ;;  %v1154_v53 = vld [vmem:[%s7031_s25 + $0x1ea8] sm:$0xff]  ;;  %v1156_v54 = vld [vmem:[%s7031_s25 + $0x1eb0] sm:$0xff] }
 0x10c   : > { %1153 = vst [vmem:[%s7036_s26 + $0xfa0] sm:$0xff] %v1152_v52  ;;  %v1158_v55 = vld [vmem:[%s7031_s25 + $0x1eb8] sm:$0xff]  ;;  %1155 = vst [vmem:[%s7036_s26 + $0xfa8] sm:$0xff] %v1154_v53  ;;  %v1160_v56 = vld [vmem:[%s7031_s25 + $0x1ec0] sm:$0xff] }
 0x10d   : > { %1157 = vst [vmem:[%s7036_s26 + $0xfb0] sm:$0xff] %v1156_v54  ;;  %1159 = vst [vmem:[%s7036_s26 + $0xfb8] sm:$0xff] %v1158_v55  ;;  %v1162_v57 = vld [vmem:[%s7031_s25 + $0x1ec8] sm:$0xff]  ;;  %v1164_v58 = vld [vmem:[%s7031_s25 + $0x1ed0] sm:$0xff] }
 0x10e   : > { %1161 = vst [vmem:[%s7036_s26 + $0xfc0] sm:$0xff] %v1160_v56  ;;  %1163 = vst [vmem:[%s7036_s26 + $0xfc8] sm:$0xff] %v1162_v57  ;;  %v1166_v59 = vld [vmem:[%s7031_s25 + $0x1ed8] sm:$0xff]  ;;  %v1168_v60 = vld [vmem:[%s7031_s25 + $0x1ee0] sm:$0xff] }
 0x10f   : > { %1165 = vst [vmem:[%s7036_s26 + $0xfd0] sm:$0xff] %v1164_v58  ;;  %v1170_v61 = vld [vmem:[%s7031_s25 + $0x1ee8] sm:$0xff]  ;;  %1167 = vst [vmem:[%s7036_s26 + $0xfd8] sm:$0xff] %v1166_v59  ;;  %v1172_v62 = vld [vmem:[%s7031_s25 + $0x1ef0] sm:$0xff] }
 0x110   : > { %1169 = vst [vmem:[%s7036_s26 + $0xfe0] sm:$0xff] %v1168_v60  ;;  %1171 = vst [vmem:[%s7036_s26 + $0xfe8] sm:$0xff] %v1170_v61  ;;  %v1174_v63 = vld [vmem:[%s7031_s25 + $0x1ef8] sm:$0xff] }
 0x111   : > { %1173 = vst [vmem:[%s7036_s26 + $0xff0] sm:$0xff] %v1172_v62  ;;  %1175 = vst [vmem:[%s7036_s26 + $0xff8] sm:$0xff] %v1174_v63 }
 0x112 PF: > { %p6402_p5 = scmp.ge.s32.totalorder %s6973_s14, 1  ;;  %p1188_p6 = scmp.lt.s32.totalorder %s6973_s14, 3 }
 0x114   : > { %p1189_p7 = pnand %p6402_p5, %p1188_p6 }
 0x115   : > { %s1195_s27 = sand.u32 (!%p1189_p7), 1, %s6965_s12   ;;  %v6975_v0 = vmov (!%p1189_p7), 0   ;;  %s6404_s7 = sshll.u32 (!%p1189_p7), %s6395_s15, 6 }
 0x116   : > { %1192 = sbr.rel (%p1189_p7) target bundleno = 1018 (0x3fa), region = 51  ;;  %s6403_s28 = sshll.u32 (!%p1189_p7), %s1195_s27, 12  ;;  %4676 = vmatprep.mubr.bf16.mxu0 (!%p1189_p7), %v6975_v0  ;;  %4717 = vmatprep.mubr.bf16.mxu1 (!%p1189_p7), %v6975_v0 }
 0x117   : > { %s8064_s29 = scalar_lea.vmem (!%p1189_p7), [#allocation2], %s6403_s28  ;;  %p1224_p8 = scmp.lt.s32.totalorder (!%p1189_p7), %s6404_s7, 127 }
 0x118   : > { %v1236_v1 = vld [vmem:[%s8064_s29] sm:$0xff] (!%p1189_p7)  ;;  %v1237_v3 = vld [vmem:[%s8064_s29 + $0x8] sm:$0xff] (!%p1189_p7)  ;;  %v1238_v63 = vld [vmem:[%s8064_s29 + $0x10] sm:$0xff] (!%p1189_p7) }
 0x119   : > { %v1268_v2 = vld [vmem:[%s8064_s29 + $0x100] sm:$0xff] (!%p1189_p7)  ;;  %v1269_v5 = vld [vmem:[%s8064_s29 + $0x108] sm:$0xff] (!%p1189_p7) }
 0x11a   : > { %v6408_v4 = vcombine.high (!%p1189_p7), %v1236_v1, %v1268_v2  ;;  %v6407_v6 = vcombine.low (!%p1189_p7), %v1236_v1, %v1268_v2  ;;  %v1300_v7 = vld [vmem:[%s8064_s29 + $0x200] sm:$0xff] (!%p1189_p7)  ;;  %v6410_v9 = vcombine.high (!%p1189_p7), %v1237_v3, %v1269_v5  ;;  %v6409_v10 = vcombine.low (!%p1189_p7), %v1237_v3, %v1269_v5  ;;  %v1301_v12 = vld [vmem:[%s8064_s29 + $0x208] sm:$0xff] (!%p1189_p7)  ;;  %v1270_v1 = vld [vmem:[%s8064_s29 + $0x110] sm:$0xff] (!%p1189_p7) }
 0x11b   : > { %v1332_v8 = vld [vmem:[%s8064_s29 + $0x300] sm:$0xff] (!%p1189_p7)  ;;  %v1333_v13 = vld [vmem:[%s8064_s29 + $0x308] sm:$0xff] (!%p1189_p7)  ;;  %v1239_v2 = vld [vmem:[%s8064_s29 + $0x18] sm:$0xff] (!%p1189_p7) }
 0x11c   : > { %v6472_v11 = vcombine.high (!%p1189_p7), %v1300_v7, %v1332_v8  ;;  %v1364_v14 = vld [vmem:[%s8064_s29 + $0x400] sm:$0xff] (!%p1189_p7)  ;;  %4644 = vmatprep.subr.bf16.mxu0 (!%p1189_p7), %v6408_v4  ;;  %v6474_v15 = vcombine.high (!%p1189_p7), %v1301_v12, %v1333_v13  ;;  %v1365_v17 = vld [vmem:[%s8064_s29 + $0x408] sm:$0xff] (!%p1189_p7)  ;;  %4685 = vmatprep.subr.bf16.mxu1 (!%p1189_p7), %v6410_v9  ;;  %v6471_v19 = vcombine.low (!%p1189_p7), %v1300_v7, %v1332_v8  ;;  %v1271_v3 = vld [vmem:[%s8064_s29 + $0x118] sm:$0xff] (!%p1189_p7) }
 0x11d   : > { %v1396_v16 = vld [vmem:[%s8064_s29 + $0x500] sm:$0xff]  ;;  %v1397_v18 = vld [vmem:[%s8064_s29 + $0x508] sm:$0xff]  ;;  %4645 = vmatpush1.bf16.msra.mxu0 %v6407_v6  ;;  %4686 = vmatpush1.bf16.msra.mxu1 %v6409_v10  ;;  %v6473_v20 = vcombine.low %v1301_v12, %v1333_v13  ;;  %v6412_v6 = vcombine.high %v1238_v63, %v1270_v1  ;;  %v6414_v7 = vcombine.high %v1239_v2, %v1271_v3  ;;  %v1302_v8 = vld [vmem:[%s8064_s29 + $0x210] sm:$0xff]  ;;  %s8890_s7 = smov (!%p1224_p8, %s6404_s7), 127 }
 0x11e   : > { %4646 = vmatprep.subr.bf16.mxu0 %v6472_v11  ;;  %v6536_v21 = vcombine.high %v1364_v14, %v1396_v16  ;;  %4687 = vmatprep.subr.bf16.mxu1 %v6474_v15  ;;  %v6538_v22 = vcombine.high %v1365_v17, %v1397_v18  ;;  %v1428_v23 = vld [vmem:[%s8064_s29 + $0x600] sm:$0xff]  ;;  %v1429_v25 = vld [vmem:[%s8064_s29 + $0x608] sm:$0xff]  ;;  %v6535_v27 = vcombine.low %v1364_v14, %v1396_v16  ;;  %v1334_v9 = vld [vmem:[%s8064_s29 + $0x310] sm:$0xff]  ;;  %s8359_s10 = scalar_lea.vmem %s8884_s2, %s8890_s7  ;;  %s6406_s11 = sshll.u32 %s8890_s7, 1 }
 0x11f   : > { %v1460_v24 = vld [vmem:[%s8064_s29 + $0x700] sm:$0xff]  ;;  %v1461_v26 = vld [vmem:[%s8064_s29 + $0x708] sm:$0xff]  ;;  %v6537_v28 = vcombine.low %v1365_v17, %v1397_v18  ;;  %v1303_v10 = vld [vmem:[%s8064_s29 + $0x218] sm:$0xff]  ;;  %v6411_v13 = vcombine.low %v1238_v63, %v1270_v1  ;;  %v6413_v14 = vcombine.low %v1239_v2, %v1271_v3  ;;  %v6476_v15 = vcombine.high %v1302_v8, %v1334_v9  ;;  %s8409_s15 = scalar_lea.vmem %s8885_s3, %s6406_s11 }
 0x120   : > { %v6600_v29 = vcombine.high %v1428_v23, %v1460_v24  ;;  %v6602_v30 = vcombine.high %v1429_v25, %v1461_v26  ;;  %v1492_v31 = vld [vmem:[%s8064_s29 + $0x800] sm:$0xff]  ;;  %v1493_v33 = vld [vmem:[%s8064_s29 + $0x808] sm:$0xff]  ;;  %v6599_v35 = vcombine.low %v1428_v23, %v1460_v24  ;;  %v6601_v36 = vcombine.low %v1429_v25, %v1461_v26  ;;  %v1335_v11 = vld [vmem:[%s8064_s29 + $0x318] sm:$0xff] }
 0x121   : > { %4647 = vmatpush1.bf16.msra.mxu0 %v6471_v19  ;;  %4688 = vmatpush1.bf16.msra.mxu1 %v6473_v20  ;;  %v1524_v32 = vld [vmem:[%s8064_s29 + $0x900] sm:$0xff]  ;;  %v1525_v34 = vld [vmem:[%s8064_s29 + $0x908] sm:$0xff]  ;;  %v6478_v16 = vcombine.high %v1303_v10, %v1335_v11  ;;  %v1366_v17 = vld [vmem:[%s8064_s29 + $0x410] sm:$0xff] }
 0x122   : > { %4648 = vmatprep.subr.bf16.mxu0 %v6536_v21  ;;  %4689 = vmatprep.subr.bf16.mxu1 %v6538_v22  ;;  %v6664_v37 = vcombine.high %v1492_v31, %v1524_v32  ;;  %v6666_v38 = vcombine.high %v1493_v33, %v1525_v34  ;;  %v1556_v39 = vld [vmem:[%s8064_s29 + $0xa00] sm:$0xff]  ;;  %v1557_v41 = vld [vmem:[%s8064_s29 + $0xa08] sm:$0xff]  ;;  %v6663_v43 = vcombine.low %v1492_v31, %v1524_v32  ;;  %v1398_v18 = vld [vmem:[%s8064_s29 + $0x510] sm:$0xff] }
 0x123   : > { %v1588_v40 = vld [vmem:[%s8064_s29 + $0xb00] sm:$0xff]  ;;  %v1589_v42 = vld [vmem:[%s8064_s29 + $0xb08] sm:$0xff]  ;;  %v6665_v44 = vcombine.low %v1493_v33, %v1525_v34  ;;  %v1367_v19 = vld [vmem:[%s8064_s29 + $0x418] sm:$0xff]  ;;  %v6475_v21 = vcombine.low %v1302_v8, %v1334_v9  ;;  %v6477_v22 = vcombine.low %v1303_v10, %v1335_v11  ;;  %v6540_v23 = vcombine.high %v1366_v17, %v1398_v18 }
 0x124   : > { %v6728_v45 = vcombine.high %v1556_v39, %v1588_v40  ;;  %v6730_v46 = vcombine.high %v1557_v41, %v1589_v42  ;;  %v1620_v47 = vld [vmem:[%s8064_s29 + $0xc00] sm:$0xff]  ;;  %v1621_v49 = vld [vmem:[%s8064_s29 + $0xc08] sm:$0xff]  ;;  %v6727_v51 = vcombine.low %v1556_v39, %v1588_v40  ;;  %v6729_v52 = vcombine.low %v1557_v41, %v1589_v42  ;;  %v1399_v20 = vld [vmem:[%s8064_s29 + $0x518] sm:$0xff] }
 0x125   : > { %4649 = vmatpush1.bf16.msra.mxu0 %v6535_v27  ;;  %4690 = vmatpush1.bf16.msra.mxu1 %v6537_v28  ;;  %v1652_v48 = vld [vmem:[%s8064_s29 + $0xd00] sm:$0xff]  ;;  %v1653_v50 = vld [vmem:[%s8064_s29 + $0xd08] sm:$0xff]  ;;  %v6542_v24 = vcombine.high %v1367_v19, %v1399_v20  ;;  %v1430_v25 = vld [vmem:[%s8064_s29 + $0x610] sm:$0xff] }
 0x126   : > { %4650 = vmatprep.subr.bf16.mxu0 %v6600_v29  ;;  %4691 = vmatprep.subr.bf16.mxu1 %v6602_v30  ;;  %v6792_v53 = vcombine.high %v1620_v47, %v1652_v48  ;;  %v6794_v54 = vcombine.high %v1621_v49, %v1653_v50  ;;  %v1684_v55 = vld [vmem:[%s8064_s29 + $0xe00] sm:$0xff]  ;;  %v1685_v57 = vld [vmem:[%s8064_s29 + $0xe08] sm:$0xff]  ;;  %v6791_v59 = vcombine.low %v1620_v47, %v1652_v48  ;;  %v1462_v26 = vld [vmem:[%s8064_s29 + $0x710] sm:$0xff] }
 0x127   : > { %v1716_v56 = vld [vmem:[%s8064_s29 + $0xf00] sm:$0xff]  ;;  %v1717_v58 = vld [vmem:[%s8064_s29 + $0xf08] sm:$0xff]  ;;  %v6793_v60 = vcombine.low %v1621_v49, %v1653_v50  ;;  %v1431_v27 = vld [vmem:[%s8064_s29 + $0x618] sm:$0xff]  ;;  %v6539_v29 = vcombine.low %v1366_v17, %v1398_v18  ;;  %v6541_v30 = vcombine.low %v1367_v19, %v1399_v20  ;;  %v6604_v31 = vcombine.high %v1430_v25, %v1462_v26 }
 0x128   : > { %v6856_v61 = vcombine.high %v1684_v55, %v1716_v56  ;;  %v6858_v62 = vcombine.high %v1685_v57, %v1717_v58  ;;  %v6855_v4 = vcombine.low %v1684_v55, %v1716_v56  ;;  %v6857_v5 = vcombine.low %v1685_v57, %v1717_v58  ;;  %v8109_v12 = vld [vmem:[%s8882_s0] sm:$0x1]  ;;  %v1463_v28 = vld [vmem:[%s8064_s29 + $0x718] sm:$0xff]  ;;  %v1494_v33 = vld [vmem:[%s8064_s29 + $0x810] sm:$0xff] }
 0x129   : > { %4651 = vmatpush1.bf16.msra.mxu0 %v6599_v35  ;;  %4692 = vmatpush1.bf16.msra.mxu1 %v6601_v36  ;;  %v6606_v32 = vcombine.high %v1431_v27, %v1463_v28  ;;  %v1526_v34 = vld [vmem:[%s8064_s29 + $0x910] sm:$0xff]  ;;  %v1495_v35 = vld [vmem:[%s8064_s29 + $0x818] sm:$0xff]  ;;  %v1240_v2 = vld [vmem:[%s8064_s29 + $0x20] sm:$0xff] }
 0x12a   : > { %4652 = vmatprep.subr.bf16.mxu0 %v6664_v37  ;;  %4693 = vmatprep.subr.bf16.mxu1 %v6666_v38  ;;  %v1527_v36 = vld [vmem:[%s8064_s29 + $0x918] sm:$0xff]  ;;  %v6603_v37 = vcombine.low %v1430_v25, %v1462_v26  ;;  %v6605_v38 = vcombine.low %v1431_v27, %v1463_v28  ;;  %v6668_v39 = vcombine.high %v1494_v33, %v1526_v34  ;;  %v1558_v41 = vld [vmem:[%s8064_s29 + $0xa10] sm:$0xff]  ;;  %v1272_v3 = vld [vmem:[%s8064_s29 + $0x120] sm:$0xff] }
 0x12b   : > { %v6670_v40 = vcombine.high %v1495_v35, %v1527_v36  ;;  %v1590_v42 = vld [vmem:[%s8064_s29 + $0xb10] sm:$0xff]  ;;  %v6416_v8 = vcombine.high %v1240_v2, %v1272_v3  ;;  %v1304_v10 = vld [vmem:[%s8064_s29 + $0x220] sm:$0xff] }
 0x12c   : > { %v6732_v47 = vcombine.high %v1558_v41, %v1590_v42  ;;  %v1622_v49 = vld [vmem:[%s8064_s29 + $0xc10] sm:$0xff]  ;;  %v1336_v11 = vld [vmem:[%s8064_s29 + $0x320] sm:$0xff] }
 0x12d   : > { %4653 = vmatpush1.bf16.msra.mxu0 %v6663_v43  ;;  %4694 = vmatpush1.bf16.msra.mxu1 %v6665_v44  ;;  %v1559_v43 = vld [vmem:[%s8064_s29 + $0xa18] sm:$0xff]  ;;  %v1654_v50 = vld [vmem:[%s8064_s29 + $0xd10] sm:$0xff]  ;;  %v6480_v17 = vcombine.high %v1304_v10, %v1336_v11  ;;  %v1368_v19 = vld [vmem:[%s8064_s29 + $0x420] sm:$0xff] }
 0x12e   : > { %4654 = vmatprep.subr.bf16.mxu0 %v6728_v45  ;;  %4695 = vmatprep.subr.bf16.mxu1 %v6730_v46  ;;  %v1591_v44 = vld [vmem:[%s8064_s29 + $0xb18] sm:$0xff]  ;;  %v6667_v45 = vcombine.low %v1494_v33, %v1526_v34  ;;  %v6669_v46 = vcombine.low %v1495_v35, %v1527_v36  ;;  %v6796_v55 = vcombine.high %v1622_v49, %v1654_v50  ;;  %v1686_v57 = vld [vmem:[%s8064_s29 + $0xe10] sm:$0xff]  ;;  %v1400_v20 = vld [vmem:[%s8064_s29 + $0x520] sm:$0xff] }
 0x12f   : > { %v6734_v48 = vcombine.high %v1559_v43, %v1591_v44  ;;  %v1718_v58 = vld [vmem:[%s8064_s29 + $0xf10] sm:$0xff]  ;;  %v6544_v25 = vcombine.high %v1368_v19, %v1400_v20  ;;  %v1432_v27 = vld [vmem:[%s8064_s29 + $0x620] sm:$0xff] }
 0x130   : > { %v6860_v63 = vcombine.high %v1686_v57, %v1718_v58  ;;  %v1464_v28 = vld [vmem:[%s8064_s29 + $0x720] sm:$0xff] }
 0x131   : > { %4655 = vmatpush1.bf16.msra.mxu0 %v6727_v51  ;;  %4696 = vmatpush1.bf16.msra.mxu1 %v6729_v52  ;;  %v1623_v51 = vld [vmem:[%s8064_s29 + $0xc18] sm:$0xff]  ;;  %v6608_v33 = vcombine.high %v1432_v27, %v1464_v28  ;;  %v1496_v35 = vld [vmem:[%s8064_s29 + $0x820] sm:$0xff] }
 0x132   : > { %4656 = vmatprep.subr.bf16.mxu0 %v6792_v53  ;;  %4697 = vmatprep.subr.bf16.mxu1 %v6794_v54  ;;  %v1655_v52 = vld [vmem:[%s8064_s29 + $0xd18] sm:$0xff]  ;;  %v6731_v53 = vcombine.low %v1558_v41, %v1590_v42  ;;  %v6733_v54 = vcombine.low %v1559_v43, %v1591_v44  ;;  %v1528_v36 = vld [vmem:[%s8064_s29 + $0x920] sm:$0xff] }
 0x133   : > { %v6798_v56 = vcombine.high %v1623_v51, %v1655_v52  ;;  %v6672_v41 = vcombine.high %v1496_v35, %v1528_v36  ;;  %v1560_v43 = vld [vmem:[%s8064_s29 + $0xa20] sm:$0xff] }
 0x134   : > { %v1592_v44 = vld [vmem:[%s8064_s29 + $0xb20] sm:$0xff] }
 0x135   : > { %4657 = vmatpush1.bf16.msra.mxu0 %v6791_v59  ;;  %4698 = vmatpush1.bf16.msra.mxu1 %v6793_v60  ;;  %v1687_v59 = vld [vmem:[%s8064_s29 + $0xe18] sm:$0xff] }
 0x136   : > { %4658 = vmatprep.subr.bf16.mxu0 %v6856_v61  ;;  %4699 = vmatprep.subr.bf16.mxu1 %v6858_v62  ;;  %v1719_v60 = vld [vmem:[%s8064_s29 + $0xf18] sm:$0xff]  ;;  %v6795_v61 = vcombine.low %v1622_v49, %v1654_v50  ;;  %v6797_v62 = vcombine.low %v1623_v51, %v1655_v52  ;;  %v6736_v49 = vcombine.high %v1560_v43, %v1592_v44  ;;  %v1624_v51 = vld [vmem:[%s8064_s29 + $0xc20] sm:$0xff] }
 0x137   : > { %v6862_v1 = vcombine.high %v1687_v59, %v1719_v60  ;;  %v1656_v52 = vld [vmem:[%s8064_s29 + $0xd20] sm:$0xff] }
 0x139   : > { %4659 = vmatpush1.bf16.msra.mxu0 %v6855_v4  ;;  %4700 = vmatpush1.bf16.msra.mxu1 %v6857_v5  ;;  %v1241_v4 = vld [vmem:[%s8064_s29 + $0x28] sm:$0xff] }
 0x13a   : > { %4726 = vmatprep.subr.bf16.mxu0 %v6412_v6  ;;  %4767 = vmatprep.subr.bf16.mxu1 %v6414_v7  ;;  %v1273_v5 = vld [vmem:[%s8064_s29 + $0x128] sm:$0xff]  ;;  %v6859_v6 = vcombine.low %v1686_v57, %v1718_v58  ;;  %v6861_v7 = vcombine.low %v1687_v59, %v1719_v60  ;;  %v6800_v57 = vcombine.high %v1624_v51, %v1656_v52  ;;  %v1688_v59 = vld [vmem:[%s8064_s29 + $0xe20] sm:$0xff] }
 0x13b   : > { %v6418_v9 = vcombine.high %v1241_v4, %v1273_v5  ;;  %v1720_v60 = vld [vmem:[%s8064_s29 + $0xf20] sm:$0xff] }
 0x13c   : > { %4677 = vmatmul.mubr.bf16.vlgmr.msra.gmra.mrb[0].mxu0 %v8109_v12  ;;  %4718 = vmatmul.mubr.bf16.vlgmr.msra.gmra.mrb[0].mxu1 %v8109_v12 }
 0x13d   : > { %4727 = vmatpush1.bf16.msra.mxu0 %v6411_v13  ;;  %4768 = vmatpush1.bf16.msra.mxu1 %v6413_v14  ;;  %v1305_v13 = vld [vmem:[%s8064_s29 + $0x228] sm:$0xff] }
 0x13e   : > { %4728 = vmatprep.subr.bf16.mxu0 %v6476_v15  ;;  %4769 = vmatprep.subr.bf16.mxu1 %v6478_v16  ;;  %v1337_v14 = vld [vmem:[%s8064_s29 + $0x328] sm:$0xff]  ;;  %v6415_v15 = vcombine.low %v1240_v2, %v1272_v3  ;;  %v6417_v16 = vcombine.low %v1241_v4, %v1273_v5  ;;  %v6864_v2 = vcombine.high %v1688_v59, %v1720_v60  ;;  %v1242_v4 = vld [vmem:[%s8064_s29 + $0x30] sm:$0xff] }
 0x13f   : > { %4758 = vmatprep.mubr.bf16.mxu0 %v6975_v0  ;;  %4799 = vmatprep.mubr.bf16.mxu1 %v6975_v0  ;;  %v6482_v18 = vcombine.high %v1305_v13, %v1337_v14  ;;  %v1274_v5 = vld [vmem:[%s8064_s29 + $0x130] sm:$0xff] }
 0x141   : > { %4729 = vmatpush1.bf16.msra.mxu0 %v6475_v21  ;;  %4770 = vmatpush1.bf16.msra.mxu1 %v6477_v22  ;;  %v1369_v21 = vld [vmem:[%s8064_s29 + $0x428] sm:$0xff] }
 0x142   : > { %4730 = vmatprep.subr.bf16.mxu0 %v6540_v23  ;;  %4771 = vmatprep.subr.bf16.mxu1 %v6542_v24  ;;  %v1401_v22 = vld [vmem:[%s8064_s29 + $0x528] sm:$0xff]  ;;  %v6479_v23 = vcombine.low %v1304_v10, %v1336_v11  ;;  %v6481_v24 = vcombine.low %v1305_v13, %v1337_v14  ;;  %v6420_v10 = vcombine.high %v1242_v4, %v1274_v5  ;;  %v1306_v13 = vld [vmem:[%s8064_s29 + $0x230] sm:$0xff] }
 0x143   : > { %v6546_v26 = vcombine.high %v1369_v21, %v1401_v22  ;;  %v1338_v14 = vld [vmem:[%s8064_s29 + $0x330] sm:$0xff] }
 0x145   : > { %4731 = vmatpush1.bf16.msra.mxu0 %v6539_v29  ;;  %4772 = vmatpush1.bf16.msra.mxu1 %v6541_v30  ;;  %v1433_v29 = vld [vmem:[%s8064_s29 + $0x628] sm:$0xff] }
 0x146   : > { %4732 = vmatprep.subr.bf16.mxu0 %v6604_v31  ;;  %4773 = vmatprep.subr.bf16.mxu1 %v6606_v32  ;;  %v1465_v30 = vld [vmem:[%s8064_s29 + $0x728] sm:$0xff]  ;;  %v6543_v31 = vcombine.low %v1368_v19, %v1400_v20  ;;  %v6545_v32 = vcombine.low %v1369_v21, %v1401_v22  ;;  %v6484_v19 = vcombine.high %v1306_v13, %v1338_v14  ;;  %v1370_v21 = vld [vmem:[%s8064_s29 + $0x430] sm:$0xff] }
 0x147   : > { %v6610_v34 = vcombine.high %v1433_v29, %v1465_v30  ;;  %v1402_v22 = vld [vmem:[%s8064_s29 + $0x530] sm:$0xff] }
 0x149   : > { %4733 = vmatpush1.bf16.msra.mxu0 %v6603_v37  ;;  %4774 = vmatpush1.bf16.msra.mxu1 %v6605_v38  ;;  %v1497_v37 = vld [vmem:[%s8064_s29 + $0x828] sm:$0xff] }
 0x14a   : > { %4734 = vmatprep.subr.bf16.mxu0 %v6668_v39  ;;  %4775 = vmatprep.subr.bf16.mxu1 %v6670_v40  ;;  %v1529_v38 = vld [vmem:[%s8064_s29 + $0x928] sm:$0xff]  ;;  %v6607_v39 = vcombine.low %v1432_v27, %v1464_v28  ;;  %v6609_v40 = vcombine.low %v1433_v29, %v1465_v30  ;;  %v6548_v27 = vcombine.high %v1370_v21, %v1402_v22  ;;  %v1434_v29 = vld [vmem:[%s8064_s29 + $0x630] sm:$0xff] }
 0x14b   : > { %v6674_v42 = vcombine.high %v1497_v37, %v1529_v38  ;;  %v1466_v30 = vld [vmem:[%s8064_s29 + $0x730] sm:$0xff] }
 0x14d   : > { %4735 = vmatpush1.bf16.msra.mxu0 %v6667_v45  ;;  %4776 = vmatpush1.bf16.msra.mxu1 %v6669_v46  ;;  %v1561_v45 = vld [vmem:[%s8064_s29 + $0xa28] sm:$0xff] }
 0x14e   : > { %4736 = vmatprep.subr.bf16.mxu0 %v6732_v47  ;;  %4777 = vmatprep.subr.bf16.mxu1 %v6734_v48  ;;  %v1593_v46 = vld [vmem:[%s8064_s29 + $0xb28] sm:$0xff]  ;;  %v6671_v47 = vcombine.low %v1496_v35, %v1528_v36  ;;  %v6673_v48 = vcombine.low %v1497_v37, %v1529_v38  ;;  %v6612_v35 = vcombine.high %v1434_v29, %v1466_v30  ;;  %v1498_v37 = vld [vmem:[%s8064_s29 + $0x830] sm:$0xff] }
 0x14f   : > { %v6738_v50 = vcombine.high %v1561_v45, %v1593_v46  ;;  %v1530_v38 = vld [vmem:[%s8064_s29 + $0x930] sm:$0xff] }
 0x151   : > { %4737 = vmatpush1.bf16.msra.mxu0 %v6731_v53  ;;  %4778 = vmatpush1.bf16.msra.mxu1 %v6733_v54  ;;  %v1625_v53 = vld [vmem:[%s8064_s29 + $0xc28] sm:$0xff] }
 0x152   : > { %4738 = vmatprep.subr.bf16.mxu0 %v6796_v55  ;;  %4779 = vmatprep.subr.bf16.mxu1 %v6798_v56  ;;  %v1657_v54 = vld [vmem:[%s8064_s29 + $0xd28] sm:$0xff]  ;;  %v6735_v55 = vcombine.low %v1560_v43, %v1592_v44  ;;  %v6737_v56 = vcombine.low %v1561_v45, %v1593_v46  ;;  %v6676_v43 = vcombine.high %v1498_v37, %v1530_v38  ;;  %v1562_v45 = vld [vmem:[%s8064_s29 + $0xa30] sm:$0xff] }
 0x153   : > { %v6802_v58 = vcombine.high %v1625_v53, %v1657_v54  ;;  %v1594_v46 = vld [vmem:[%s8064_s29 + $0xb30] sm:$0xff] }
 0x155   : > { %4739 = vmatpush1.bf16.msra.mxu0 %v6795_v61  ;;  %4780 = vmatpush1.bf16.msra.mxu1 %v6797_v62  ;;  %v1689_v61 = vld [vmem:[%s8064_s29 + $0xe28] sm:$0xff] }
 0x156   : > { %4740 = vmatprep.subr.bf16.mxu0 %v6860_v63  ;;  %4781 = vmatprep.subr.bf16.mxu1 %v6862_v1  ;;  %v1721_v62 = vld [vmem:[%s8064_s29 + $0xf28] sm:$0xff]  ;;  %v6799_v63 = vcombine.low %v1624_v51, %v1656_v52  ;;  %v6801_v1 = vcombine.low %v1625_v53, %v1657_v54  ;;  %v6740_v51 = vcombine.high %v1562_v45, %v1594_v46  ;;  %v1626_v53 = vld [vmem:[%s8064_s29 + $0xc30] sm:$0xff] }
 0x157   : > { %v6866_v3 = vcombine.high %v1689_v61, %v1721_v62  ;;  %v1658_v54 = vld [vmem:[%s8064_s29 + $0xd30] sm:$0xff] }
 0x159   : > { %4741 = vmatpush1.bf16.msra.mxu0 %v6859_v6  ;;  %4782 = vmatpush1.bf16.msra.mxu1 %v6861_v7  ;;  %v1243_v6 = vld [vmem:[%s8064_s29 + $0x38] sm:$0xff] }
 0x15a   : > { %4808 = vmatprep.subr.bf16.mxu0 %v6416_v8  ;;  %4849 = vmatprep.subr.bf16.mxu1 %v6418_v9  ;;  %v1275_v7 = vld [vmem:[%s8064_s29 + $0x138] sm:$0xff]  ;;  %v6863_v8 = vcombine.low %v1688_v59, %v1720_v60  ;;  %v6865_v9 = vcombine.low %v1689_v61, %v1721_v62  ;;  %v6804_v59 = vcombine.high %v1626_v53, %v1658_v54  ;;  %v1690_v61 = vld [vmem:[%s8064_s29 + $0xe30] sm:$0xff] }
 0x15b   : > { %v6422_v11 = vcombine.high %v1243_v6, %v1275_v7  ;;  %v1722_v62 = vld [vmem:[%s8064_s29 + $0xf30] sm:$0xff] }
 0x15c   : > { %4759 = vmatmul.mubr.bf16.vlgmr.msra.gmra.mrb[4].mxu0 %v8109_v12  ;;  %4800 = vmatmul.mubr.bf16.vlgmr.msra.gmra.mrb[4].mxu1 %v8109_v12 }
 0x15d   : > { %4809 = vmatpush1.bf16.msra.mxu0 %v6415_v15  ;;  %4850 = vmatpush1.bf16.msra.mxu1 %v6417_v16  ;;  %v1307_v15 = vld [vmem:[%s8064_s29 + $0x238] sm:$0xff] }
 0x15e   : > { %4810 = vmatprep.subr.bf16.mxu0 %v6480_v17  ;;  %4851 = vmatprep.subr.bf16.mxu1 %v6482_v18  ;;  %v1339_v16 = vld [vmem:[%s8064_s29 + $0x338] sm:$0xff]  ;;  %v6419_v17 = vcombine.low %v1242_v4, %v1274_v5  ;;  %v6421_v18 = vcombine.low %v1243_v6, %v1275_v7  ;;  %v6868_v4 = vcombine.high %v1690_v61, %v1722_v62  ;;  %v1244_v6 = vld [vmem:[%s8064_s29 + $0x40] sm:$0xff] }
 0x15f   : > { %4840 = vmatprep.mubr.bf16.mxu0 %v6975_v0  ;;  %4881 = vmatprep.mubr.bf16.mxu1 %v6975_v0  ;;  %v6486_v20 = vcombine.high %v1307_v15, %v1339_v16  ;;  %v1276_v7 = vld [vmem:[%s8064_s29 + $0x140] sm:$0xff] }
 0x161   : > { %4811 = vmatpush1.bf16.msra.mxu0 %v6479_v23  ;;  %4852 = vmatpush1.bf16.msra.mxu1 %v6481_v24  ;;  %v1371_v23 = vld [vmem:[%s8064_s29 + $0x438] sm:$0xff] }
 0x162   : > { %4812 = vmatprep.subr.bf16.mxu0 %v6544_v25  ;;  %4853 = vmatprep.subr.bf16.mxu1 %v6546_v26  ;;  %v1403_v24 = vld [vmem:[%s8064_s29 + $0x538] sm:$0xff]  ;;  %v6483_v25 = vcombine.low %v1306_v13, %v1338_v14  ;;  %v6485_v26 = vcombine.low %v1307_v15, %v1339_v16  ;;  %v6424_v13 = vcombine.high %v1244_v6, %v1276_v7  ;;  %v1308_v15 = vld [vmem:[%s8064_s29 + $0x240] sm:$0xff] }
 0x163   : > { %v6550_v28 = vcombine.high %v1371_v23, %v1403_v24  ;;  %v1340_v16 = vld [vmem:[%s8064_s29 + $0x340] sm:$0xff] }
 0x165   : > { %4813 = vmatpush1.bf16.msra.mxu0 %v6543_v31  ;;  %4854 = vmatpush1.bf16.msra.mxu1 %v6545_v32  ;;  %v1435_v31 = vld [vmem:[%s8064_s29 + $0x638] sm:$0xff] }
 0x166   : > { %4814 = vmatprep.subr.bf16.mxu0 %v6608_v33  ;;  %4855 = vmatprep.subr.bf16.mxu1 %v6610_v34  ;;  %v1467_v32 = vld [vmem:[%s8064_s29 + $0x738] sm:$0xff]  ;;  %v6547_v33 = vcombine.low %v1370_v21, %v1402_v22  ;;  %v6549_v34 = vcombine.low %v1371_v23, %v1403_v24  ;;  %v6488_v21 = vcombine.high %v1308_v15, %v1340_v16  ;;  %v1372_v23 = vld [vmem:[%s8064_s29 + $0x440] sm:$0xff] }
 0x167   : > { %v6614_v36 = vcombine.high %v1435_v31, %v1467_v32  ;;  %v1404_v24 = vld [vmem:[%s8064_s29 + $0x540] sm:$0xff] }
 0x169   : > { %4815 = vmatpush1.bf16.msra.mxu0 %v6607_v39  ;;  %4856 = vmatpush1.bf16.msra.mxu1 %v6609_v40  ;;  %v1499_v39 = vld [vmem:[%s8064_s29 + $0x838] sm:$0xff] }
 0x16a   : > { %4816 = vmatprep.subr.bf16.mxu0 %v6672_v41  ;;  %4857 = vmatprep.subr.bf16.mxu1 %v6674_v42  ;;  %v1531_v40 = vld [vmem:[%s8064_s29 + $0x938] sm:$0xff]  ;;  %v6611_v41 = vcombine.low %v1434_v29, %v1466_v30  ;;  %v6613_v42 = vcombine.low %v1435_v31, %v1467_v32  ;;  %v6552_v29 = vcombine.high %v1372_v23, %v1404_v24  ;;  %v1436_v31 = vld [vmem:[%s8064_s29 + $0x640] sm:$0xff] }
 0x16b   : > { %v6678_v44 = vcombine.high %v1499_v39, %v1531_v40  ;;  %v1468_v32 = vld [vmem:[%s8064_s29 + $0x740] sm:$0xff] }
 0x16d   : > { %4817 = vmatpush1.bf16.msra.mxu0 %v6671_v47  ;;  %4858 = vmatpush1.bf16.msra.mxu1 %v6673_v48  ;;  %v1563_v47 = vld [vmem:[%s8064_s29 + $0xa38] sm:$0xff] }
 0x16e   : > { %4818 = vmatprep.subr.bf16.mxu0 %v6736_v49  ;;  %4859 = vmatprep.subr.bf16.mxu1 %v6738_v50  ;;  %v1595_v48 = vld [vmem:[%s8064_s29 + $0xb38] sm:$0xff]  ;;  %v6675_v49 = vcombine.low %v1498_v37, %v1530_v38  ;;  %v6677_v50 = vcombine.low %v1499_v39, %v1531_v40  ;;  %v6616_v37 = vcombine.high %v1436_v31, %v1468_v32  ;;  %v1500_v39 = vld [vmem:[%s8064_s29 + $0x840] sm:$0xff] }
 0x16f   : > { %v6742_v52 = vcombine.high %v1563_v47, %v1595_v48  ;;  %v1532_v40 = vld [vmem:[%s8064_s29 + $0x940] sm:$0xff] }
 0x171   : > { %4819 = vmatpush1.bf16.msra.mxu0 %v6735_v55  ;;  %4860 = vmatpush1.bf16.msra.mxu1 %v6737_v56  ;;  %v1627_v55 = vld [vmem:[%s8064_s29 + $0xc38] sm:$0xff] }
 0x172   : > { %4820 = vmatprep.subr.bf16.mxu0 %v6800_v57  ;;  %4861 = vmatprep.subr.bf16.mxu1 %v6802_v58  ;;  %v1659_v56 = vld [vmem:[%s8064_s29 + $0xd38] sm:$0xff]  ;;  %v6739_v57 = vcombine.low %v1562_v45, %v1594_v46  ;;  %v6741_v58 = vcombine.low %v1563_v47, %v1595_v48  ;;  %v6680_v45 = vcombine.high %v1500_v39, %v1532_v40  ;;  %v1564_v47 = vld [vmem:[%s8064_s29 + $0xa40] sm:$0xff] }
 0x173   : > { %v6806_v60 = vcombine.high %v1627_v55, %v1659_v56  ;;  %v1596_v48 = vld [vmem:[%s8064_s29 + $0xb40] sm:$0xff] }
 0x175   : > { %4821 = vmatpush1.bf16.msra.mxu0 %v6799_v63  ;;  %4862 = vmatpush1.bf16.msra.mxu1 %v6801_v1  ;;  %v1691_v63 = vld [vmem:[%s8064_s29 + $0xe38] sm:$0xff] }
 0x176   : > { %4822 = vmatprep.subr.bf16.mxu0 %v6864_v2  ;;  %4863 = vmatprep.subr.bf16.mxu1 %v6866_v3  ;;  %v1723_v1 = vld [vmem:[%s8064_s29 + $0xf38] sm:$0xff]  ;;  %v6803_v2 = vcombine.low %v1626_v53, %v1658_v54  ;;  %v6805_v3 = vcombine.low %v1627_v55, %v1659_v56  ;;  %v6744_v53 = vcombine.high %v1564_v47, %v1596_v48  ;;  %v1628_v55 = vld [vmem:[%s8064_s29 + $0xc40] sm:$0xff] }
 0x177   : > { %v6870_v5 = vcombine.high %v1691_v63, %v1723_v1  ;;  %v1660_v56 = vld [vmem:[%s8064_s29 + $0xd40] sm:$0xff] }
 0x179   : > { %4823 = vmatpush1.bf16.msra.mxu0 %v6863_v8  ;;  %4864 = vmatpush1.bf16.msra.mxu1 %v6865_v9  ;;  %v1245_v8 = vld [vmem:[%s8064_s29 + $0x48] sm:$0xff] }
 0x17a   : > { %4890 = vmatprep.subr.bf16.mxu0 %v6420_v10  ;;  %4931 = vmatprep.subr.bf16.mxu1 %v6422_v11  ;;  %v1277_v9 = vld [vmem:[%s8064_s29 + $0x148] sm:$0xff]  ;;  %v6867_v10 = vcombine.low %v1690_v61, %v1722_v62  ;;  %v6869_v11 = vcombine.low %v1691_v63, %v1723_v1  ;;  %v6808_v61 = vcombine.high %v1628_v55, %v1660_v56  ;;  %v1692_v63 = vld [vmem:[%s8064_s29 + $0xe40] sm:$0xff] }
 0x17b   : > { %v6426_v14 = vcombine.high %v1245_v8, %v1277_v9  ;;  %v1724_v1 = vld [vmem:[%s8064_s29 + $0xf40] sm:$0xff] }
 0x17c   : > { %4841 = vmatmul.mubr.bf16.vlgmr.msra.gmra.mrb[8].mxu0 %v8109_v12  ;;  %4882 = vmatmul.mubr.bf16.vlgmr.msra.gmra.mrb[8].mxu1 %v8109_v12 }
 0x17d   : > { %4891 = vmatpush1.bf16.msra.mxu0 %v6419_v17  ;;  %4932 = vmatpush1.bf16.msra.mxu1 %v6421_v18  ;;  %v1309_v17 = vld [vmem:[%s8064_s29 + $0x248] sm:$0xff] }
 0x17e   : > { %4892 = vmatprep.subr.bf16.mxu0 %v6484_v19  ;;  %4933 = vmatprep.subr.bf16.mxu1 %v6486_v20  ;;  %v1341_v18 = vld [vmem:[%s8064_s29 + $0x348] sm:$0xff]  ;;  %v6423_v19 = vcombine.low %v1244_v6, %v1276_v7  ;;  %v6425_v20 = vcombine.low %v1245_v8, %v1277_v9  ;;  %v6872_v6 = vcombine.high %v1692_v63, %v1724_v1  ;;  %v1246_v8 = vld [vmem:[%s8064_s29 + $0x50] sm:$0xff] }
 0x17f   : > { %4922 = vmatprep.mubr.bf16.mxu0 %v6975_v0  ;;  %4963 = vmatprep.mubr.bf16.mxu1 %v6975_v0  ;;  %v6490_v22 = vcombine.high %v1309_v17, %v1341_v18  ;;  %v1278_v9 = vld [vmem:[%s8064_s29 + $0x150] sm:$0xff] }
 0x181   : > { %4893 = vmatpush1.bf16.msra.mxu0 %v6483_v25  ;;  %4934 = vmatpush1.bf16.msra.mxu1 %v6485_v26  ;;  %v1373_v25 = vld [vmem:[%s8064_s29 + $0x448] sm:$0xff] }
 0x182   : > { %4894 = vmatprep.subr.bf16.mxu0 %v6548_v27  ;;  %4935 = vmatprep.subr.bf16.mxu1 %v6550_v28  ;;  %v1405_v26 = vld [vmem:[%s8064_s29 + $0x548] sm:$0xff]  ;;  %v6487_v27 = vcombine.low %v1308_v15, %v1340_v16  ;;  %v6489_v28 = vcombine.low %v1309_v17, %v1341_v18  ;;  %v6428_v15 = vcombine.high %v1246_v8, %v1278_v9  ;;  %v1310_v17 = vld [vmem:[%s8064_s29 + $0x250] sm:$0xff] }
 0x183   : > { %v6554_v30 = vcombine.high %v1373_v25, %v1405_v26  ;;  %v1342_v18 = vld [vmem:[%s8064_s29 + $0x350] sm:$0xff] }
 0x185   : > { %4895 = vmatpush1.bf16.msra.mxu0 %v6547_v33  ;;  %4936 = vmatpush1.bf16.msra.mxu1 %v6549_v34  ;;  %v1437_v33 = vld [vmem:[%s8064_s29 + $0x648] sm:$0xff] }
 0x186   : > { %4896 = vmatprep.subr.bf16.mxu0 %v6612_v35  ;;  %4937 = vmatprep.subr.bf16.mxu1 %v6614_v36  ;;  %v1469_v34 = vld [vmem:[%s8064_s29 + $0x748] sm:$0xff]  ;;  %v6551_v35 = vcombine.low %v1372_v23, %v1404_v24  ;;  %v6553_v36 = vcombine.low %v1373_v25, %v1405_v26  ;;  %v6492_v23 = vcombine.high %v1310_v17, %v1342_v18  ;;  %v1374_v25 = vld [vmem:[%s8064_s29 + $0x450] sm:$0xff] }
 0x187   : > { %v6618_v38 = vcombine.high %v1437_v33, %v1469_v34  ;;  %v1406_v26 = vld [vmem:[%s8064_s29 + $0x550] sm:$0xff] }
 0x189   : > { %4897 = vmatpush1.bf16.msra.mxu0 %v6611_v41  ;;  %4938 = vmatpush1.bf16.msra.mxu1 %v6613_v42  ;;  %v1501_v41 = vld [vmem:[%s8064_s29 + $0x848] sm:$0xff] }
 0x18a   : > { %4898 = vmatprep.subr.bf16.mxu0 %v6676_v43  ;;  %4939 = vmatprep.subr.bf16.mxu1 %v6678_v44  ;;  %v1533_v42 = vld [vmem:[%s8064_s29 + $0x948] sm:$0xff]  ;;  %v6615_v43 = vcombine.low %v1436_v31, %v1468_v32  ;;  %v6617_v44 = vcombine.low %v1437_v33, %v1469_v34  ;;  %v6556_v31 = vcombine.high %v1374_v25, %v1406_v26  ;;  %v1438_v33 = vld [vmem:[%s8064_s29 + $0x650] sm:$0xff] }
 0x18b   : > { %v6682_v46 = vcombine.high %v1501_v41, %v1533_v42  ;;  %v1470_v34 = vld [vmem:[%s8064_s29 + $0x750] sm:$0xff] }
 0x18d   : > { %4899 = vmatpush1.bf16.msra.mxu0 %v6675_v49  ;;  %4940 = vmatpush1.bf16.msra.mxu1 %v6677_v50  ;;  %v1565_v49 = vld [vmem:[%s8064_s29 + $0xa48] sm:$0xff] }
 0x18e   : > { %4900 = vmatprep.subr.bf16.mxu0 %v6740_v51  ;;  %4941 = vmatprep.subr.bf16.mxu1 %v6742_v52  ;;  %v1597_v50 = vld [vmem:[%s8064_s29 + $0xb48] sm:$0xff]  ;;  %v6679_v51 = vcombine.low %v1500_v39, %v1532_v40  ;;  %v6681_v52 = vcombine.low %v1501_v41, %v1533_v42  ;;  %v6620_v39 = vcombine.high %v1438_v33, %v1470_v34  ;;  %v1502_v41 = vld [vmem:[%s8064_s29 + $0x850] sm:$0xff] }
 0x18f   : > { %v6746_v54 = vcombine.high %v1565_v49, %v1597_v50  ;;  %v1534_v42 = vld [vmem:[%s8064_s29 + $0x950] sm:$0xff] }
 0x191   : > { %4901 = vmatpush1.bf16.msra.mxu0 %v6739_v57  ;;  %4942 = vmatpush1.bf16.msra.mxu1 %v6741_v58  ;;  %v1629_v57 = vld [vmem:[%s8064_s29 + $0xc48] sm:$0xff] }
 0x192   : > { %4902 = vmatprep.subr.bf16.mxu0 %v6804_v59  ;;  %4943 = vmatprep.subr.bf16.mxu1 %v6806_v60  ;;  %v1661_v58 = vld [vmem:[%s8064_s29 + $0xd48] sm:$0xff]  ;;  %v6743_v59 = vcombine.low %v1564_v47, %v1596_v48  ;;  %v6745_v60 = vcombine.low %v1565_v49, %v1597_v50  ;;  %v6684_v47 = vcombine.high %v1502_v41, %v1534_v42  ;;  %v1566_v49 = vld [vmem:[%s8064_s29 + $0xa50] sm:$0xff] }
 0x193   : > { %v6810_v62 = vcombine.high %v1629_v57, %v1661_v58  ;;  %v1598_v50 = vld [vmem:[%s8064_s29 + $0xb50] sm:$0xff] }
 0x195   : > { %4903 = vmatpush1.bf16.msra.mxu0 %v6803_v2  ;;  %4944 = vmatpush1.bf16.msra.mxu1 %v6805_v3  ;;  %v1693_v2 = vld [vmem:[%s8064_s29 + $0xe48] sm:$0xff] }
 0x196   : > { %4904 = vmatprep.subr.bf16.mxu0 %v6868_v4  ;;  %4945 = vmatprep.subr.bf16.mxu1 %v6870_v5  ;;  %v1725_v3 = vld [vmem:[%s8064_s29 + $0xf48] sm:$0xff]  ;;  %v6807_v4 = vcombine.low %v1628_v55, %v1660_v56  ;;  %v6809_v5 = vcombine.low %v1629_v57, %v1661_v58  ;;  %v6748_v55 = vcombine.high %v1566_v49, %v1598_v50  ;;  %v1630_v57 = vld [vmem:[%s8064_s29 + $0xc50] sm:$0xff] }
 0x197   : > { %v6874_v7 = vcombine.high %v1693_v2, %v1725_v3  ;;  %v1662_v58 = vld [vmem:[%s8064_s29 + $0xd50] sm:$0xff] }
 0x199   : > { %4905 = vmatpush1.bf16.msra.mxu0 %v6867_v10  ;;  %4946 = vmatpush1.bf16.msra.mxu1 %v6869_v11  ;;  %v1247_v10 = vld [vmem:[%s8064_s29 + $0x58] sm:$0xff] }
 0x19a   : > { %4972 = vmatprep.subr.bf16.mxu0 %v6424_v13  ;;  %5013 = vmatprep.subr.bf16.mxu1 %v6426_v14  ;;  %v1279_v11 = vld [vmem:[%s8064_s29 + $0x158] sm:$0xff]  ;;  %v6871_v13 = vcombine.low %v1692_v63, %v1724_v1  ;;  %v6873_v14 = vcombine.low %v1693_v2, %v1725_v3  ;;  %v6812_v63 = vcombine.high %v1630_v57, %v1662_v58  ;;  %v1694_v2 = vld [vmem:[%s8064_s29 + $0xe50] sm:$0xff] }
 0x19b   : > { %v6430_v16 = vcombine.high %v1247_v10, %v1279_v11  ;;  %v1726_v3 = vld [vmem:[%s8064_s29 + $0xf50] sm:$0xff] }
 0x19c   : > { %4923 = vmatmul.mubr.bf16.vlgmr.msra.gmra.mrb[12].mxu0 %v8109_v12  ;;  %4964 = vmatmul.mubr.bf16.vlgmr.msra.gmra.mrb[12].mxu1 %v8109_v12 }
 0x19d   : > { %4973 = vmatpush1.bf16.msra.mxu0 %v6423_v19  ;;  %5014 = vmatpush1.bf16.msra.mxu1 %v6425_v20  ;;  %v1311_v19 = vld [vmem:[%s8064_s29 + $0x258] sm:$0xff] }
 0x19e   : > { %4974 = vmatprep.subr.bf16.mxu0 %v6488_v21  ;;  %5015 = vmatprep.subr.bf16.mxu1 %v6490_v22  ;;  %v1343_v20 = vld [vmem:[%s8064_s29 + $0x358] sm:$0xff]  ;;  %v6427_v21 = vcombine.low %v1246_v8, %v1278_v9  ;;  %v6429_v22 = vcombine.low %v1247_v10, %v1279_v11  ;;  %v6876_v8 = vcombine.high %v1694_v2, %v1726_v3  ;;  %v1248_v10 = vld [vmem:[%s8064_s29 + $0x60] sm:$0xff] }
 0x19f   : > { %5004 = vmatprep.mubr.bf16.mxu0 %v6975_v0  ;;  %5045 = vmatprep.mubr.bf16.mxu1 %v6975_v0  ;;  %v6494_v24 = vcombine.high %v1311_v19, %v1343_v20  ;;  %v1280_v11 = vld [vmem:[%s8064_s29 + $0x160] sm:$0xff] }
 0x1a1   : > { %4975 = vmatpush1.bf16.msra.mxu0 %v6487_v27  ;;  %5016 = vmatpush1.bf16.msra.mxu1 %v6489_v28  ;;  %v1375_v27 = vld [vmem:[%s8064_s29 + $0x458] sm:$0xff] }
 0x1a2   : > { %4976 = vmatprep.subr.bf16.mxu0 %v6552_v29  ;;  %5017 = vmatprep.subr.bf16.mxu1 %v6554_v30  ;;  %v1407_v28 = vld [vmem:[%s8064_s29 + $0x558] sm:$0xff]  ;;  %v6491_v29 = vcombine.low %v1310_v17, %v1342_v18  ;;  %v6493_v30 = vcombine.low %v1311_v19, %v1343_v20  ;;  %v6432_v17 = vcombine.high %v1248_v10, %v1280_v11  ;;  %v1312_v19 = vld [vmem:[%s8064_s29 + $0x260] sm:$0xff] }
 0x1a3   : > { %v6558_v32 = vcombine.high %v1375_v27, %v1407_v28  ;;  %v1344_v20 = vld [vmem:[%s8064_s29 + $0x360] sm:$0xff] }
 0x1a5   : > { %4977 = vmatpush1.bf16.msra.mxu0 %v6551_v35  ;;  %5018 = vmatpush1.bf16.msra.mxu1 %v6553_v36  ;;  %v1439_v35 = vld [vmem:[%s8064_s29 + $0x658] sm:$0xff] }
 0x1a6   : > { %4978 = vmatprep.subr.bf16.mxu0 %v6616_v37  ;;  %5019 = vmatprep.subr.bf16.mxu1 %v6618_v38  ;;  %v1471_v36 = vld [vmem:[%s8064_s29 + $0x758] sm:$0xff]  ;;  %v6555_v37 = vcombine.low %v1374_v25, %v1406_v26  ;;  %v6557_v38 = vcombine.low %v1375_v27, %v1407_v28  ;;  %v6496_v25 = vcombine.high %v1312_v19, %v1344_v20  ;;  %v1376_v27 = vld [vmem:[%s8064_s29 + $0x460] sm:$0xff] }
 0x1a7   : > { %v6622_v40 = vcombine.high %v1439_v35, %v1471_v36  ;;  %v1408_v28 = vld [vmem:[%s8064_s29 + $0x560] sm:$0xff] }
 0x1a9   : > { %4979 = vmatpush1.bf16.msra.mxu0 %v6615_v43  ;;  %5020 = vmatpush1.bf16.msra.mxu1 %v6617_v44  ;;  %v1503_v43 = vld [vmem:[%s8064_s29 + $0x858] sm:$0xff] }
 0x1aa   : > { %4980 = vmatprep.subr.bf16.mxu0 %v6680_v45  ;;  %5021 = vmatprep.subr.bf16.mxu1 %v6682_v46  ;;  %v1535_v44 = vld [vmem:[%s8064_s29 + $0x958] sm:$0xff]  ;;  %v6619_v45 = vcombine.low %v1438_v33, %v1470_v34  ;;  %v6621_v46 = vcombine.low %v1439_v35, %v1471_v36  ;;  %v6560_v34 = vcombine.high %v1376_v27, %v1408_v28  ;;  %v1440_v35 = vld [vmem:[%s8064_s29 + $0x660] sm:$0xff] }
 0x1ab   : > { %v6686_v48 = vcombine.high %v1503_v43, %v1535_v44  ;;  %v1472_v36 = vld [vmem:[%s8064_s29 + $0x760] sm:$0xff] }
 0x1ad   : > { %4981 = vmatpush1.bf16.msra.mxu0 %v6679_v51  ;;  %5022 = vmatpush1.bf16.msra.mxu1 %v6681_v52  ;;  %v1567_v51 = vld [vmem:[%s8064_s29 + $0xa58] sm:$0xff] }
 0x1ae   : > { %4982 = vmatprep.subr.bf16.mxu0 %v6744_v53  ;;  %5023 = vmatprep.subr.bf16.mxu1 %v6746_v54  ;;  %v1599_v52 = vld [vmem:[%s8064_s29 + $0xb58] sm:$0xff]  ;;  %v6683_v53 = vcombine.low %v1502_v41, %v1534_v42  ;;  %v6685_v54 = vcombine.low %v1503_v43, %v1535_v44  ;;  %v6624_v41 = vcombine.high %v1440_v35, %v1472_v36  ;;  %v1504_v43 = vld [vmem:[%s8064_s29 + $0x860] sm:$0xff] }
 0x1af   : > { %v6750_v56 = vcombine.high %v1567_v51, %v1599_v52  ;;  %v1536_v44 = vld [vmem:[%s8064_s29 + $0x960] sm:$0xff] }
 0x1b1   : > { %4983 = vmatpush1.bf16.msra.mxu0 %v6743_v59  ;;  %5024 = vmatpush1.bf16.msra.mxu1 %v6745_v60  ;;  %v1631_v59 = vld [vmem:[%s8064_s29 + $0xc58] sm:$0xff] }
 0x1b2   : > { %4984 = vmatprep.subr.bf16.mxu0 %v6808_v61  ;;  %5025 = vmatprep.subr.bf16.mxu1 %v6810_v62  ;;  %v1663_v60 = vld [vmem:[%s8064_s29 + $0xd58] sm:$0xff]  ;;  %v6747_v61 = vcombine.low %v1566_v49, %v1598_v50  ;;  %v6749_v62 = vcombine.low %v1567_v51, %v1599_v52  ;;  %v6688_v49 = vcombine.high %v1504_v43, %v1536_v44  ;;  %v1568_v51 = vld [vmem:[%s8064_s29 + $0xa60] sm:$0xff] }
 0x1b3   : > { %v6814_v1 = vcombine.high %v1631_v59, %v1663_v60  ;;  %v1600_v52 = vld [vmem:[%s8064_s29 + $0xb60] sm:$0xff] }
 0x1b5   : > { %4985 = vmatpush1.bf16.msra.mxu0 %v6807_v4  ;;  %5026 = vmatpush1.bf16.msra.mxu1 %v6809_v5  ;;  %v1695_v4 = vld [vmem:[%s8064_s29 + $0xe58] sm:$0xff] }
 0x1b6   : > { %4986 = vmatprep.subr.bf16.mxu0 %v6872_v6  ;;  %5027 = vmatprep.subr.bf16.mxu1 %v6874_v7  ;;  %v1727_v5 = vld [vmem:[%s8064_s29 + $0xf58] sm:$0xff]  ;;  %v6811_v6 = vcombine.low %v1630_v57, %v1662_v58  ;;  %v6813_v7 = vcombine.low %v1631_v59, %v1663_v60  ;;  %v6752_v57 = vcombine.high %v1568_v51, %v1600_v52  ;;  %v1632_v59 = vld [vmem:[%s8064_s29 + $0xc60] sm:$0xff] }
 0x1b7   : > { %v6878_v9 = vcombine.high %v1695_v4, %v1727_v5  ;;  %v1664_v60 = vld [vmem:[%s8064_s29 + $0xd60] sm:$0xff] }
 0x1b9   : > { %4987 = vmatpush1.bf16.msra.mxu0 %v6871_v13  ;;  %5028 = vmatpush1.bf16.msra.mxu1 %v6873_v14  ;;  %v1249_v13 = vld [vmem:[%s8064_s29 + $0x68] sm:$0xff] }
 0x1ba   : > { %5054 = vmatprep.subr.bf16.mxu0 %v6428_v15  ;;  %5095 = vmatprep.subr.bf16.mxu1 %v6430_v16  ;;  %v1281_v14 = vld [vmem:[%s8064_s29 + $0x168] sm:$0xff]  ;;  %v6875_v15 = vcombine.low %v1694_v2, %v1726_v3  ;;  %v6877_v16 = vcombine.low %v1695_v4, %v1727_v5  ;;  %v6816_v2 = vcombine.high %v1632_v59, %v1664_v60  ;;  %v1696_v4 = vld [vmem:[%s8064_s29 + $0xe60] sm:$0xff] }
 0x1bb   : > { %v6434_v18 = vcombine.high %v1249_v13, %v1281_v14  ;;  %v1728_v5 = vld [vmem:[%s8064_s29 + $0xf60] sm:$0xff] }
 0x1bc   : > { %5005 = vmatmul.mubr.bf16.vlgmr.msra.gmra.mrb[16].mxu0 %v8109_v12  ;;  %5046 = vmatmul.mubr.bf16.vlgmr.msra.gmra.mrb[16].mxu1 %v8109_v12 }
 0x1bd   : > { %5055 = vmatpush1.bf16.msra.mxu0 %v6427_v21  ;;  %5096 = vmatpush1.bf16.msra.mxu1 %v6429_v22  ;;  %v1313_v21 = vld [vmem:[%s8064_s29 + $0x268] sm:$0xff] }
 0x1be   : > { %5056 = vmatprep.subr.bf16.mxu0 %v6492_v23  ;;  %5097 = vmatprep.subr.bf16.mxu1 %v6494_v24  ;;  %v1345_v22 = vld [vmem:[%s8064_s29 + $0x368] sm:$0xff]  ;;  %v6431_v23 = vcombine.low %v1248_v10, %v1280_v11  ;;  %v6433_v24 = vcombine.low %v1249_v13, %v1281_v14  ;;  %v6880_v10 = vcombine.high %v1696_v4, %v1728_v5  ;;  %v1250_v13 = vld [vmem:[%s8064_s29 + $0x70] sm:$0xff] }
 0x1bf   : > { %5086 = vmatprep.mubr.bf16.mxu0 %v6975_v0  ;;  %5127 = vmatprep.mubr.bf16.mxu1 %v6975_v0  ;;  %v6498_v26 = vcombine.high %v1313_v21, %v1345_v22  ;;  %v6497_v33 = vcombine.low %v1313_v21, %v1345_v22  ;;  %v1282_v14 = vld [vmem:[%s8064_s29 + $0x170] sm:$0xff] }
 0x1c0   : > { %v1314_v21 = vld [vmem:[%s8064_s29 + $0x270] sm:$0xff] }
 0x1c1   : > { %5057 = vmatpush1.bf16.msra.mxu0 %v6491_v29  ;;  %5098 = vmatpush1.bf16.msra.mxu1 %v6493_v30  ;;  %v1377_v29 = vld [vmem:[%s8064_s29 + $0x468] sm:$0xff]  ;;  %v1346_v22 = vld [vmem:[%s8064_s29 + $0x370] sm:$0xff] }
 0x1c2   : > { %5058 = vmatprep.subr.bf16.mxu0 %v6556_v31  ;;  %5099 = vmatprep.subr.bf16.mxu1 %v6558_v32  ;;  %v1409_v30 = vld [vmem:[%s8064_s29 + $0x568] sm:$0xff]  ;;  %v8299_v31 = vld [vmem:[%s8882_s0] sm:$0x1]  ;;  %v6495_v32 = vcombine.low %v1312_v19, %v1344_v20  ;;  %v6436_v19 = vcombine.high %v1250_v13, %v1282_v14 }
 0x1c5   : > { %5059 = vmatpush1.bf16.msra.mxu0 %v6555_v37  ;;  %5100 = vmatpush1.bf16.msra.mxu1 %v6557_v38  ;;  %v1441_v37 = vld [vmem:[%s8064_s29 + $0x668] sm:$0xff] }
 0x1c6   : > { %5060 = vmatprep.subr.bf16.mxu0 %v6620_v39  ;;  %5101 = vmatprep.subr.bf16.mxu1 %v6622_v40  ;;  %v1473_v38 = vld [vmem:[%s8064_s29 + $0x768] sm:$0xff]  ;;  %v6559_v39 = vcombine.low %v1376_v27, %v1408_v28  ;;  %v6561_v40 = vcombine.low %v1377_v29, %v1409_v30  ;;  %v6500_v27 = vcombine.high %v1314_v21, %v1346_v22 }
 0x1c7   : > { %v6626_v42 = vcombine.high %v1441_v37, %v1473_v38 }
 0x1c9   : > { %5061 = vmatpush1.bf16.msra.mxu0 %v6619_v45  ;;  %5102 = vmatpush1.bf16.msra.mxu1 %v6621_v46  ;;  %v1505_v45 = vld [vmem:[%s8064_s29 + $0x868] sm:$0xff] }
 0x1ca   : > { %5062 = vmatprep.subr.bf16.mxu0 %v6684_v47  ;;  %5103 = vmatprep.subr.bf16.mxu1 %v6686_v48  ;;  %v1537_v46 = vld [vmem:[%s8064_s29 + $0x968] sm:$0xff]  ;;  %v6623_v47 = vcombine.low %v1440_v35, %v1472_v36  ;;  %v6625_v48 = vcombine.low %v1441_v37, %v1473_v38  ;;  %v1442_v37 = vld [vmem:[%s8064_s29 + $0x670] sm:$0xff] }
 0x1cb   : > { %v6690_v50 = vcombine.high %v1505_v45, %v1537_v46  ;;  %v1474_v38 = vld [vmem:[%s8064_s29 + $0x770] sm:$0xff] }
 0x1cd   : > { %5063 = vmatpush1.bf16.msra.mxu0 %v6683_v53  ;;  %5104 = vmatpush1.bf16.msra.mxu1 %v6685_v54  ;;  %v1569_v53 = vld [vmem:[%s8064_s29 + $0xa68] sm:$0xff] }
 0x1ce   : > { %5064 = vmatprep.subr.bf16.mxu0 %v6748_v55  ;;  %5105 = vmatprep.subr.bf16.mxu1 %v6750_v56  ;;  %v1601_v54 = vld [vmem:[%s8064_s29 + $0xb68] sm:$0xff]  ;;  %v6687_v55 = vcombine.low %v1504_v43, %v1536_v44  ;;  %v6689_v56 = vcombine.low %v1505_v45, %v1537_v46  ;;  %v6628_v44 = vcombine.high %v1442_v37, %v1474_v38  ;;  %v1506_v46 = vld [vmem:[%s8064_s29 + $0x870] sm:$0xff] }
 0x1cf   : > { %v6754_v58 = vcombine.high %v1569_v53, %v1601_v54 }
 0x1d1   : > { %5065 = vmatpush1.bf16.msra.mxu0 %v6747_v61  ;;  %5106 = vmatpush1.bf16.msra.mxu1 %v6749_v62  ;;  %v1633_v61 = vld [vmem:[%s8064_s29 + $0xc68] sm:$0xff] }
 0x1d2   : > { %5066 = vmatprep.subr.bf16.mxu0 %v6812_v63  ;;  %5107 = vmatprep.subr.bf16.mxu1 %v6814_v1  ;;  %v1665_v62 = vld [vmem:[%s8064_s29 + $0xd68] sm:$0xff]  ;;  %v6751_v63 = vcombine.low %v1568_v51, %v1600_v52  ;;  %v6753_v1 = vcombine.low %v1569_v53, %v1601_v54  ;;  %v6627_v51 = vcombine.low %v1442_v37, %v1474_v38 }
 0x1d3   : > { %v6818_v3 = vcombine.high %v1633_v61, %v1665_v62 }
 0x1d5   : > { %5067 = vmatpush1.bf16.msra.mxu0 %v6811_v6  ;;  %5108 = vmatpush1.bf16.msra.mxu1 %v6813_v7  ;;  %v1697_v6 = vld [vmem:[%s8064_s29 + $0xe68] sm:$0xff] }
 0x1d6   : > { %5068 = vmatprep.subr.bf16.mxu0 %v6876_v8  ;;  %5109 = vmatprep.subr.bf16.mxu1 %v6878_v9  ;;  %v1729_v7 = vld [vmem:[%s8064_s29 + $0xf68] sm:$0xff]  ;;  %v6815_v8 = vcombine.low %v1632_v59, %v1664_v60  ;;  %v6817_v9 = vcombine.low %v1633_v61, %v1665_v62  ;;  %v1603_v59 = vld [vmem:[%s8064_s29 + $0xb78] sm:$0xff]  ;;  %v8369_v61 = vld [vmem:[%s8359_s10] sm:$0xff] }
 0x1d7   : > { %v6882_v11 = vcombine.high %v1697_v6, %v1729_v7 }
 0x1d9   : > { %5069 = vmatpush1.bf16.msra.mxu0 %v6875_v15  ;;  %5110 = vmatpush1.bf16.msra.mxu1 %v6877_v16  ;;  %v1251_v15 = vld [vmem:[%s8064_s29 + $0x78] sm:$0xff] }
 0x1da   : > { %5136 = vmatprep.subr.bf16.mxu0 %v6432_v17  ;;  %5177 = vmatprep.subr.bf16.mxu1 %v6434_v18  ;;  %v1283_v16 = vld [vmem:[%s8064_s29 + $0x178] sm:$0xff]  ;;  %v6879_v17 = vcombine.low %v1696_v4, %v1728_v5  ;;  %v6881_v18 = vcombine.low %v1697_v6, %v1729_v7  ;;  %v1634_v7 = vld [vmem:[%s8064_s29 + $0xc70] sm:$0xff] }
 0x1db   : > { %v6438_v20 = vcombine.high %v1251_v15, %v1283_v16 }
 0x1dc   : > { %5087 = vmatmul.mubr.bf16.vlgmr.msra.gmra.mrb[20].mxu0 %v8109_v12  ;;  %5128 = vmatmul.mubr.bf16.vlgmr.msra.gmra.mrb[20].mxu1 %v8299_v31  ;;  %v6562_v12 = vcombine.high %v1377_v29, %v1409_v30  ;;  %v1378_v29 = vld [vmem:[%s8064_s29 + $0x470] sm:$0xff] }
 0x1dd   : > { %5137 = vmatpush1.bf16.msra.mxu0 %v6431_v23  ;;  %5178 = vmatpush1.bf16.msra.mxu1 %v6433_v24  ;;  %v1315_v23 = vld [vmem:[%s8064_s29 + $0x278] sm:$0xff]  ;;  %v1410_v30 = vld [vmem:[%s8064_s29 + $0x570] sm:$0xff] }
 0x1de   : > { %5138 = vmatprep.subr.bf16.mxu0 %v6496_v25  ;;  %5179 = vmatprep.subr.bf16.mxu1 %v6498_v26  ;;  %v1347_v24 = vld [vmem:[%s8064_s29 + $0x378] sm:$0xff]  ;;  %v6435_v25 = vcombine.low %v1250_v13, %v1282_v14  ;;  %v6437_v26 = vcombine.low %v1251_v15, %v1283_v16  ;;  %v6564_v35 = vcombine.high %v1378_v29, %v1410_v30 }
 0x1df   : > { %5168 = vmatprep.mubr.bf16.mxu0 %v6975_v0  ;;  %5209 = vmatprep.mubr.bf16.mxu1 %v6975_v0  ;;  %v6502_v28 = vcombine.high %v1315_v23, %v1347_v24 }
 0x1e1   : > { %5139 = vmatpush1.bf16.msra.mxu0 %v6495_v32  ;;  %5180 = vmatpush1.bf16.msra.mxu1 %v6497_v33  ;;  %v1379_v32 = vld [vmem:[%s8064_s29 + $0x478] sm:$0xff] }
 0x1e2   : > { %5140 = vmatprep.subr.bf16.mxu0 %v6560_v34  ;;  %5181 = vmatprep.subr.bf16.mxu1 %v6562_v12  ;;  %v1411_v33 = vld [vmem:[%s8064_s29 + $0x578] sm:$0xff]  ;;  %v6499_v34 = vcombine.low %v1314_v21, %v1346_v22  ;;  %v6501_v12 = vcombine.low %v1315_v23, %v1347_v24  ;;  %v1698_v22 = vld [vmem:[%s8064_s29 + $0xe70] sm:$0xff] }
 0x1e3   : > { %v6566_v36 = vcombine.high %v1379_v32, %v1411_v33  ;;  %v6565_v43 = vcombine.low %v1379_v32, %v1411_v33  ;;  %v1730_v23 = vld [vmem:[%s8064_s29 + $0xf70] sm:$0xff] }
 0x1e5   : > { %5141 = vmatpush1.bf16.msra.mxu0 %v6559_v39  ;;  %5182 = vmatpush1.bf16.msra.mxu1 %v6561_v40  ;;  %v1443_v39 = vld [vmem:[%s8064_s29 + $0x678] sm:$0xff] }
 0x1e6   : > { %5142 = vmatprep.subr.bf16.mxu0 %v6624_v41  ;;  %5183 = vmatprep.subr.bf16.mxu1 %v6626_v42  ;;  %v1475_v40 = vld [vmem:[%s8064_s29 + $0x778] sm:$0xff]  ;;  %v1764_v41 = vlaneseq  ;;  %v6563_v42 = vcombine.low %v1378_v29, %v1410_v30 }
 0x1e7   : > { %v6630_v45 = vcombine.high %v1443_v39, %v1475_v40  ;;  %v6629_v52 = vcombine.low %v1443_v39, %v1475_v40  ;;  %v6884_v39 = vcombine.high %v1698_v22, %v1730_v23 }
 0x1e9   : > { %5143 = vmatpush1.bf16.msra.mxu0 %v6623_v47  ;;  %5184 = vmatpush1.bf16.msra.mxu1 %v6625_v48  ;;  %v1538_v47 = vld [vmem:[%s8064_s29 + $0x970] sm:$0xff]  ;;  %v1507_v48 = vld [vmem:[%s8064_s29 + $0x878] sm:$0xff] }
 0x1ea   : > { %5144 = vmatprep.subr.bf16.mxu0 %v6688_v49  ;;  %5185 = vmatprep.subr.bf16.mxu1 %v6690_v50  ;;  %v1539_v49 = vld [vmem:[%s8064_s29 + $0x978] sm:$0xff]  ;;  %v8353_v50 = vshrl.u32 %v1764_v41, 7  ;;  %v6692_v53 = vcombine.high %v1506_v46, %v1538_v47  ;;  %v6691_v60 = vcombine.low %v1506_v46, %v1538_v47  ;;  %v1253_v46 = vld [vmem:[%s8064_s29 + $0x88] sm:$0xff] }
 0x1eb   : > { %v6694_v54 = vcombine.high %v1507_v48, %v1539_v49  ;;  %v1285_v47 = vld [vmem:[%s8064_s29 + $0x188] sm:$0xff] }
 0x1ec   : > { %v8372_v62 = vsub.s32 2, %v8353_v50  ;;  %v8378_v4 = vsub.s32 3, %v8353_v50 }
 0x1ed   : > { %5145 = vmatpush1.bf16.msra.mxu0 %v6687_v55  ;;  %5186 = vmatpush1.bf16.msra.mxu1 %v6689_v56  ;;  %v1570_v55 = vld [vmem:[%s8064_s29 + $0xa70] sm:$0xff] }
 0x1ee   : > { %5146 = vmatprep.subr.bf16.mxu0 %v6752_v57  ;;  %5187 = vmatprep.subr.bf16.mxu1 %v6754_v58  ;;  %v1602_v56 = vld [vmem:[%s8064_s29 + $0xb70] sm:$0xff]  ;;  %v8364_v57 = vsub.s32 0, %v8353_v50  ;;  %v1571_v58 = vld [vmem:[%s8064_s29 + $0xa78] sm:$0xff]  ;;  %v1775_v13 = vrot.slane %v8369_v61, %v8372_v62 }
 0x1ef   : > { %v6756_v5 = vcombine.high %v1570_v55, %v1602_v56  ;;  %v6758_v6 = vcombine.high %v1571_v58, %v1603_v59  ;;  %v6755_v16 = vcombine.low %v1570_v55, %v1602_v56  ;;  %v1316_v55 = vld [vmem:[%s8064_s29 + $0x280] sm:$0xff] }
 0x1f0   : > { %v1348_v56 = vld [vmem:[%s8064_s29 + $0x380] sm:$0xff] }
 0x1f1   : > { %5147 = vmatpush1.bf16.msra.mxu0 %v6751_v63  ;;  %5188 = vmatpush1.bf16.msra.mxu1 %v6753_v1  ;;  %v8375_v63 = vsub.s32 1, %v8353_v50  ;;  %v6976_v1 = vmov 1983009808  }
 0x1f2   : > { %5148 = vmatprep.subr.bf16.mxu0 %v6816_v2  ;;  %5189 = vmatprep.subr.bf16.mxu1 %v6818_v3  ;;  %v6023_v2 = vunpack.c.l.s4 %v6976_v1  ;;  %v6693_v3 = vcombine.low %v1507_v48, %v1539_v49  ;;  %v6883_v49 = vcombine.low %v1698_v22, %v1730_v23  ;;  %v1508_v23 = vld [vmem:[%s8064_s29 + $0x880] sm:$0xff] }
 0x1f3   : > { %v1771_v14 = vrot.slane %v8369_v61, %v8375_v63 }
 0x1f4   : > { %v6024_v15 = vunpack.c.0.s8 %v6023_v2  ;;  %v6441_v2 = vcombine.low %v1253_v46, %v1285_v47 }
 0x1f5   : > { %5149 = vmatpush1.bf16.msra.mxu0 %v6815_v8  ;;  %5190 = vmatpush1.bf16.msra.mxu1 %v6817_v9  ;;  %v1666_v8 = vld [vmem:[%s8064_s29 + $0xd70] sm:$0xff]  ;;  %v1767_v9 = vrot.slane %v8369_v61, %v8364_v57 }
 0x1f6   : > { %5150 = vmatprep.subr.bf16.mxu0 %v6880_v10  ;;  %5191 = vmatprep.subr.bf16.mxu1 %v6882_v11  ;;  %v1635_v10 = vld [vmem:[%s8064_s29 + $0xc78] sm:$0xff]  ;;  %v8397_v32 = vsub.s32 %v6024_v15, %v8353_v50  ;;  %v1444_v15 = vld [vmem:[%s8064_s29 + $0x680] sm:$0xff] }
 0x1f7   : > { %v1667_v11 = vld [vmem:[%s8064_s29 + $0xd78] sm:$0xff] }
 0x1f8   : > { %v6822_v21 = vcombine.high %v1635_v10, %v1667_v11  ;;  %v6821_v38 = vcombine.low %v1635_v10, %v1667_v11  ;;  %v6503_v10 = vcombine.low %v1316_v55, %v1348_v56 }
 0x1f9   : > { %5151 = vmatpush1.bf16.msra.mxu0 %v6879_v17  ;;  %5192 = vmatpush1.bf16.msra.mxu1 %v6881_v18  ;;  %v1779_v17 = vrot.slane %v8369_v61, %v8378_v4  ;;  %v6757_v18 = vcombine.low %v1571_v58, %v1603_v59  ;;  %v1317_v59 = vld [vmem:[%s8064_s29 + $0x288] sm:$0xff] }
 0x1fa   : > { %5218 = vmatprep.subr.bf16.mxu0 %v6436_v19  ;;  %5259 = vmatprep.subr.bf16.mxu1 %v6438_v20  ;;  %v6820_v19 = vcombine.high %v1634_v7, %v1666_v8 }
 0x1fc   : > { %5169 = vmatmul.mubr.bf16.vlgmr.msra.gmra.mrb[24].mxu0 %v8299_v31  ;;  %5210 = vmatmul.mubr.bf16.vlgmr.msra.gmra.mrb[24].mxu1 %v8299_v31 }
 0x1fd   : > { %5219 = vmatpush1.bf16.msra.mxu0 %v6435_v25  ;;  %5260 = vmatpush1.bf16.msra.mxu1 %v6437_v26 }
 0x1fe   : > { %5220 = vmatprep.subr.bf16.mxu0 %v6500_v27  ;;  %5261 = vmatprep.subr.bf16.mxu1 %v6502_v28  ;;  %v1699_v27 = vld [vmem:[%s8064_s29 + $0xe78] sm:$0xff] }
 0x1ff   : > { %5250 = vmatprep.mubr.bf16.mxu0 %v6975_v0  ;;  %5291 = vmatprep.mubr.bf16.mxu1 %v6975_v0  ;;  %v1731_v28 = vld [vmem:[%s8064_s29 + $0xf78] sm:$0xff] }
 0x201   : > { %5221 = vmatpush1.bf16.msra.mxu0 %v6499_v34  ;;  %5262 = vmatpush1.bf16.msra.mxu1 %v6501_v12  ;;  %v6819_v12 = vcombine.low %v1634_v7, %v1666_v8  ;;  %v1412_v7 = vld [vmem:[%s8064_s29 + $0x580] sm:$0xff]  ;;  %v1381_v8 = vld [vmem:[%s8064_s29 + $0x488] sm:$0xff] }
 0x202   : > { %5222 = vmatprep.subr.bf16.mxu0 %v6564_v35  ;;  %5263 = vmatprep.subr.bf16.mxu1 %v6566_v36 }
 0x205   : > { %5223 = vmatpush1.bf16.msra.mxu0 %v6563_v42  ;;  %5264 = vmatpush1.bf16.msra.mxu1 %v6565_v43  ;;  %v6886_v42 = vcombine.high %v1699_v27, %v1731_v28  ;;  %v1252_v43 = vld [vmem:[%s8064_s29 + $0x80] sm:$0xff] }
 0x206   : > { %5224 = vmatprep.subr.bf16.mxu0 %v6628_v44  ;;  %5265 = vmatprep.subr.bf16.mxu1 %v6630_v45  ;;  %v1284_v44 = vld [vmem:[%s8064_s29 + $0x180] sm:$0xff] }
 0x207   : > { %v6439_v1 = vcombine.low %v1252_v43, %v1284_v44 }
 0x209   : > { %5225 = vmatpush1.bf16.msra.mxu0 %v6627_v51  ;;  %5266 = vmatpush1.bf16.msra.mxu1 %v6629_v52  ;;  %v6885_v52 = vcombine.low %v1699_v27, %v1731_v28 }
 0x20a   : > { %5226 = vmatprep.subr.bf16.mxu0 %v6692_v53  ;;  %5267 = vmatprep.subr.bf16.mxu1 %v6694_v54  ;;  %v6440_v53 = vcombine.high %v1252_v43, %v1284_v44  ;;  %v6442_v54 = vcombine.high %v1253_v46, %v1285_v47  ;;  %v1636_v44 = vld [vmem:[%s8064_s29 + $0xc80] sm:$0xff]  ;;  %v1637_v47 = vld [vmem:[%s8064_s29 + $0xc88] sm:$0xff] }
 0x20d   : > { %5227 = vmatpush1.bf16.msra.mxu0 %v6691_v60  ;;  %5268 = vmatpush1.bf16.msra.mxu1 %v6693_v3  ;;  %v1349_v60 = vld [vmem:[%s8064_s29 + $0x388] sm:$0xff]  ;;  %v6504_v3 = vcombine.high %v1316_v55, %v1348_v56 }
 0x20e   : > { %5228 = vmatprep.subr.bf16.mxu0 %v6756_v5  ;;  %5269 = vmatprep.subr.bf16.mxu1 %v6758_v6  ;;  %v6506_v5 = vcombine.high %v1317_v59, %v1349_v60  ;;  %v1380_v6 = vld [vmem:[%s8064_s29 + $0x480] sm:$0xff]  ;;  %v6505_v11 = vcombine.low %v1317_v59, %v1349_v60 }
 0x20f   : > { %v4678_v20 = vpop.f32.mrb[0].mxu0  ;;  %v4719_v25 = vpop.f32.mrb[0].mxu1  ;;  %v1732_v59 = vld [vmem:[%s8064_s29 + $0xf80] sm:$0xff] }
 0x210   : > { %v4679_v24 = vadd.f32 %v4678_v20, %v1767_v9  ;;  %v4680_v26 = vpop.f32.mrb[1].mxu0  ;;  %v4720_v29 = vadd.f32 %v4719_v25, %v1775_v13  ;;  %v4721_v33 = vpop.f32.mrb[1].mxu1  ;;  %v1413_v9 = vld [vmem:[%s8064_s29 + $0x588] sm:$0xff]  ;;  %v6568_v13 = vcombine.high %v1380_v6, %v1412_v7 }
 0x211   : > { %v4681_v30 = vadd.f32 %v4680_v26, %v1771_v14  ;;  %v4682_v34 = vpop.f32.mrb[2].mxu0  ;;  %5229 = vmatpush1.bf16.msra.mxu0 %v6755_v16  ;;  %v4722_v35 = vadd.f32 %v4721_v33, %v1779_v17  ;;  %v4723_v36 = vpop.f32.mrb[2].mxu1  ;;  %5270 = vmatpush1.bf16.msra.mxu1 %v6757_v18  ;;  %v6570_v14 = vcombine.high %v1381_v8, %v1413_v9  ;;  %v1476_v16 = vld [vmem:[%s8064_s29 + $0x780] sm:$0xff]  ;;  %v1445_v17 = vld [vmem:[%s8064_s29 + $0x688] sm:$0xff] }
 0x212   : > { %v4683_v37 = vpop.f32.mrb[3].mxu0  ;;  %5230 = vmatprep.subr.bf16.mxu0 %v6820_v19  ;;  %v4724_v41 = vpop.f32.mrb[3].mxu1  ;;  %5271 = vmatprep.subr.bf16.mxu1 %v6822_v21  ;;  %v1477_v18 = vld [vmem:[%s8064_s29 + $0x788] sm:$0xff]  ;;  %v6567_v19 = vcombine.low %v1380_v6, %v1412_v7  ;;  %v6569_v20 = vcombine.low %v1381_v8, %v1413_v9  ;;  %v6632_v21 = vcombine.high %v1444_v15, %v1476_v16  ;;  %v1572_v33 = vld [vmem:[%s8064_s29 + $0xa80] sm:$0xff] }
 0x213   : > { %v6020_v40 = vcombine.low %v4679_v24, %v4681_v30  ;;  %v6021_v45 = vcombine.low %v4720_v29, %v4722_v35  ;;  %v6634_v22 = vcombine.high %v1445_v17, %v1477_v18  ;;  %v1540_v24 = vld [vmem:[%s8064_s29 + $0x980] sm:$0xff]  ;;  %v1509_v25 = vld [vmem:[%s8064_s29 + $0x888] sm:$0xff]  ;;  %v6631_v27 = vcombine.low %v1444_v15, %v1476_v16 }
 0x214   : > { %v1541_v26 = vld [vmem:[%s8064_s29 + $0x988] sm:$0xff]  ;;  %v6633_v28 = vcombine.low %v1445_v17, %v1477_v18  ;;  %v6696_v29 = vcombine.high %v1508_v23, %v1540_v24  ;;  %v1604_v34 = vld [vmem:[%s8064_s29 + $0xb80] sm:$0xff]  ;;  %v6695_v37 = vcombine.low %v1508_v23, %v1540_v24  ;;  %v8446_v41 = vsub.s32 7, %v8353_v50  ;;  %v1287_v23 = vld [vmem:[%s8064_s29 + $0x198] sm:$0xff] }
 0x215   : > { %v6028_v48 = vrot.slane %v6020_v40, %v8397_v32  ;;  %5231 = vmatpush1.bf16.msra.mxu0 %v6819_v12  ;;  %v6035_v51 = vrot.slane %v6021_v45, %v8397_v32  ;;  %5272 = vmatpush1.bf16.msra.mxu1 %v6821_v38  ;;  %v6698_v30 = vcombine.high %v1509_v25, %v1541_v26  ;;  %v8435_v12 = vsub.s32 4, %v8353_v50  ;;  %v1573_v35 = vld [vmem:[%s8064_s29 + $0xa88] sm:$0xff]  ;;  %v1668_v45 = vld [vmem:[%s8064_s29 + $0xd80] sm:$0xff] }
 0x216   : > { %5232 = vmatprep.subr.bf16.mxu0 %v6884_v39  ;;  %5273 = vmatprep.subr.bf16.mxu1 %v6886_v42  ;;  %v1605_v36 = vld [vmem:[%s8064_s29 + $0xb88] sm:$0xff]  ;;  %v8440_v38 = vsub.s32 6, %v8353_v50  ;;  %v8443_v39 = vsub.s32 5, %v8353_v50  ;;  %v6697_v40 = vcombine.low %v1509_v25, %v1541_v26  ;;  %v6760_v42 = vcombine.high %v1572_v33, %v1604_v34 }
 0x217   : > { %v6036_v58 = vcombine.low %v6028_v48, %v6035_v51  ;;  %v6762_v43 = vcombine.high %v1573_v35, %v1605_v36  ;;  %v1783_v46 = vrot.slane %v8369_v61, %v8435_v12  ;;  %v1669_v48 = vld [vmem:[%s8064_s29 + $0xd88] sm:$0xff]  ;;  %v6759_v51 = vcombine.low %v1572_v33, %v1604_v34  ;;  %v1350_v33 = vld [vmem:[%s8064_s29 + $0x390] sm:$0xff] }
 0x218   : > { %v1787_v50 = vrot.slane %v8369_v61, %v8443_v39  ;;  %v6826_v56 = vcombine.high %v1637_v47, %v1669_v48 }
 0x219   : > { %5233 = vmatpush1.bf16.msra.mxu0 %v6883_v49  ;;  %6308 = vst [vmem:[%s8409_s15] sm:$0xff] %v6036_v58  ;;  %5274 = vmatpush1.bf16.msra.mxu1 %v6885_v52  ;;  %v1791_v49 = vrot.slane %v8369_v61, %v8440_v38  ;;  %v1795_v52 = vrot.slane %v8369_v61, %v8446_v41  ;;  %v1700_v58 = vld [vmem:[%s8064_s29 + $0xe80] sm:$0xff] }
 0x21a   : > { %5300 = vmatprep.subr.bf16.mxu0 %v6440_v53  ;;  %5341 = vmatprep.subr.bf16.mxu1 %v6442_v54  ;;  %v6761_v53 = vcombine.low %v1573_v35, %v1605_v36  ;;  %v6824_v54 = vcombine.high %v1636_v44, %v1668_v45  ;;  %v6823_v61 = vcombine.low %v1636_v44, %v1668_v45  ;;  %v1319_v35 = vld [vmem:[%s8064_s29 + $0x298] sm:$0xff]  ;;  %v1382_v44 = vld [vmem:[%s8064_s29 + $0x490] sm:$0xff] }
 0x21b   : > { %v6888_v15 = vcombine.high %v1700_v58, %v1732_v59  ;;  %v6887_v25 = vcombine.low %v1700_v58, %v1732_v59  ;;  %v1351_v36 = vld [vmem:[%s8064_s29 + $0x398] sm:$0xff]  ;;  %v1414_v45 = vld [vmem:[%s8064_s29 + $0x590] sm:$0xff] }
 0x21c   : > { %5251 = vmatmul.mubr.bf16.vlgmr.msra.gmra.mrb[28].mxu0 %v8299_v31  ;;  %5292 = vmatmul.mubr.bf16.vlgmr.msra.gmra.mrb[28].mxu1 %v8299_v31 }
 0x21d   : > { %5301 = vmatpush1.bf16.msra.mxu0 %v6439_v1  ;;  %5342 = vmatpush1.bf16.msra.mxu1 %v6441_v2 }
 0x21e   : > { %5302 = vmatprep.subr.bf16.mxu0 %v6504_v3  ;;  %5343 = vmatprep.subr.bf16.mxu1 %v6506_v5  ;;  %v1701_v3 = vld [vmem:[%s8064_s29 + $0xe88] sm:$0xff] }
 0x21f   : > { %5332 = vmatprep.mubr.bf16.mxu0 %v6975_v0  ;;  %5373 = vmatprep.mubr.bf16.mxu1 %v6975_v0  ;;  %v1733_v5 = vld [vmem:[%s8064_s29 + $0xf88] sm:$0xff] }
 0x220   : > { %v6890_v18 = vcombine.high %v1701_v3, %v1733_v5 }
 0x221   : > { %5303 = vmatpush1.bf16.msra.mxu0 %v6503_v10  ;;  %5344 = vmatpush1.bf16.msra.mxu1 %v6505_v11 }
 0x222   : > { %5304 = vmatprep.subr.bf16.mxu0 %v6568_v13  ;;  %5345 = vmatprep.subr.bf16.mxu1 %v6570_v14  ;;  %v6825_v14 = vcombine.low %v1637_v47, %v1669_v48  ;;  %v1415_v47 = vld [vmem:[%s8064_s29 + $0x598] sm:$0xff] }
 0x225   : > { %5305 = vmatpush1.bf16.msra.mxu0 %v6567_v19  ;;  %5346 = vmatpush1.bf16.msra.mxu1 %v6569_v20  ;;  %v1254_v19 = vld [vmem:[%s8064_s29 + $0x90] sm:$0xff] }
 0x226   : > { %5306 = vmatprep.subr.bf16.mxu0 %v6632_v21  ;;  %5347 = vmatprep.subr.bf16.mxu1 %v6634_v22  ;;  %v1286_v20 = vld [vmem:[%s8064_s29 + $0x190] sm:$0xff]  ;;  %v1255_v22 = vld [vmem:[%s8064_s29 + $0x98] sm:$0xff] }
 0x229   : > { %5307 = vmatpush1.bf16.msra.mxu0 %v6631_v27  ;;  %5348 = vmatpush1.bf16.msra.mxu1 %v6633_v28  ;;  %v6889_v27 = vcombine.low %v1701_v3, %v1733_v5  ;;  %v6444_v28 = vcombine.high %v1254_v19, %v1286_v20  ;;  %v1511_v3 = vld [vmem:[%s8064_s29 + $0x898] sm:$0xff] }
 0x22a   : > { %5308 = vmatprep.subr.bf16.mxu0 %v6696_v29  ;;  %5349 = vmatprep.subr.bf16.mxu1 %v6698_v30  ;;  %v6446_v29 = vcombine.high %v1255_v22, %v1287_v23  ;;  %v1318_v30 = vld [vmem:[%s8064_s29 + $0x290] sm:$0xff]  ;;  %v1543_v5 = vld [vmem:[%s8064_s29 + $0x998] sm:$0xff] }
 0x22b   : > { %v6507_v48 = vcombine.low %v1318_v30, %v1350_v33 }
 0x22d   : > { %5309 = vmatpush1.bf16.msra.mxu0 %v6695_v37  ;;  %5350 = vmatpush1.bf16.msra.mxu1 %v6697_v40  ;;  %v6443_v37 = vcombine.low %v1254_v19, %v1286_v20  ;;  %v6445_v40 = vcombine.low %v1255_v22, %v1287_v23  ;;  %v1638_v19 = vld [vmem:[%s8064_s29 + $0xc90] sm:$0xff]  ;;  %v1639_v22 = vld [vmem:[%s8064_s29 + $0xc98] sm:$0xff] }
 0x22e   : > { %5310 = vmatprep.subr.bf16.mxu0 %v6760_v42  ;;  %5351 = vmatprep.subr.bf16.mxu1 %v6762_v43  ;;  %v6508_v42 = vcombine.high %v1318_v30, %v1350_v33  ;;  %v6510_v43 = vcombine.high %v1319_v35, %v1351_v36  ;;  %v1670_v20 = vld [vmem:[%s8064_s29 + $0xd90] sm:$0xff]  ;;  %v1671_v23 = vld [vmem:[%s8064_s29 + $0xd98] sm:$0xff] }
 0x22f   : > { %v4760_v55 = vpop.f32.mrb[4].mxu0  ;;  %v4801_v1 = vpop.f32.mrb[4].mxu1  ;;  %v6830_v33 = vcombine.high %v1639_v22, %v1671_v23 }
 0x230   : > { %v4761_v60 = vadd.f32 %v4760_v55, %v1783_v46  ;;  %v4762_v2 = vpop.f32.mrb[5].mxu0  ;;  %v4802_v6 = vadd.f32 %v4801_v1, %v1791_v49  ;;  %v4803_v8 = vpop.f32.mrb[5].mxu1  ;;  %v1383_v46 = vld [vmem:[%s8064_s29 + $0x498] sm:$0xff]  ;;  %v6509_v49 = vcombine.low %v1319_v35, %v1351_v36  ;;  %v1510_v1 = vld [vmem:[%s8064_s29 + $0x890] sm:$0xff] }
 0x231   : > { %v4763_v7 = vadd.f32 %v4762_v2, %v1787_v50  ;;  %v4764_v9 = vpop.f32.mrb[6].mxu0  ;;  %5311 = vmatpush1.bf16.msra.mxu0 %v6759_v51  ;;  %v4804_v10 = vadd.f32 %v4803_v8, %v1795_v52  ;;  %v4805_v11 = vpop.f32.mrb[6].mxu1  ;;  %5352 = vmatpush1.bf16.msra.mxu1 %v6761_v53  ;;  %v6572_v50 = vcombine.high %v1382_v44, %v1414_v45  ;;  %v1446_v52 = vld [vmem:[%s8064_s29 + $0x690] sm:$0xff]  ;;  %v1479_v55 = vld [vmem:[%s8064_s29 + $0x798] sm:$0xff] }
 0x232   : > { %v4765_v13 = vpop.f32.mrb[7].mxu0  ;;  %5312 = vmatprep.subr.bf16.mxu0 %v6824_v54  ;;  %v4806_v17 = vpop.f32.mrb[7].mxu1  ;;  %5353 = vmatprep.subr.bf16.mxu1 %v6826_v56  ;;  %v6574_v51 = vcombine.high %v1383_v46, %v1415_v47  ;;  %v1478_v53 = vld [vmem:[%s8064_s29 + $0x790] sm:$0xff]  ;;  %v1447_v54 = vld [vmem:[%s8064_s29 + $0x698] sm:$0xff]  ;;  %v6571_v56 = vcombine.low %v1382_v44, %v1414_v45  ;;  %v6573_v58 = vcombine.low %v1383_v46, %v1415_v47 }
 0x233   : > { %v6037_v16 = vcombine.low %v4761_v60, %v4763_v7  ;;  %v6038_v21 = vcombine.low %v4802_v6, %v4804_v10  ;;  %v6636_v59 = vcombine.high %v1446_v52, %v1478_v53  ;;  %v6638_v60 = vcombine.high %v1447_v54, %v1479_v55  ;;  %v1542_v2 = vld [vmem:[%s8064_s29 + $0x990] sm:$0xff]  ;;  %v1575_v11 = vld [vmem:[%s8064_s29 + $0xa98] sm:$0xff] }
 0x234   : > { %v6635_v6 = vcombine.low %v1446_v52, %v1478_v53  ;;  %v6637_v7 = vcombine.low %v1447_v54, %v1479_v55  ;;  %v6700_v8 = vcombine.high %v1510_v1, %v1542_v2  ;;  %v6702_v9 = vcombine.high %v1511_v3, %v1543_v5  ;;  %v1606_v10 = vld [vmem:[%s8064_s29 + $0xb90] sm:$0xff]  ;;  %v1607_v13 = vld [vmem:[%s8064_s29 + $0xb98] sm:$0xff] }
 0x235   : > { %v6045_v24 = vrot.slane %v6037_v16, %v8397_v32  ;;  %5313 = vmatpush1.bf16.msra.mxu0 %v6823_v61  ;;  %v6052_v26 = vrot.slane %v6038_v21, %v8397_v32  ;;  %5354 = vmatpush1.bf16.msra.mxu1 %v6825_v14  ;;  %v1574_v61 = vld [vmem:[%s8064_s29 + $0xa90] sm:$0xff]  ;;  %v6699_v14 = vcombine.low %v1510_v1, %v1542_v2  ;;  %v1257_v1 = vld [vmem:[%s8064_s29 + $0xa8] sm:$0xff] }
 0x236   : > { %5314 = vmatprep.subr.bf16.mxu0 %v6888_v15  ;;  %5355 = vmatprep.subr.bf16.mxu1 %v6890_v18  ;;  %v8496_v15 = vld [vmem:[%s8359_s10 + $0x8] sm:$0xff]  ;;  %v6701_v16 = vcombine.low %v1511_v3, %v1543_v5  ;;  %v6764_v17 = vcombine.high %v1574_v61, %v1606_v10  ;;  %v6766_v18 = vcombine.high %v1575_v11, %v1607_v13  ;;  %v1734_v35 = vld [vmem:[%s8064_s29 + $0xf90] sm:$0xff] }
 0x237   : > { %v6053_v34 = vcombine.low %v6045_v24, %v6052_v26  ;;  %v1799_v21 = vrot.slane %v8496_v15, %v8364_v57  ;;  %v1807_v24 = vrot.slane %v8496_v15, %v8372_v62  ;;  %v6763_v26 = vcombine.low %v1574_v61, %v1606_v10  ;;  %v1289_v2 = vld [vmem:[%s8064_s29 + $0x1a8] sm:$0xff]  ;;  %v1320_v61 = vld [vmem:[%s8064_s29 + $0x2a0] sm:$0xff] }
 0x238   : > { %v6829_v52 = vcombine.low %v1639_v22, %v1671_v23  ;;  %v1352_v10 = vld [vmem:[%s8064_s29 + $0x3a0] sm:$0xff]  ;;  %v1385_v22 = vld [vmem:[%s8064_s29 + $0x4a8] sm:$0xff] }
 0x239   : > { %5315 = vmatpush1.bf16.msra.mxu0 %v6887_v25  ;;  %6309 = vst [vmem:[%s8409_s15 + $0x8] sm:$0xff] %v6053_v34  ;;  %5356 = vmatpush1.bf16.msra.mxu1 %v6889_v27  ;;  %v1803_v25 = vrot.slane %v8496_v15, %v8375_v63  ;;  %v1811_v27 = vrot.slane %v8496_v15, %v8378_v4  ;;  %v1702_v34 = vld [vmem:[%s8064_s29 + $0xe90] sm:$0xff]  ;;  %v1417_v23 = vld [vmem:[%s8064_s29 + $0x5a8] sm:$0xff] }
 0x23a   : > { %5382 = vmatprep.subr.bf16.mxu0 %v6444_v28  ;;  %5423 = vmatprep.subr.bf16.mxu1 %v6446_v29  ;;  %v6765_v28 = vcombine.low %v1575_v11, %v1607_v13  ;;  %v6828_v29 = vcombine.high %v1638_v19, %v1670_v20  ;;  %v6892_v53 = vcombine.high %v1702_v34, %v1734_v35  ;;  %v1321_v13 = vld [vmem:[%s8064_s29 + $0x2a8] sm:$0xff] }
 0x23b   : > { %v6891_v5 = vcombine.low %v1702_v34, %v1734_v35  ;;  %v6577_v34 = vcombine.low %v1385_v22, %v1417_v23 }
 0x23c   : > { %5333 = vmatmul.mubr.bf16.vlgmr.msra.gmra.mrb[32].mxu0 %v8299_v31  ;;  %5374 = vmatmul.mubr.bf16.vlgmr.msra.gmra.mrb[32].mxu1 %v8299_v31 }
 0x23d   : > { %5383 = vmatpush1.bf16.msra.mxu0 %v6443_v37  ;;  %5424 = vmatpush1.bf16.msra.mxu1 %v6445_v40 }
 0x23e   : > { %5384 = vmatprep.subr.bf16.mxu0 %v6508_v42  ;;  %5425 = vmatprep.subr.bf16.mxu1 %v6510_v43  ;;  %v1703_v42 = vld [vmem:[%s8064_s29 + $0xe98] sm:$0xff] }
 0x23f   : > { %5414 = vmatprep.mubr.bf16.mxu0 %v6975_v0  ;;  %5455 = vmatprep.mubr.bf16.mxu1 %v6975_v0  ;;  %v1735_v43 = vld [vmem:[%s8064_s29 + $0xf98] sm:$0xff] }
 0x241   : > { %5385 = vmatpush1.bf16.msra.mxu0 %v6507_v48  ;;  %5426 = vmatpush1.bf16.msra.mxu1 %v6509_v49  ;;  %v6827_v48 = vcombine.low %v1638_v19, %v1670_v20  ;;  %v1384_v20 = vld [vmem:[%s8064_s29 + $0x4a0] sm:$0xff] }
 0x242   : > { %5386 = vmatprep.subr.bf16.mxu0 %v6572_v50  ;;  %5427 = vmatprep.subr.bf16.mxu1 %v6574_v51 }
 0x245   : > { %5387 = vmatpush1.bf16.msra.mxu0 %v6571_v56  ;;  %5428 = vmatpush1.bf16.msra.mxu1 %v6573_v58  ;;  %v6894_v56 = vcombine.high %v1703_v42, %v1735_v43  ;;  %v1256_v58 = vld [vmem:[%s8064_s29 + $0xa0] sm:$0xff] }
 0x246   : > { %5388 = vmatprep.subr.bf16.mxu0 %v6636_v59  ;;  %5429 = vmatprep.subr.bf16.mxu1 %v6638_v60  ;;  %v1288_v59 = vld [vmem:[%s8064_s29 + $0x1a0] sm:$0xff] }
 0x249   : > { %5389 = vmatpush1.bf16.msra.mxu0 %v6635_v6  ;;  %5430 = vmatpush1.bf16.msra.mxu1 %v6637_v7  ;;  %v6893_v7 = vcombine.low %v1703_v42, %v1735_v43  ;;  %v1513_v42 = vld [vmem:[%s8064_s29 + $0x8a8] sm:$0xff] }
 0x24a   : > { %5390 = vmatprep.subr.bf16.mxu0 %v6700_v8  ;;  %5431 = vmatprep.subr.bf16.mxu1 %v6702_v9  ;;  %v6448_v8 = vcombine.high %v1256_v58, %v1288_v59  ;;  %v6450_v9 = vcombine.high %v1257_v1, %v1289_v2  ;;  %v1545_v43 = vld [vmem:[%s8064_s29 + $0x9a8] sm:$0xff] }
 0x24d   : > { %5391 = vmatpush1.bf16.msra.mxu0 %v6699_v14  ;;  %5432 = vmatpush1.bf16.msra.mxu1 %v6701_v16  ;;  %v1353_v14 = vld [vmem:[%s8064_s29 + $0x3a8] sm:$0xff]  ;;  %v6447_v16 = vcombine.low %v1256_v58, %v1288_v59  ;;  %v1672_v58 = vld [vmem:[%s8064_s29 + $0xda0] sm:$0xff]  ;;  %v1815_v59 = vrot.slane %v8496_v15, %v8435_v12 }
 0x24e   : > { %5392 = vmatprep.subr.bf16.mxu0 %v6764_v17  ;;  %5433 = vmatprep.subr.bf16.mxu1 %v6766_v18  ;;  %v6449_v17 = vcombine.low %v1257_v1, %v1289_v2  ;;  %v6512_v18 = vcombine.high %v1320_v61, %v1352_v10  ;;  %v6514_v19 = vcombine.high %v1321_v13, %v1353_v14  ;;  %v1673_v1 = vld [vmem:[%s8064_s29 + $0xda8] sm:$0xff] }
 0x24f   : > { %v4842_v30 = vpop.f32.mrb[8].mxu0  ;;  %v4883_v37 = vpop.f32.mrb[8].mxu1  ;;  %v1823_v2 = vrot.slane %v8496_v15, %v8440_v38 }
 0x250   : > { %v4843_v36 = vadd.f32 %v4842_v30, %v1799_v21  ;;  %v4844_v40 = vpop.f32.mrb[9].mxu0  ;;  %v4884_v44 = vadd.f32 %v4883_v37, %v1807_v24  ;;  %v4885_v46 = vpop.f32.mrb[9].mxu1  ;;  %v1416_v21 = vld [vmem:[%s8064_s29 + $0x5a0] sm:$0xff]  ;;  %v6511_v24 = vcombine.low %v1320_v61, %v1352_v10  ;;  %v1449_v30 = vld [vmem:[%s8064_s29 + $0x6a8] sm:$0xff] }
 0x251   : > { %v4845_v45 = vadd.f32 %v4844_v40, %v1803_v25  ;;  %v4846_v47 = vpop.f32.mrb[10].mxu0  ;;  %5393 = vmatpush1.bf16.msra.mxu0 %v6763_v26  ;;  %v4886_v49 = vadd.f32 %v4885_v46, %v1811_v27  ;;  %v4887_v50 = vpop.f32.mrb[10].mxu1  ;;  %5434 = vmatpush1.bf16.msra.mxu1 %v6765_v28  ;;  %v6513_v25 = vcombine.low %v1321_v13, %v1353_v14  ;;  %v1448_v28 = vld [vmem:[%s8064_s29 + $0x6a0] sm:$0xff] }
 0x252   : > { %v4847_v51 = vpop.f32.mrb[11].mxu0  ;;  %5394 = vmatprep.subr.bf16.mxu0 %v6828_v29  ;;  %v4888_v55 = vpop.f32.mrb[11].mxu1  ;;  %5435 = vmatprep.subr.bf16.mxu1 %v6830_v33  ;;  %v6576_v26 = vcombine.high %v1384_v20, %v1416_v21  ;;  %v6578_v27 = vcombine.high %v1385_v22, %v1417_v23  ;;  %v1480_v29 = vld [vmem:[%s8064_s29 + $0x7a0] sm:$0xff]  ;;  %v1481_v33 = vld [vmem:[%s8064_s29 + $0x7a8] sm:$0xff]  ;;  %v6706_v47 = vcombine.high %v1513_v42, %v1545_v43 }
 0x253   : > { %v6054_v54 = vcombine.low %v4843_v36, %v4845_v45  ;;  %v6055_v60 = vcombine.low %v4884_v44, %v4886_v49  ;;  %v6640_v35 = vcombine.high %v1448_v28, %v1480_v29  ;;  %v6642_v36 = vcombine.high %v1449_v30, %v1481_v33  ;;  %v1512_v37 = vld [vmem:[%s8064_s29 + $0x8a0] sm:$0xff]  ;;  %v1577_v50 = vld [vmem:[%s8064_s29 + $0xaa8] sm:$0xff] }
 0x254   : > { %v1544_v40 = vld [vmem:[%s8064_s29 + $0x9a0] sm:$0xff]  ;;  %v6639_v44 = vcombine.low %v1448_v28, %v1480_v29  ;;  %v6641_v45 = vcombine.low %v1449_v30, %v1481_v33  ;;  %v1609_v51 = vld [vmem:[%s8064_s29 + $0xba8] sm:$0xff]  ;;  %v1258_v33 = vld [vmem:[%s8064_s29 + $0xb0] sm:$0xff] }
 0x255   : > { %v6062_v3 = vrot.slane %v6054_v54, %v8397_v32  ;;  %5395 = vmatpush1.bf16.msra.mxu0 %v6827_v48  ;;  %v6069_v6 = vrot.slane %v6055_v60, %v8397_v32  ;;  %5436 = vmatpush1.bf16.msra.mxu1 %v6829_v52  ;;  %v6704_v46 = vcombine.high %v1512_v37, %v1544_v40  ;;  %v1576_v48 = vld [vmem:[%s8064_s29 + $0xaa0] sm:$0xff]  ;;  %v1641_v60 = vld [vmem:[%s8064_s29 + $0xca8] sm:$0xff] }
 0x256   : > { %5396 = vmatprep.subr.bf16.mxu0 %v6892_v53  ;;  %5437 = vmatprep.subr.bf16.mxu1 %v6894_v56  ;;  %v1608_v49 = vld [vmem:[%s8064_s29 + $0xba0] sm:$0xff]  ;;  %v6703_v52 = vcombine.low %v1512_v37, %v1544_v40  ;;  %v6705_v53 = vcombine.low %v1513_v42, %v1545_v43  ;;  %v6770_v55 = vcombine.high %v1577_v50, %v1609_v51 }
 0x257   : > { %v6070_v11 = vcombine.low %v6062_v3, %v6069_v6  ;;  %v6768_v54 = vcombine.high %v1576_v48, %v1608_v49  ;;  %v1640_v56 = vld [vmem:[%s8064_s29 + $0xca0] sm:$0xff]  ;;  %v1819_v3 = vrot.slane %v8496_v15, %v8443_v39  ;;  %v1827_v6 = vrot.slane %v8496_v15, %v8446_v41 }
 0x258   : > { %v6834_v61 = vcombine.high %v1641_v60, %v1673_v1  ;;  %v1704_v10 = vld [vmem:[%s8064_s29 + $0xea0] sm:$0xff]  ;;  %v6831_v15 = vcombine.low %v1640_v56, %v1672_v58 }
 0x259   : > { %5397 = vmatpush1.bf16.msra.mxu0 %v6891_v5  ;;  %6310 = vst [vmem:[%s8409_s15 + $0x10] sm:$0xff] %v6070_v11  ;;  %5438 = vmatpush1.bf16.msra.mxu1 %v6893_v7  ;;  %v6767_v5 = vcombine.low %v1576_v48, %v1608_v49  ;;  %v6769_v7 = vcombine.low %v1577_v50, %v1609_v51  ;;  %v1736_v11 = vld [vmem:[%s8064_s29 + $0xfa0] sm:$0xff]  ;;  %v1323_v49 = vld [vmem:[%s8064_s29 + $0x2b8] sm:$0xff] }
 0x25a   : > { %5464 = vmatprep.subr.bf16.mxu0 %v6448_v8  ;;  %5505 = vmatprep.subr.bf16.mxu1 %v6450_v9  ;;  %v6832_v8 = vcombine.high %v1640_v56, %v1672_v58  ;;  %v6895_v40 = vcombine.low %v1704_v10, %v1736_v11  ;;  %v1355_v50 = vld [vmem:[%s8064_s29 + $0x3b8] sm:$0xff]  ;;  %v1418_v56 = vld [vmem:[%s8064_s29 + $0x5b0] sm:$0xff]  ;;  %v8577_v58 = vld [vmem:[%s8882_s0] sm:$0x1] }
 0x25c   : > { %5415 = vmatmul.mubr.bf16.vlgmr.msra.gmra.mrb[36].mxu0 %v8299_v31  ;;  %5456 = vmatmul.mubr.bf16.vlgmr.msra.gmra.mrb[36].mxu1 %v8299_v31  ;;  %v6575_v31 = vcombine.low %v1384_v20, %v1416_v21 }
 0x25d   : > { %5465 = vmatpush1.bf16.msra.mxu0 %v6447_v16  ;;  %5506 = vmatpush1.bf16.msra.mxu1 %v6449_v17  ;;  %v1705_v17 = vld [vmem:[%s8064_s29 + $0xea8] sm:$0xff] }
 0x25e   : > { %5466 = vmatprep.subr.bf16.mxu0 %v6512_v18  ;;  %5507 = vmatprep.subr.bf16.mxu1 %v6514_v19  ;;  %v1737_v18 = vld [vmem:[%s8064_s29 + $0xfa8] sm:$0xff] }
 0x25f   : > { %5496 = vmatprep.mubr.bf16.mxu0 %v6975_v0  ;;  %5537 = vmatprep.mubr.bf16.mxu1 %v6975_v0  ;;  %v6898_v30 = vcombine.high %v1705_v17, %v1737_v18  ;;  %v6897_v43 = vcombine.low %v1705_v17, %v1737_v18  ;;  %v1515_v17 = vld [vmem:[%s8064_s29 + $0x8b8] sm:$0xff] }
 0x260   : > { %v1547_v18 = vld [vmem:[%s8064_s29 + $0x9b8] sm:$0xff] }
 0x261   : > { %5467 = vmatpush1.bf16.msra.mxu0 %v6511_v24  ;;  %5508 = vmatpush1.bf16.msra.mxu1 %v6513_v25 }
 0x262   : > { %5468 = vmatprep.subr.bf16.mxu0 %v6576_v26  ;;  %5509 = vmatprep.subr.bf16.mxu1 %v6578_v27  ;;  %v6833_v26 = vcombine.low %v1641_v60, %v1673_v1  ;;  %v6896_v27 = vcombine.high %v1704_v10, %v1736_v11  ;;  %v1419_v60 = vld [vmem:[%s8064_s29 + $0x5b8] sm:$0xff] }
 0x265   : > { %5469 = vmatpush1.bf16.msra.mxu0 %v6575_v31  ;;  %5510 = vmatpush1.bf16.msra.mxu1 %v6577_v34  ;;  %v1290_v31 = vld [vmem:[%s8064_s29 + $0x1b0] sm:$0xff] }
 0x266   : > { %5470 = vmatprep.subr.bf16.mxu0 %v6640_v35  ;;  %5511 = vmatprep.subr.bf16.mxu1 %v6642_v36  ;;  %v1259_v35 = vld [vmem:[%s8064_s29 + $0xb8] sm:$0xff]  ;;  %v6451_v51 = vcombine.low %v1258_v33, %v1290_v31 }
 0x267   : > { %v1291_v36 = vld [vmem:[%s8064_s29 + $0x1b8] sm:$0xff] }
 0x269   : > { %5471 = vmatpush1.bf16.msra.mxu0 %v6639_v44  ;;  %5512 = vmatpush1.bf16.msra.mxu1 %v6641_v45  ;;  %v6452_v44 = vcombine.high %v1258_v33, %v1290_v31  ;;  %v6454_v45 = vcombine.high %v1259_v35, %v1291_v36  ;;  %v1642_v33 = vld [vmem:[%s8064_s29 + $0xcb0] sm:$0xff] }
 0x26a   : > { %5472 = vmatprep.subr.bf16.mxu0 %v6704_v46  ;;  %5513 = vmatprep.subr.bf16.mxu1 %v6706_v47  ;;  %v1322_v46 = vld [vmem:[%s8064_s29 + $0x2b0] sm:$0xff] }
 0x26b   : > { %v1354_v47 = vld [vmem:[%s8064_s29 + $0x3b0] sm:$0xff] }
 0x26c   : > { %v6515_v1 = vcombine.low %v1322_v46, %v1354_v47  ;;  %v1674_v31 = vld [vmem:[%s8064_s29 + $0xdb0] sm:$0xff] }
 0x26d   : > { %5473 = vmatpush1.bf16.msra.mxu0 %v6703_v52  ;;  %5514 = vmatpush1.bf16.msra.mxu1 %v6705_v53  ;;  %v6453_v52 = vcombine.low %v1259_v35, %v1291_v36  ;;  %v6516_v53 = vcombine.high %v1322_v46, %v1354_v47  ;;  %v1643_v35 = vld [vmem:[%s8064_s29 + $0xcb8] sm:$0xff] }
 0x26e   : > { %5474 = vmatprep.subr.bf16.mxu0 %v6768_v54  ;;  %5515 = vmatprep.subr.bf16.mxu1 %v6770_v55  ;;  %v6518_v54 = vcombine.high %v1323_v49, %v1355_v50  ;;  %v1386_v55 = vld [vmem:[%s8064_s29 + $0x4b0] sm:$0xff]  ;;  %v1675_v36 = vld [vmem:[%s8064_s29 + $0xdb8] sm:$0xff] }
 0x26f   : > { %v4924_v9 = vpop.f32.mrb[12].mxu0  ;;  %v4965_v14 = vpop.f32.mrb[12].mxu1  ;;  %v6838_v47 = vcombine.high %v1643_v35, %v1675_v36 }
 0x270   : > { %v4925_v13 = vadd.f32 %v4924_v9, %v1815_v59  ;;  %v4926_v16 = vpop.f32.mrb[13].mxu0  ;;  %v4966_v19 = vadd.f32 %v4965_v14, %v1823_v2  ;;  %v4967_v21 = vpop.f32.mrb[13].mxu1  ;;  %v1387_v59 = vld [vmem:[%s8064_s29 + $0x4b8] sm:$0xff]  ;;  %v6517_v2 = vcombine.low %v1323_v49, %v1355_v50  ;;  %v1514_v14 = vld [vmem:[%s8064_s29 + $0x8b0] sm:$0xff] }
 0x271   : > { %v4927_v20 = vadd.f32 %v4926_v16, %v1819_v3  ;;  %v4928_v22 = vpop.f32.mrb[14].mxu0  ;;  %5475 = vmatpush1.bf16.msra.mxu0 %v6767_v5  ;;  %v4968_v23 = vadd.f32 %v4967_v21, %v1827_v6  ;;  %v4969_v24 = vpop.f32.mrb[14].mxu1  ;;  %5516 = vmatpush1.bf16.msra.mxu1 %v6769_v7  ;;  %v6580_v3 = vcombine.high %v1386_v55, %v1418_v56  ;;  %v1450_v6 = vld [vmem:[%s8064_s29 + $0x6b0] sm:$0xff]  ;;  %v1483_v9 = vld [vmem:[%s8064_s29 + $0x7b8] sm:$0xff] }
 0x272   : > { %v4929_v25 = vpop.f32.mrb[15].mxu0  ;;  %5476 = vmatprep.subr.bf16.mxu0 %v6832_v8  ;;  %v4970_v29 = vpop.f32.mrb[15].mxu1  ;;  %5517 = vmatprep.subr.bf16.mxu1 %v6834_v61  ;;  %v6582_v5 = vcombine.high %v1387_v59, %v1419_v60  ;;  %v1482_v7 = vld [vmem:[%s8064_s29 + $0x7b0] sm:$0xff]  ;;  %v1451_v8 = vld [vmem:[%s8064_s29 + $0x6b8] sm:$0xff]  ;;  %v6579_v61 = vcombine.low %v1386_v55, %v1418_v56  ;;  %v6581_v10 = vcombine.low %v1387_v59, %v1419_v60 }
 0x273   : > { %v6071_v28 = vcombine.low %v4925_v13, %v4927_v20  ;;  %v6072_v34 = vcombine.low %v4966_v19, %v4968_v23  ;;  %v6644_v11 = vcombine.high %v1450_v6, %v1482_v7  ;;  %v6646_v13 = vcombine.high %v1451_v8, %v1483_v9  ;;  %v1546_v16 = vld [vmem:[%s8064_s29 + $0x9b0] sm:$0xff]  ;;  %v1579_v24 = vld [vmem:[%s8064_s29 + $0xab8] sm:$0xff] }
 0x274   : > { %v6643_v19 = vcombine.low %v1450_v6, %v1482_v7  ;;  %v6645_v20 = vcombine.low %v1451_v8, %v1483_v9  ;;  %v6708_v21 = vcombine.high %v1514_v14, %v1546_v16  ;;  %v6710_v22 = vcombine.high %v1515_v17, %v1547_v18  ;;  %v1610_v23 = vld [vmem:[%s8064_s29 + $0xbb0] sm:$0xff]  ;;  %v1611_v25 = vld [vmem:[%s8064_s29 + $0xbb8] sm:$0xff] }
 0x275   : > { %v6079_v37 = vrot.slane %v6071_v28, %v8397_v32  ;;  %5477 = vmatpush1.bf16.msra.mxu0 %v6831_v15  ;;  %v6086_v42 = vrot.slane %v6072_v34, %v8397_v32  ;;  %5518 = vmatpush1.bf16.msra.mxu1 %v6833_v26  ;;  %v1578_v15 = vld [vmem:[%s8064_s29 + $0xab0] sm:$0xff]  ;;  %v6707_v26 = vcombine.low %v1514_v14, %v1546_v16  ;;  %v1261_v14 = vld [vmem:[%s8064_s29 + $0xc8] sm:$0xff] }
 0x276   : > { %5478 = vmatprep.subr.bf16.mxu0 %v6896_v27  ;;  %5519 = vmatprep.subr.bf16.mxu1 %v6898_v30  ;;  %v8598_v27 = vld [vmem:[%s8359_s10 + $0x10] sm:$0xff]  ;;  %v6709_v28 = vcombine.low %v1515_v17, %v1547_v18  ;;  %v6772_v29 = vcombine.high %v1578_v15, %v1610_v23  ;;  %v6774_v30 = vcombine.high %v1579_v24, %v1611_v25  ;;  %v1293_v16 = vld [vmem:[%s8064_s29 + $0x1c8] sm:$0xff] }
 0x277   : > { %v6087_v48 = vcombine.low %v6079_v37, %v6086_v42  ;;  %v1831_v34 = vrot.slane %v8598_v27, %v8364_v57  ;;  %v1839_v37 = vrot.slane %v8598_v27, %v8372_v62  ;;  %v6771_v42 = vcombine.low %v1578_v15, %v1610_v23  ;;  %v1738_v49 = vld [vmem:[%s8064_s29 + $0xfb0] sm:$0xff]  ;;  %v1324_v15 = vld [vmem:[%s8064_s29 + $0x2c0] sm:$0xff] }
 0x278   : > { %v6837_v6 = vcombine.low %v1643_v35, %v1675_v36  ;;  %v1356_v23 = vld [vmem:[%s8064_s29 + $0x3c0] sm:$0xff]  ;;  %v1389_v35 = vld [vmem:[%s8064_s29 + $0x4c8] sm:$0xff] }
 0x279   : > { %5479 = vmatpush1.bf16.msra.mxu0 %v6895_v40  ;;  %6311 = vst [vmem:[%s8409_s15 + $0x18] sm:$0xff] %v6087_v48  ;;  %5520 = vmatpush1.bf16.msra.mxu1 %v6897_v43  ;;  %v1835_v40 = vrot.slane %v8598_v27, %v8375_v63  ;;  %v1843_v43 = vrot.slane %v8598_v27, %v8378_v4  ;;  %v1706_v48 = vld [vmem:[%s8064_s29 + $0xeb0] sm:$0xff]  ;;  %v1421_v36 = vld [vmem:[%s8064_s29 + $0x5c8] sm:$0xff] }
 0x27a   : > { %5546 = vmatprep.subr.bf16.mxu0 %v6452_v44  ;;  %5587 = vmatprep.subr.bf16.mxu1 %v6454_v45  ;;  %v6773_v44 = vcombine.low %v1579_v24, %v1611_v25  ;;  %v6836_v45 = vcombine.high %v1642_v33, %v1674_v31  ;;  %v6900_v7 = vcombine.high %v1706_v48, %v1738_v49  ;;  %v1325_v25 = vld [vmem:[%s8064_s29 + $0x2c8] sm:$0xff] }
 0x27b   : > { %v6899_v18 = vcombine.low %v1706_v48, %v1738_v49  ;;  %v6585_v49 = vcombine.low %v1389_v35, %v1421_v36 }
 0x27c   : > { %5497 = vmatmul.mubr.bf16.vlgmr.msra.gmra.mrb[40].mxu0 %v8577_v58  ;;  %5538 = vmatmul.mubr.bf16.vlgmr.msra.gmra.mrb[40].mxu1 %v8577_v58 }
 0x27d   : > { %5547 = vmatpush1.bf16.msra.mxu0 %v6451_v51  ;;  %5588 = vmatpush1.bf16.msra.mxu1 %v6453_v52 }
 0x27e   : > { %5548 = vmatprep.subr.bf16.mxu0 %v6516_v53  ;;  %5589 = vmatprep.subr.bf16.mxu1 %v6518_v54  ;;  %v1707_v53 = vld [vmem:[%s8064_s29 + $0xeb8] sm:$0xff] }
 0x27f   : > { %5578 = vmatprep.mubr.bf16.mxu0 %v6975_v0  ;;  %5619 = vmatprep.mubr.bf16.mxu1 %v6975_v0  ;;  %v1739_v54 = vld [vmem:[%s8064_s29 + $0xfb8] sm:$0xff] }
 0x281   : > { %5549 = vmatpush1.bf16.msra.mxu0 %v6515_v1  ;;  %5590 = vmatpush1.bf16.msra.mxu1 %v6517_v2  ;;  %v6835_v1 = vcombine.low %v1642_v33, %v1674_v31  ;;  %v1388_v31 = vld [vmem:[%s8064_s29 + $0x4c0] sm:$0xff] }
 0x282   : > { %5550 = vmatprep.subr.bf16.mxu0 %v6580_v3  ;;  %5591 = vmatprep.subr.bf16.mxu1 %v6582_v5 }
 0x285   : > { %5551 = vmatpush1.bf16.msra.mxu0 %v6579_v61  ;;  %5592 = vmatpush1.bf16.msra.mxu1 %v6581_v10  ;;  %v6902_v61 = vcombine.high %v1707_v53, %v1739_v54  ;;  %v1260_v10 = vld [vmem:[%s8064_s29 + $0xc0] sm:$0xff] }
 0x286   : > { %5552 = vmatprep.subr.bf16.mxu0 %v6644_v11  ;;  %5593 = vmatprep.subr.bf16.mxu1 %v6646_v13  ;;  %v1292_v11 = vld [vmem:[%s8064_s29 + $0x1c0] sm:$0xff] }
 0x289   : > { %5553 = vmatpush1.bf16.msra.mxu0 %v6643_v19  ;;  %5594 = vmatpush1.bf16.msra.mxu1 %v6645_v20  ;;  %v6901_v20 = vcombine.low %v1707_v53, %v1739_v54  ;;  %v1548_v53 = vld [vmem:[%s8064_s29 + $0x9c0] sm:$0xff]  ;;  %v1517_v54 = vld [vmem:[%s8064_s29 + $0x8c8] sm:$0xff] }
 0x28a   : > { %5554 = vmatprep.subr.bf16.mxu0 %v6708_v21  ;;  %5595 = vmatprep.subr.bf16.mxu1 %v6710_v22  ;;  %v6456_v21 = vcombine.high %v1260_v10, %v1292_v11  ;;  %v6458_v22 = vcombine.high %v1261_v14, %v1293_v16 }
 0x28d   : > { %5555 = vmatpush1.bf16.msra.mxu0 %v6707_v26  ;;  %5596 = vmatpush1.bf16.msra.mxu1 %v6709_v28  ;;  %v1357_v26 = vld [vmem:[%s8064_s29 + $0x3c8] sm:$0xff]  ;;  %v6455_v28 = vcombine.low %v1260_v10, %v1292_v11  ;;  %v1644_v10 = vld [vmem:[%s8064_s29 + $0xcc0] sm:$0xff] }
 0x28e   : > { %5556 = vmatprep.subr.bf16.mxu0 %v6772_v29  ;;  %5597 = vmatprep.subr.bf16.mxu1 %v6774_v30  ;;  %v6457_v29 = vcombine.low %v1261_v14, %v1293_v16  ;;  %v6520_v30 = vcombine.high %v1324_v15, %v1356_v23  ;;  %v6522_v33 = vcombine.high %v1325_v25, %v1357_v26  ;;  %v1676_v11 = vld [vmem:[%s8064_s29 + $0xdc0] sm:$0xff]  ;;  %v1645_v14 = vld [vmem:[%s8064_s29 + $0xcc8] sm:$0xff] }
 0x28f   : > { %v5006_v46 = vpop.f32.mrb[16].mxu0  ;;  %v5047_v51 = vpop.f32.mrb[16].mxu1  ;;  %v1677_v16 = vld [vmem:[%s8064_s29 + $0xdc8] sm:$0xff] }
 0x290   : > { %v5007_v50 = vadd.f32 %v5006_v46, %v1831_v34  ;;  %v5008_v52 = vpop.f32.mrb[17].mxu0  ;;  %v5048_v55 = vadd.f32 %v5047_v51, %v1839_v37  ;;  %v5049_v59 = vpop.f32.mrb[17].mxu1  ;;  %v1420_v34 = vld [vmem:[%s8064_s29 + $0x5c0] sm:$0xff]  ;;  %v6519_v37 = vcombine.low %v1324_v15, %v1356_v23  ;;  %v1453_v46 = vld [vmem:[%s8064_s29 + $0x6c8] sm:$0xff]  ;;  %v6842_v23 = vcombine.high %v1645_v14, %v1677_v16 }
 0x291   : > { %v5009_v56 = vadd.f32 %v5008_v52, %v1835_v40  ;;  %v5010_v60 = vpop.f32.mrb[18].mxu0  ;;  %5557 = vmatpush1.bf16.msra.mxu0 %v6771_v42  ;;  %v5050_v2 = vadd.f32 %v5049_v59, %v1843_v43  ;;  %v5051_v3 = vpop.f32.mrb[18].mxu1  ;;  %5598 = vmatpush1.bf16.msra.mxu1 %v6773_v44  ;;  %v6521_v40 = vcombine.low %v1325_v25, %v1357_v26  ;;  %v1452_v44 = vld [vmem:[%s8064_s29 + $0x6c0] sm:$0xff] }
 0x292   : > { %v5011_v5 = vpop.f32.mrb[19].mxu0  ;;  %5558 = vmatprep.subr.bf16.mxu0 %v6836_v45  ;;  %v5052_v9 = vpop.f32.mrb[19].mxu1  ;;  %5599 = vmatprep.subr.bf16.mxu1 %v6838_v47  ;;  %v6584_v42 = vcombine.high %v1388_v31, %v1420_v34  ;;  %v6586_v43 = vcombine.high %v1389_v35, %v1421_v36  ;;  %v1484_v45 = vld [vmem:[%s8064_s29 + $0x7c0] sm:$0xff]  ;;  %v1485_v47 = vld [vmem:[%s8064_s29 + $0x7c8] sm:$0xff]  ;;  %v6583_v48 = vcombine.low %v1388_v31, %v1420_v34 }
 0x293   : > { %v6088_v8 = vcombine.low %v5007_v50, %v5009_v56  ;;  %v6089_v13 = vcombine.low %v5048_v55, %v5050_v2  ;;  %v6648_v50 = vcombine.high %v1452_v44, %v1484_v45  ;;  %v6650_v51 = vcombine.high %v1453_v46, %v1485_v47  ;;  %v1516_v52 = vld [vmem:[%s8064_s29 + $0x8c0] sm:$0xff]  ;;  %v1549_v55 = vld [vmem:[%s8064_s29 + $0x9c8] sm:$0xff] }
 0x294   : > { %v6647_v56 = vcombine.low %v1452_v44, %v1484_v45  ;;  %v6649_v59 = vcombine.low %v1453_v46, %v1485_v47  ;;  %v6712_v60 = vcombine.high %v1516_v52, %v1548_v53  ;;  %v1580_v2 = vld [vmem:[%s8064_s29 + $0xac0] sm:$0xff]  ;;  %v1581_v5 = vld [vmem:[%s8064_s29 + $0xac8] sm:$0xff] }
 0x295   : > { %v6096_v17 = vrot.slane %v6088_v8, %v8397_v32  ;;  %5559 = vmatpush1.bf16.msra.mxu0 %v6835_v1  ;;  %v6103_v19 = vrot.slane %v6089_v13, %v8397_v32  ;;  %5600 = vmatpush1.bf16.msra.mxu1 %v6837_v6  ;;  %v6714_v1 = vcombine.high %v1517_v54, %v1549_v55  ;;  %v1612_v3 = vld [vmem:[%s8064_s29 + $0xbc0] sm:$0xff]  ;;  %v1613_v6 = vld [vmem:[%s8064_s29 + $0xbc8] sm:$0xff] }
 0x296   : > { %5560 = vmatprep.subr.bf16.mxu0 %v6900_v7  ;;  %5601 = vmatprep.subr.bf16.mxu1 %v6902_v61  ;;  %v6711_v7 = vcombine.low %v1516_v52, %v1548_v53  ;;  %v6713_v8 = vcombine.low %v1517_v54, %v1549_v55  ;;  %v6776_v9 = vcombine.high %v1580_v2, %v1612_v3  ;;  %v1740_v25 = vld [vmem:[%s8064_s29 + $0xfc0] sm:$0xff]  ;;  %v1295_v52 = vld [vmem:[%s8064_s29 + $0x1d8] sm:$0xff] }
 0x297   : > { %v6104_v24 = vcombine.low %v6096_v17, %v6103_v19  ;;  %v6778_v61 = vcombine.high %v1581_v5, %v1613_v6  ;;  %v1847_v13 = vrot.slane %v8598_v27, %v8435_v12  ;;  %v1855_v17 = vrot.slane %v8598_v27, %v8440_v38 }
 0x298   : > { %v6775_v19 = vcombine.low %v1580_v2, %v1612_v3  ;;  %v1358_v2 = vld [vmem:[%s8064_s29 + $0x3d0] sm:$0xff] }
 0x299   : > { %5561 = vmatpush1.bf16.msra.mxu0 %v6899_v18  ;;  %6312 = vst [vmem:[%s8409_s15 + $0x20] sm:$0xff] %v6104_v24  ;;  %5602 = vmatpush1.bf16.msra.mxu1 %v6901_v20  ;;  %v1851_v18 = vrot.slane %v8598_v27, %v8443_v39  ;;  %v1859_v20 = vrot.slane %v8598_v27, %v8446_v41  ;;  %v1708_v24 = vld [vmem:[%s8064_s29 + $0xec0] sm:$0xff] }
 0x29a   : > { %5628 = vmatprep.subr.bf16.mxu0 %v6456_v21  ;;  %5669 = vmatprep.subr.bf16.mxu1 %v6458_v22  ;;  %v6777_v21 = vcombine.low %v1581_v5, %v1613_v6  ;;  %v6840_v22 = vcombine.high %v1644_v10, %v1676_v11  ;;  %v6839_v27 = vcombine.low %v1644_v10, %v1676_v11  ;;  %v1327_v5 = vld [vmem:[%s8064_s29 + $0x2d8] sm:$0xff]  ;;  %v1390_v10 = vld [vmem:[%s8064_s29 + $0x4d0] sm:$0xff] }
 0x29b   : > { %v6904_v44 = vcombine.high %v1708_v24, %v1740_v25  ;;  %v6903_v54 = vcombine.low %v1708_v24, %v1740_v25  ;;  %v1359_v6 = vld [vmem:[%s8064_s29 + $0x3d8] sm:$0xff]  ;;  %v1422_v11 = vld [vmem:[%s8064_s29 + $0x5d0] sm:$0xff] }
 0x29c   : > { %5579 = vmatmul.mubr.bf16.vlgmr.msra.gmra.mrb[44].mxu0 %v8577_v58  ;;  %5620 = vmatmul.mubr.bf16.vlgmr.msra.gmra.mrb[44].mxu1 %v8577_v58 }
 0x29d   : > { %5629 = vmatpush1.bf16.msra.mxu0 %v6455_v28  ;;  %5670 = vmatpush1.bf16.msra.mxu1 %v6457_v29 }
 0x29e   : > { %5630 = vmatprep.subr.bf16.mxu0 %v6520_v30  ;;  %5671 = vmatprep.subr.bf16.mxu1 %v6522_v33  ;;  %v1709_v30 = vld [vmem:[%s8064_s29 + $0xec8] sm:$0xff] }
 0x29f   : > { %5660 = vmatprep.mubr.bf16.mxu0 %v6975_v0  ;;  %5701 = vmatprep.mubr.bf16.mxu1 %v6975_v0  ;;  %v1741_v33 = vld [vmem:[%s8064_s29 + $0xfc8] sm:$0xff] }
 0x2a0   : > { %v6906_v47 = vcombine.high %v1709_v30, %v1741_v33 }
 0x2a1   : > { %5631 = vmatpush1.bf16.msra.mxu0 %v6519_v37  ;;  %5672 = vmatpush1.bf16.msra.mxu1 %v6521_v40 }
 0x2a2   : > { %5632 = vmatprep.subr.bf16.mxu0 %v6584_v42  ;;  %5673 = vmatprep.subr.bf16.mxu1 %v6586_v43  ;;  %v6841_v43 = vcombine.low %v1645_v14, %v1677_v16  ;;  %v1423_v14 = vld [vmem:[%s8064_s29 + $0x5d8] sm:$0xff] }
 0x2a5   : > { %5633 = vmatpush1.bf16.msra.mxu0 %v6583_v48  ;;  %5674 = vmatpush1.bf16.msra.mxu1 %v6585_v49  ;;  %v1262_v48 = vld [vmem:[%s8064_s29 + $0xd0] sm:$0xff] }
 0x2a6   : > { %5634 = vmatprep.subr.bf16.mxu0 %v6648_v50  ;;  %5675 = vmatprep.subr.bf16.mxu1 %v6650_v51  ;;  %v1294_v49 = vld [vmem:[%s8064_s29 + $0x1d0] sm:$0xff]  ;;  %v1263_v51 = vld [vmem:[%s8064_s29 + $0xd8] sm:$0xff] }
 0x2a9   : > { %5635 = vmatpush1.bf16.msra.mxu0 %v6647_v56  ;;  %5676 = vmatpush1.bf16.msra.mxu1 %v6649_v59  ;;  %v6905_v56 = vcombine.low %v1709_v30, %v1741_v33  ;;  %v6460_v59 = vcombine.high %v1262_v48, %v1294_v49  ;;  %v1519_v30 = vld [vmem:[%s8064_s29 + $0x8d8] sm:$0xff] }
 0x2aa   : > { %5636 = vmatprep.subr.bf16.mxu0 %v6712_v60  ;;  %5677 = vmatprep.subr.bf16.mxu1 %v6714_v1  ;;  %v6462_v60 = vcombine.high %v1263_v51, %v1295_v52  ;;  %v1326_v1 = vld [vmem:[%s8064_s29 + $0x2d0] sm:$0xff]  ;;  %v1551_v33 = vld [vmem:[%s8064_s29 + $0x9d8] sm:$0xff] }
 0x2ab   : > { %v6523_v16 = vcombine.low %v1326_v1, %v1358_v2 }
 0x2ad   : > { %5637 = vmatpush1.bf16.msra.mxu0 %v6711_v7  ;;  %5678 = vmatpush1.bf16.msra.mxu1 %v6713_v8  ;;  %v6459_v7 = vcombine.low %v1262_v48, %v1294_v49  ;;  %v6461_v8 = vcombine.low %v1263_v51, %v1295_v52  ;;  %v1646_v48 = vld [vmem:[%s8064_s29 + $0xcd0] sm:$0xff]  ;;  %v1647_v51 = vld [vmem:[%s8064_s29 + $0xcd8] sm:$0xff] }
 0x2ae   : > { %5638 = vmatprep.subr.bf16.mxu0 %v6776_v9  ;;  %5679 = vmatprep.subr.bf16.mxu1 %v6778_v61  ;;  %v6524_v9 = vcombine.high %v1326_v1, %v1358_v2  ;;  %v6526_v61 = vcombine.high %v1327_v5, %v1359_v6  ;;  %v1678_v49 = vld [vmem:[%s8064_s29 + $0xdd0] sm:$0xff]  ;;  %v1679_v52 = vld [vmem:[%s8064_s29 + $0xdd8] sm:$0xff] }
 0x2af   : > { %v5088_v15 = vpop.f32.mrb[20].mxu0  ;;  %v5129_v28 = vpop.f32.mrb[20].mxu1  ;;  %v6846_v2 = vcombine.high %v1647_v51, %v1679_v52 }
 0x2b0   : > { %v5089_v26 = vadd.f32 %v5088_v15, %v1847_v13  ;;  %v5090_v29 = vpop.f32.mrb[21].mxu0  ;;  %v5130_v31 = vadd.f32 %v5129_v28, %v1855_v17  ;;  %v5131_v35 = vpop.f32.mrb[21].mxu1  ;;  %v1391_v13 = vld [vmem:[%s8064_s29 + $0x4d8] sm:$0xff]  ;;  %v6525_v17 = vcombine.low %v1327_v5, %v1359_v6  ;;  %v1518_v28 = vld [vmem:[%s8064_s29 + $0x8d0] sm:$0xff] }
 0x2b1   : > { %v5091_v34 = vadd.f32 %v5090_v29, %v1851_v18  ;;  %v5092_v36 = vpop.f32.mrb[22].mxu0  ;;  %5639 = vmatpush1.bf16.msra.mxu0 %v6775_v19  ;;  %v5132_v37 = vadd.f32 %v5131_v35, %v1859_v20  ;;  %v5133_v40 = vpop.f32.mrb[22].mxu1  ;;  %5680 = vmatpush1.bf16.msra.mxu1 %v6777_v21  ;;  %v6588_v18 = vcombine.high %v1390_v10, %v1422_v11  ;;  %v1454_v20 = vld [vmem:[%s8064_s29 + $0x6d0] sm:$0xff]  ;;  %v1487_v15 = vld [vmem:[%s8064_s29 + $0x7d8] sm:$0xff] }
 0x2b2   : > { %v5093_v42 = vpop.f32.mrb[23].mxu0  ;;  %5640 = vmatprep.subr.bf16.mxu0 %v6840_v22  ;;  %v5134_v46 = vpop.f32.mrb[23].mxu1  ;;  %5681 = vmatprep.subr.bf16.mxu1 %v6842_v23  ;;  %v6590_v19 = vcombine.high %v1391_v13, %v1423_v14  ;;  %v1486_v21 = vld [vmem:[%s8064_s29 + $0x7d0] sm:$0xff]  ;;  %v1455_v22 = vld [vmem:[%s8064_s29 + $0x6d8] sm:$0xff]  ;;  %v6587_v23 = vcombine.low %v1390_v10, %v1422_v11  ;;  %v6589_v24 = vcombine.low %v1391_v13, %v1423_v14 }
 0x2b3   : > { %v6105_v45 = vcombine.low %v5089_v26, %v5091_v34  ;;  %v6106_v50 = vcombine.low %v5130_v31, %v5132_v37  ;;  %v6652_v25 = vcombine.high %v1454_v20, %v1486_v21  ;;  %v6654_v26 = vcombine.high %v1455_v22, %v1487_v15  ;;  %v1550_v29 = vld [vmem:[%s8064_s29 + $0x9d0] sm:$0xff]  ;;  %v1583_v40 = vld [vmem:[%s8064_s29 + $0xad8] sm:$0xff] }
 0x2b4   : > { %v6651_v31 = vcombine.low %v1454_v20, %v1486_v21  ;;  %v6653_v34 = vcombine.low %v1455_v22, %v1487_v15  ;;  %v6716_v35 = vcombine.high %v1518_v28, %v1550_v29  ;;  %v6718_v36 = vcombine.high %v1519_v30, %v1551_v33  ;;  %v1614_v37 = vld [vmem:[%s8064_s29 + $0xbd0] sm:$0xff]  ;;  %v1615_v42 = vld [vmem:[%s8064_s29 + $0xbd8] sm:$0xff] }
 0x2b5   : > { %v6113_v53 = vrot.slane %v6105_v45, %v8397_v32  ;;  %5641 = vmatpush1.bf16.msra.mxu0 %v6839_v27  ;;  %v6120_v55 = vrot.slane %v6106_v50, %v8397_v32  ;;  %5682 = vmatpush1.bf16.msra.mxu1 %v6841_v43  ;;  %v1582_v27 = vld [vmem:[%s8064_s29 + $0xad0] sm:$0xff]  ;;  %v6715_v43 = vcombine.low %v1518_v28, %v1550_v29  ;;  %v1265_v28 = vld [vmem:[%s8064_s29 + $0xe8] sm:$0xff] }
 0x2b6   : > { %5642 = vmatprep.subr.bf16.mxu0 %v6904_v44  ;;  %5683 = vmatprep.subr.bf16.mxu1 %v6906_v47  ;;  %v8695_v44 = vld [vmem:[%s8359_s10 + $0x18] sm:$0xff]  ;;  %v6717_v45 = vcombine.low %v1519_v30, %v1551_v33  ;;  %v6780_v46 = vcombine.high %v1582_v27, %v1614_v37  ;;  %v6782_v47 = vcombine.high %v1583_v40, %v1615_v42  ;;  %v1742_v5 = vld [vmem:[%s8064_s29 + $0xfd0] sm:$0xff]  ;;  %v1297_v29 = vld [vmem:[%s8064_s29 + $0x1e8] sm:$0xff] }
 0x2b7   : > { %v6121_v3 = vcombine.low %v6113_v53, %v6120_v55  ;;  %v1863_v50 = vrot.slane %v8695_v44, %v8364_v57  ;;  %v1871_v53 = vrot.slane %v8695_v44, %v8372_v62  ;;  %v6779_v55 = vcombine.low %v1582_v27, %v1614_v37  ;;  %v1328_v27 = vld [vmem:[%s8064_s29 + $0x2e0] sm:$0xff] }
 0x2b8   : > { %v6845_v20 = vcombine.low %v1647_v51, %v1679_v52  ;;  %v1360_v37 = vld [vmem:[%s8064_s29 + $0x3e0] sm:$0xff]  ;;  %v1393_v51 = vld [vmem:[%s8064_s29 + $0x4e8] sm:$0xff] }
 0x2b9   : > { %5643 = vmatpush1.bf16.msra.mxu0 %v6903_v54  ;;  %6313 = vst [vmem:[%s8409_s15 + $0x28] sm:$0xff] %v6121_v3  ;;  %5684 = vmatpush1.bf16.msra.mxu1 %v6905_v56  ;;  %v1867_v54 = vrot.slane %v8695_v44, %v8375_v63  ;;  %v1875_v56 = vrot.slane %v8695_v44, %v8378_v4  ;;  %v1710_v3 = vld [vmem:[%s8064_s29 + $0xed0] sm:$0xff]  ;;  %v1425_v52 = vld [vmem:[%s8064_s29 + $0x5e8] sm:$0xff] }
 0x2ba   : > { %5710 = vmatprep.subr.bf16.mxu0 %v6460_v59  ;;  %5751 = vmatprep.subr.bf16.mxu1 %v6462_v60  ;;  %v6781_v59 = vcombine.low %v1583_v40, %v1615_v42  ;;  %v6844_v60 = vcombine.high %v1646_v48, %v1678_v49  ;;  %v6908_v21 = vcombine.high %v1710_v3, %v1742_v5  ;;  %v1329_v42 = vld [vmem:[%s8064_s29 + $0x2e8] sm:$0xff] }
 0x2bb   : > { %v6907_v33 = vcombine.low %v1710_v3, %v1742_v5  ;;  %v6593_v5 = vcombine.low %v1393_v51, %v1425_v52 }
 0x2bc   : > { %5661 = vmatmul.mubr.bf16.vlgmr.msra.gmra.mrb[48].mxu0 %v8577_v58  ;;  %5702 = vmatmul.mubr.bf16.vlgmr.msra.gmra.mrb[48].mxu1 %v8577_v58 }
 0x2bd   : > { %5711 = vmatpush1.bf16.msra.mxu0 %v6459_v7  ;;  %5752 = vmatpush1.bf16.msra.mxu1 %v6461_v8 }
 0x2be   : > { %5712 = vmatprep.subr.bf16.mxu0 %v6524_v9  ;;  %5753 = vmatprep.subr.bf16.mxu1 %v6526_v61  ;;  %v1711_v9 = vld [vmem:[%s8064_s29 + $0xed8] sm:$0xff] }
 0x2bf   : > { %5742 = vmatprep.mubr.bf16.mxu0 %v6975_v0  ;;  %5783 = vmatprep.mubr.bf16.mxu1 %v6975_v0  ;;  %v1743_v61 = vld [vmem:[%s8064_s29 + $0xfd8] sm:$0xff] }
 0x2c1   : > { %5713 = vmatpush1.bf16.msra.mxu0 %v6523_v16  ;;  %5754 = vmatpush1.bf16.msra.mxu1 %v6525_v17  ;;  %v6843_v16 = vcombine.low %v1646_v48, %v1678_v49  ;;  %v1392_v49 = vld [vmem:[%s8064_s29 + $0x4e0] sm:$0xff] }
 0x2c2   : > { %5714 = vmatprep.subr.bf16.mxu0 %v6588_v18  ;;  %5755 = vmatprep.subr.bf16.mxu1 %v6590_v19 }
 0x2c5   : > { %5715 = vmatpush1.bf16.msra.mxu0 %v6587_v23  ;;  %5756 = vmatpush1.bf16.msra.mxu1 %v6589_v24  ;;  %v6910_v23 = vcombine.high %v1711_v9, %v1743_v61  ;;  %v1264_v24 = vld [vmem:[%s8064_s29 + $0xe0] sm:$0xff] }
 0x2c6   : > { %5716 = vmatprep.subr.bf16.mxu0 %v6652_v25  ;;  %5757 = vmatprep.subr.bf16.mxu1 %v6654_v26  ;;  %v1296_v25 = vld [vmem:[%s8064_s29 + $0x1e0] sm:$0xff] }
 0x2c9   : > { %5717 = vmatpush1.bf16.msra.mxu0 %v6651_v31  ;;  %5758 = vmatpush1.bf16.msra.mxu1 %v6653_v34  ;;  %v6909_v34 = vcombine.low %v1711_v9, %v1743_v61  ;;  %v1552_v9 = vld [vmem:[%s8064_s29 + $0x9e0] sm:$0xff]  ;;  %v1521_v61 = vld [vmem:[%s8064_s29 + $0x8e8] sm:$0xff] }
 0x2ca   : > { %5718 = vmatprep.subr.bf16.mxu0 %v6716_v35  ;;  %5759 = vmatprep.subr.bf16.mxu1 %v6718_v36  ;;  %v6464_v35 = vcombine.high %v1264_v24, %v1296_v25  ;;  %v6466_v36 = vcombine.high %v1265_v28, %v1297_v29 }
 0x2cd   : > { %5719 = vmatpush1.bf16.msra.mxu0 %v6715_v43  ;;  %5760 = vmatpush1.bf16.msra.mxu1 %v6717_v45  ;;  %v1361_v43 = vld [vmem:[%s8064_s29 + $0x3e8] sm:$0xff]  ;;  %v6463_v45 = vcombine.low %v1264_v24, %v1296_v25  ;;  %v1648_v24 = vld [vmem:[%s8064_s29 + $0xce0] sm:$0xff] }
 0x2ce   : > { %5720 = vmatprep.subr.bf16.mxu0 %v6780_v46  ;;  %5761 = vmatprep.subr.bf16.mxu1 %v6782_v47  ;;  %v6465_v46 = vcombine.low %v1265_v28, %v1297_v29  ;;  %v6528_v47 = vcombine.high %v1328_v27, %v1360_v37  ;;  %v6530_v48 = vcombine.high %v1329_v42, %v1361_v43  ;;  %v1680_v25 = vld [vmem:[%s8064_s29 + $0xde0] sm:$0xff]  ;;  %v1649_v28 = vld [vmem:[%s8064_s29 + $0xce8] sm:$0xff] }
 0x2cf   : > { %v5170_v1 = vpop.f32.mrb[24].mxu0  ;;  %v5211_v7 = vpop.f32.mrb[24].mxu1  ;;  %v1681_v29 = vld [vmem:[%s8064_s29 + $0xde8] sm:$0xff] }
 0x2d0   : > { %v5171_v6 = vadd.f32 %v5170_v1, %v1863_v50  ;;  %v5172_v8 = vpop.f32.mrb[25].mxu0  ;;  %v5212_v10 = vadd.f32 %v5211_v7, %v1871_v53  ;;  %v5213_v13 = vpop.f32.mrb[25].mxu1  ;;  %v1424_v50 = vld [vmem:[%s8064_s29 + $0x5e0] sm:$0xff]  ;;  %v6527_v53 = vcombine.low %v1328_v27, %v1360_v37  ;;  %v1457_v1 = vld [vmem:[%s8064_s29 + $0x6e8] sm:$0xff]  ;;  %v6850_v37 = vcombine.high %v1649_v28, %v1681_v29 }
 0x2d1   : > { %v5173_v11 = vadd.f32 %v5172_v8, %v1867_v54  ;;  %v5174_v14 = vpop.f32.mrb[26].mxu0  ;;  %5721 = vmatpush1.bf16.msra.mxu0 %v6779_v55  ;;  %v5214_v17 = vadd.f32 %v5213_v13, %v1875_v56  ;;  %v5215_v18 = vpop.f32.mrb[26].mxu1  ;;  %5762 = vmatpush1.bf16.msra.mxu1 %v6781_v59  ;;  %v6529_v54 = vcombine.low %v1329_v42, %v1361_v43  ;;  %v1456_v59 = vld [vmem:[%s8064_s29 + $0x6e0] sm:$0xff] }
 0x2d2   : > { %v5175_v19 = vpop.f32.mrb[27].mxu0  ;;  %5722 = vmatprep.subr.bf16.mxu0 %v6844_v60  ;;  %v5216_v15 = vpop.f32.mrb[27].mxu1  ;;  %5763 = vmatprep.subr.bf16.mxu1 %v6846_v2  ;;  %v6592_v55 = vcombine.high %v1392_v49, %v1424_v50  ;;  %v6594_v56 = vcombine.high %v1393_v51, %v1425_v52  ;;  %v1488_v60 = vld [vmem:[%s8064_s29 + $0x7e0] sm:$0xff]  ;;  %v1489_v2 = vld [vmem:[%s8064_s29 + $0x7e8] sm:$0xff]  ;;  %v6591_v3 = vcombine.low %v1392_v49, %v1424_v50 }
 0x2d3   : > { %v6122_v22 = vcombine.low %v5171_v6, %v5173_v11  ;;  %v6123_v26 = vcombine.low %v5212_v10, %v5214_v17  ;;  %v6656_v6 = vcombine.high %v1456_v59, %v1488_v60  ;;  %v6658_v7 = vcombine.high %v1457_v1, %v1489_v2  ;;  %v1520_v8 = vld [vmem:[%s8064_s29 + $0x8e0] sm:$0xff]  ;;  %v1553_v10 = vld [vmem:[%s8064_s29 + $0x9e8] sm:$0xff] }
 0x2d4   : > { %v6655_v11 = vcombine.low %v1456_v59, %v1488_v60  ;;  %v6657_v13 = vcombine.low %v1457_v1, %v1489_v2  ;;  %v6720_v14 = vcombine.high %v1520_v8, %v1552_v9  ;;  %v1584_v17 = vld [vmem:[%s8064_s29 + $0xae0] sm:$0xff]  ;;  %v1585_v19 = vld [vmem:[%s8064_s29 + $0xae8] sm:$0xff] }
 0x2d5   : > { %v6130_v30 = vrot.slane %v6122_v22, %v8397_v32  ;;  %5723 = vmatpush1.bf16.msra.mxu0 %v6843_v16  ;;  %v6137_v31 = vrot.slane %v6123_v26, %v8397_v32  ;;  %5764 = vmatpush1.bf16.msra.mxu1 %v6845_v20  ;;  %v6722_v16 = vcombine.high %v1521_v61, %v1553_v10  ;;  %v1616_v18 = vld [vmem:[%s8064_s29 + $0xbe0] sm:$0xff]  ;;  %v1617_v20 = vld [vmem:[%s8064_s29 + $0xbe8] sm:$0xff] }
 0x2d6   : > { %5724 = vmatprep.subr.bf16.mxu0 %v6908_v21  ;;  %5765 = vmatprep.subr.bf16.mxu1 %v6910_v23  ;;  %v6719_v21 = vcombine.low %v1520_v8, %v1552_v9  ;;  %v6721_v22 = vcombine.low %v1521_v61, %v1553_v10  ;;  %v6784_v15 = vcombine.high %v1584_v17, %v1616_v18  ;;  %v1744_v42 = vld [vmem:[%s8064_s29 + $0xfe0] sm:$0xff]  ;;  %v1299_v8 = vld [vmem:[%s8064_s29 + $0x1f8] sm:$0xff] }
 0x2d7   : > { %v6138_v40 = vcombine.low %v6130_v30, %v6137_v31  ;;  %v6786_v23 = vcombine.high %v1585_v19, %v1617_v20  ;;  %v1879_v26 = vrot.slane %v8695_v44, %v8435_v12  ;;  %v1887_v30 = vrot.slane %v8695_v44, %v8440_v38 }
 0x2d8   : > { %v6783_v31 = vcombine.low %v1584_v17, %v1616_v18  ;;  %v1362_v17 = vld [vmem:[%s8064_s29 + $0x3f0] sm:$0xff] }
 0x2d9   : > { %5725 = vmatpush1.bf16.msra.mxu0 %v6907_v33  ;;  %6314 = vst [vmem:[%s8409_s15 + $0x30] sm:$0xff] %v6138_v40  ;;  %5766 = vmatpush1.bf16.msra.mxu1 %v6909_v34  ;;  %v1883_v33 = vrot.slane %v8695_v44, %v8443_v39  ;;  %v1891_v34 = vrot.slane %v8695_v44, %v8446_v41  ;;  %v1712_v40 = vld [vmem:[%s8064_s29 + $0xee0] sm:$0xff] }
 0x2da   : > { %5792 = vmatprep.subr.bf16.mxu0 %v6464_v35  ;;  %5833 = vmatprep.subr.bf16.mxu1 %v6466_v36  ;;  %v6785_v35 = vcombine.low %v1585_v19, %v1617_v20  ;;  %v6848_v36 = vcombine.high %v1648_v24, %v1680_v25  ;;  %v6847_v44 = vcombine.low %v1648_v24, %v1680_v25  ;;  %v1331_v19 = vld [vmem:[%s8064_s29 + $0x2f8] sm:$0xff]  ;;  %v1394_v24 = vld [vmem:[%s8064_s29 + $0x4f0] sm:$0xff] }
 0x2db   : > { %v6912_v59 = vcombine.high %v1712_v40, %v1744_v42  ;;  %v6911_v61 = vcombine.low %v1712_v40, %v1744_v42  ;;  %v1363_v20 = vld [vmem:[%s8064_s29 + $0x3f8] sm:$0xff]  ;;  %v1426_v25 = vld [vmem:[%s8064_s29 + $0x5f0] sm:$0xff] }
 0x2dc   : > { %5743 = vmatmul.mubr.bf16.vlgmr.msra.gmra.mrb[52].mxu0 %v8577_v58  ;;  %5784 = vmatmul.mubr.bf16.vlgmr.msra.gmra.mrb[52].mxu1 %v8577_v58 }
 0x2dd   : > { %5793 = vmatpush1.bf16.msra.mxu0 %v6463_v45  ;;  %5834 = vmatpush1.bf16.msra.mxu1 %v6465_v46 }
 0x2de   : > { %5794 = vmatprep.subr.bf16.mxu0 %v6528_v47  ;;  %5835 = vmatprep.subr.bf16.mxu1 %v6530_v48  ;;  %v1713_v47 = vld [vmem:[%s8064_s29 + $0xee8] sm:$0xff] }
 0x2df   : > { %5824 = vmatprep.mubr.bf16.mxu0 %v6975_v0  ;;  %5865 = vmatprep.mubr.bf16.mxu1 %v6975_v0  ;;  %v1745_v48 = vld [vmem:[%s8064_s29 + $0xfe8] sm:$0xff] }
 0x2e0   : > { %v6914_v2 = vcombine.high %v1713_v47, %v1745_v48 }
 0x2e1   : > { %5795 = vmatpush1.bf16.msra.mxu0 %v6527_v53  ;;  %5836 = vmatpush1.bf16.msra.mxu1 %v6529_v54 }
 0x2e2   : > { %5796 = vmatprep.subr.bf16.mxu0 %v6592_v55  ;;  %5837 = vmatprep.subr.bf16.mxu1 %v6594_v56  ;;  %v6849_v56 = vcombine.low %v1649_v28, %v1681_v29  ;;  %v1427_v28 = vld [vmem:[%s8064_s29 + $0x5f8] sm:$0xff] }
 0x2e5   : > { %5797 = vmatpush1.bf16.msra.mxu0 %v6591_v3  ;;  %5838 = vmatpush1.bf16.msra.mxu1 %v6593_v5  ;;  %v1266_v3 = vld [vmem:[%s8064_s29 + $0xf0] sm:$0xff] }
 0x2e6   : > { %5798 = vmatprep.subr.bf16.mxu0 %v6656_v6  ;;  %5839 = vmatprep.subr.bf16.mxu1 %v6658_v7  ;;  %v1298_v5 = vld [vmem:[%s8064_s29 + $0x1f0] sm:$0xff]  ;;  %v1267_v7 = vld [vmem:[%s8064_s29 + $0xf8] sm:$0xff] }
 0x2e9   : > { %5799 = vmatpush1.bf16.msra.mxu0 %v6655_v11  ;;  %5840 = vmatpush1.bf16.msra.mxu1 %v6657_v13  ;;  %v6913_v11 = vcombine.low %v1713_v47, %v1745_v48  ;;  %v6468_v13 = vcombine.high %v1266_v3, %v1298_v5  ;;  %v1555_v47 = vld [vmem:[%s8064_s29 + $0x9f8] sm:$0xff] }
 0x2ea   : > { %5800 = vmatprep.subr.bf16.mxu0 %v6720_v14  ;;  %5841 = vmatprep.subr.bf16.mxu1 %v6722_v16  ;;  %v6470_v14 = vcombine.high %v1267_v7, %v1299_v8  ;;  %v1330_v16 = vld [vmem:[%s8064_s29 + $0x2f0] sm:$0xff] }
 0x2eb   : > { %v6531_v29 = vcombine.low %v1330_v16, %v1362_v17 }
 0x2ed   : > { %5801 = vmatpush1.bf16.msra.mxu0 %v6719_v21  ;;  %5842 = vmatpush1.bf16.msra.mxu1 %v6721_v22  ;;  %v6467_v21 = vcombine.low %v1266_v3, %v1298_v5  ;;  %v6469_v22 = vcombine.low %v1267_v7, %v1299_v8  ;;  %v1651_v5 = vld [vmem:[%s8064_s29 + $0xcf8] sm:$0xff] }
 0x2ee   : > { %5802 = vmatprep.subr.bf16.mxu0 %v6784_v15  ;;  %5843 = vmatprep.subr.bf16.mxu1 %v6786_v23  ;;  %v6532_v15 = vcombine.high %v1330_v16, %v1362_v17  ;;  %v6534_v23 = vcombine.high %v1331_v19, %v1363_v20  ;;  %v1714_v16 = vld [vmem:[%s8064_s29 + $0xef0] sm:$0xff] }
 0x2ef   : > { %v5252_v27 = vpop.f32.mrb[28].mxu0  ;;  %v5293_v45 = vpop.f32.mrb[28].mxu1  ;;  %v1746_v17 = vld [vmem:[%s8064_s29 + $0xff0] sm:$0xff] }
 0x2f0   : > { %v5253_v43 = vadd.f32 %v5252_v27, %v1879_v26  ;;  %v5254_v46 = vpop.f32.mrb[29].mxu0  ;;  %v5294_v49 = vadd.f32 %v5293_v45, %v1887_v30  ;;  %v5295_v51 = vpop.f32.mrb[29].mxu1  ;;  %v1395_v26 = vld [vmem:[%s8064_s29 + $0x4f8] sm:$0xff]  ;;  %v6533_v30 = vcombine.low %v1331_v19, %v1363_v20  ;;  %v1554_v45 = vld [vmem:[%s8064_s29 + $0x9f0] sm:$0xff] }
 0x2f1   : > { %v5255_v50 = vadd.f32 %v5254_v46, %v1883_v33  ;;  %v5256_v52 = vpop.f32.mrb[30].mxu0  ;;  %5803 = vmatpush1.bf16.msra.mxu0 %v6783_v31  ;;  %v5296_v53 = vadd.f32 %v5295_v51, %v1891_v34  ;;  %v5297_v54 = vpop.f32.mrb[30].mxu1  ;;  %5844 = vmatpush1.bf16.msra.mxu1 %v6785_v35  ;;  %v6596_v33 = vcombine.high %v1394_v24, %v1426_v25  ;;  %v1458_v34 = vld [vmem:[%s8064_s29 + $0x6f0] sm:$0xff]  ;;  %v1491_v27 = vld [vmem:[%s8064_s29 + $0x7f8] sm:$0xff] }
 0x2f2   : > { %v5257_v55 = vpop.f32.mrb[31].mxu0  ;;  %5804 = vmatprep.subr.bf16.mxu0 %v6848_v36  ;;  %v5298_v1 = vpop.f32.mrb[31].mxu1  ;;  %5845 = vmatprep.subr.bf16.mxu1 %v6850_v37  ;;  %v6598_v31 = vcombine.high %v1395_v26, %v1427_v28  ;;  %v1490_v35 = vld [vmem:[%s8064_s29 + $0x7f0] sm:$0xff]  ;;  %v1459_v36 = vld [vmem:[%s8064_s29 + $0x6f8] sm:$0xff]  ;;  %v6597_v37 = vcombine.low %v1395_v26, %v1427_v28 }
 0x2f3   : > { %v6139_v60 = vcombine.low %v5253_v43, %v5255_v50  ;;  %v6140_v6 = vcombine.low %v5294_v49, %v5296_v53  ;;  %v6660_v40 = vcombine.high %v1458_v34, %v1490_v35  ;;  %v6662_v42 = vcombine.high %v1459_v36, %v1491_v27  ;;  %v1522_v43 = vld [vmem:[%s8064_s29 + $0x8f0] sm:$0xff]  ;;  %v1523_v46 = vld [vmem:[%s8064_s29 + $0x8f8] sm:$0xff]  ;;  %v8792_v55 = vld [vmem:[%s8359_s10 + $0x20] sm:$0xff] }
 0x2f4   : > { %v6659_v48 = vcombine.low %v1458_v34, %v1490_v35  ;;  %v6724_v49 = vcombine.high %v1522_v43, %v1554_v45  ;;  %v6726_v50 = vcombine.high %v1523_v46, %v1555_v47  ;;  %v1586_v51 = vld [vmem:[%s8064_s29 + $0xaf0] sm:$0xff]  ;;  %v1619_v53 = vld [vmem:[%s8064_s29 + $0xbf8] sm:$0xff]  ;;  %v6723_v54 = vcombine.low %v1522_v43, %v1554_v45  ;;  %v6950_v45 = vld [vmem:[%s8882_s0] sm:$0x1] }
 0x2f5   : > { %v6147_v9 = vrot.slane %v6139_v60, %v8397_v32  ;;  %5805 = vmatpush1.bf16.msra.mxu0 %v6847_v44  ;;  %v6154_v10 = vrot.slane %v6140_v6, %v8397_v32  ;;  %5846 = vmatpush1.bf16.msra.mxu1 %v6849_v56  ;;  %v1618_v52 = vld [vmem:[%s8064_s29 + $0xbf0] sm:$0xff]  ;;  %v1587_v44 = vld [vmem:[%s8064_s29 + $0xaf8] sm:$0xff]  ;;  %v6725_v56 = vcombine.low %v1523_v46, %v1555_v47 }
 0x2f6   : > { %5806 = vmatprep.subr.bf16.mxu0 %v6912_v59  ;;  %5847 = vmatprep.subr.bf16.mxu1 %v6914_v2  ;;  %v6788_v59 = vcombine.high %v1586_v51, %v1618_v52  ;;  %v6790_v60 = vcombine.high %v1587_v44, %v1619_v53  ;;  %v1650_v1 = vld [vmem:[%s8064_s29 + $0xcf0] sm:$0xff]  ;;  %v1895_v3 = vrot.slane %v8792_v55, %v8364_v57  ;;  %v1683_v6 = vld [vmem:[%s8064_s29 + $0xdf8] sm:$0xff] }
 0x2f7   : > { %v6155_v18 = vcombine.low %v6147_v9, %v6154_v10  ;;  %v1682_v2 = vld [vmem:[%s8064_s29 + $0xdf0] sm:$0xff]  ;;  %v1903_v7 = vrot.slane %v8792_v55, %v8372_v62  ;;  %v1899_v8 = vrot.slane %v8792_v55, %v8375_v63  ;;  %v6787_v9 = vcombine.low %v1586_v51, %v1618_v52 }
 0x2f8   : > { %v6789_v10 = vcombine.low %v1587_v44, %v1619_v53  ;;  %v6851_v26 = vcombine.low %v1650_v1, %v1682_v2  ;;  %v1911_v46 = vrot.slane %v8792_v55, %v8435_v12  ;;  %v1919_v47 = vrot.slane %v8792_v55, %v8440_v38 }
 0x2f9   : > { %5807 = vmatpush1.bf16.msra.mxu0 %v6911_v61  ;;  %6315 = vst [vmem:[%s8409_s15 + $0x38] sm:$0xff] %v6155_v18  ;;  %5848 = vmatpush1.bf16.msra.mxu1 %v6913_v11  ;;  %v1907_v61 = vrot.slane %v8792_v55, %v8378_v4  ;;  %v6852_v11 = vcombine.high %v1650_v1, %v1682_v2 }
 0x2fa   : > { %5874 = vmatprep.subr.bf16.mxu0 %v6468_v13  ;;  %5915 = vmatprep.subr.bf16.mxu1 %v6470_v14  ;;  %v6854_v14 = vcombine.high %v1651_v5, %v1683_v6 }
 0x2fc   : > { %5825 = vmatmul.mubr.bf16.vlgmr.msra.gmra.mrb[56].mxu0 %v8577_v58  ;;  %5866 = vmatmul.mubr.bf16.vlgmr.msra.gmra.mrb[56].mxu1 %v8577_v58  ;;  %v6595_v58 = vcombine.low %v1394_v24, %v1426_v25 }
 0x2fd   : > { %5875 = vmatpush1.bf16.msra.mxu0 %v6467_v21  ;;  %5916 = vmatpush1.bf16.msra.mxu1 %v6469_v22  ;;  %v1715_v21 = vld [vmem:[%s8064_s29 + $0xef8] sm:$0xff] }
 0x2fe   : > { %5876 = vmatprep.subr.bf16.mxu0 %v6532_v15  ;;  %5917 = vmatprep.subr.bf16.mxu1 %v6534_v23  ;;  %v1747_v22 = vld [vmem:[%s8064_s29 + $0xff8] sm:$0xff] }
 0x2ff   : > { %5906 = vmatprep.mubr.bf16.mxu0 %v6975_v0  ;;  %5947 = vmatprep.mubr.bf16.mxu1 %v6975_v0  ;;  %v6661_v0 = vcombine.low %v1459_v36, %v1491_v27  ;;  %v6918_v36 = vcombine.high %v1715_v21, %v1747_v22 }
 0x301   : > { %5877 = vmatpush1.bf16.msra.mxu0 %v6531_v29  ;;  %5918 = vmatpush1.bf16.msra.mxu1 %v6533_v30 }
 0x302   : > { %5878 = vmatprep.subr.bf16.mxu0 %v6596_v33  ;;  %5919 = vmatprep.subr.bf16.mxu1 %v6598_v31  ;;  %v6853_v33 = vcombine.low %v1651_v5, %v1683_v6  ;;  %v6916_v31 = vcombine.high %v1714_v16, %v1746_v17 }
 0x305   : > { %5879 = vmatpush1.bf16.msra.mxu0 %v6595_v58  ;;  %5920 = vmatpush1.bf16.msra.mxu1 %v6597_v37  ;;  %v6915_v37 = vcombine.low %v1714_v16, %v1746_v17 }
 0x306   : > { %5880 = vmatprep.subr.bf16.mxu0 %v6660_v40  ;;  %5921 = vmatprep.subr.bf16.mxu1 %v6662_v42  ;;  %v6917_v42 = vcombine.low %v1715_v21, %v1747_v22 }
 0x309   : > { %5881 = vmatpush1.bf16.msra.mxu0 %v6659_v48  ;;  %5922 = vmatpush1.bf16.msra.mxu1 %v6661_v0  ;;  %v1915_v48 = vrot.slane %v8792_v55, %v8443_v39  ;;  %v1923_v0 = vrot.slane %v8792_v55, %v8446_v41 }
 0x30a   : > { %5882 = vmatprep.subr.bf16.mxu0 %v6724_v49  ;;  %5923 = vmatprep.subr.bf16.mxu1 %v6726_v50 }
 0x30d   : > { %5883 = vmatpush1.bf16.msra.mxu0 %v6723_v54  ;;  %5924 = vmatpush1.bf16.msra.mxu1 %v6725_v56 }
 0x30e   : > { %5884 = vmatprep.subr.bf16.mxu0 %v6788_v59  ;;  %5925 = vmatprep.subr.bf16.mxu1 %v6790_v60 }
 0x30f   : > { %v5334_v13 = vpop.f32.mrb[32].mxu0  ;;  %v5375_v19 = vpop.f32.mrb[32].mxu1 }
 0x310   : > { %v5335_v18 = vadd.f32 %v5334_v13, %v1895_v3  ;;  %v5336_v20 = vpop.f32.mrb[33].mxu0  ;;  %v5376_v15 = vadd.f32 %v5375_v19, %v1903_v7  ;;  %v5377_v24 = vpop.f32.mrb[33].mxu1 }
 0x311   : > { %v5337_v23 = vadd.f32 %v5336_v20, %v1899_v8  ;;  %v5338_v25 = vpop.f32.mrb[34].mxu0  ;;  %5885 = vmatpush1.bf16.msra.mxu0 %v6787_v9  ;;  %v5378_v28 = vadd.f32 %v5377_v24, %v1907_v61  ;;  %v5379_v29 = vpop.f32.mrb[34].mxu1  ;;  %5926 = vmatpush1.bf16.msra.mxu1 %v6789_v10  ;;  %v1753_v8 = vld [vmem:[%s8359_s10 + $0x28] sm:$0xff] }
 0x312   : > { %v5339_v30 = vpop.f32.mrb[35].mxu0  ;;  %5886 = vmatprep.subr.bf16.mxu0 %v6852_v11  ;;  %v5380_v35 = vpop.f32.mrb[35].mxu1  ;;  %5927 = vmatprep.subr.bf16.mxu1 %v6854_v14  ;;  %v1927_v9 = vrot.slane %v1753_v8, %v8364_v57  ;;  %v1935_v61 = vrot.slane %v1753_v8, %v8372_v62  ;;  %v1931_v10 = vrot.slane %v1753_v8, %v8375_v63 }
 0x313   : > { %v6156_v34 = vcombine.low %v5335_v18, %v5337_v23  ;;  %v6157_v27 = vcombine.low %v5376_v15, %v5378_v28  ;;  %v1939_v11 = vrot.slane %v1753_v8, %v8378_v4  ;;  %v1955_v35 = vrot.slane %v1753_v8, %v8446_v41 }
 0x315   : > { %v6164_v58 = vrot.slane %v6156_v34, %v8397_v32  ;;  %5887 = vmatpush1.bf16.msra.mxu0 %v6851_v26  ;;  %v6171_v40 = vrot.slane %v6157_v27, %v8397_v32  ;;  %5928 = vmatpush1.bf16.msra.mxu1 %v6853_v33  ;;  %v1943_v33 = vrot.slane %v1753_v8, %v8435_v12 }
 0x316   : > { %5888 = vmatprep.subr.bf16.mxu0 %v6916_v31  ;;  %5929 = vmatprep.subr.bf16.mxu1 %v6918_v36  ;;  %v1951_v31 = vrot.slane %v1753_v8, %v8440_v38  ;;  %v1947_v34 = vrot.slane %v1753_v8, %v8443_v39 }
 0x317   : > { %v6172_v43 = vcombine.low %v6164_v58, %v6171_v40 }
 0x319   : > { %5889 = vmatpush1.bf16.msra.mxu0 %v6915_v37  ;;  %6316 = vst [vmem:[%s8409_s15 + $0x40] sm:$0xff] %v6172_v43  ;;  %5930 = vmatpush1.bf16.msra.mxu1 %v6917_v42 }
 0x31c   : > { %5907 = vmatmul.mubr.bf16.vlgmr.msra.gmra.mrb[60].mxu0 %v6950_v45  ;;  %5948 = vmatmul.mubr.bf16.vlgmr.msra.gmra.mrb[60].mxu1 %v6950_v45 }
 0x32f   : > { %v5416_v49 = vpop.f32.mrb[36].mxu0  ;;  %v5457_v51 = vpop.f32.mrb[36].mxu1 }
 0x330   : > { %v5417_v50 = vadd.f32 %v5416_v49, %v1911_v46  ;;  %v5418_v52 = vpop.f32.mrb[37].mxu0  ;;  %v5458_v44 = vadd.f32 %v5457_v51, %v1919_v47  ;;  %v5459_v54 = vpop.f32.mrb[37].mxu1 }
 0x331   : > { %v5419_v53 = vadd.f32 %v5418_v52, %v1915_v48  ;;  %v5420_v56 = vpop.f32.mrb[38].mxu0  ;;  %v5460_v59 = vadd.f32 %v5459_v54, %v1923_v0  ;;  %v5461_v60 = vpop.f32.mrb[38].mxu1 }
 0x332   : > { %v5421_v1 = vpop.f32.mrb[39].mxu0  ;;  %v5462_v3 = vpop.f32.mrb[39].mxu1 }
 0x333   : > { %v6173_v2 = vcombine.low %v5417_v50, %v5419_v53  ;;  %v6174_v5 = vcombine.low %v5458_v44, %v5460_v59  ;;  %v1754_v53 = vld [vmem:[%s8359_s10 + $0x30] sm:$0xff] }
 0x334   : > { %v1959_v54 = vrot.slane %v1754_v53, %v8364_v57  ;;  %v1967_v56 = vrot.slane %v1754_v53, %v8372_v62  ;;  %v1963_v59 = vrot.slane %v1754_v53, %v8375_v63  ;;  %v1971_v60 = vrot.slane %v1754_v53, %v8378_v4 }
 0x335   : > { %v6181_v6 = vrot.slane %v6173_v2, %v8397_v32  ;;  %v6188_v55 = vrot.slane %v6174_v5, %v8397_v32 }
 0x337   : > { %v6189_v7 = vcombine.low %v6181_v6, %v6188_v55 }
 0x339   : > { %6317 = vst [vmem:[%s8409_s15 + $0x48] sm:$0xff] %v6189_v7 }
 0x34f   : > { %v5498_v13 = vpop.f32.mrb[40].mxu0  ;;  %v5539_v16 = vpop.f32.mrb[40].mxu1 }
 0x350   : > { %v5499_v14 = vadd.f32 %v5498_v13, %v1927_v9  ;;  %v5500_v17 = vpop.f32.mrb[41].mxu0  ;;  %v5540_v18 = vadd.f32 %v5539_v16, %v1935_v61  ;;  %v5541_v20 = vpop.f32.mrb[41].mxu1 }
 0x351   : > { %v5501_v19 = vadd.f32 %v5500_v17, %v1931_v10  ;;  %v5502_v21 = vpop.f32.mrb[42].mxu0  ;;  %v5542_v22 = vadd.f32 %v5541_v20, %v1939_v11  ;;  %v5543_v15 = vpop.f32.mrb[42].mxu1  ;;  %v1983_v20 = vrot.slane %v1754_v53, %v8440_v38 }
 0x352   : > { %v5503_v23 = vpop.f32.mrb[43].mxu0  ;;  %v5544_v25 = vpop.f32.mrb[43].mxu1  ;;  %v1979_v21 = vrot.slane %v1754_v53, %v8443_v39 }
 0x353   : > { %v6190_v24 = vcombine.low %v5499_v14, %v5501_v19  ;;  %v6191_v26 = vcombine.low %v5540_v18, %v5542_v22  ;;  %v1975_v19 = vrot.slane %v1754_v53, %v8435_v12  ;;  %v1987_v22 = vrot.slane %v1754_v53, %v8446_v41 }
 0x355   : > { %v6198_v28 = vrot.slane %v6190_v24, %v8397_v32  ;;  %v6205_v29 = vrot.slane %v6191_v26, %v8397_v32 }
 0x357   : > { %v6206_v30 = vcombine.low %v6198_v28, %v6205_v29 }
 0x359   : > { %6318 = vst [vmem:[%s8409_s15 + $0x50] sm:$0xff] %v6206_v30 }
 0x36f   : > { %v5580_v36 = vpop.f32.mrb[44].mxu0  ;;  %v5621_v58 = vpop.f32.mrb[44].mxu1 }
 0x370   : > { %v5581_v27 = vadd.f32 %v5580_v36, %v1943_v33  ;;  %v5582_v37 = vpop.f32.mrb[45].mxu0  ;;  %v5622_v40 = vadd.f32 %v5621_v58, %v1951_v31  ;;  %v5623_v43 = vpop.f32.mrb[45].mxu1 }
 0x371   : > { %v5583_v42 = vadd.f32 %v5582_v37, %v1947_v34  ;;  %v5584_v45 = vpop.f32.mrb[46].mxu0  ;;  %v5624_v46 = vadd.f32 %v5623_v43, %v1955_v35  ;;  %v5625_v47 = vpop.f32.mrb[46].mxu1 }
 0x372   : > { %v5585_v48 = vpop.f32.mrb[47].mxu0  ;;  %v5626_v49 = vpop.f32.mrb[47].mxu1 }
 0x373   : > { %v6207_v0 = vcombine.low %v5581_v27, %v5583_v42  ;;  %v6208_v50 = vcombine.low %v5622_v40, %v5624_v46  ;;  %v1755_v42 = vld [vmem:[%s8359_s10 + $0x38] sm:$0xff] }
 0x374   : > { %v1991_v43 = vrot.slane %v1755_v42, %v8364_v57  ;;  %v1999_v45 = vrot.slane %v1755_v42, %v8372_v62  ;;  %v1995_v46 = vrot.slane %v1755_v42, %v8375_v63  ;;  %v2003_v47 = vrot.slane %v1755_v42, %v8378_v4 }
 0x375   : > { %v6215_v51 = vrot.slane %v6207_v0, %v8397_v32  ;;  %v6222_v52 = vrot.slane %v6208_v50, %v8397_v32 }
 0x377   : > { %v6223_v44 = vcombine.low %v6215_v51, %v6222_v52 }
 0x379   : > { %6319 = vst [vmem:[%s8409_s15 + $0x58] sm:$0xff] %v6223_v44 }
 0x38f   : > { %v5662_v1 = vpop.f32.mrb[48].mxu0  ;;  %v5703_v3 = vpop.f32.mrb[48].mxu1 }
 0x390   : > { %v5663_v2 = vadd.f32 %v5662_v1, %v1959_v54  ;;  %v5664_v5 = vpop.f32.mrb[49].mxu0  ;;  %v5704_v6 = vadd.f32 %v5703_v3, %v1967_v56  ;;  %v5705_v7 = vpop.f32.mrb[49].mxu1  ;;  %v2015_v3 = vrot.slane %v1755_v42, %v8440_v38 }
 0x391   : > { %v5665_v55 = vadd.f32 %v5664_v5, %v1963_v59  ;;  %v5666_v8 = vpop.f32.mrb[50].mxu0  ;;  %v5706_v9 = vadd.f32 %v5705_v7, %v1971_v60  ;;  %v5707_v61 = vpop.f32.mrb[50].mxu1  ;;  %v2011_v5 = vrot.slane %v1755_v42, %v8443_v39 }
 0x392   : > { %v5667_v10 = vpop.f32.mrb[51].mxu0  ;;  %v5708_v13 = vpop.f32.mrb[51].mxu1 }
 0x393   : > { %v6224_v11 = vcombine.low %v5663_v2, %v5665_v55  ;;  %v6225_v14 = vcombine.low %v5704_v6, %v5706_v9  ;;  %v2007_v2 = vrot.slane %v1755_v42, %v8435_v12  ;;  %v2019_v6 = vrot.slane %v1755_v42, %v8446_v41 }
 0x395   : > { %v6232_v16 = vrot.slane %v6224_v11, %v8397_v32  ;;  %v6239_v17 = vrot.slane %v6225_v14, %v8397_v32 }
 0x397   : > { %v6240_v18 = vcombine.low %v6232_v16, %v6239_v17 }
 0x399   : > { %6320 = vst [vmem:[%s8409_s15 + $0x60] sm:$0xff] %v6240_v18 }
 0x3af   : > { %v5744_v15 = vpop.f32.mrb[52].mxu0  ;;  %v5785_v24 = vpop.f32.mrb[52].mxu1 }
 0x3b0   : > { %v5745_v23 = vadd.f32 %v5744_v15, %v1975_v19  ;;  %v5746_v25 = vpop.f32.mrb[53].mxu0  ;;  %v5786_v26 = vadd.f32 %v5785_v24, %v1983_v20  ;;  %v5787_v29 = vpop.f32.mrb[53].mxu1 }
 0x3b1   : > { %v5747_v28 = vadd.f32 %v5746_v25, %v1979_v21  ;;  %v5748_v30 = vpop.f32.mrb[54].mxu0  ;;  %v5788_v33 = vadd.f32 %v5787_v29, %v1987_v22  ;;  %v5789_v31 = vpop.f32.mrb[54].mxu1 }
 0x3b2   : > { %v5749_v34 = vpop.f32.mrb[55].mxu0  ;;  %v5790_v36 = vpop.f32.mrb[55].mxu1 }
 0x3b3   : > { %v6241_v35 = vcombine.low %v5745_v23, %v5747_v28  ;;  %v6242_v27 = vcombine.low %v5786_v26, %v5788_v33 }
 0x3b5   : > { %v6249_v58 = vrot.slane %v6241_v35, %v8397_v32  ;;  %v6256_v37 = vrot.slane %v6242_v27, %v8397_v32 }
 0x3b7   : > { %v6257_v40 = vcombine.low %v6249_v58, %v6256_v37 }
 0x3b9   : > { %6321 = vst [vmem:[%s8409_s15 + $0x68] sm:$0xff] %v6257_v40 }
 0x3cf   : > { %v5826_v48 = vpop.f32.mrb[56].mxu0  ;;  %v5867_v49 = vpop.f32.mrb[56].mxu1 }
 0x3d0   : > { %v5827_v0 = vadd.f32 %v5826_v48, %v1991_v43  ;;  %v5828_v50 = vpop.f32.mrb[57].mxu0  ;;  %v5868_v51 = vadd.f32 %v5867_v49, %v1999_v45  ;;  %v5869_v44 = vpop.f32.mrb[57].mxu1 }
 0x3d1   : > { %v5829_v52 = vadd.f32 %v5828_v50, %v1995_v46  ;;  %v5830_v53 = vpop.f32.mrb[58].mxu0  ;;  %v5870_v54 = vadd.f32 %v5869_v44, %v2003_v47  ;;  %v5871_v56 = vpop.f32.mrb[58].mxu1 }
 0x3d2   : > { %v5831_v59 = vpop.f32.mrb[59].mxu0  ;;  %v5872_v57 = vpop.f32.mrb[59].mxu1 }
 0x3d3   : > { %v6258_v60 = vcombine.low %v5827_v0, %v5829_v52  ;;  %v6259_v1 = vcombine.low %v5868_v51, %v5870_v54 }
 0x3d5   : > { %v6266_v62 = vrot.slane %v6258_v60, %v8397_v32  ;;  %v6273_v63 = vrot.slane %v6259_v1, %v8397_v32 }
 0x3d7   : > { %v6274_v4 = vcombine.low %v6266_v62, %v6273_v63 }
 0x3d9   : > { %6322 = vst [vmem:[%s8409_s15 + $0x70] sm:$0xff] %v6274_v4 }
 0x3ef   : > { %v5908_v55 = vpop.f32.mrb[60].mxu0  ;;  %v5949_v8 = vpop.f32.mrb[60].mxu1 }
 0x3f0   : > { %v5909_v7 = vadd.f32 %v5908_v55, %v2007_v2  ;;  %v5910_v9 = vpop.f32.mrb[61].mxu0  ;;  %v5950_v61 = vadd.f32 %v5949_v8, %v2015_v3  ;;  %v5951_v11 = vpop.f32.mrb[61].mxu1 }
 0x3f1   : > { %v5911_v10 = vadd.f32 %v5910_v9, %v2011_v5  ;;  %v5912_v13 = vpop.f32.mrb[62].mxu0  ;;  %v5952_v14 = vadd.f32 %v5951_v11, %v2019_v6  ;;  %v5953_v16 = vpop.f32.mrb[62].mxu1 }
 0x3f2   : > { %v5913_v17 = vpop.f32.mrb[63].mxu0  ;;  %v5954_v12 = vpop.f32.mrb[63].mxu1 }
 0x3f3   : > { %v6275_v18 = vcombine.low %v5909_v7, %v5911_v10  ;;  %v6276_v19 = vcombine.low %v5950_v61, %v5952_v14 }
 0x3f5   : > { %v6283_v38 = vrot.slane %v6275_v18, %v8397_v32  ;;  %v6290_v39 = vrot.slane %v6276_v19, %v8397_v32 }
 0x3f7   : > { %v6291_v41 = vcombine.low %v6283_v38, %v6290_v39 }
 0x3f9   : > { %6323 = vst [vmem:[%s8409_s15 + $0x78] sm:$0xff] %v6291_v41 }
 0x3fa PF: > { %p10_p9 = scmp.ge.s32.totalorder %s7014_s16, 4   ;;  %s8886_s12 = smov %s6969_s13 }
 0x3fb   : > { %s8887_s13 = smov %s7023_s19  ;;  %s8888_s14 = smov %s7014_s16 }
 0x3fc   :  { %12 = sbr.rel (!%p10_p9) target bundleno = 2 (0x2), region = 93 }

// kernel: wifi_detector_forward.8
= control target key start
LH: loop header
LB: loop body
LE: loop exit
PB: predicated region body
PF: predicated region fallthrough
CT: control target
= control target key end

     0   :  { %14 = vsyncpa [#allocation4], 0  ;;  %s8408_s27 = smov 0   ;;  %s9176_s0 = inlined_call_operand.vmem [shape: bf16[2,16384], index: 0, kind: input, shape index: {}]   ;;  %s9177_s1 = inlined_call_operand.vmem [shape: bf16[16384,128], index: 1, kind: input, shape index: {}]   ;;  %s9178_s2 = inlined_call_operand.vmem [shape: f32[1,128], index: 2, kind: input, shape index: {}]   ;;  %s9179_s3 = inlined_call_operand.vmem [shape: f32[128,64], index: 3, kind: input, shape index: {}]   ;;  %s9180_s4 = inlined_call_operand.vmem [shape: f32[1,64], index: 4, kind: input, shape index: {}]   ;;  %s9181_s5 = inlined_call_operand.vmem [shape: f32[64,5], index: 5, kind: input, shape index: {}]   ;;  %s9182_s6 = inlined_call_operand.vmem [shape: f32[1,5], index: 6, kind: input, shape index: {}]   ;;  %s9183_s7 = inlined_call_operand.vmem [shape: bf16[2,128], index: 7, kind: output, shape index: {0}]   ;;  %s9184_s8 = inlined_call_operand.hbm [shape: f32[2,5], index: 8, kind: output, shape index: {1}]  }
   0x1 LB: > { %s8414_s28 = sadd.s32 4294967295, %s8355_s27   ;;  %p6433_p0 = scmp.ge.s32.totalorder %s8355_s27, 1  ;;  %s8355_s27 = sphi %s8408_s27, %s20_s27  }
   0x2   : > { %p267_p1 = scmp.lt.s32.totalorder %s8355_s27, 3 }
   0x4   : > { %p268_p2 = pnand %p6433_p0, %p267_p1 }
   0x5   : > { %s6434_s29 = sshll.u32 (!%p268_p2), %s8414_s28, 6  ;;  %s6435_s30 = sshll.u32 (!%p268_p2), %s8414_s28, 10 }
   0x6   : > { %271 = sbr.rel (%p268_p2) target bundleno = 1225 (0x4c9), region = 48  ;;  %p301_p3 = scmp.lt.s32.totalorder (!%p268_p2), %s6434_s29, 127 }
   0x7   : > { %p306_p4 = scmp.lt.s32.totalorder (!%p268_p2), %s6435_s30, 2047  ;;  %p6437_p5 = scmp.ne.s32.totalorder (!%p268_p2), %s8414_s28, 0 }
   0xd   : > { %s9186_s29 = smov (!%p301_p3, %s6434_s29), 127  ;;  %s9188_s30 = smov (!%p306_p4, %s6435_s30), 2047 }
   0xe   : > { %s8423_s11 = scalar_lea.vmem %s9176_s0, %s9186_s29  ;;  %s6436_s12 = sshll.u32 %s9188_s30, 2  ;;  %v8357_v0 = vmov (!%p6437_p5), 0.0  }
   0xf   : > { %s8428_s15 = scalar_lea.vmem %s9177_s1, %s6436_s12  ;;  %315 = sbr.rel (%p6437_p5) target bundleno = 22 (0x16), region = 52  ;;  %316 = vst [vmem:[#allocation2] sm:$0x3] (!%p6437_p5), %v8357_v0 }
  0x16 PF: > { %v7799_v1 = vld [vmem:[%s8428_s15 + $0x40] sm:$0xff]   ;;  %v7803_v5 = vld [vmem:[%s8428_s15 + $0x48] sm:$0xff]   ;;  %v7807_v9 = vld [vmem:[%s8428_s15 + $0x50] sm:$0xff]   ;;  %v1362_v29 = vlaneseq  ;;  %v8358_v37 = vmov 1966171168   ;;  %p6950_p6 = scmp.ne.s32.totalorder %s8414_s28, 1 }
  0x17   : > { %v7800_v2 = vld [vmem:[%s8428_s15 + $0xc0] sm:$0xff]   ;;  %6959 = vmatprep.subr.bf16.mxu0 %v7799_v1  ;;  %v7804_v6 = vld [vmem:[%s8428_s15 + $0xc8] sm:$0xff]   ;;  %v7808_v10 = vld [vmem:[%s8428_s15 + $0xd0] sm:$0xff]   ;;  %v1360_v38 = vunpack.c.l.s4 %v8358_v37  ;;  %vm8360_vm0 = vmmov (!%p6950_p6), 0   ;;  %vm6293_vm1 = vcmask (!%p6950_p6), 523264   ;;  %vm6367_vm2 = vcmask (!%p6950_p6), 33792  }
  0x18   : > { %v7801_v3 = vld [vmem:[%s8428_s15] sm:$0xff]   ;;  %6981 = vmatprep.subr.bf16.mxu1 %v7800_v2  ;;  %v7805_v7 = vld [vmem:[%s8428_s15 + $0x8] sm:$0xff]   ;;  %v7809_v11 = vld [vmem:[%s8428_s15 + $0x10] sm:$0xff]   ;;  %v1363_v34 = vshrl.u32 %v1362_v29, 7 }
  0x19   : > { %v7802_v4 = vld [vmem:[%s8428_s15 + $0x80] sm:$0xff]   ;;  %6960 = vmatpush3.bf16.msra.mxu0 %v7801_v3  ;;  %v7806_v8 = vld [vmem:[%s8428_s15 + $0x88] sm:$0xff]   ;;  %v7810_v12 = vld [vmem:[%s8428_s15 + $0x90] sm:$0xff]   ;;  %v1361_v41 = vunpack.c.0.s8 %v1360_v38 }
  0x1a   : > { %6982 = vmatpush3.bf16.msra.mxu1 %v7802_v4  ;;  %6961 = vmatprep.subr.bf16.mxu0 %v7803_v5  ;;  %v7811_v13 = vld [vmem:[%s8428_s15 + $0x58] sm:$0xff]   ;;  %v7815_v17 = vld [vmem:[%s8428_s15 + $0x60] sm:$0xff]   ;;  %v7819_v21 = vld [vmem:[%s8428_s15 + $0x68] sm:$0xff]  }
  0x1b   : > { %6983 = vmatprep.subr.bf16.mxu1 %v7804_v6  ;;  %v7812_v14 = vld [vmem:[%s8428_s15 + $0xd8] sm:$0xff]   ;;  %v7816_v18 = vld [vmem:[%s8428_s15 + $0xe0] sm:$0xff]   ;;  %v7820_v22 = vld [vmem:[%s8428_s15 + $0xe8] sm:$0xff]   ;;  %v8466_v42 = vsub.s32 %v1361_v41, %v1363_v34 }
  0x1c   : > { %v7813_v15 = vld [vmem:[%s8428_s15 + $0x18] sm:$0xff]   ;;  %v7817_v19 = vld [vmem:[%s8428_s15 + $0x20] sm:$0xff]   ;;  %v7821_v23 = vld [vmem:[%s8428_s15 + $0x28] sm:$0xff]  }
  0x1d   : > { %6962 = vmatpush3.bf16.msra.mxu0 %v7805_v7  ;;  %v7814_v16 = vld [vmem:[%s8428_s15 + $0x98] sm:$0xff]   ;;  %v7818_v20 = vld [vmem:[%s8428_s15 + $0xa0] sm:$0xff]   ;;  %v7822_v24 = vld [vmem:[%s8428_s15 + $0xa8] sm:$0xff]  }
  0x1e   : > { %6984 = vmatpush3.bf16.msra.mxu1 %v7806_v8  ;;  %6963 = vmatprep.subr.bf16.mxu0 %v7807_v9  ;;  %v7823_v25 = vld [vmem:[%s8428_s15 + $0x70] sm:$0xff]   ;;  %v7827_v30 = vld [vmem:[%s8428_s15 + $0x78] sm:$0xff]   ;;  %v318_v35 = vld [vmem:[%s8423_s11] sm:$0xff] }
  0x1f   : > { %6985 = vmatprep.subr.bf16.mxu1 %v7808_v10  ;;  %v7824_v26 = vld [vmem:[%s8428_s15 + $0xf0] sm:$0xff]   ;;  %v7828_v31 = vld [vmem:[%s8428_s15 + $0xf8] sm:$0xff]   ;;  %v7832_v36 = vld [vmem:[%s8428_s15 + $0x140] sm:$0xff]   ;;  %v1358_v40 = vcombine.high %v318_v35, %v318_v35  ;;  %v1365_v43 = vrot.slane %v318_v35, %v8466_v42 }
  0x20   : > { %v7825_v27 = vld [vmem:[%s8428_s15 + $0x30] sm:$0xff]   ;;  %v7829_v32 = vld [vmem:[%s8428_s15 + $0x38] sm:$0xff]   ;;  %v7833_v39 = vld [vmem:[%s8428_s15 + $0x1c0] sm:$0xff]  }
  0x21   : > { %6964 = vmatpush3.bf16.msra.mxu0 %v7809_v11  ;;  %v7826_v28 = vld [vmem:[%s8428_s15 + $0xb0] sm:$0xff]   ;;  %v7830_v33 = vld [vmem:[%s8428_s15 + $0xb8] sm:$0xff]   ;;  %v8470_v44 = vrot.slane %v1358_v40, %v8466_v42  ;;  %v1373_v45 = vcombine.high %v1365_v43, %v1365_v43  ;;  %v1381_v46 = vrot.slane %v1365_v43, %v8466_v42  ;;  %v7834_v48 = vld [vmem:[%s8428_s15 + $0x100] sm:$0xff]  }
  0x22   : > { %6986 = vmatpush3.bf16.msra.mxu1 %v7810_v12  ;;  %6965 = vmatprep.subr.bf16.mxu0 %v7811_v13  ;;  %v7835_v50 = vld [vmem:[%s8428_s15 + $0x180] sm:$0xff]   ;;  %v7836_v53 = vld [vmem:[%s8428_s15 + $0x148] sm:$0xff]   ;;  %v7840_v59 = vld [vmem:[%s8428_s15 + $0x150] sm:$0xff]  }
  0x23   : > { %6987 = vmatprep.subr.bf16.mxu1 %v7812_v14  ;;  %v1374_v47 = vcombine.high %v8470_v44, %v8470_v44  ;;  %v1395_v49 = vrot.slane %v1373_v45, %v8466_v42  ;;  %v1403_v52 = vcombine.high %v1381_v46, %v1381_v46  ;;  %v7837_v55 = vld [vmem:[%s8428_s15 + $0x1c8] sm:$0xff]   ;;  %v7841_v60 = vld [vmem:[%s8428_s15 + $0x1d0] sm:$0xff]   ;;  %v7844_v63 = vld [vmem:[%s8428_s15 + $0x158] sm:$0xff]  }
  0x24   : > { %v7838_v56 = vld [vmem:[%s8428_s15 + $0x108] sm:$0xff]   ;;  %v7842_v61 = vld [vmem:[%s8428_s15 + $0x110] sm:$0xff]   ;;  %v7845_v0 = vld [vmem:[%s8428_s15 + $0x1d8] sm:$0xff]  }
  0x25   : > { %6966 = vmatpush3.bf16.msra.mxu0 %v7813_v15  ;;  %v1402_v51 = vrot.slane %v1374_v47, %v8466_v42  ;;  %4918 = vmatprep.mubr.bf16.mxu0 %v1395_v49  ;;  %v1405_v54 = vcombine.high %v1395_v49, %v1395_v49  ;;  %v7839_v58 = vld [vmem:[%s8428_s15 + $0x188] sm:$0xff]   ;;  %v7843_v62 = vld [vmem:[%s8428_s15 + $0x190] sm:$0xff]   ;;  %v7846_v1 = vld [vmem:[%s8428_s15 + $0x118] sm:$0xff]  }
  0x26   : > { %6988 = vmatpush3.bf16.msra.mxu1 %v7814_v16  ;;  %6967 = vmatprep.subr.bf16.mxu0 %v7815_v17  ;;  %v7847_v2 = vld [vmem:[%s8428_s15 + $0x198] sm:$0xff]   ;;  %v7848_v3 = vld [vmem:[%s8428_s15 + $0x160] sm:$0xff]   ;;  %v7852_v7 = vld [vmem:[%s8428_s15 + $0x168] sm:$0xff]  }
  0x27   : > { %6989 = vmatprep.subr.bf16.mxu1 %v7816_v18  ;;  %v1406_v57 = vcombine.high %v1402_v51, %v1402_v51  ;;  %4958 = vmatprep.mubr.bf16.mxu1 %v1405_v54  ;;  %v7849_v4 = vld [vmem:[%s8428_s15 + $0x1e0] sm:$0xff]   ;;  %v7853_v8 = vld [vmem:[%s8428_s15 + $0x1e8] sm:$0xff]   ;;  %v7856_v11 = vld [vmem:[%s8428_s15 + $0x170] sm:$0xff]  }
  0x28   : > { %v7850_v5 = vld [vmem:[%s8428_s15 + $0x120] sm:$0xff]   ;;  %v7854_v9 = vld [vmem:[%s8428_s15 + $0x128] sm:$0xff]   ;;  %v7857_v12 = vld [vmem:[%s8428_s15 + $0x1f0] sm:$0xff]  }
  0x29   : > { %6968 = vmatpush3.bf16.msra.mxu0 %v7817_v19  ;;  %v7851_v6 = vld [vmem:[%s8428_s15 + $0x1a0] sm:$0xff]   ;;  %v7855_v10 = vld [vmem:[%s8428_s15 + $0x1a8] sm:$0xff]   ;;  %v7858_v13 = vld [vmem:[%s8428_s15 + $0x130] sm:$0xff]   ;;  %v1388_v19 = vrot.slane %v8470_v44, %v8466_v42 }
  0x2a   : > { %6990 = vmatpush3.bf16.msra.mxu1 %v7818_v20  ;;  %6969 = vmatprep.subr.bf16.mxu0 %v7819_v21  ;;  %v7859_v14 = vld [vmem:[%s8428_s15 + $0x1b0] sm:$0xff]   ;;  %v7860_v15 = vld [vmem:[%s8428_s15 + $0x178] sm:$0xff]   ;;  %v7864_v20 = vld [vmem:[%s8428_s15 + $0x240] sm:$0xff]  }
  0x2b   : > { %6991 = vmatprep.subr.bf16.mxu1 %v7820_v22  ;;  %v7861_v16 = vld [vmem:[%s8428_s15 + $0x1f8] sm:$0xff]   ;;  %v7865_v21 = vld [vmem:[%s8428_s15 + $0x2c0] sm:$0xff]   ;;  %v7872_v29 = vld [vmem:[%s8428_s15 + $0x250] sm:$0xff]  }
  0x2c   : > { %v7862_v17 = vld [vmem:[%s8428_s15 + $0x138] sm:$0xff]   ;;  %v7866_v22 = vld [vmem:[%s8428_s15 + $0x200] sm:$0xff]   ;;  %v7884_v41 = vld [vmem:[%s8428_s15 + $0x268] sm:$0xff]  }
  0x2d   : > { %6970 = vmatpush3.bf16.msra.mxu0 %v7821_v23  ;;  %v7863_v18 = vld [vmem:[%s8428_s15 + $0x1b8] sm:$0xff]   ;;  %v7867_v23 = vld [vmem:[%s8428_s15 + $0x280] sm:$0xff]   ;;  %v7885_v43 = vld [vmem:[%s8428_s15 + $0x2e8] sm:$0xff]  }
  0x2e   : > { %6992 = vmatpush3.bf16.msra.mxu1 %v7822_v24  ;;  %6971 = vmatprep.subr.bf16.mxu0 %v7823_v25  ;;  %v1404_v24 = vcombine.high %v1388_v19, %v1388_v19  ;;  %v7868_v25 = vld [vmem:[%s8428_s15 + $0x248] sm:$0xff]   ;;  %v7877_v34 = vld [vmem:[%s8428_s15 + $0x2d8] sm:$0xff]   ;;  %v7880_v37 = vld [vmem:[%s8428_s15 + $0x260] sm:$0xff]  }
  0x2f   : > { %6993 = vmatprep.subr.bf16.mxu1 %v7824_v26  ;;  %v7869_v26 = vld [vmem:[%s8428_s15 + $0x2c8] sm:$0xff]   ;;  %v7878_v35 = vld [vmem:[%s8428_s15 + $0x218] sm:$0xff]   ;;  %v7881_v38 = vld [vmem:[%s8428_s15 + $0x2e0] sm:$0xff]  }
  0x30   : > { %v7883_v40 = vld [vmem:[%s8428_s15 + $0x2a0] sm:$0xff]   ;;  %v7886_v44 = vld [vmem:[%s8428_s15 + $0x228] sm:$0xff]  }
  0x31   : > { %6972 = vmatpush3.bf16.msra.mxu0 %v7825_v27  ;;  %v7870_v27 = vld [vmem:[%s8428_s15 + $0x208] sm:$0xff]  }
  0x32   : > { %6994 = vmatpush3.bf16.msra.mxu1 %v7826_v28  ;;  %6973 = vmatprep.subr.bf16.mxu0 %v7827_v30  ;;  %v7871_v28 = vld [vmem:[%s8428_s15 + $0x288] sm:$0xff]   ;;  %v7873_v30 = vld [vmem:[%s8428_s15 + $0x2d0] sm:$0xff]  }
  0x33   : > { %6995 = vmatprep.subr.bf16.mxu1 %v7828_v31  ;;  %v7874_v31 = vld [vmem:[%s8428_s15 + $0x210] sm:$0xff]   ;;  %v7887_v45 = vld [vmem:[%s8428_s15 + $0x2a8] sm:$0xff]  }
  0x34   : > { %v319_v47 = vld [vmem:[%s8423_s11 + $0x8] sm:$0xff] }
  0x35   : > { %6974 = vmatpush3.bf16.msra.mxu0 %v7829_v32  ;;  %v7875_v32 = vld [vmem:[%s8428_s15 + $0x290] sm:$0xff]   ;;  %v1414_v49 = vrot.slane %v319_v47, %v8466_v42 }
  0x36   : > { %6996 = vmatpush3.bf16.msra.mxu1 %v7830_v33  ;;  %7003 = vmatprep.subr.bf16.mxu0 %v7832_v36  ;;  %v7876_v33 = vld [vmem:[%s8428_s15 + $0x258] sm:$0xff]  }
  0x37   : > { %7025 = vmatprep.subr.bf16.mxu1 %v7833_v39  ;;  %v7879_v36 = vld [vmem:[%s8428_s15 + $0x298] sm:$0xff]   ;;  %v7882_v39 = vld [vmem:[%s8428_s15 + $0x220] sm:$0xff]  }
  0x38   : > { %4919 = vmatmul.mubr.bf16.vlgmr.msra.gmra.mrb[0].mxu0 %v1381_v46  ;;  %v7888_v46 = vld [vmem:[%s8428_s15 + $0x270] sm:$0xff]  }
  0x39   : > { %7004 = vmatpush3.bf16.msra.mxu0 %v7834_v48  ;;  %4959 = vmatmul.mubr.bf16.vlgmr.msra.gmra.mrb[0].mxu1 %v1403_v52  ;;  %v7889_v48 = vld [vmem:[%s8428_s15 + $0x2f0] sm:$0xff]  }
  0x3a   : > { %7005 = vmatprep.subr.bf16.mxu0 %v7836_v53  ;;  %7026 = vmatpush3.bf16.msra.mxu1 %v7835_v50  ;;  %v1407_v50 = vcombine.high %v319_v47, %v319_v47  ;;  %v7891_v52 = vld [vmem:[%s8428_s15 + $0x2b0] sm:$0xff]   ;;  %v1422_v53 = vcombine.high %v1414_v49, %v1414_v49 }
  0x3b   : > { %4998 = vmatprep.mubr.bf16.mxu0 %v1402_v51  ;;  %7027 = vmatprep.subr.bf16.mxu1 %v7837_v55  ;;  %v7890_v51 = vld [vmem:[%s8428_s15 + $0x230] sm:$0xff]   ;;  %v7892_v55 = vld [vmem:[%s8428_s15 + $0x278] sm:$0xff]  }
  0x3c   : > { %5038 = vmatprep.mubr.bf16.mxu1 %v1406_v57  ;;  %v8540_v54 = vrot.slane %v1407_v50, %v8466_v42  ;;  %v1444_v57 = vrot.slane %v1422_v53, %v8466_v42  ;;  %v7939_v47 = vld [vmem:[%s8428_s15 + $0x410] sm:$0xff]   ;;  %v7942_v50 = vld [vmem:[%s8428_s15 + $0x4d8] sm:$0xff]   ;;  %v7945_v53 = vld [vmem:[%s8428_s15 + $0x460] sm:$0xff]  }
  0x3d   : > { %7006 = vmatpush3.bf16.msra.mxu0 %v7838_v56  ;;  %v7893_v56 = vld [vmem:[%s8428_s15 + $0x2f8] sm:$0xff]  }
  0x3e   : > { %7007 = vmatprep.subr.bf16.mxu0 %v7840_v59  ;;  %7028 = vmatpush3.bf16.msra.mxu1 %v7839_v58  ;;  %v1423_v58 = vcombine.high %v8540_v54, %v8540_v54  ;;  %v7894_v59 = vld [vmem:[%s8428_s15 + $0x238] sm:$0xff]  }
  0x3f   : > { %7029 = vmatprep.subr.bf16.mxu1 %v7841_v60  ;;  %v7895_v60 = vld [vmem:[%s8428_s15 + $0x2b8] sm:$0xff]  }
  0x41   : > { %7008 = vmatpush3.bf16.msra.mxu0 %v7842_v61  ;;  %v1454_v61 = vcombine.high %v1444_v57, %v1444_v57 }
  0x42   : > { %7009 = vmatprep.subr.bf16.mxu0 %v7844_v63  ;;  %7030 = vmatpush3.bf16.msra.mxu1 %v7843_v62  ;;  %v1430_v62 = vrot.slane %v1414_v49, %v8466_v42  ;;  %v7896_v63 = vld [vmem:[%s8428_s15 + $0x340] sm:$0xff]   ;;  %v7941_v49 = vld [vmem:[%s8428_s15 + $0x458] sm:$0xff]  }
  0x43   : > { %7031 = vmatprep.subr.bf16.mxu1 %v7845_v0  ;;  %v7897_v0 = vld [vmem:[%s8428_s15 + $0x3c0] sm:$0xff]  }
  0x45   : > { %7010 = vmatpush3.bf16.msra.mxu0 %v7846_v1  ;;  %v1451_v1 = vrot.slane %v1423_v58, %v8466_v42  ;;  %v7950_v58 = vld [vmem:[%s8428_s15 + $0x4e8] sm:$0xff]  }
  0x46   : > { %7011 = vmatprep.subr.bf16.mxu0 %v7848_v3  ;;  %7032 = vmatpush3.bf16.msra.mxu1 %v7847_v2  ;;  %v7898_v2 = vld [vmem:[%s8428_s15 + $0x300] sm:$0xff]  }
  0x47   : > { %7033 = vmatprep.subr.bf16.mxu1 %v7849_v4  ;;  %v7899_v3 = vld [vmem:[%s8428_s15 + $0x380] sm:$0xff]   ;;  %v1452_v4 = vcombine.high %v1430_v62, %v1430_v62 }
  0x49   : > { %7012 = vmatpush3.bf16.msra.mxu0 %v7850_v5  ;;  %v7900_v5 = vld [vmem:[%s8428_s15 + $0x348] sm:$0xff]  }
  0x4a   : > { %7013 = vmatprep.subr.bf16.mxu0 %v7852_v7  ;;  %7034 = vmatpush3.bf16.msra.mxu1 %v7851_v6  ;;  %v7901_v6 = vld [vmem:[%s8428_s15 + $0x3c8] sm:$0xff]   ;;  %v1455_v7 = vcombine.high %v1451_v1, %v1451_v1 }
  0x4b   : > { %7035 = vmatprep.subr.bf16.mxu1 %v7853_v8  ;;  %v7902_v8 = vld [vmem:[%s8428_s15 + $0x308] sm:$0xff]  }
  0x4d   : > { %7014 = vmatpush3.bf16.msra.mxu0 %v7854_v9  ;;  %v7903_v9 = vld [vmem:[%s8428_s15 + $0x388] sm:$0xff]  }
  0x4e   : > { %7015 = vmatprep.subr.bf16.mxu0 %v7856_v11  ;;  %7036 = vmatpush3.bf16.msra.mxu1 %v7855_v10  ;;  %v7904_v10 = vld [vmem:[%s8428_s15 + $0x350] sm:$0xff]  }
  0x4f   : > { %7037 = vmatprep.subr.bf16.mxu1 %v7857_v12  ;;  %v7905_v11 = vld [vmem:[%s8428_s15 + $0x3d0] sm:$0xff]  }
  0x50   : > { %v7906_v12 = vld [vmem:[%s8428_s15 + $0x310] sm:$0xff]  }
  0x51   : > { %7016 = vmatpush3.bf16.msra.mxu0 %v7858_v13  ;;  %v7907_v13 = vld [vmem:[%s8428_s15 + $0x390] sm:$0xff]  }
  0x52   : > { %7017 = vmatprep.subr.bf16.mxu0 %v7860_v15  ;;  %7038 = vmatpush3.bf16.msra.mxu1 %v7859_v14  ;;  %v7908_v14 = vld [vmem:[%s8428_s15 + $0x358] sm:$0xff]  }
  0x53   : > { %7039 = vmatprep.subr.bf16.mxu1 %v7861_v16  ;;  %v7909_v15 = vld [vmem:[%s8428_s15 + $0x3d8] sm:$0xff]  }
  0x54   : > { %v7910_v16 = vld [vmem:[%s8428_s15 + $0x318] sm:$0xff]  }
  0x55   : > { %7018 = vmatpush3.bf16.msra.mxu0 %v7862_v17  ;;  %v7911_v17 = vld [vmem:[%s8428_s15 + $0x398] sm:$0xff]  }
  0x56   : > { %7047 = vmatprep.subr.bf16.mxu0 %v7864_v20  ;;  %7040 = vmatpush3.bf16.msra.mxu1 %v7863_v18  ;;  %v7912_v18 = vld [vmem:[%s8428_s15 + $0x360] sm:$0xff]  }
  0x57   : > { %7069 = vmatprep.subr.bf16.mxu1 %v7865_v21  ;;  %v7914_v20 = vld [vmem:[%s8428_s15 + $0x320] sm:$0xff]  }
  0x58   : > { %4999 = vmatmul.mubr.bf16.vlgmr.msra.gmra.mrb[4].mxu0 %v1388_v19  ;;  %v7913_v19 = vld [vmem:[%s8428_s15 + $0x3e0] sm:$0xff]  }
  0x59   : > { %7048 = vmatpush3.bf16.msra.mxu0 %v7866_v22  ;;  %5039 = vmatmul.mubr.bf16.vlgmr.msra.gmra.mrb[4].mxu1 %v1404_v24  ;;  %v7915_v21 = vld [vmem:[%s8428_s15 + $0x3a0] sm:$0xff]   ;;  %v7916_v22 = vld [vmem:[%s8428_s15 + $0x368] sm:$0xff]  }
  0x5a   : > { %7049 = vmatprep.subr.bf16.mxu0 %v7868_v25  ;;  %7070 = vmatpush3.bf16.msra.mxu1 %v7867_v23  ;;  %v7917_v23 = vld [vmem:[%s8428_s15 + $0x3e8] sm:$0xff]  }
  0x5b   : > { %7071 = vmatprep.subr.bf16.mxu1 %v7869_v26  ;;  %5078 = vmatprep.mubr.bf16.mxu0 %v1444_v57  ;;  %v7918_v24 = vld [vmem:[%s8428_s15 + $0x328] sm:$0xff]   ;;  %v7920_v26 = vld [vmem:[%s8428_s15 + $0x370] sm:$0xff]  }
  0x5c   : > { %5118 = vmatprep.mubr.bf16.mxu1 %v1454_v61  ;;  %v7919_v25 = vld [vmem:[%s8428_s15 + $0x3a8] sm:$0xff]   ;;  %v7953_v61 = vld [vmem:[%s8428_s15 + $0x470] sm:$0xff]  }
  0x5d   : > { %7050 = vmatpush3.bf16.msra.mxu0 %v7870_v27  ;;  %v7921_v27 = vld [vmem:[%s8428_s15 + $0x3f0] sm:$0xff]   ;;  %v7949_v57 = vld [vmem:[%s8428_s15 + $0x468] sm:$0xff]  }
  0x5e   : > { %7051 = vmatprep.subr.bf16.mxu0 %v7872_v29  ;;  %7072 = vmatpush3.bf16.msra.mxu1 %v7871_v28  ;;  %v7922_v28 = vld [vmem:[%s8428_s15 + $0x330] sm:$0xff]  }
  0x5f   : > { %7073 = vmatprep.subr.bf16.mxu1 %v7873_v30  ;;  %v7923_v29 = vld [vmem:[%s8428_s15 + $0x3b0] sm:$0xff]   ;;  %v7924_v30 = vld [vmem:[%s8428_s15 + $0x378] sm:$0xff]  }
  0x61   : > { %7052 = vmatpush3.bf16.msra.mxu0 %v7874_v31  ;;  %v7925_v31 = vld [vmem:[%s8428_s15 + $0x3f8] sm:$0xff]  }
  0x62   : > { %7053 = vmatprep.subr.bf16.mxu0 %v7876_v33  ;;  %7074 = vmatpush3.bf16.msra.mxu1 %v7875_v32  ;;  %v7926_v32 = vld [vmem:[%s8428_s15 + $0x338] sm:$0xff]  }
  0x63   : > { %7075 = vmatprep.subr.bf16.mxu1 %v7877_v34  ;;  %v7927_v33 = vld [vmem:[%s8428_s15 + $0x3b8] sm:$0xff]   ;;  %v1437_v34 = vrot.slane %v8540_v54, %v8466_v42  ;;  %v7946_v54 = vld [vmem:[%s8428_s15 + $0x4e0] sm:$0xff]  }
  0x65   : > { %7054 = vmatpush3.bf16.msra.mxu0 %v7878_v35  ;;  %v7929_v35 = vld [vmem:[%s8428_s15 + $0x440] sm:$0xff]  }
  0x66   : > { %7055 = vmatprep.subr.bf16.mxu0 %v7880_v37  ;;  %7076 = vmatpush3.bf16.msra.mxu1 %v7879_v36  ;;  %v7930_v36 = vld [vmem:[%s8428_s15 + $0x4c0] sm:$0xff]  }
  0x67   : > { %7077 = vmatprep.subr.bf16.mxu1 %v7881_v38  ;;  %v7931_v37 = vld [vmem:[%s8428_s15 + $0x400] sm:$0xff]  }
  0x68   : > { %v7932_v38 = vld [vmem:[%s8428_s15 + $0x480] sm:$0xff]  }
  0x69   : > { %7056 = vmatpush3.bf16.msra.mxu0 %v7882_v39  ;;  %v1453_v39 = vcombine.high %v1437_v34, %v1437_v34 }
  0x6a   : > { %7057 = vmatprep.subr.bf16.mxu0 %v7884_v41  ;;  %7078 = vmatpush3.bf16.msra.mxu1 %v7883_v40  ;;  %v7933_v40 = vld [vmem:[%s8428_s15 + $0x448] sm:$0xff]  }
  0x6b   : > { %7079 = vmatprep.subr.bf16.mxu1 %v7885_v43  ;;  %v7934_v41 = vld [vmem:[%s8428_s15 + $0x4c8] sm:$0xff]  }
  0x6c   : > { %v7935_v43 = vld [vmem:[%s8428_s15 + $0x408] sm:$0xff]  }
  0x6d   : > { %7058 = vmatpush3.bf16.msra.mxu0 %v7886_v44  ;;  %v7936_v44 = vld [vmem:[%s8428_s15 + $0x488] sm:$0xff]  }
  0x6e   : > { %7059 = vmatprep.subr.bf16.mxu0 %v7888_v46  ;;  %7080 = vmatpush3.bf16.msra.mxu1 %v7887_v45  ;;  %v7937_v45 = vld [vmem:[%s8428_s15 + $0x450] sm:$0xff]  }
  0x6f   : > { %7081 = vmatprep.subr.bf16.mxu1 %v7889_v48  ;;  %v7938_v46 = vld [vmem:[%s8428_s15 + $0x4d0] sm:$0xff]  }
  0x70   : > { %v7940_v48 = vld [vmem:[%s8428_s15 + $0x490] sm:$0xff]  }
  0x71   : > { %7060 = vmatpush3.bf16.msra.mxu0 %v7890_v51  ;;  %v7943_v51 = vld [vmem:[%s8428_s15 + $0x418] sm:$0xff]  }
  0x72   : > { %7061 = vmatprep.subr.bf16.mxu0 %v7892_v55  ;;  %7082 = vmatpush3.bf16.msra.mxu1 %v7891_v52  ;;  %v7944_v52 = vld [vmem:[%s8428_s15 + $0x498] sm:$0xff]   ;;  %v7947_v55 = vld [vmem:[%s8428_s15 + $0x420] sm:$0xff]  }
  0x73   : > { %7083 = vmatprep.subr.bf16.mxu1 %v7893_v56  ;;  %v7948_v56 = vld [vmem:[%s8428_s15 + $0x4a0] sm:$0xff]  }
  0x75   : > { %7062 = vmatpush3.bf16.msra.mxu0 %v7894_v59  ;;  %v7951_v59 = vld [vmem:[%s8428_s15 + $0x428] sm:$0xff]  }
  0x76   : > { %7091 = vmatprep.subr.bf16.mxu0 %v7896_v63  ;;  %7084 = vmatpush3.bf16.msra.mxu1 %v7895_v60  ;;  %v7952_v60 = vld [vmem:[%s8428_s15 + $0x4a8] sm:$0xff]   ;;  %v7954_v63 = vld [vmem:[%s8428_s15 + $0x4f0] sm:$0xff]  }
  0x77   : > { %7113 = vmatprep.subr.bf16.mxu1 %v7897_v0 }
  0x78   : > { %5079 = vmatmul.mubr.bf16.vlgmr.msra.gmra.mrb[8].mxu0 %v1430_v62  ;;  %v320_v62 = vld [vmem:[%s8423_s11 + $0x10] sm:$0xff] }
  0x79   : > { %7092 = vmatpush3.bf16.msra.mxu0 %v7898_v2  ;;  %5158 = vmatprep.mubr.bf16.mxu0 %v1451_v1  ;;  %v1463_v0 = vrot.slane %v320_v62, %v8466_v42  ;;  %v1456_v1 = vcombine.high %v320_v62, %v320_v62  ;;  %v7955_v2 = vld [vmem:[%s8428_s15 + $0x430] sm:$0xff]  }
  0x7a   : > { %5119 = vmatmul.mubr.bf16.vlgmr.msra.gmra.mrb[8].mxu1 %v1452_v4  ;;  %7093 = vmatprep.subr.bf16.mxu0 %v7900_v5  ;;  %v8004_v62 = vld [vmem:[%s8428_s15 + $0x610] sm:$0xff]  }
  0x7b   : > { %7114 = vmatpush3.bf16.msra.mxu1 %v7899_v3  ;;  %5198 = vmatprep.mubr.bf16.mxu1 %v1455_v7  ;;  %v7956_v3 = vld [vmem:[%s8428_s15 + $0x4b0] sm:$0xff]   ;;  %v1471_v4 = vcombine.high %v1463_v0, %v1463_v0  ;;  %v8616_v5 = vrot.slane %v1456_v1, %v8466_v42  ;;  %v7958_v7 = vld [vmem:[%s8428_s15 + $0x4f8] sm:$0xff]  }
  0x7c   : > { %7115 = vmatprep.subr.bf16.mxu1 %v7901_v6  ;;  %v7957_v6 = vld [vmem:[%s8428_s15 + $0x478] sm:$0xff]  }
  0x7d   : > { %7094 = vmatpush3.bf16.msra.mxu0 %v7902_v8  ;;  %v1493_v8 = vrot.slane %v1471_v4, %v8466_v42  ;;  %v8007_v1 = vld [vmem:[%s8428_s15 + $0x6d8] sm:$0xff]   ;;  %v8010_v4 = vld [vmem:[%s8428_s15 + $0x660] sm:$0xff]  }
  0x7e   : > { %7095 = vmatprep.subr.bf16.mxu0 %v7904_v10  ;;  %v7959_v10 = vld [vmem:[%s8428_s15 + $0x438] sm:$0xff]  }
  0x7f   : > { %7116 = vmatpush3.bf16.msra.mxu1 %v7903_v9  ;;  %v1472_v9 = vcombine.high %v8616_v5, %v8616_v5 }
  0x80   : > { %7117 = vmatprep.subr.bf16.mxu1 %v7905_v11  ;;  %v7960_v11 = vld [vmem:[%s8428_s15 + $0x4b8] sm:$0xff]  }
  0x81   : > { %7096 = vmatpush3.bf16.msra.mxu0 %v7906_v12  ;;  %v1503_v12 = vcombine.high %v1493_v8, %v1493_v8 }
  0x82   : > { %7097 = vmatprep.subr.bf16.mxu0 %v7908_v14  ;;  %v7961_v14 = vld [vmem:[%s8428_s15 + $0x540] sm:$0xff]  }
  0x83   : > { %7118 = vmatpush3.bf16.msra.mxu1 %v7907_v13  ;;  %v1479_v13 = vrot.slane %v1463_v0, %v8466_v42  ;;  %v8006_v0 = vld [vmem:[%s8428_s15 + $0x658] sm:$0xff]  }
  0x84   : > { %7119 = vmatprep.subr.bf16.mxu1 %v7909_v15  ;;  %v7962_v15 = vld [vmem:[%s8428_s15 + $0x5c0] sm:$0xff]  }
  0x85   : > { %7098 = vmatpush3.bf16.msra.mxu0 %v7910_v16  ;;  %v1500_v16 = vrot.slane %v1472_v9, %v8466_v42  ;;  %v8015_v9 = vld [vmem:[%s8428_s15 + $0x6e8] sm:$0xff]  }
  0x86   : > { %7099 = vmatprep.subr.bf16.mxu0 %v7912_v18  ;;  %v7964_v18 = vld [vmem:[%s8428_s15 + $0x580] sm:$0xff]  }
  0x87   : > { %7120 = vmatpush3.bf16.msra.mxu1 %v7911_v17  ;;  %v7963_v17 = vld [vmem:[%s8428_s15 + $0x500] sm:$0xff]  }
  0x88   : > { %7121 = vmatprep.subr.bf16.mxu1 %v7913_v19  ;;  %v1501_v19 = vcombine.high %v1479_v13, %v1479_v13 }
  0x89   : > { %7100 = vmatpush3.bf16.msra.mxu0 %v7914_v20  ;;  %v7965_v20 = vld [vmem:[%s8428_s15 + $0x548] sm:$0xff]  }
  0x8a   : > { %7101 = vmatprep.subr.bf16.mxu0 %v7916_v22  ;;  %v1504_v22 = vcombine.high %v1500_v16, %v1500_v16 }
  0x8b   : > { %7122 = vmatpush3.bf16.msra.mxu1 %v7915_v21  ;;  %v7966_v21 = vld [vmem:[%s8428_s15 + $0x5c8] sm:$0xff]  }
  0x8c   : > { %7123 = vmatprep.subr.bf16.mxu1 %v7917_v23  ;;  %v7967_v23 = vld [vmem:[%s8428_s15 + $0x508] sm:$0xff]  }
  0x8d   : > { %7102 = vmatpush3.bf16.msra.mxu0 %v7918_v24  ;;  %v7968_v24 = vld [vmem:[%s8428_s15 + $0x588] sm:$0xff]  }
  0x8e   : > { %7103 = vmatprep.subr.bf16.mxu0 %v7920_v26  ;;  %v7970_v26 = vld [vmem:[%s8428_s15 + $0x5d0] sm:$0xff]  }
  0x8f   : > { %7124 = vmatpush3.bf16.msra.mxu1 %v7919_v25  ;;  %v7969_v25 = vld [vmem:[%s8428_s15 + $0x550] sm:$0xff]  }
  0x90   : > { %7125 = vmatprep.subr.bf16.mxu1 %v7921_v27  ;;  %v7971_v27 = vld [vmem:[%s8428_s15 + $0x510] sm:$0xff]  }
  0x91   : > { %7104 = vmatpush3.bf16.msra.mxu0 %v7922_v28  ;;  %v7972_v28 = vld [vmem:[%s8428_s15 + $0x590] sm:$0xff]  }
  0x92   : > { %7105 = vmatprep.subr.bf16.mxu0 %v7924_v30  ;;  %v7974_v30 = vld [vmem:[%s8428_s15 + $0x5d8] sm:$0xff]  }
  0x93   : > { %7126 = vmatpush3.bf16.msra.mxu1 %v7923_v29  ;;  %v7973_v29 = vld [vmem:[%s8428_s15 + $0x558] sm:$0xff]  }
  0x94   : > { %7127 = vmatprep.subr.bf16.mxu1 %v7925_v31  ;;  %v7975_v31 = vld [vmem:[%s8428_s15 + $0x518] sm:$0xff]  }
  0x95   : > { %7106 = vmatpush3.bf16.msra.mxu0 %v7926_v32  ;;  %v7976_v32 = vld [vmem:[%s8428_s15 + $0x598] sm:$0xff]  }
  0x96   : > { %7135 = vmatprep.subr.bf16.mxu0 %v7929_v35  ;;  %v7979_v35 = vld [vmem:[%s8428_s15 + $0x520] sm:$0xff]  }
  0x97   : > { %7128 = vmatpush3.bf16.msra.mxu1 %v7927_v33  ;;  %v7977_v33 = vld [vmem:[%s8428_s15 + $0x560] sm:$0xff]  }
  0x98   : > { %5159 = vmatmul.mubr.bf16.vlgmr.msra.gmra.mrb[12].mxu0 %v1437_v34  ;;  %7157 = vmatprep.subr.bf16.mxu1 %v7930_v36  ;;  %v7978_v34 = vld [vmem:[%s8428_s15 + $0x5e0] sm:$0xff]  }
  0x99   : > { %7136 = vmatpush3.bf16.msra.mxu0 %v7931_v37  ;;  %5238 = vmatprep.mubr.bf16.mxu0 %v1493_v8  ;;  %v7980_v36 = vld [vmem:[%s8428_s15 + $0x5a0] sm:$0xff]   ;;  %v7981_v37 = vld [vmem:[%s8428_s15 + $0x568] sm:$0xff]  }
  0x9a   : > { %5199 = vmatmul.mubr.bf16.vlgmr.msra.gmra.mrb[12].mxu1 %v1453_v39  ;;  %7137 = vmatprep.subr.bf16.mxu0 %v7933_v40  ;;  %v7983_v39 = vld [vmem:[%s8428_s15 + $0x528] sm:$0xff]  }
  0x9b   : > { %7158 = vmatpush3.bf16.msra.mxu1 %v7932_v38  ;;  %5278 = vmatprep.mubr.bf16.mxu1 %v1503_v12  ;;  %v7982_v38 = vld [vmem:[%s8428_s15 + $0x5e8] sm:$0xff]   ;;  %v8018_v12 = vld [vmem:[%s8428_s15 + $0x670] sm:$0xff]  }
  0x9c   : > { %7159 = vmatprep.subr.bf16.mxu1 %v7934_v41  ;;  %v7984_v40 = vld [vmem:[%s8428_s15 + $0x5a8] sm:$0xff]   ;;  %v7985_v41 = vld [vmem:[%s8428_s15 + $0x570] sm:$0xff]  }
  0x9d   : > { %7138 = vmatpush3.bf16.msra.mxu0 %v7935_v43  ;;  %v7986_v43 = vld [vmem:[%s8428_s15 + $0x5f0] sm:$0xff]   ;;  %v8014_v8 = vld [vmem:[%s8428_s15 + $0x668] sm:$0xff]  }
  0x9e   : > { %7139 = vmatprep.subr.bf16.mxu0 %v7937_v45  ;;  %v7988_v45 = vld [vmem:[%s8428_s15 + $0x5b0] sm:$0xff]  }
  0x9f   : > { %7160 = vmatpush3.bf16.msra.mxu1 %v7936_v44  ;;  %v7987_v44 = vld [vmem:[%s8428_s15 + $0x530] sm:$0xff]  }
  0xa0   : > { %7161 = vmatprep.subr.bf16.mxu1 %v7938_v46  ;;  %v7989_v46 = vld [vmem:[%s8428_s15 + $0x578] sm:$0xff]  }
  0xa1   : > { %7140 = vmatpush3.bf16.msra.mxu0 %v7939_v47  ;;  %v7990_v47 = vld [vmem:[%s8428_s15 + $0x5f8] sm:$0xff]  }
  0xa2   : > { %7141 = vmatprep.subr.bf16.mxu0 %v7941_v49  ;;  %v7992_v49 = vld [vmem:[%s8428_s15 + $0x5b8] sm:$0xff]  }
  0xa3   : > { %7162 = vmatpush3.bf16.msra.mxu1 %v7940_v48  ;;  %v7991_v48 = vld [vmem:[%s8428_s15 + $0x538] sm:$0xff]  }
  0xa4   : > { %7163 = vmatprep.subr.bf16.mxu1 %v7942_v50  ;;  %v1486_v50 = vrot.slane %v8616_v5, %v8466_v42  ;;  %v8011_v5 = vld [vmem:[%s8428_s15 + $0x6e0] sm:$0xff]  }
  0xa5   : > { %7142 = vmatpush3.bf16.msra.mxu0 %v7943_v51  ;;  %v7994_v51 = vld [vmem:[%s8428_s15 + $0x640] sm:$0xff]  }
  0xa6   : > { %7143 = vmatprep.subr.bf16.mxu0 %v7945_v53  ;;  %v7996_v53 = vld [vmem:[%s8428_s15 + $0x600] sm:$0xff]  }
  0xa7   : > { %7164 = vmatpush3.bf16.msra.mxu1 %v7944_v52  ;;  %v7995_v52 = vld [vmem:[%s8428_s15 + $0x6c0] sm:$0xff]  }
  0xa8   : > { %7165 = vmatprep.subr.bf16.mxu1 %v7946_v54  ;;  %v7997_v54 = vld [vmem:[%s8428_s15 + $0x680] sm:$0xff]  }
  0xa9   : > { %7144 = vmatpush3.bf16.msra.mxu0 %v7947_v55  ;;  %v1502_v55 = vcombine.high %v1486_v50, %v1486_v50 }
  0xaa   : > { %7145 = vmatprep.subr.bf16.mxu0 %v7949_v57  ;;  %v7999_v57 = vld [vmem:[%s8428_s15 + $0x6c8] sm:$0xff]  }
  0xab   : > { %7166 = vmatpush3.bf16.msra.mxu1 %v7948_v56  ;;  %v7998_v56 = vld [vmem:[%s8428_s15 + $0x648] sm:$0xff]  }
  0xac   : > { %7167 = vmatprep.subr.bf16.mxu1 %v7950_v58  ;;  %v8000_v58 = vld [vmem:[%s8428_s15 + $0x608] sm:$0xff]  }
  0xad   : > { %7146 = vmatpush3.bf16.msra.mxu0 %v7951_v59  ;;  %v8001_v59 = vld [vmem:[%s8428_s15 + $0x688] sm:$0xff]  }
  0xae   : > { %7147 = vmatprep.subr.bf16.mxu0 %v7953_v61  ;;  %v8003_v61 = vld [vmem:[%s8428_s15 + $0x6d0] sm:$0xff]  }
  0xaf   : > { %7168 = vmatpush3.bf16.msra.mxu1 %v7952_v60  ;;  %v8002_v60 = vld [vmem:[%s8428_s15 + $0x650] sm:$0xff]  }
  0xb0   : > { %7169 = vmatprep.subr.bf16.mxu1 %v7954_v63  ;;  %v8005_v63 = vld [vmem:[%s8428_s15 + $0x690] sm:$0xff]  }
  0xb1   : > { %7148 = vmatpush3.bf16.msra.mxu0 %v7955_v2  ;;  %v8008_v2 = vld [vmem:[%s8428_s15 + $0x618] sm:$0xff]  }
  0xb2   : > { %7149 = vmatprep.subr.bf16.mxu0 %v7957_v6  ;;  %v8012_v6 = vld [vmem:[%s8428_s15 + $0x620] sm:$0xff]  }
  0xb3   : > { %7170 = vmatpush3.bf16.msra.mxu1 %v7956_v3  ;;  %v8009_v3 = vld [vmem:[%s8428_s15 + $0x698] sm:$0xff]  }
  0xb4   : > { %7171 = vmatprep.subr.bf16.mxu1 %v7958_v7  ;;  %v8013_v7 = vld [vmem:[%s8428_s15 + $0x6a0] sm:$0xff]  }
  0xb5   : > { %7150 = vmatpush3.bf16.msra.mxu0 %v7959_v10  ;;  %v8016_v10 = vld [vmem:[%s8428_s15 + $0x628] sm:$0xff]  }
  0xb6   : > { %7179 = vmatprep.subr.bf16.mxu0 %v7961_v14  ;;  %v321_v14 = vld [vmem:[%s8423_s11 + $0x18] sm:$0xff] }
  0xb7   : > { %7172 = vmatpush3.bf16.msra.mxu1 %v7960_v11  ;;  %v8017_v11 = vld [vmem:[%s8428_s15 + $0x6a8] sm:$0xff]  }
  0xb8   : > { %5239 = vmatmul.mubr.bf16.vlgmr.msra.gmra.mrb[16].mxu0 %v1479_v13  ;;  %7201 = vmatprep.subr.bf16.mxu1 %v7962_v15  ;;  %v8019_v13 = vld [vmem:[%s8428_s15 + $0x6f0] sm:$0xff]  }
  0xb9   : > { %7180 = vmatpush3.bf16.msra.mxu0 %v7963_v17  ;;  %5318 = vmatprep.mubr.bf16.mxu0 %v1500_v16  ;;  %v8020_v15 = vld [vmem:[%s8428_s15 + $0x630] sm:$0xff]   ;;  %v1512_v16 = vrot.slane %v321_v14, %v8466_v42  ;;  %v1505_v17 = vcombine.high %v321_v14, %v321_v14  ;;  %v8060_v14 = vld [vmem:[%s8428_s15 + $0x8c0] sm:$0xff]  }
  0xba   : > { %5279 = vmatmul.mubr.bf16.vlgmr.msra.gmra.mrb[16].mxu1 %v1501_v19  ;;  %7181 = vmatprep.subr.bf16.mxu0 %v7965_v20  ;;  %v8022_v19 = vld [vmem:[%s8428_s15 + $0x678] sm:$0xff]  }
  0xbb   : > { %7202 = vmatpush3.bf16.msra.mxu1 %v7964_v18  ;;  %5358 = vmatprep.mubr.bf16.mxu1 %v1504_v22  ;;  %v8021_v18 = vld [vmem:[%s8428_s15 + $0x6b0] sm:$0xff]   ;;  %v1520_v20 = vcombine.high %v1512_v16, %v1512_v16  ;;  %v8023_v22 = vld [vmem:[%s8428_s15 + $0x6f8] sm:$0xff]  }
  0xbc   : > { %7203 = vmatprep.subr.bf16.mxu1 %v7966_v21  ;;  %v8693_v21 = vrot.slane %v1505_v17, %v8466_v42 }
  0xbd   : > { %7182 = vmatpush3.bf16.msra.mxu0 %v7967_v23  ;;  %v8024_v23 = vld [vmem:[%s8428_s15 + $0x638] sm:$0xff]  }
  0xbe   : > { %7183 = vmatprep.subr.bf16.mxu0 %v7969_v25  ;;  %v1521_v25 = vcombine.high %v8693_v21, %v8693_v21 }
  0xbf   : > { %7204 = vmatpush3.bf16.msra.mxu1 %v7968_v24  ;;  %v1542_v24 = vrot.slane %v1520_v20, %v8466_v42  ;;  %v8065_v20 = vld [vmem:[%s8428_s15 + $0x808] sm:$0xff]  }
  0xc0   : > { %7205 = vmatprep.subr.bf16.mxu1 %v7970_v26  ;;  %v8025_v26 = vld [vmem:[%s8428_s15 + $0x6b8] sm:$0xff]  }
  0xc1   : > { %7184 = vmatpush3.bf16.msra.mxu0 %v7971_v27  ;;  %v1552_v27 = vcombine.high %v1542_v24, %v1542_v24 }
  0xc2   : > { %7185 = vmatprep.subr.bf16.mxu0 %v7973_v29  ;;  %v8026_v29 = vld [vmem:[%s8428_s15 + $0x740] sm:$0xff]  }
  0xc3   : > { %7206 = vmatpush3.bf16.msra.mxu1 %v7972_v28  ;;  %v1528_v28 = vrot.slane %v1512_v16, %v8466_v42  ;;  %v8062_v16 = vld [vmem:[%s8428_s15 + $0x880] sm:$0xff]  }
  0xc4   : > { %7207 = vmatprep.subr.bf16.mxu1 %v7974_v30  ;;  %v8027_v30 = vld [vmem:[%s8428_s15 + $0x7c0] sm:$0xff]  }
  0xc5   : > { %7186 = vmatpush3.bf16.msra.mxu0 %v7975_v31  ;;  %v1549_v31 = vrot.slane %v1521_v25, %v8466_v42  ;;  %v8070_v25 = vld [vmem:[%s8428_s15 + $0x890] sm:$0xff]  }
  0xc6   : > { %7187 = vmatprep.subr.bf16.mxu0 %v7977_v33  ;;  %v8029_v33 = vld [vmem:[%s8428_s15 + $0x780] sm:$0xff]  }
  0xc7   : > { %7208 = vmatpush3.bf16.msra.mxu1 %v7976_v32  ;;  %v8028_v32 = vld [vmem:[%s8428_s15 + $0x700] sm:$0xff]  }
  0xc8   : > { %7209 = vmatprep.subr.bf16.mxu1 %v7978_v34  ;;  %v1550_v34 = vcombine.high %v1528_v28, %v1528_v28 }
  0xc9   : > { %7188 = vmatpush3.bf16.msra.mxu0 %v7979_v35  ;;  %v8030_v35 = vld [vmem:[%s8428_s15 + $0x748] sm:$0xff]  }
  0xca   : > { %7189 = vmatprep.subr.bf16.mxu0 %v7981_v37  ;;  %v1553_v37 = vcombine.high %v1549_v31, %v1549_v31 }
  0xcb   : > { %7210 = vmatpush3.bf16.msra.mxu1 %v7980_v36  ;;  %v8031_v36 = vld [vmem:[%s8428_s15 + $0x7c8] sm:$0xff]  }
  0xcc   : > { %7211 = vmatprep.subr.bf16.mxu1 %v7982_v38  ;;  %v8032_v38 = vld [vmem:[%s8428_s15 + $0x708] sm:$0xff]  }
  0xcd   : > { %7190 = vmatpush3.bf16.msra.mxu0 %v7983_v39  ;;  %v8033_v39 = vld [vmem:[%s8428_s15 + $0x788] sm:$0xff]  }
  0xce   : > { %7191 = vmatprep.subr.bf16.mxu0 %v7985_v41  ;;  %v8035_v41 = vld [vmem:[%s8428_s15 + $0x7d0] sm:$0xff]  }
  0xcf   : > { %7212 = vmatpush3.bf16.msra.mxu1 %v7984_v40  ;;  %v8034_v40 = vld [vmem:[%s8428_s15 + $0x750] sm:$0xff]  }
  0xd0   : > { %7213 = vmatprep.subr.bf16.mxu1 %v7986_v43  ;;  %v8036_v43 = vld [vmem:[%s8428_s15 + $0x710] sm:$0xff]  }
  0xd1   : > { %7192 = vmatpush3.bf16.msra.mxu0 %v7987_v44  ;;  %v8037_v44 = vld [vmem:[%s8428_s15 + $0x790] sm:$0xff]  }
  0xd2   : > { %7193 = vmatprep.subr.bf16.mxu0 %v7989_v46  ;;  %v8039_v46 = vld [vmem:[%s8428_s15 + $0x7d8] sm:$0xff]  }
  0xd3   : > { %7214 = vmatpush3.bf16.msra.mxu1 %v7988_v45  ;;  %v8038_v45 = vld [vmem:[%s8428_s15 + $0x758] sm:$0xff]  }
  0xd4   : > { %7215 = vmatprep.subr.bf16.mxu1 %v7990_v47  ;;  %v8040_v47 = vld [vmem:[%s8428_s15 + $0x718] sm:$0xff]  }
  0xd5   : > { %7194 = vmatpush3.bf16.msra.mxu0 %v7991_v48  ;;  %v8041_v48 = vld [vmem:[%s8428_s15 + $0x798] sm:$0xff]  }
  0xd6   : > { %7223 = vmatprep.subr.bf16.mxu0 %v7994_v51  ;;  %v8044_v51 = vld [vmem:[%s8428_s15 + $0x720] sm:$0xff]  }
  0xd7   : > { %7216 = vmatpush3.bf16.msra.mxu1 %v7992_v49  ;;  %v8042_v49 = vld [vmem:[%s8428_s15 + $0x760] sm:$0xff]  }
  0xd8   : > { %5319 = vmatmul.mubr.bf16.vlgmr.msra.gmra.mrb[20].mxu0 %v1486_v50  ;;  %7245 = vmatprep.subr.bf16.mxu1 %v7995_v52  ;;  %v8043_v50 = vld [vmem:[%s8428_s15 + $0x7e0] sm:$0xff]  }
  0xd9   : > { %7224 = vmatpush3.bf16.msra.mxu0 %v7996_v53  ;;  %5398 = vmatprep.mubr.bf16.mxu0 %v1542_v24  ;;  %v8045_v52 = vld [vmem:[%s8428_s15 + $0x7a0] sm:$0xff]   ;;  %v8046_v53 = vld [vmem:[%s8428_s15 + $0x768] sm:$0xff]   ;;  %v8069_v24 = vld [vmem:[%s8428_s15 + $0x810] sm:$0xff]  }
  0xda   : > { %5359 = vmatmul.mubr.bf16.vlgmr.msra.gmra.mrb[20].mxu1 %v1502_v55  ;;  %7225 = vmatprep.subr.bf16.mxu0 %v7998_v56  ;;  %v8048_v55 = vld [vmem:[%s8428_s15 + $0x728] sm:$0xff]  }
  0xdb   : > { %7246 = vmatpush3.bf16.msra.mxu1 %v7997_v54  ;;  %5438 = vmatprep.mubr.bf16.mxu1 %v1552_v27  ;;  %v8047_v54 = vld [vmem:[%s8428_s15 + $0x7e8] sm:$0xff]   ;;  %v8072_v27 = vld [vmem:[%s8428_s15 + $0x8d8] sm:$0xff]  }
  0xdc   : > { %7247 = vmatprep.subr.bf16.mxu1 %v7999_v57  ;;  %v8049_v56 = vld [vmem:[%s8428_s15 + $0x7a8] sm:$0xff]   ;;  %v8050_v57 = vld [vmem:[%s8428_s15 + $0x770] sm:$0xff]  }
  0xdd   : > { %7226 = vmatpush3.bf16.msra.mxu0 %v8000_v58 }
  0xde   : > { %7227 = vmatprep.subr.bf16.mxu0 %v8002_v60 }
  0xdf   : > { %7248 = vmatpush3.bf16.msra.mxu1 %v8001_v59  ;;  %v8051_v59 = vld [vmem:[%s8428_s15 + $0x7f0] sm:$0xff]  }
  0xe0   : > { %7249 = vmatprep.subr.bf16.mxu1 %v8003_v61  ;;  %v8052_v61 = vld [vmem:[%s8428_s15 + $0x730] sm:$0xff]  }
  0xe1   : > { %7228 = vmatpush3.bf16.msra.mxu0 %v8004_v62 }
  0xe2   : > { %7229 = vmatprep.subr.bf16.mxu0 %v8006_v0 }
  0xe3   : > { %7250 = vmatpush3.bf16.msra.mxu1 %v8005_v63 }
  0xe4   : > { %7251 = vmatprep.subr.bf16.mxu1 %v8007_v1  ;;  %v8053_v1 = vld [vmem:[%s8428_s15 + $0x7b0] sm:$0xff]  }
  0xe5   : > { %7230 = vmatpush3.bf16.msra.mxu0 %v8008_v2  ;;  %v8054_v2 = vld [vmem:[%s8428_s15 + $0x778] sm:$0xff]  }
  0xe6   : > { %7231 = vmatprep.subr.bf16.mxu0 %v8010_v4 }
  0xe7   : > { %7252 = vmatpush3.bf16.msra.mxu1 %v8009_v3 }
  0xe8   : > { %7253 = vmatprep.subr.bf16.mxu1 %v8011_v5 }
  0xe9   : > { %7232 = vmatpush3.bf16.msra.mxu0 %v8012_v6 }
  0xea   : > { %7233 = vmatprep.subr.bf16.mxu0 %v8014_v8 }
  0xeb   : > { %7254 = vmatpush3.bf16.msra.mxu1 %v8013_v7  ;;  %v8055_v7 = vld [vmem:[%s8428_s15 + $0x7f8] sm:$0xff]  }
  0xec   : > { %7255 = vmatprep.subr.bf16.mxu1 %v8015_v9  ;;  %v8056_v9 = vld [vmem:[%s8428_s15 + $0x738] sm:$0xff]  }
  0xed   : > { %7234 = vmatpush3.bf16.msra.mxu0 %v8016_v10 }
  0xee   : > { %7235 = vmatprep.subr.bf16.mxu0 %v8018_v12  ;;  %v1535_v12 = vrot.slane %v8693_v21, %v8466_v42  ;;  %v8066_v21 = vld [vmem:[%s8428_s15 + $0x888] sm:$0xff]  }
  0xef   : > { %7256 = vmatpush3.bf16.msra.mxu1 %v8017_v11  ;;  %v8057_v11 = vld [vmem:[%s8428_s15 + $0x7b8] sm:$0xff]  }
  0xf0   : > { %7257 = vmatprep.subr.bf16.mxu1 %v8019_v13  ;;  %v8059_v13 = vld [vmem:[%s8428_s15 + $0x840] sm:$0xff]   ;;  %v1551_v17 = vcombine.high %v1535_v12, %v1535_v12 }
  0xf1   : > { %7236 = vmatpush3.bf16.msra.mxu0 %v8020_v15  ;;  %v8061_v15 = vld [vmem:[%s8428_s15 + $0x800] sm:$0xff]  }
  0xf2   : > { %7237 = vmatprep.subr.bf16.mxu0 %v8022_v19  ;;  %v8064_v19 = vld [vmem:[%s8428_s15 + $0x8c8] sm:$0xff]  }
  0xf3   : > { %7258 = vmatpush3.bf16.msra.mxu1 %v8021_v18  ;;  %v8063_v18 = vld [vmem:[%s8428_s15 + $0x848] sm:$0xff]  }
  0xf4   : > { %7259 = vmatprep.subr.bf16.mxu1 %v8023_v22  ;;  %v8067_v22 = vld [vmem:[%s8428_s15 + $0x850] sm:$0xff]  }
  0xf5   : > { %7238 = vmatpush3.bf16.msra.mxu0 %v8024_v23  ;;  %v8068_v23 = vld [vmem:[%s8428_s15 + $0x8d0] sm:$0xff]  }
  0xf6   : > { %7267 = vmatprep.subr.bf16.mxu0 %v8026_v29  ;;  %v8074_v29 = vld [vmem:[%s8428_s15 + $0x898] sm:$0xff]  }
  0xf7   : > { %7260 = vmatpush3.bf16.msra.mxu1 %v8025_v26  ;;  %v8071_v26 = vld [vmem:[%s8428_s15 + $0x858] sm:$0xff]  }
  0xf8   : > { %5399 = vmatmul.mubr.bf16.vlgmr.msra.gmra.mrb[24].mxu0 %v1528_v28  ;;  %7289 = vmatprep.subr.bf16.mxu1 %v8027_v30  ;;  %v8073_v28 = vld [vmem:[%s8428_s15 + $0x818] sm:$0xff]   ;;  %v8075_v30 = vld [vmem:[%s8428_s15 + $0x860] sm:$0xff]  }
  0xf9   : > { %7268 = vmatpush3.bf16.msra.mxu0 %v8028_v32  ;;  %5478 = vmatprep.mubr.bf16.mxu0 %v1549_v31  ;;  %v8076_v31 = vld [vmem:[%s8428_s15 + $0x8e0] sm:$0xff]  }
  0xfa   : > { %5439 = vmatmul.mubr.bf16.vlgmr.msra.gmra.mrb[24].mxu1 %v1550_v34  ;;  %7269 = vmatprep.subr.bf16.mxu0 %v8030_v35  ;;  %v8077_v32 = vld [vmem:[%s8428_s15 + $0x820] sm:$0xff]   ;;  %v8079_v34 = vld [vmem:[%s8428_s15 + $0x868] sm:$0xff]  }
  0xfb   : > { %7290 = vmatpush3.bf16.msra.mxu1 %v8029_v33  ;;  %5518 = vmatprep.mubr.bf16.mxu1 %v1553_v37  ;;  %v8078_v33 = vld [vmem:[%s8428_s15 + $0x8a0] sm:$0xff]   ;;  %v8080_v35 = vld [vmem:[%s8428_s15 + $0x8e8] sm:$0xff]  }
  0xfc   : > { %7291 = vmatprep.subr.bf16.mxu1 %v8031_v36  ;;  %v8081_v36 = vld [vmem:[%s8428_s15 + $0x828] sm:$0xff]  }
  0xfd   : > { %7270 = vmatpush3.bf16.msra.mxu0 %v8032_v38  ;;  %v8082_v37 = vld [vmem:[%s8428_s15 + $0x8a8] sm:$0xff]   ;;  %v8083_v38 = vld [vmem:[%s8428_s15 + $0x870] sm:$0xff]  }
  0xfe   : > { %7271 = vmatprep.subr.bf16.mxu0 %v8034_v40  ;;  %v8084_v40 = vld [vmem:[%s8428_s15 + $0x8f0] sm:$0xff]  }
  0xff   : > { %7292 = vmatpush3.bf16.msra.mxu1 %v8033_v39 }
 0x100   : > { %7293 = vmatprep.subr.bf16.mxu1 %v8035_v41  ;;  %v322_v41 = vld [vmem:[%s8423_s11 + $0x20] sm:$0xff] }
 0x101   : > { %7272 = vmatpush3.bf16.msra.mxu0 %v8036_v43 }
 0x102   : > { %7273 = vmatprep.subr.bf16.mxu0 %v8038_v45  ;;  %v1561_v45 = vrot.slane %v322_v41, %v8466_v42 }
 0x103   : > { %7294 = vmatpush3.bf16.msra.mxu1 %v8037_v44  ;;  %v8085_v44 = vld [vmem:[%s8428_s15 + $0x830] sm:$0xff]  }
 0x104   : > { %7295 = vmatprep.subr.bf16.mxu1 %v8039_v46  ;;  %v1554_v46 = vcombine.high %v322_v41, %v322_v41 }
 0x105   : > { %7274 = vmatpush3.bf16.msra.mxu0 %v8040_v47 }
 0x106   : > { %7275 = vmatprep.subr.bf16.mxu0 %v8042_v49 }
 0x107   : > { %7296 = vmatpush3.bf16.msra.mxu1 %v8041_v48 }
 0x108   : > { %7297 = vmatprep.subr.bf16.mxu1 %v8043_v50 }
 0x109   : > { %7276 = vmatpush3.bf16.msra.mxu0 %v8044_v51 }
 0x10a   : > { %7277 = vmatprep.subr.bf16.mxu0 %v8046_v53  ;;  %v8087_v53 = vld [vmem:[%s8428_s15 + $0x878] sm:$0xff]  }
 0x10b   : > { %7298 = vmatpush3.bf16.msra.mxu1 %v8045_v52  ;;  %v6975_v58 = vpop.f32.mrb[0].mxu0  ;;  %v8086_v52 = vld [vmem:[%s8428_s15 + $0x8b0] sm:$0xff]  }
 0x10c   : > { %v6976_v60 = vpop.f32.mrb[1].mxu0  ;;  %7299 = vmatprep.subr.bf16.mxu1 %v8047_v54  ;;  %v6997_v62 = vpop.f32.mrb[0].mxu1  ;;  %v1569_v54 = vcombine.high %v1561_v45, %v1561_v45 }
 0x10d   : > { %v6977_v63 = vadd.f32 %v6976_v60, %v6975_v58  ;;  %v6978_v0 = vpop.f32.mrb[2].mxu0  ;;  %7278 = vmatpush3.bf16.msra.mxu0 %v8048_v55  ;;  %v6998_v3 = vpop.f32.mrb[1].mxu1  ;;  %v8771_v55 = vrot.slane %v1554_v46, %v8466_v42 }
 0x10e   : > { %v6979_v4 = vpop.f32.mrb[3].mxu0  ;;  %7279 = vmatprep.subr.bf16.mxu0 %v8050_v57  ;;  %v6999_v5 = vadd.f32 %v6998_v3, %v6997_v62  ;;  %v7000_v6 = vpop.f32.mrb[2].mxu1  ;;  %v1591_v62 = vrot.slane %v1569_v54, %v8466_v42  ;;  %v1577_v3 = vrot.slane %v1561_v45, %v8466_v42  ;;  %v8125_v54 = vld [vmem:[%s8428_s15 + $0xac0] sm:$0xff]  }
 0x10f   : > { %7300 = vmatpush3.bf16.msra.mxu1 %v8049_v56  ;;  %v7001_v8 = vpop.f32.mrb[3].mxu1  ;;  %v8091_v4 = vld [vmem:[%s8428_s15 + $0x940] sm:$0xff]  }
 0x110   : > { %7301 = vmatprep.subr.bf16.mxu1 %v8051_v59  ;;  %v8734_v10 = vadd.f32 %v6999_v5, %v6977_v63  ;;  %v8088_v59 = vld [vmem:[%s8428_s15 + $0x8f8] sm:$0xff]   ;;  %v1570_v63 = vcombine.high %v8771_v55, %v8771_v55  ;;  %v8092_v5 = vld [vmem:[%s8428_s15 + $0x9c0] sm:$0xff]  }
 0x111   : > { %7280 = vmatpush3.bf16.msra.mxu0 %v8052_v61  ;;  %v8089_v61 = vld [vmem:[%s8428_s15 + $0x838] sm:$0xff]   ;;  %v8094_v8 = vld [vmem:[%s8428_s15 + $0x980] sm:$0xff]  }
 0x112   : > { %7281 = vmatprep.subr.bf16.mxu0 %v8054_v2  ;;  %v1601_v2 = vcombine.high %v1591_v62, %v1591_v62  ;;  %v1598_v6 = vrot.slane %v1570_v63, %v8466_v42  ;;  %v8133_v63 = vld [vmem:[%s8428_s15 + $0xad0] sm:$0xff]  }
 0x113   : > { %7302 = vmatpush3.bf16.msra.mxu1 %v8053_v1  ;;  %v8090_v1 = vld [vmem:[%s8428_s15 + $0x8b8] sm:$0xff]  }
 0x114   : > { %7303 = vmatprep.subr.bf16.mxu1 %v8055_v7  ;;  %v8093_v7 = vld [vmem:[%s8428_s15 + $0x900] sm:$0xff]  }
 0x115   : > { %7282 = vmatpush3.bf16.msra.mxu0 %v8056_v9  ;;  %v1599_v9 = vcombine.high %v1577_v3, %v1577_v3 }
 0x116   : > { %7311 = vmatprep.subr.bf16.mxu0 %v8059_v13  ;;  %v8097_v13 = vld [vmem:[%s8428_s15 + $0x908] sm:$0xff]  }
 0x117   : > { %7304 = vmatpush3.bf16.msra.mxu1 %v8057_v11  ;;  %v8096_v11 = vld [vmem:[%s8428_s15 + $0x9c8] sm:$0xff]  }
 0x118   : > { %5479 = vmatmul.mubr.bf16.vlgmr.msra.gmra.mrb[28].mxu0 %v1535_v12  ;;  %7333 = vmatprep.subr.bf16.mxu1 %v8060_v14  ;;  %v1602_v12 = vcombine.high %v1598_v6, %v1598_v6  ;;  %v8098_v14 = vld [vmem:[%s8428_s15 + $0x988] sm:$0xff]  }
 0x119   : > { %7312 = vmatpush3.bf16.msra.mxu0 %v8061_v15  ;;  %5558 = vmatprep.mubr.bf16.mxu0 %v1591_v62  ;;  %v8099_v15 = vld [vmem:[%s8428_s15 + $0x950] sm:$0xff]  }
 0x11a   : > { %5519 = vmatmul.mubr.bf16.vlgmr.msra.gmra.mrb[28].mxu1 %v1551_v17  ;;  %7313 = vmatprep.subr.bf16.mxu0 %v8063_v18  ;;  %v8101_v17 = vld [vmem:[%s8428_s15 + $0x910] sm:$0xff]  }
 0x11b   : > { %7334 = vmatpush3.bf16.msra.mxu1 %v8062_v16  ;;  %5598 = vmatprep.mubr.bf16.mxu1 %v1601_v2  ;;  %v8100_v16 = vld [vmem:[%s8428_s15 + $0x9d0] sm:$0xff]   ;;  %v8136_v2 = vld [vmem:[%s8428_s15 + $0xa58] sm:$0xff]  }
 0x11c   : > { %7335 = vmatprep.subr.bf16.mxu1 %v8064_v19  ;;  %v8102_v18 = vld [vmem:[%s8428_s15 + $0x990] sm:$0xff]   ;;  %v8103_v19 = vld [vmem:[%s8428_s15 + $0x958] sm:$0xff]  }
 0x11d   : > { %7314 = vmatpush3.bf16.msra.mxu0 %v8065_v20  ;;  %v8104_v20 = vld [vmem:[%s8428_s15 + $0x9d8] sm:$0xff]   ;;  %v8132_v62 = vld [vmem:[%s8428_s15 + $0xa50] sm:$0xff]  }
 0x11e   : > { %7315 = vmatprep.subr.bf16.mxu0 %v8067_v22  ;;  %v8106_v22 = vld [vmem:[%s8428_s15 + $0x998] sm:$0xff]  }
 0x11f   : > { %7336 = vmatpush3.bf16.msra.mxu1 %v8066_v21  ;;  %v8105_v21 = vld [vmem:[%s8428_s15 + $0x918] sm:$0xff]  }
 0x120   : > { %7337 = vmatprep.subr.bf16.mxu1 %v8068_v23  ;;  %v8107_v23 = vld [vmem:[%s8428_s15 + $0x960] sm:$0xff]  }
 0x121   : > { %7316 = vmatpush3.bf16.msra.mxu0 %v8069_v24  ;;  %v8108_v24 = vld [vmem:[%s8428_s15 + $0x9e0] sm:$0xff]  }
 0x122   : > { %7317 = vmatprep.subr.bf16.mxu0 %v8071_v26  ;;  %v8110_v26 = vld [vmem:[%s8428_s15 + $0x9a0] sm:$0xff]  }
 0x123   : > { %7338 = vmatpush3.bf16.msra.mxu1 %v8070_v25  ;;  %v8109_v25 = vld [vmem:[%s8428_s15 + $0x920] sm:$0xff]  }
 0x124   : > { %7339 = vmatprep.subr.bf16.mxu1 %v8072_v27  ;;  %v8111_v27 = vld [vmem:[%s8428_s15 + $0x968] sm:$0xff]  }
 0x125   : > { %7318 = vmatpush3.bf16.msra.mxu0 %v8073_v28  ;;  %v8112_v28 = vld [vmem:[%s8428_s15 + $0x9e8] sm:$0xff]  }
 0x126   : > { %7319 = vmatprep.subr.bf16.mxu0 %v8075_v30  ;;  %v8114_v30 = vld [vmem:[%s8428_s15 + $0x9a8] sm:$0xff]  }
 0x127   : > { %7340 = vmatpush3.bf16.msra.mxu1 %v8074_v29  ;;  %v8113_v29 = vld [vmem:[%s8428_s15 + $0x928] sm:$0xff]  }
 0x128   : > { %7341 = vmatprep.subr.bf16.mxu1 %v8076_v31  ;;  %v8115_v31 = vld [vmem:[%s8428_s15 + $0x970] sm:$0xff]  }
 0x129   : > { %7320 = vmatpush3.bf16.msra.mxu0 %v8077_v32 }
 0x12a   : > { %7321 = vmatprep.subr.bf16.mxu0 %v8079_v34 }
 0x12b   : > { %7342 = vmatpush3.bf16.msra.mxu1 %v8078_v33  ;;  %v7019_v39 = vpop.f32.mrb[4].mxu0  ;;  %v8116_v33 = vld [vmem:[%s8428_s15 + $0x9f0] sm:$0xff]  }
 0x12c   : > { %v7020_v43 = vpop.f32.mrb[5].mxu0  ;;  %7343 = vmatprep.subr.bf16.mxu1 %v8080_v35  ;;  %v7041_v47 = vpop.f32.mrb[4].mxu1  ;;  %v8117_v35 = vld [vmem:[%s8428_s15 + $0x930] sm:$0xff]  }
 0x12d   : > { %v7021_v48 = vadd.f32 %v7020_v43, %v7019_v39  ;;  %v7022_v49 = vpop.f32.mrb[6].mxu0  ;;  %7322 = vmatpush3.bf16.msra.mxu0 %v8081_v36  ;;  %v7042_v50 = vpop.f32.mrb[5].mxu1  ;;  %v8118_v39 = vld [vmem:[%s8428_s15 + $0x9b0] sm:$0xff]  }
 0x12e   : > { %v7023_v51 = vpop.f32.mrb[7].mxu0  ;;  %7323 = vmatprep.subr.bf16.mxu0 %v8083_v38  ;;  %v7043_v57 = vadd.f32 %v7042_v50, %v7041_v47  ;;  %v7044_v58 = vpop.f32.mrb[6].mxu1  ;;  %v8120_v47 = vld [vmem:[%s8428_s15 + $0x9f8] sm:$0xff]  }
 0x12f   : > { %v5001_v56 = vadd.f32 %v7021_v48, %v8734_v10  ;;  %7344 = vmatpush3.bf16.msra.mxu1 %v8082_v37  ;;  %v7045_v60 = vpop.f32.mrb[7].mxu1  ;;  %v8095_v10 = vld [vmem:[%s8428_s15 + $0x948] sm:$0xff]   ;;  %v8121_v49 = vld [vmem:[%s8428_s15 + $0x938] sm:$0xff]  }
 0x130   : > { %7345 = vmatprep.subr.bf16.mxu1 %v8084_v40  ;;  %v8119_v40 = vld [vmem:[%s8428_s15 + $0x978] sm:$0xff]   ;;  %v8129_v60 = vld [vmem:[%s8428_s15 + $0xac8] sm:$0xff]  }
 0x131   : > { %v8779_v0 = vadd.f32 %v7043_v57, %v5001_v56  ;;  %7324 = vmatpush3.bf16.msra.mxu0 %v8085_v44  ;;  %v8122_v51 = vld [vmem:[%s8428_s15 + $0x9b8] sm:$0xff]   ;;  %v8126_v56 = vld [vmem:[%s8428_s15 + $0xa00] sm:$0xff]  }
 0x132   : > { %7325 = vmatprep.subr.bf16.mxu0 %v8087_v53  ;;  %v8124_v53 = vld [vmem:[%s8428_s15 + $0xa40] sm:$0xff]  }
 0x133   : > { %7346 = vmatpush3.bf16.msra.mxu1 %v8086_v52  ;;  %v1584_v52 = vrot.slane %v8771_v55, %v8466_v42  ;;  %v8127_v57 = vld [vmem:[%s8428_s15 + $0xa80] sm:$0xff]   ;;  %v8130_v55 = vld [vmem:[%s8428_s15 + $0xa08] sm:$0xff]  }
 0x134   : > { %7347 = vmatprep.subr.bf16.mxu1 %v8088_v59  ;;  %v8128_v59 = vld [vmem:[%s8428_s15 + $0xa48] sm:$0xff]  }
 0x135   : > { %7326 = vmatpush3.bf16.msra.mxu0 %v8089_v61  ;;  %v1600_v58 = vcombine.high %v1584_v52, %v1584_v52  ;;  %v8131_v61 = vld [vmem:[%s8428_s15 + $0xa88] sm:$0xff]  }
 0x136   : > { %7355 = vmatprep.subr.bf16.mxu0 %v8091_v4  ;;  %v8138_v4 = vld [vmem:[%s8428_s15 + $0xa18] sm:$0xff]  }
 0x137   : > { %7348 = vmatpush3.bf16.msra.mxu1 %v8090_v1  ;;  %v8135_v1 = vld [vmem:[%s8428_s15 + $0xa90] sm:$0xff]  }
 0x138   : > { %5559 = vmatmul.mubr.bf16.vlgmr.msra.gmra.mrb[32].mxu0 %v1577_v3  ;;  %7377 = vmatprep.subr.bf16.mxu1 %v8092_v5  ;;  %v8137_v3 = vld [vmem:[%s8428_s15 + $0xad8] sm:$0xff]  }
 0x139   : > { %7356 = vmatpush3.bf16.msra.mxu0 %v8093_v7  ;;  %5638 = vmatprep.mubr.bf16.mxu0 %v1598_v6  ;;  %v8139_v5 = vld [vmem:[%s8428_s15 + $0xa98] sm:$0xff]   ;;  %v8140_v6 = vld [vmem:[%s8428_s15 + $0xa60] sm:$0xff]  }
 0x13a   : > { %5599 = vmatmul.mubr.bf16.vlgmr.msra.gmra.mrb[32].mxu1 %v1599_v9  ;;  %7357 = vmatprep.subr.bf16.mxu0 %v8095_v10  ;;  %v8141_v7 = vld [vmem:[%s8428_s15 + $0xae0] sm:$0xff]   ;;  %v8144_v10 = vld [vmem:[%s8428_s15 + $0xa68] sm:$0xff]  }
 0x13b   : > { %7378 = vmatpush3.bf16.msra.mxu1 %v8094_v8  ;;  %5678 = vmatprep.mubr.bf16.mxu1 %v1602_v12  ;;  %v8142_v8 = vld [vmem:[%s8428_s15 + $0xa20] sm:$0xff]   ;;  %v8146_v12 = vld [vmem:[%s8428_s15 + $0xa28] sm:$0xff]  }
 0x13c   : > { %7379 = vmatprep.subr.bf16.mxu1 %v8096_v11  ;;  %v8143_v9 = vld [vmem:[%s8428_s15 + $0xaa0] sm:$0xff]   ;;  %v8145_v11 = vld [vmem:[%s8428_s15 + $0xae8] sm:$0xff]  }
 0x13d   : > { %7358 = vmatpush3.bf16.msra.mxu0 %v8097_v13  ;;  %v8147_v13 = vld [vmem:[%s8428_s15 + $0xaa8] sm:$0xff]  }
 0x13e   : > { %7359 = vmatprep.subr.bf16.mxu0 %v8099_v15 }
 0x13f   : > { %7380 = vmatpush3.bf16.msra.mxu1 %v8098_v14  ;;  %v8148_v14 = vld [vmem:[%s8428_s15 + $0xa70] sm:$0xff]  }
 0x140   : > { %7381 = vmatprep.subr.bf16.mxu1 %v8100_v16  ;;  %v8149_v16 = vld [vmem:[%s8428_s15 + $0xaf0] sm:$0xff]  }
 0x141   : > { %7360 = vmatpush3.bf16.msra.mxu0 %v8101_v17 }
 0x142   : > { %7361 = vmatprep.subr.bf16.mxu0 %v8103_v19  ;;  %v323_v19 = vld [vmem:[%s8423_s11 + $0x28] sm:$0xff] }
 0x143   : > { %7382 = vmatpush3.bf16.msra.mxu1 %v8102_v18  ;;  %v8150_v18 = vld [vmem:[%s8428_s15 + $0xa30] sm:$0xff]  }
 0x144   : > { %7383 = vmatprep.subr.bf16.mxu1 %v8104_v20 }
 0x145   : > { %7362 = vmatpush3.bf16.msra.mxu0 %v8105_v21 }
 0x146   : > { %7363 = vmatprep.subr.bf16.mxu0 %v8107_v23  ;;  %v1610_v23 = vrot.slane %v323_v19, %v8466_v42 }
 0x147   : > { %7384 = vmatpush3.bf16.msra.mxu1 %v8106_v22 }
 0x148   : > { %7385 = vmatprep.subr.bf16.mxu1 %v8108_v24  ;;  %v1603_v24 = vcombine.high %v323_v19, %v323_v19 }
 0x149   : > { %7364 = vmatpush3.bf16.msra.mxu0 %v8109_v25 }
 0x14a   : > { %7365 = vmatprep.subr.bf16.mxu0 %v8111_v27  ;;  %v8151_v27 = vld [vmem:[%s8428_s15 + $0xab0] sm:$0xff]  }
 0x14b   : > { %7386 = vmatpush3.bf16.msra.mxu1 %v8110_v26  ;;  %v7063_v32 = vpop.f32.mrb[8].mxu0 }
 0x14c   : > { %v7064_v34 = vpop.f32.mrb[9].mxu0  ;;  %7387 = vmatprep.subr.bf16.mxu1 %v8112_v28  ;;  %v8152_v28 = vld [vmem:[%s8428_s15 + $0xa78] sm:$0xff]  }
 0x14d   : > { %v7085_v36 = vpop.f32.mrb[8].mxu1  ;;  %v7065_v37 = vadd.f32 %v7064_v34, %v7063_v32  ;;  %v7066_v38 = vpop.f32.mrb[10].mxu0  ;;  %7366 = vmatpush3.bf16.msra.mxu0 %v8113_v29  ;;  %v8153_v32 = vld [vmem:[%s8428_s15 + $0xaf8] sm:$0xff]  }
 0x14e   : > { %v7086_v41 = vpop.f32.mrb[9].mxu1  ;;  %v7067_v43 = vpop.f32.mrb[11].mxu0  ;;  %7367 = vmatprep.subr.bf16.mxu0 %v8115_v31  ;;  %v8155_v38 = vld [vmem:[%s8428_s15 + $0xab8] sm:$0xff]  }
 0x14f   : > { %v5081_v44 = vadd.f32 %v7065_v37, %v8779_v0  ;;  %v7087_v45 = vadd.f32 %v7086_v41, %v7085_v36  ;;  %v7088_v46 = vpop.f32.mrb[10].mxu1  ;;  %7388 = vmatpush3.bf16.msra.mxu1 %v8114_v30  ;;  %v8134_v0 = vld [vmem:[%s8428_s15 + $0xa10] sm:$0xff]   ;;  %v8856_v36 = vrot.slane %v1603_v24, %v8466_v42  ;;  %v8156_v41 = vld [vmem:[%s8428_s15 + $0xb40] sm:$0xff]   ;;  %v8186_v24 = vld [vmem:[%s8428_s15 + $0xb38] sm:$0xff]  }
 0x150   : > { %v7089_v48 = vpop.f32.mrb[11].mxu1  ;;  %7389 = vmatprep.subr.bf16.mxu1 %v8116_v33  ;;  %v1618_v33 = vcombine.high %v1610_v23, %v1610_v23  ;;  %v8158_v46 = vld [vmem:[%s8428_s15 + $0xb00] sm:$0xff]  }
 0x151   : > { %v8816_v50 = vadd.f32 %v7087_v45, %v5081_v44  ;;  %7368 = vmatpush3.bf16.msra.mxu0 %v8117_v35  ;;  %v8154_v35 = vld [vmem:[%s8428_s15 + $0xa38] sm:$0xff]   ;;  %v1619_v43 = vcombine.high %v8856_v36, %v8856_v36  ;;  %v8157_v45 = vld [vmem:[%s8428_s15 + $0xbc0] sm:$0xff]  }
 0x152   : > { %7369 = vmatprep.subr.bf16.mxu0 %v8119_v40  ;;  %v1626_v40 = vrot.slane %v1610_v23, %v8466_v42  ;;  %v8159_v48 = vld [vmem:[%s8428_s15 + $0xb80] sm:$0xff]  }
 0x153   : > { %7390 = vmatpush3.bf16.msra.mxu1 %v8118_v39  ;;  %v1640_v39 = vrot.slane %v1618_v33, %v8466_v42  ;;  %v8193_v33 = vld [vmem:[%s8428_s15 + $0xc48] sm:$0xff]  }
 0x154   : > { %7391 = vmatprep.subr.bf16.mxu1 %v8120_v47  ;;  %v1647_v47 = vrot.slane %v1619_v43, %v8466_v42  ;;  %v8202_v43 = vld [vmem:[%s8428_s15 + $0xcd8] sm:$0xff]  }
 0x155   : > { %7370 = vmatpush3.bf16.msra.mxu0 %v8121_v49  ;;  %v1650_v44 = vcombine.high %v1640_v39, %v1640_v39  ;;  %v1648_v49 = vcombine.high %v1626_v40, %v1626_v40 }
 0x156   : > { %7399 = vmatprep.subr.bf16.mxu0 %v8124_v53  ;;  %v8162_v53 = vld [vmem:[%s8428_s15 + $0xb08] sm:$0xff]  }
 0x157   : > { %7392 = vmatpush3.bf16.msra.mxu1 %v8122_v51  ;;  %v8161_v51 = vld [vmem:[%s8428_s15 + $0xbc8] sm:$0xff]  }
 0x158   : > { %5639 = vmatmul.mubr.bf16.vlgmr.msra.gmra.mrb[36].mxu0 %v1584_v52  ;;  %7421 = vmatprep.subr.bf16.mxu1 %v8125_v54  ;;  %v1651_v52 = vcombine.high %v1647_v47, %v1647_v47  ;;  %v8163_v54 = vld [vmem:[%s8428_s15 + $0xb88] sm:$0xff]  }
 0x159   : > { %7400 = vmatpush3.bf16.msra.mxu0 %v8126_v56  ;;  %5718 = vmatprep.mubr.bf16.mxu0 %v1640_v39  ;;  %v8164_v56 = vld [vmem:[%s8428_s15 + $0xb50] sm:$0xff]  }
 0x15a   : > { %5679 = vmatmul.mubr.bf16.vlgmr.msra.gmra.mrb[36].mxu1 %v1600_v58  ;;  %7401 = vmatprep.subr.bf16.mxu0 %v8128_v59  ;;  %v8166_v58 = vld [vmem:[%s8428_s15 + $0xb10] sm:$0xff]  }
 0x15b   : > { %7422 = vmatpush3.bf16.msra.mxu1 %v8127_v57  ;;  %5758 = vmatprep.mubr.bf16.mxu1 %v1650_v44  ;;  %v8165_v57 = vld [vmem:[%s8428_s15 + $0xbd0] sm:$0xff]   ;;  %v8203_v44 = vld [vmem:[%s8428_s15 + $0xc18] sm:$0xff]  }
 0x15c   : > { %7423 = vmatprep.subr.bf16.mxu1 %v8129_v60  ;;  %v8167_v59 = vld [vmem:[%s8428_s15 + $0xb90] sm:$0xff]   ;;  %v8168_v60 = vld [vmem:[%s8428_s15 + $0xb58] sm:$0xff]  }
 0x15d   : > { %7402 = vmatpush3.bf16.msra.mxu0 %v8130_v55  ;;  %v8169_v55 = vld [vmem:[%s8428_s15 + $0xbd8] sm:$0xff]   ;;  %v8199_v39 = vld [vmem:[%s8428_s15 + $0xc10] sm:$0xff]  }
 0x15e   : > { %7403 = vmatprep.subr.bf16.mxu0 %v8132_v62  ;;  %v8171_v62 = vld [vmem:[%s8428_s15 + $0xb98] sm:$0xff]  }
 0x15f   : > { %7424 = vmatpush3.bf16.msra.mxu1 %v8131_v61  ;;  %v8170_v61 = vld [vmem:[%s8428_s15 + $0xb18] sm:$0xff]  }
 0x160   : > { %7425 = vmatprep.subr.bf16.mxu1 %v8133_v63  ;;  %v8172_v63 = vld [vmem:[%s8428_s15 + $0xb60] sm:$0xff]  }
 0x161   : > { %7404 = vmatpush3.bf16.msra.mxu0 %v8134_v0  ;;  %v8173_v0 = vld [vmem:[%s8428_s15 + $0xbe0] sm:$0xff]  }
 0x162   : > { %7405 = vmatprep.subr.bf16.mxu0 %v8136_v2  ;;  %v8175_v2 = vld [vmem:[%s8428_s15 + $0xba0] sm:$0xff]  }
 0x163   : > { %7426 = vmatpush3.bf16.msra.mxu1 %v8135_v1  ;;  %v8174_v1 = vld [vmem:[%s8428_s15 + $0xb20] sm:$0xff]  }
 0x164   : > { %7427 = vmatprep.subr.bf16.mxu1 %v8137_v3  ;;  %v8176_v3 = vld [vmem:[%s8428_s15 + $0xb68] sm:$0xff]  }
 0x165   : > { %7406 = vmatpush3.bf16.msra.mxu0 %v8138_v4  ;;  %v8177_v4 = vld [vmem:[%s8428_s15 + $0xbe8] sm:$0xff]  }
 0x166   : > { %7407 = vmatprep.subr.bf16.mxu0 %v8140_v6  ;;  %v8179_v6 = vld [vmem:[%s8428_s15 + $0xba8] sm:$0xff]  }
 0x167   : > { %7428 = vmatpush3.bf16.msra.mxu1 %v8139_v5  ;;  %v8178_v5 = vld [vmem:[%s8428_s15 + $0xb28] sm:$0xff]  }
 0x168   : > { %7429 = vmatprep.subr.bf16.mxu1 %v8141_v7  ;;  %v8180_v7 = vld [vmem:[%s8428_s15 + $0xb70] sm:$0xff]  }
 0x169   : > { %7408 = vmatpush3.bf16.msra.mxu0 %v8142_v8 }
 0x16a   : > { %7409 = vmatprep.subr.bf16.mxu0 %v8144_v10 }
 0x16b   : > { %7430 = vmatpush3.bf16.msra.mxu1 %v8143_v9  ;;  %v7107_v15 = vpop.f32.mrb[12].mxu0  ;;  %v8181_v9 = vld [vmem:[%s8428_s15 + $0xbf0] sm:$0xff]  }
 0x16c   : > { %v7108_v17 = vpop.f32.mrb[13].mxu0  ;;  %7431 = vmatprep.subr.bf16.mxu1 %v8145_v11  ;;  %v8182_v11 = vld [vmem:[%s8428_s15 + $0xb30] sm:$0xff]  }
 0x16d   : > { %v7129_v20 = vpop.f32.mrb[12].mxu1  ;;  %v7109_v21 = vadd.f32 %v7108_v17, %v7107_v15  ;;  %v7110_v22 = vpop.f32.mrb[14].mxu0  ;;  %7410 = vmatpush3.bf16.msra.mxu0 %v8146_v12  ;;  %v8183_v15 = vld [vmem:[%s8428_s15 + $0xbb0] sm:$0xff]  }
 0x16e   : > { %v7130_v25 = vpop.f32.mrb[13].mxu1  ;;  %v7111_v26 = vpop.f32.mrb[15].mxu0  ;;  %7411 = vmatprep.subr.bf16.mxu0 %v8148_v14  ;;  %v8185_v22 = vld [vmem:[%s8428_s15 + $0xbf8] sm:$0xff]  }
 0x16f   : > { %v5161_v29 = vadd.f32 %v7109_v21, %v8816_v50  ;;  %v7131_v30 = vadd.f32 %v7130_v25, %v7129_v20  ;;  %v7132_v31 = vpop.f32.mrb[14].mxu1  ;;  %7432 = vmatpush3.bf16.msra.mxu1 %v8147_v13  ;;  %v8160_v50 = vld [vmem:[%s8428_s15 + $0xb48] sm:$0xff]   ;;  %v8187_v26 = vld [vmem:[%s8428_s15 + $0xbb8] sm:$0xff]  }
 0x170   : > { %v7133_v34 = vpop.f32.mrb[15].mxu1  ;;  %7433 = vmatprep.subr.bf16.mxu1 %v8149_v16  ;;  %v8184_v16 = vld [vmem:[%s8428_s15 + $0xb78] sm:$0xff]   ;;  %v8192_v31 = vld [vmem:[%s8428_s15 + $0xc80] sm:$0xff]  }
 0x171   : > { %v8858_v37 = vadd.f32 %v7131_v30, %v5161_v29  ;;  %7412 = vmatpush3.bf16.msra.mxu0 %v8150_v18  ;;  %v8190_v29 = vld [vmem:[%s8428_s15 + $0xcc0] sm:$0xff]   ;;  %v8194_v34 = vld [vmem:[%s8428_s15 + $0xcc8] sm:$0xff]  }
 0x172   : > { %7413 = vmatprep.subr.bf16.mxu0 %v8152_v28  ;;  %v8189_v28 = vld [vmem:[%s8428_s15 + $0xc40] sm:$0xff]  }
 0x173   : > { %7434 = vmatpush3.bf16.msra.mxu1 %v8151_v27  ;;  %v1633_v27 = vrot.slane %v8856_v36, %v8466_v42  ;;  %v8191_v30 = vld [vmem:[%s8428_s15 + $0xc00] sm:$0xff]   ;;  %v8196_v36 = vld [vmem:[%s8428_s15 + $0xc88] sm:$0xff]  }
 0x174   : > { %7435 = vmatprep.subr.bf16.mxu1 %v8153_v32 }
 0x175   : > { %7414 = vmatpush3.bf16.msra.mxu0 %v8154_v35  ;;  %v1649_v32 = vcombine.high %v1633_v27, %v1633_v27  ;;  %v8195_v35 = vld [vmem:[%s8428_s15 + $0xc08] sm:$0xff]  }
 0x176   : > { %7443 = vmatprep.subr.bf16.mxu0 %v8156_v41  ;;  %v8201_v41 = vld [vmem:[%s8428_s15 + $0xc58] sm:$0xff]  }
 0x177   : > { %7436 = vmatpush3.bf16.msra.mxu1 %v8155_v38  ;;  %v8198_v38 = vld [vmem:[%s8428_s15 + $0xcd0] sm:$0xff]  }
 0x178   : > { %5719 = vmatmul.mubr.bf16.vlgmr.msra.gmra.mrb[40].mxu0 %v1626_v40  ;;  %7465 = vmatprep.subr.bf16.mxu1 %v8157_v45  ;;  %v8200_v40 = vld [vmem:[%s8428_s15 + $0xc90] sm:$0xff]   ;;  %v8204_v45 = vld [vmem:[%s8428_s15 + $0xc98] sm:$0xff]  }
 0x179   : > { %7444 = vmatpush3.bf16.msra.mxu0 %v8158_v46  ;;  %5798 = vmatprep.mubr.bf16.mxu0 %v1647_v47  ;;  %v8205_v46 = vld [vmem:[%s8428_s15 + $0xc60] sm:$0xff]  }
 0x17a   : > { %5759 = vmatmul.mubr.bf16.vlgmr.msra.gmra.mrb[40].mxu1 %v1648_v49  ;;  %7445 = vmatprep.subr.bf16.mxu0 %v8160_v50  ;;  %v8206_v47 = vld [vmem:[%s8428_s15 + $0xce0] sm:$0xff]   ;;  %v8209_v50 = vld [vmem:[%s8428_s15 + $0xc68] sm:$0xff]  }
 0x17b   : > { %7466 = vmatpush3.bf16.msra.mxu1 %v8159_v48  ;;  %5838 = vmatprep.mubr.bf16.mxu1 %v1651_v52  ;;  %v8207_v48 = vld [vmem:[%s8428_s15 + $0xc20] sm:$0xff]   ;;  %v8211_v52 = vld [vmem:[%s8428_s15 + $0xc28] sm:$0xff]  }
 0x17c   : > { %7467 = vmatprep.subr.bf16.mxu1 %v8161_v51  ;;  %v8208_v49 = vld [vmem:[%s8428_s15 + $0xca0] sm:$0xff]   ;;  %v8210_v51 = vld [vmem:[%s8428_s15 + $0xce8] sm:$0xff]  }
 0x17d   : > { %7446 = vmatpush3.bf16.msra.mxu0 %v8162_v53  ;;  %v8212_v53 = vld [vmem:[%s8428_s15 + $0xca8] sm:$0xff]  }
 0x17e   : > { %7447 = vmatprep.subr.bf16.mxu0 %v8164_v56 }
 0x17f   : > { %7468 = vmatpush3.bf16.msra.mxu1 %v8163_v54  ;;  %v8213_v54 = vld [vmem:[%s8428_s15 + $0xc70] sm:$0xff]  }
 0x180   : > { %7469 = vmatprep.subr.bf16.mxu1 %v8165_v57  ;;  %v8214_v57 = vld [vmem:[%s8428_s15 + $0xcf0] sm:$0xff]  }
 0x181   : > { %7448 = vmatpush3.bf16.msra.mxu0 %v8166_v58 }
 0x182   : > { %7449 = vmatprep.subr.bf16.mxu0 %v8168_v60 }
 0x183   : > { %7470 = vmatpush3.bf16.msra.mxu1 %v8167_v59  ;;  %v8215_v59 = vld [vmem:[%s8428_s15 + $0xc30] sm:$0xff]  }
 0x184   : > { %7471 = vmatprep.subr.bf16.mxu1 %v8169_v55 }
 0x185   : > { %7450 = vmatpush3.bf16.msra.mxu0 %v8170_v61 }
 0x186   : > { %7451 = vmatprep.subr.bf16.mxu0 %v8172_v63  ;;  %v8217_v63 = vld [vmem:[%s8428_s15 + $0xc78] sm:$0xff]  }
 0x187   : > { %7472 = vmatpush3.bf16.msra.mxu1 %v8171_v62  ;;  %v8216_v62 = vld [vmem:[%s8428_s15 + $0xcb0] sm:$0xff]  }
 0x188   : > { %7473 = vmatprep.subr.bf16.mxu1 %v8173_v0  ;;  %v324_v0 = vld [vmem:[%s8423_s11 + $0x30] sm:$0xff] }
 0x189   : > { %7452 = vmatpush3.bf16.msra.mxu0 %v8174_v1 }
 0x18a   : > { %7453 = vmatprep.subr.bf16.mxu0 %v8176_v3  ;;  %v1659_v3 = vrot.slane %v324_v0, %v8466_v42 }
 0x18b   : > { %7474 = vmatpush3.bf16.msra.mxu1 %v8175_v2  ;;  %v7151_v8 = vpop.f32.mrb[16].mxu0 }
 0x18c   : > { %v7152_v10 = vpop.f32.mrb[17].mxu0  ;;  %7475 = vmatprep.subr.bf16.mxu1 %v8177_v4  ;;  %v1652_v4 = vcombine.high %v324_v0, %v324_v0  ;;  %v8251_v0 = vld [vmem:[%s8428_s15 + $0xd38] sm:$0xff]  }
 0x18d   : > { %v7173_v12 = vpop.f32.mrb[16].mxu1  ;;  %v7153_v13 = vadd.f32 %v7152_v10, %v7151_v8  ;;  %v7154_v14 = vpop.f32.mrb[18].mxu0  ;;  %7454 = vmatpush3.bf16.msra.mxu0 %v8178_v5  ;;  %v8218_v8 = vld [vmem:[%s8428_s15 + $0xcf8] sm:$0xff]  }
 0x18e   : > { %v7174_v17 = vpop.f32.mrb[17].mxu1  ;;  %v7155_v18 = vpop.f32.mrb[19].mxu0  ;;  %7455 = vmatprep.subr.bf16.mxu0 %v8180_v7  ;;  %v8219_v10 = vld [vmem:[%s8428_s15 + $0xc38] sm:$0xff]  }
 0x18f   : > { %v5241_v19 = vadd.f32 %v7153_v13, %v8858_v37  ;;  %v7175_v20 = vadd.f32 %v7174_v17, %v7173_v12  ;;  %v7176_v21 = vpop.f32.mrb[18].mxu1  ;;  %7476 = vmatpush3.bf16.msra.mxu1 %v8179_v6  ;;  %v8197_v37 = vld [vmem:[%s8428_s15 + $0xc50] sm:$0xff]   ;;  %v8938_v12 = vrot.slane %v1652_v4, %v8466_v42  ;;  %v8220_v14 = vld [vmem:[%s8428_s15 + $0xcb8] sm:$0xff]   ;;  %v8221_v17 = vld [vmem:[%s8428_s15 + $0xd40] sm:$0xff]  }
 0x190   : > { %v7177_v23 = vpop.f32.mrb[19].mxu1  ;;  %7477 = vmatprep.subr.bf16.mxu1 %v8181_v9  ;;  %v8223_v21 = vld [vmem:[%s8428_s15 + $0xd00] sm:$0xff]  }
 0x191   : > { %v8898_v25 = vadd.f32 %v7175_v20, %v5241_v19  ;;  %7456 = vmatpush3.bf16.msra.mxu0 %v8182_v11  ;;  %v1667_v11 = vcombine.high %v1659_v3, %v1659_v3  ;;  %v1668_v18 = vcombine.high %v8938_v12, %v8938_v12  ;;  %v8222_v19 = vld [vmem:[%s8428_s15 + $0xdc0] sm:$0xff]  }
 0x192   : > { %7457 = vmatprep.subr.bf16.mxu0 %v8184_v16  ;;  %v1675_v16 = vrot.slane %v1659_v3, %v8466_v42  ;;  %v8224_v23 = vld [vmem:[%s8428_s15 + $0xd80] sm:$0xff]   ;;  %v1682_v3 = vrot.slane %v8938_v12, %v8466_v42  ;;  %v8261_v12 = vld [vmem:[%s8428_s15 + $0xe88] sm:$0xff]  }
 0x193   : > { %7478 = vmatpush3.bf16.msra.mxu1 %v8183_v15  ;;  %v1689_v15 = vrot.slane %v1667_v11, %v8466_v42  ;;  %v8254_v4 = vld [vmem:[%s8428_s15 + $0xe40] sm:$0xff]   ;;  %v8260_v11 = vld [vmem:[%s8428_s15 + $0xe08] sm:$0xff]  }
 0x194   : > { %7479 = vmatprep.subr.bf16.mxu1 %v8185_v22  ;;  %v1696_v22 = vrot.slane %v1668_v18, %v8466_v42  ;;  %v8267_v18 = vld [vmem:[%s8428_s15 + $0xed8] sm:$0xff]  }
 0x195   : > { %7458 = vmatpush3.bf16.msra.mxu0 %v8186_v24  ;;  %v1699_v20 = vcombine.high %v1689_v15, %v1689_v15  ;;  %v1697_v24 = vcombine.high %v1675_v16, %v1675_v16 }
 0x196   : > { %7487 = vmatprep.subr.bf16.mxu0 %v8189_v28  ;;  %v8227_v28 = vld [vmem:[%s8428_s15 + $0xd08] sm:$0xff]  }
 0x197   : > { %7480 = vmatpush3.bf16.msra.mxu1 %v8187_v26  ;;  %v8226_v26 = vld [vmem:[%s8428_s15 + $0xdc8] sm:$0xff]  }
 0x198   : > { %5799 = vmatmul.mubr.bf16.vlgmr.msra.gmra.mrb[44].mxu0 %v1633_v27  ;;  %7509 = vmatprep.subr.bf16.mxu1 %v8190_v29  ;;  %v1700_v27 = vcombine.high %v1696_v22, %v1696_v22  ;;  %v8228_v29 = vld [vmem:[%s8428_s15 + $0xd88] sm:$0xff]  }
 0x199   : > { %7488 = vmatpush3.bf16.msra.mxu0 %v8191_v30  ;;  %5878 = vmatprep.mubr.bf16.mxu0 %v1689_v15  ;;  %v8229_v30 = vld [vmem:[%s8428_s15 + $0xd50] sm:$0xff]  }
 0x19a   : > { %5839 = vmatmul.mubr.bf16.vlgmr.msra.gmra.mrb[44].mxu1 %v1649_v32  ;;  %7489 = vmatprep.subr.bf16.mxu0 %v8193_v33  ;;  %v8231_v32 = vld [vmem:[%s8428_s15 + $0xd10] sm:$0xff]  }
 0x19b   : > { %7510 = vmatpush3.bf16.msra.mxu1 %v8192_v31  ;;  %5918 = vmatprep.mubr.bf16.mxu1 %v1699_v20  ;;  %v8230_v31 = vld [vmem:[%s8428_s15 + $0xdd0] sm:$0xff]   ;;  %v8269_v20 = vld [vmem:[%s8428_s15 + $0xe98] sm:$0xff]  }
 0x19c   : > { %7511 = vmatprep.subr.bf16.mxu1 %v8194_v34  ;;  %v8232_v33 = vld [vmem:[%s8428_s15 + $0xd90] sm:$0xff]   ;;  %v8233_v34 = vld [vmem:[%s8428_s15 + $0xd58] sm:$0xff]  }
 0x19d   : > { %7490 = vmatpush3.bf16.msra.mxu0 %v8195_v35  ;;  %v8234_v35 = vld [vmem:[%s8428_s15 + $0xdd8] sm:$0xff]   ;;  %v8264_v15 = vld [vmem:[%s8428_s15 + $0xe10] sm:$0xff]  }
 0x19e   : > { %7491 = vmatprep.subr.bf16.mxu0 %v8197_v37  ;;  %v8236_v37 = vld [vmem:[%s8428_s15 + $0xd98] sm:$0xff]  }
 0x19f   : > { %7512 = vmatpush3.bf16.msra.mxu1 %v8196_v36  ;;  %v8235_v36 = vld [vmem:[%s8428_s15 + $0xd18] sm:$0xff]  }
 0x1a0   : > { %7513 = vmatprep.subr.bf16.mxu1 %v8198_v38  ;;  %v8237_v38 = vld [vmem:[%s8428_s15 + $0xd60] sm:$0xff]  }
 0x1a1   : > { %7492 = vmatpush3.bf16.msra.mxu0 %v8199_v39  ;;  %v8238_v39 = vld [vmem:[%s8428_s15 + $0xde0] sm:$0xff]  }
 0x1a2   : > { %7493 = vmatprep.subr.bf16.mxu0 %v8201_v41  ;;  %v8240_v41 = vld [vmem:[%s8428_s15 + $0xda0] sm:$0xff]  }
 0x1a3   : > { %7514 = vmatpush3.bf16.msra.mxu1 %v8200_v40  ;;  %v8239_v40 = vld [vmem:[%s8428_s15 + $0xd20] sm:$0xff]  }
 0x1a4   : > { %7515 = vmatprep.subr.bf16.mxu1 %v8202_v43  ;;  %v8241_v43 = vld [vmem:[%s8428_s15 + $0xd68] sm:$0xff]  }
 0x1a5   : > { %7494 = vmatpush3.bf16.msra.mxu0 %v8203_v44  ;;  %v8242_v44 = vld [vmem:[%s8428_s15 + $0xde8] sm:$0xff]  }
 0x1a6   : > { %7495 = vmatprep.subr.bf16.mxu0 %v8205_v46  ;;  %v8244_v46 = vld [vmem:[%s8428_s15 + $0xda8] sm:$0xff]  }
 0x1a7   : > { %7516 = vmatpush3.bf16.msra.mxu1 %v8204_v45  ;;  %v8243_v45 = vld [vmem:[%s8428_s15 + $0xd28] sm:$0xff]  }
 0x1a8   : > { %7517 = vmatprep.subr.bf16.mxu1 %v8206_v47  ;;  %v8245_v47 = vld [vmem:[%s8428_s15 + $0xd70] sm:$0xff]  }
 0x1a9   : > { %7496 = vmatpush3.bf16.msra.mxu0 %v8207_v48 }
 0x1aa   : > { %7497 = vmatprep.subr.bf16.mxu0 %v8209_v50 }
 0x1ab   : > { %7518 = vmatpush3.bf16.msra.mxu1 %v8208_v49  ;;  %v7195_v56 = vpop.f32.mrb[20].mxu0  ;;  %v8246_v49 = vld [vmem:[%s8428_s15 + $0xdf0] sm:$0xff]  }
 0x1ac   : > { %v7196_v58 = vpop.f32.mrb[21].mxu0  ;;  %7519 = vmatprep.subr.bf16.mxu1 %v8210_v51  ;;  %v8247_v51 = vld [vmem:[%s8428_s15 + $0xd30] sm:$0xff]  }
 0x1ad   : > { %v7217_v60 = vpop.f32.mrb[20].mxu1  ;;  %v7197_v55 = vadd.f32 %v7196_v58, %v7195_v56  ;;  %v7198_v61 = vpop.f32.mrb[22].mxu0  ;;  %7498 = vmatpush3.bf16.msra.mxu0 %v8211_v52  ;;  %v8248_v56 = vld [vmem:[%s8428_s15 + $0xdb0] sm:$0xff]  }
 0x1ae   : > { %v7218_v1 = vpop.f32.mrb[21].mxu1  ;;  %v7199_v2 = vpop.f32.mrb[23].mxu0  ;;  %7499 = vmatprep.subr.bf16.mxu0 %v8213_v54 }
 0x1af   : > { %v5321_v5 = vadd.f32 %v7197_v55, %v8898_v25  ;;  %v7219_v6 = vadd.f32 %v7218_v1, %v7217_v60  ;;  %v7220_v7 = vpop.f32.mrb[22].mxu1  ;;  %7520 = vmatpush3.bf16.msra.mxu1 %v8212_v53  ;;  %v8225_v25 = vld [vmem:[%s8428_s15 + $0xd48] sm:$0xff]   ;;  %v8252_v2 = vld [vmem:[%s8428_s15 + $0xdb8] sm:$0xff]  }
 0x1b0   : > { %v7221_v9 = vpop.f32.mrb[23].mxu1  ;;  %7521 = vmatprep.subr.bf16.mxu1 %v8214_v57  ;;  %v8249_v57 = vld [vmem:[%s8428_s15 + $0xd78] sm:$0xff]   ;;  %v8257_v7 = vld [vmem:[%s8428_s15 + $0xe80] sm:$0xff]  }
 0x1b1   : > { %v8940_v13 = vadd.f32 %v7219_v6, %v5321_v5  ;;  %7500 = vmatpush3.bf16.msra.mxu0 %v8215_v59  ;;  %v8255_v5 = vld [vmem:[%s8428_s15 + $0xec0] sm:$0xff]   ;;  %v8258_v9 = vld [vmem:[%s8428_s15 + $0xe48] sm:$0xff]  }
 0x1b2   : > { %7501 = vmatprep.subr.bf16.mxu0 %v8217_v63  ;;  %v8256_v6 = vld [vmem:[%s8428_s15 + $0xe00] sm:$0xff]  }
 0x1b3   : > { %7522 = vmatpush3.bf16.msra.mxu1 %v8216_v62  ;;  %v8250_v62 = vld [vmem:[%s8428_s15 + $0xdf8] sm:$0xff]  }
 0x1b4   : > { %7523 = vmatprep.subr.bf16.mxu1 %v8218_v8  ;;  %v1698_v8 = vcombine.high %v1682_v3, %v1682_v3 }
 0x1b5   : > { %7502 = vmatpush3.bf16.msra.mxu0 %v8219_v10  ;;  %v8259_v10 = vld [vmem:[%s8428_s15 + $0xec8] sm:$0xff]  }
 0x1b6   : > { %7531 = vmatprep.subr.bf16.mxu0 %v8221_v17  ;;  %v8266_v17 = vld [vmem:[%s8428_s15 + $0xe58] sm:$0xff]  }
 0x1b7   : > { %7524 = vmatpush3.bf16.msra.mxu1 %v8220_v14  ;;  %v8263_v14 = vld [vmem:[%s8428_s15 + $0xed0] sm:$0xff]  }
 0x1b8   : > { %5879 = vmatmul.mubr.bf16.vlgmr.msra.gmra.mrb[48].mxu0 %v1675_v16  ;;  %7553 = vmatprep.subr.bf16.mxu1 %v8222_v19  ;;  %v8265_v16 = vld [vmem:[%s8428_s15 + $0xe90] sm:$0xff]   ;;  %v8268_v19 = vld [vmem:[%s8428_s15 + $0xe18] sm:$0xff]  }
 0x1b9   : > { %7532 = vmatpush3.bf16.msra.mxu0 %v8223_v21  ;;  %5958 = vmatprep.mubr.bf16.mxu0 %v1696_v22  ;;  %v8270_v21 = vld [vmem:[%s8428_s15 + $0xe60] sm:$0xff]  }
 0x1ba   : > { %5919 = vmatmul.mubr.bf16.vlgmr.msra.gmra.mrb[48].mxu1 %v1697_v24  ;;  %7533 = vmatprep.subr.bf16.mxu0 %v8225_v25  ;;  %v8271_v22 = vld [vmem:[%s8428_s15 + $0xee0] sm:$0xff]   ;;  %v8274_v25 = vld [vmem:[%s8428_s15 + $0xe68] sm:$0xff]  }
 0x1bb   : > { %7554 = vmatpush3.bf16.msra.mxu1 %v8224_v23  ;;  %5998 = vmatprep.mubr.bf16.mxu1 %v1700_v27  ;;  %v8272_v23 = vld [vmem:[%s8428_s15 + $0xe20] sm:$0xff]   ;;  %v8276_v27 = vld [vmem:[%s8428_s15 + $0xe28] sm:$0xff]  }
 0x1bc   : > { %7555 = vmatprep.subr.bf16.mxu1 %v8226_v26  ;;  %v8273_v24 = vld [vmem:[%s8428_s15 + $0xea0] sm:$0xff]   ;;  %v8275_v26 = vld [vmem:[%s8428_s15 + $0xee8] sm:$0xff]  }
 0x1bd   : > { %7534 = vmatpush3.bf16.msra.mxu0 %v8227_v28  ;;  %v8277_v28 = vld [vmem:[%s8428_s15 + $0xea8] sm:$0xff]  }
 0x1be   : > { %7535 = vmatprep.subr.bf16.mxu0 %v8229_v30 }
 0x1bf   : > { %7556 = vmatpush3.bf16.msra.mxu1 %v8228_v29  ;;  %v8278_v29 = vld [vmem:[%s8428_s15 + $0xe70] sm:$0xff]  }
 0x1c0   : > { %7557 = vmatprep.subr.bf16.mxu1 %v8230_v31  ;;  %v8279_v31 = vld [vmem:[%s8428_s15 + $0xef0] sm:$0xff]  }
 0x1c1   : > { %7536 = vmatpush3.bf16.msra.mxu0 %v8231_v32 }
 0x1c2   : > { %7537 = vmatprep.subr.bf16.mxu0 %v8233_v34 }
 0x1c3   : > { %7558 = vmatpush3.bf16.msra.mxu1 %v8232_v33  ;;  %v8280_v33 = vld [vmem:[%s8428_s15 + $0xe30] sm:$0xff]  }
 0x1c4   : > { %7559 = vmatprep.subr.bf16.mxu1 %v8234_v35 }
 0x1c5   : > { %7538 = vmatpush3.bf16.msra.mxu0 %v8235_v36 }
 0x1c6   : > { %7539 = vmatprep.subr.bf16.mxu0 %v8237_v38  ;;  %v8282_v38 = vld [vmem:[%s8428_s15 + $0xe78] sm:$0xff]  }
 0x1c7   : > { %7560 = vmatpush3.bf16.msra.mxu1 %v8236_v37  ;;  %v8281_v37 = vld [vmem:[%s8428_s15 + $0xeb0] sm:$0xff]  }
 0x1c8   : > { %7561 = vmatprep.subr.bf16.mxu1 %v8238_v39 }
 0x1c9   : > { %7540 = vmatpush3.bf16.msra.mxu0 %v8239_v40 }
 0x1ca   : > { %7541 = vmatprep.subr.bf16.mxu0 %v8241_v43 }
 0x1cb   : > { %7562 = vmatpush3.bf16.msra.mxu1 %v8240_v41  ;;  %v7239_v48 = vpop.f32.mrb[24].mxu0 }
 0x1cc   : > { %v7240_v50 = vpop.f32.mrb[25].mxu0  ;;  %7563 = vmatprep.subr.bf16.mxu1 %v8242_v44 }
 0x1cd   : > { %v7261_v52 = vpop.f32.mrb[24].mxu1  ;;  %v7241_v53 = vadd.f32 %v7240_v50, %v7239_v48  ;;  %v7242_v54 = vpop.f32.mrb[26].mxu0  ;;  %7542 = vmatpush3.bf16.msra.mxu0 %v8243_v45  ;;  %v325_v45 = vld [vmem:[%s8423_s11 + $0x38] sm:$0xff] }
 0x1ce   : > { %v7262_v58 = vpop.f32.mrb[25].mxu1  ;;  %v7243_v59 = vpop.f32.mrb[27].mxu0  ;;  %7543 = vmatprep.subr.bf16.mxu0 %v8245_v47  ;;  %v8283_v47 = vld [vmem:[%s8428_s15 + $0xef8] sm:$0xff]   ;;  %v1708_v48 = vrot.slane %v325_v45, %v8466_v42  ;;  %v8286_v54 = vld [vmem:[%s8428_s15 + $0xf40] sm:$0xff]  }
 0x1cf   : > { %v5401_v60 = vadd.f32 %v7241_v53, %v8940_v13  ;;  %v7263_v55 = vadd.f32 %v7262_v58, %v7261_v52  ;;  %v7264_v61 = vpop.f32.mrb[26].mxu1  ;;  %7564 = vmatpush3.bf16.msra.mxu1 %v8244_v46  ;;  %v8262_v13 = vld [vmem:[%s8428_s15 + $0xe50] sm:$0xff]   ;;  %v8287_v59 = vld [vmem:[%s8428_s15 + $0xfc0] sm:$0xff]  }
 0x1d0   : > { %v7265_v63 = vpop.f32.mrb[27].mxu1  ;;  %7565 = vmatprep.subr.bf16.mxu1 %v8246_v49  ;;  %v1701_v49 = vcombine.high %v325_v45, %v325_v45  ;;  %v1716_v52 = vcombine.high %v1708_v48, %v1708_v48  ;;  %v1724_v53 = vrot.slane %v1708_v48, %v8466_v42 }
 0x1d1   : > { %v8980_v1 = vadd.f32 %v7263_v55, %v5401_v60  ;;  %7544 = vmatpush3.bf16.msra.mxu0 %v8247_v51  ;;  %v8284_v51 = vld [vmem:[%s8428_s15 + $0xe38] sm:$0xff]   ;;  %v8288_v55 = vld [vmem:[%s8428_s15 + $0xf00] sm:$0xff]   ;;  %v8290_v63 = vld [vmem:[%s8428_s15 + $0xf48] sm:$0xff]  }
 0x1d2   : > { %7545 = vmatprep.subr.bf16.mxu0 %v8249_v57  ;;  %v8285_v57 = vld [vmem:[%s8428_s15 + $0xeb8] sm:$0xff]   ;;  %v1738_v58 = vrot.slane %v1716_v52, %v8466_v42 }
 0x1d3   : > { %7566 = vmatpush3.bf16.msra.mxu1 %v8248_v56  ;;  %v9024_v56 = vrot.slane %v1701_v49, %v8466_v42 }
 0x1d4   : > { %7567 = vmatprep.subr.bf16.mxu1 %v8250_v62  ;;  %v1748_v61 = vcombine.high %v1738_v58, %v1738_v58  ;;  %v1746_v62 = vcombine.high %v1724_v53, %v1724_v53 }
 0x1d5   : > { %7546 = vmatpush3.bf16.msra.mxu0 %v8251_v0  ;;  %v1717_v60 = vcombine.high %v9024_v56, %v9024_v56 }
 0x1d6   : > { %7575 = vmatprep.subr.bf16.mxu0 %v8254_v4  ;;  %v8292_v4 = vld [vmem:[%s8428_s15 + $0xf08] sm:$0xff]  }
 0x1d7   : > { %7568 = vmatpush3.bf16.msra.mxu1 %v8252_v2  ;;  %v1745_v0 = vrot.slane %v1717_v60, %v8466_v42  ;;  %v8291_v2 = vld [vmem:[%s8428_s15 + $0xfc8] sm:$0xff]  }
 0x1d8   : > { %5959 = vmatmul.mubr.bf16.vlgmr.msra.gmra.mrb[52].mxu0 %v1682_v3  ;;  %7597 = vmatprep.subr.bf16.mxu1 %v8255_v5  ;;  %v8294_v5 = vld [vmem:[%s8428_s15 + $0xf50] sm:$0xff]  }
 0x1d9   : > { %7576 = vmatpush3.bf16.msra.mxu0 %v8256_v6  ;;  %6038 = vmatprep.mubr.bf16.mxu0 %v1738_v58  ;;  %v1749_v3 = vcombine.high %v1745_v0, %v1745_v0  ;;  %v8293_v6 = vld [vmem:[%s8428_s15 + $0xf88] sm:$0xff]  }
 0x1da   : > { %5999 = vmatmul.mubr.bf16.vlgmr.msra.gmra.mrb[52].mxu1 %v1698_v8  ;;  %7577 = vmatprep.subr.bf16.mxu0 %v8258_v9  ;;  %v8296_v8 = vld [vmem:[%s8428_s15 + $0xf10] sm:$0xff]   ;;  %v8298_v9 = vld [vmem:[%s8428_s15 + $0xf58] sm:$0xff]  }
 0x1db   : > { %7598 = vmatpush3.bf16.msra.mxu1 %v8257_v7  ;;  %6078 = vmatprep.mubr.bf16.mxu1 %v1748_v61  ;;  %v8295_v7 = vld [vmem:[%s8428_s15 + $0xfd0] sm:$0xff]  }
 0x1dc   : > { %7599 = vmatprep.subr.bf16.mxu1 %v8259_v10  ;;  %v8297_v10 = vld [vmem:[%s8428_s15 + $0xf90] sm:$0xff]  }
 0x1dd   : > { %7578 = vmatpush3.bf16.msra.mxu0 %v8260_v11  ;;  %v8299_v11 = vld [vmem:[%s8428_s15 + $0xfd8] sm:$0xff]  }
 0x1de   : > { %7579 = vmatprep.subr.bf16.mxu0 %v8262_v13  ;;  %v8302_v13 = vld [vmem:[%s8428_s15 + $0xf60] sm:$0xff]  }
 0x1df   : > { %7600 = vmatpush3.bf16.msra.mxu1 %v8261_v12  ;;  %v8300_v12 = vld [vmem:[%s8428_s15 + $0xf18] sm:$0xff]  }
 0x1e0   : > { %7601 = vmatprep.subr.bf16.mxu1 %v8263_v14  ;;  %v8301_v14 = vld [vmem:[%s8428_s15 + $0xf98] sm:$0xff]  }
 0x1e1   : > { %7580 = vmatpush3.bf16.msra.mxu0 %v8264_v15  ;;  %v8303_v15 = vld [vmem:[%s8428_s15 + $0xfe0] sm:$0xff]  }
 0x1e2   : > { %7581 = vmatprep.subr.bf16.mxu0 %v8266_v17  ;;  %v8306_v17 = vld [vmem:[%s8428_s15 + $0xf68] sm:$0xff]  }
 0x1e3   : > { %7602 = vmatpush3.bf16.msra.mxu1 %v8265_v16  ;;  %v8304_v16 = vld [vmem:[%s8428_s15 + $0xf20] sm:$0xff]  }
 0x1e4   : > { %7603 = vmatprep.subr.bf16.mxu1 %v8267_v18  ;;  %v8305_v18 = vld [vmem:[%s8428_s15 + $0xfa0] sm:$0xff]  }
 0x1e5   : > { %7582 = vmatpush3.bf16.msra.mxu0 %v8268_v19  ;;  %v8307_v19 = vld [vmem:[%s8428_s15 + $0xfe8] sm:$0xff]  }
 0x1e6   : > { %7583 = vmatprep.subr.bf16.mxu0 %v8270_v21  ;;  %v8310_v21 = vld [vmem:[%s8428_s15 + $0xf70] sm:$0xff]  }
 0x1e7   : > { %7604 = vmatpush3.bf16.msra.mxu1 %v8269_v20  ;;  %v8308_v20 = vld [vmem:[%s8428_s15 + $0xf28] sm:$0xff]  }
 0x1e8   : > { %7605 = vmatprep.subr.bf16.mxu1 %v8271_v22 }
 0x1e9   : > { %7584 = vmatpush3.bf16.msra.mxu0 %v8272_v23  ;;  %v8309_v23 = vld [vmem:[%s8428_s15 + $0xfa8] sm:$0xff]  }
 0x1ea   : > { %7585 = vmatprep.subr.bf16.mxu0 %v8274_v25  ;;  %v8311_v25 = vld [vmem:[%s8428_s15 + $0xff0] sm:$0xff]  }
 0x1eb   : > { %7606 = vmatpush3.bf16.msra.mxu1 %v8273_v24  ;;  %v7283_v30 = vpop.f32.mrb[28].mxu0 }
 0x1ec   : > { %v7284_v32 = vpop.f32.mrb[29].mxu0  ;;  %7607 = vmatprep.subr.bf16.mxu1 %v8275_v26 }
 0x1ed   : > { %v7305_v34 = vpop.f32.mrb[28].mxu1  ;;  %v7285_v35 = vadd.f32 %v7284_v32, %v7283_v30  ;;  %v7286_v36 = vpop.f32.mrb[30].mxu0  ;;  %7586 = vmatpush3.bf16.msra.mxu0 %v8276_v27  ;;  %v8314_v30 = vld [vmem:[%s8428_s15 + $0xf78] sm:$0xff]  }
 0x1ee   : > { %v7306_v39 = vpop.f32.mrb[29].mxu1  ;;  %v7287_v40 = vpop.f32.mrb[31].mxu0  ;;  %7587 = vmatprep.subr.bf16.mxu0 %v8278_v29  ;;  %v8312_v29 = vld [vmem:[%s8428_s15 + $0xf30] sm:$0xff]  }
 0x1ef   : > { %v5481_v41 = vadd.f32 %v7285_v35, %v8980_v1  ;;  %v7307_v43 = vadd.f32 %v7306_v39, %v7305_v34  ;;  %v7308_v44 = vpop.f32.mrb[30].mxu1  ;;  %7608 = vmatpush3.bf16.msra.mxu1 %v8277_v28  ;;  %v8289_v1 = vld [vmem:[%s8428_s15 + $0xf80] sm:$0xff]   ;;  %v8313_v36 = vld [vmem:[%s8428_s15 + $0xfb0] sm:$0xff]   ;;  %v8316_v40 = vld [vmem:[%s8428_s15 + $0xf38] sm:$0xff]  }
 0x1f0   : > { %v7309_v46 = vpop.f32.mrb[31].mxu1  ;;  %7609 = vmatprep.subr.bf16.mxu1 %v8279_v31 }
 0x1f1   : > { %v9018_v50 = vadd.f32 %v7307_v43, %v5481_v41  ;;  %7588 = vmatpush3.bf16.msra.mxu0 %v8280_v33  ;;  %v1731_v41 = vrot.slane %v9024_v56, %v8466_v42  ;;  %v8317_v43 = vld [vmem:[%s8428_s15 + $0xfb8] sm:$0xff]  }
 0x1f2   : > { %7589 = vmatprep.subr.bf16.mxu0 %v8282_v38  ;;  %v8315_v38 = vld [vmem:[%s8428_s15 + $0xff8] sm:$0xff]  }
 0x1f3   : > { %7610 = vmatpush3.bf16.msra.mxu1 %v8281_v37  ;;  %v1747_v44 = vcombine.high %v1731_v41, %v1731_v41 }
 0x1f4   : > { %7611 = vmatprep.subr.bf16.mxu1 %v8283_v47 }
 0x1f5   : > { %7590 = vmatpush3.bf16.msra.mxu0 %v8284_v51 }
 0x1f6   : > { %7619 = vmatprep.subr.bf16.mxu0 %v8286_v54 }
 0x1f7   : > { %7612 = vmatpush3.bf16.msra.mxu1 %v8285_v57 }
 0x1f8   : > { %6039 = vmatmul.mubr.bf16.vlgmr.msra.gmra.mrb[56].mxu0 %v1724_v53  ;;  %7641 = vmatprep.subr.bf16.mxu1 %v8287_v59 }
 0x1f9   : > { %7620 = vmatpush3.bf16.msra.mxu0 %v8288_v55  ;;  %6118 = vmatprep.mubr.bf16.mxu0 %v1745_v0 }
 0x1fa   : > { %6079 = vmatmul.mubr.bf16.vlgmr.msra.gmra.mrb[56].mxu1 %v1746_v62  ;;  %7621 = vmatprep.subr.bf16.mxu0 %v8290_v63 }
 0x1fb   : > { %7642 = vmatpush3.bf16.msra.mxu1 %v8289_v1  ;;  %6158 = vmatprep.mubr.bf16.mxu1 %v1749_v3 }
 0x1fc   : > { %7643 = vmatprep.subr.bf16.mxu1 %v8291_v2 }
 0x1fd   : > { %7622 = vmatpush3.bf16.msra.mxu0 %v8292_v4 }
 0x1fe   : > { %7623 = vmatprep.subr.bf16.mxu0 %v8294_v5 }
 0x1ff   : > { %7644 = vmatpush3.bf16.msra.mxu1 %v8293_v6 }
 0x200   : > { %7645 = vmatprep.subr.bf16.mxu1 %v8295_v7 }
 0x201   : > { %7624 = vmatpush3.bf16.msra.mxu0 %v8296_v8 }
 0x202   : > { %7625 = vmatprep.subr.bf16.mxu0 %v8298_v9 }
 0x203   : > { %7646 = vmatpush3.bf16.msra.mxu1 %v8297_v10 }
 0x204   : > { %7647 = vmatprep.subr.bf16.mxu1 %v8299_v11 }
 0x205   : > { %7626 = vmatpush3.bf16.msra.mxu0 %v8300_v12 }
 0x206   : > { %7627 = vmatprep.subr.bf16.mxu0 %v8302_v13 }
 0x207   : > { %7648 = vmatpush3.bf16.msra.mxu1 %v8301_v14 }
 0x208   : > { %7649 = vmatprep.subr.bf16.mxu1 %v8303_v15 }
 0x209   : > { %7628 = vmatpush3.bf16.msra.mxu0 %v8304_v16 }
 0x20a   : > { %7629 = vmatprep.subr.bf16.mxu0 %v8306_v17 }
 0x20b   : > { %7650 = vmatpush3.bf16.msra.mxu1 %v8305_v18  ;;  %v7327_v22 = vpop.f32.mrb[32].mxu0 }
 0x20c   : > { %v7328_v24 = vpop.f32.mrb[33].mxu0  ;;  %7651 = vmatprep.subr.bf16.mxu1 %v8307_v19 }
 0x20d   : > { %v7349_v26 = vpop.f32.mrb[32].mxu1  ;;  %v7329_v27 = vadd.f32 %v7328_v24, %v7327_v22  ;;  %v7330_v28 = vpop.f32.mrb[34].mxu0  ;;  %7630 = vmatpush3.bf16.msra.mxu0 %v8308_v20 }
 0x20e   : > { %v7350_v31 = vpop.f32.mrb[33].mxu1  ;;  %v7331_v32 = vpop.f32.mrb[35].mxu0  ;;  %7631 = vmatprep.subr.bf16.mxu0 %v8310_v21 }
 0x20f   : > { %v5561_v33 = vadd.f32 %v7329_v27, %v9018_v50  ;;  %v7351_v34 = vadd.f32 %v7350_v31, %v7349_v26  ;;  %v7352_v35 = vpop.f32.mrb[34].mxu1  ;;  %7652 = vmatpush3.bf16.msra.mxu1 %v8309_v23 }
 0x210   : > { %v7353_v37 = vpop.f32.mrb[35].mxu1  ;;  %7653 = vmatprep.subr.bf16.mxu1 %v8311_v25 }
 0x211   : > { %v5601_v39 = vadd.f32 %v7351_v34, %v5561_v33  ;;  %7632 = vmatpush3.bf16.msra.mxu0 %v8312_v29 }
 0x212   : > { %7633 = vmatprep.subr.bf16.mxu0 %v8314_v30 }
 0x213   : > { %7654 = vmatpush3.bf16.msra.mxu1 %v8313_v36 }
 0x214   : > { %7655 = vmatprep.subr.bf16.mxu1 %v8315_v38 }
 0x215   : > { %7634 = vmatpush3.bf16.msra.mxu0 %v8316_v40 }
 0x217   : > { %7656 = vmatpush3.bf16.msra.mxu1 %v8317_v43 }
 0x218   : > { %6119 = vmatmul.mubr.bf16.vlgmr.msra.gmra.mrb[60].mxu0 %v1731_v41 }
 0x21a   : > { %6159 = vmatmul.mubr.bf16.vlgmr.msra.gmra.mrb[60].mxu1 %v1747_v44 }
 0x22b   : > { %v7371_v45 = vpop.f32.mrb[36].mxu0 }
 0x22c   : > { %v7372_v46 = vpop.f32.mrb[37].mxu0 }
 0x22d   : > { %v7393_v47 = vpop.f32.mrb[36].mxu1  ;;  %v7373_v48 = vadd.f32 %v7372_v46, %v7371_v45  ;;  %v7374_v49 = vpop.f32.mrb[38].mxu0 }
 0x22e   : > { %v7394_v50 = vpop.f32.mrb[37].mxu1  ;;  %v7375_v51 = vpop.f32.mrb[39].mxu0 }
 0x22f   : > { %v5641_v52 = vadd.f32 %v7373_v48, %v5601_v39  ;;  %v7395_v53 = vadd.f32 %v7394_v50, %v7393_v47  ;;  %v7396_v54 = vpop.f32.mrb[38].mxu1 }
 0x230   : > { %v7397_v57 = vpop.f32.mrb[39].mxu1 }
 0x231   : > { %v5681_v42 = vadd.f32 %v7395_v53, %v5641_v52 }
 0x24b   : > { %v7415_v56 = vpop.f32.mrb[40].mxu0 }
 0x24c   : > { %v7416_v58 = vpop.f32.mrb[41].mxu0 }
 0x24d   : > { %v7437_v59 = vpop.f32.mrb[40].mxu1  ;;  %v7417_v60 = vadd.f32 %v7416_v58, %v7415_v56  ;;  %v7418_v55 = vpop.f32.mrb[42].mxu0 }
 0x24e   : > { %v7438_v61 = vpop.f32.mrb[41].mxu1  ;;  %v7419_v62 = vpop.f32.mrb[43].mxu0 }
 0x24f   : > { %v5721_v63 = vadd.f32 %v7417_v60, %v5681_v42  ;;  %v7439_v0 = vadd.f32 %v7438_v61, %v7437_v59  ;;  %v7440_v1 = vpop.f32.mrb[42].mxu1  ;;  %v317_v62 = vld [vmem:[#allocation2] sm:$0x3] }
 0x250   : > { %v7441_v2 = vpop.f32.mrb[43].mxu1 }
 0x251   : > { %v5761_v3 = vadd.f32 %v7439_v0, %v5721_v63  ;;  %v6184_v2 = vld [vmem:[%s9179_s3] sm:$0xff] (!%p6950_p6) }
 0x26b   : > { %v7459_v4 = vpop.f32.mrb[44].mxu0 }
 0x26c   : > { %v7460_v5 = vpop.f32.mrb[45].mxu0 }
 0x26d   : > { %v7481_v6 = vpop.f32.mrb[44].mxu1  ;;  %v7461_v7 = vadd.f32 %v7460_v5, %v7459_v4  ;;  %v7462_v8 = vpop.f32.mrb[46].mxu0  ;;  %v6186_v4 = vld [vmem:[%s9179_s3 + $0x10] sm:$0xff] (!%p6950_p6)  ;;  %v8359_v5 = vmov (!%p6950_p6), 0.0|0.0  }
 0x26e   : > { %v7482_v9 = vpop.f32.mrb[45].mxu1  ;;  %v7463_v10 = vpop.f32.mrb[47].mxu0  ;;  %7743 = vmatprep.subr.bf16.mxu0 (!%p6950_p6), %v8359_v5  ;;  %v8361_v8 = vmov (!%p6950_p6), 0.0   ;;  %7767 = vmatprep.subr.bf16.mxu1 (!%p6950_p6), %v8359_v5 }
 0x26f   : > { %v5801_v11 = vadd.f32 %v7461_v7, %v5761_v3  ;;  %v7483_v12 = vadd.f32 %v7482_v9, %v7481_v6  ;;  %v7484_v13 = vpop.f32.mrb[46].mxu1  ;;  %v6185_v3 = vld [vmem:[%s9179_s3 + $0x8] sm:$0xff] (!%p6950_p6)  ;;  %v6187_v7 = vld [vmem:[%s9179_s3 + $0x18] sm:$0xff] (!%p6950_p6)  ;;  %7721 = vmatprep.mubr.msk.f32.mxu0 (!%p6950_p6), %vm8360_vm0, %v8361_v8  ;;  %7740 = vmatprep.mubr.msk.f32.mxu1 (!%p6950_p6), %vm8360_vm0, %v8361_v8  ;;  %v6188_v10 = vld [vmem:[%s9179_s3 + $0x20] sm:$0xff] (!%p6950_p6) }
 0x270   : > { %v7485_v14 = vpop.f32.mrb[47].mxu1  ;;  %v7744_v6 = vpack.c.bf16 (!%p6950_p6), %v6185_v3, %v6184_v2  ;;  %v7747_v9 = vpack.c.bf16 (!%p6950_p6), %v6187_v7, %v6186_v4  ;;  %v6951_v13 = vld [vmem:[%s9178_s2] ss:$0 sm:$0xff] (!%p6950_p6) }
 0x271   : > { %v5841_v15 = vadd.f32 %v7483_v12, %v5801_v11  ;;  %v6189_v11 = vld [vmem:[%s9179_s3 + $0x28] sm:$0xff] (!%p6950_p6) }
 0x272   : > { %7745 = vmatpush3.bf16.msra.mxu0 (!%p6950_p6), %v7744_v6 }
 0x273   : > { %7746 = vmatprep.subr.bf16.mxu0 (!%p6950_p6), %v8359_v5 }
 0x276   : > { %7748 = vmatpush3.bf16.msra.mxu0 (!%p6950_p6), %v7747_v9 }
 0x277   : > { %7749 = vmatprep.subr.bf16.mxu0 (!%p6950_p6), %v8359_v5 }
 0x28b   : > { %v7503_v16 = vpop.f32.mrb[48].mxu0 }
 0x28c   : > { %v7504_v17 = vpop.f32.mrb[49].mxu0 }
 0x28d   : > { %v7525_v18 = vpop.f32.mrb[48].mxu1  ;;  %v7505_v19 = vadd.f32 %v7504_v17, %v7503_v16  ;;  %v7506_v20 = vpop.f32.mrb[50].mxu0  ;;  %v6279_v16 = vld [vmem:[%s9181_s5 + $0x8] sm:$0xff] (!%p6950_p6)  ;;  %v6280_v17 = vld [vmem:[%s9181_s5 + $0x10] sm:$0xff] (!%p6950_p6) }
 0x28e   : > { %v7526_v21 = vpop.f32.mrb[49].mxu1  ;;  %v7507_v22 = vpop.f32.mrb[51].mxu0  ;;  %v6281_v20 = vld [vmem:[%s9181_s5 + $0x18] sm:$0xff] (!%p6950_p6) }
 0x28f   : > { %v5881_v23 = vadd.f32 %v7505_v19, %v5841_v15  ;;  %v7527_v24 = vadd.f32 %v7526_v21, %v7525_v18  ;;  %v7528_v25 = vpop.f32.mrb[50].mxu1  ;;  %v6278_v15 = vld [vmem:[%s9181_s5] sm:$0xff] (!%p6950_p6)  ;;  %v7750_v18 = vpack.c.bf16 (!%p6950_p6), %v6189_v11, %v6188_v10  ;;  %v6190_v21 = vld [vmem:[%s9179_s3 + $0x30] sm:$0xff] (!%p6950_p6)  ;;  %v6191_v22 = vld [vmem:[%s9179_s3 + $0x38] sm:$0xff] (!%p6950_p6) }
 0x290   : > { %v7529_v26 = vpop.f32.mrb[51].mxu1  ;;  %v7768_v19 = vpack.c.bf16 (!%p6950_p6), %v6279_v16, %v6278_v15 }
 0x291   : > { %v5921_v27 = vadd.f32 %v7527_v24, %v5881_v23  ;;  %v7771_v24 = vpack.c.bf16 (!%p6950_p6), %v6281_v20, %v6280_v17  ;;  %v6282_v26 = vld [vmem:[%s9181_s5 + $0x20] sm:$0xff] (!%p6950_p6)  ;;  %7751 = vmatpush3.bf16.msra.mxu0 (!%p6950_p6), %v7750_v18 }
 0x292   : > { %7769 = vmatpush3.bf16.msra.mxu1 (!%p6950_p6), %v7768_v19  ;;  %7752 = vmatprep.subr.bf16.mxu0 (!%p6950_p6), %v8359_v5 }
 0x293   : > { %7770 = vmatprep.subr.bf16.mxu1 (!%p6950_p6), %v8359_v5 }
 0x296   : > { %7772 = vmatpush3.bf16.msra.mxu1 (!%p6950_p6), %v7771_v24 }
 0x297   : > { %7773 = vmatprep.subr.bf16.mxu1 (!%p6950_p6), %v8359_v5 }
 0x2ab   : > { %v7547_v28 = vpop.f32.mrb[52].mxu0 }
 0x2ac   : > { %v7548_v29 = vpop.f32.mrb[53].mxu0 }
 0x2ad   : > { %v7569_v30 = vpop.f32.mrb[52].mxu1  ;;  %v7549_v31 = vadd.f32 %v7548_v29, %v7547_v28  ;;  %v7550_v32 = vpop.f32.mrb[54].mxu0  ;;  %v7753_v28 = vpack.c.bf16 (!%p6950_p6), %v6191_v22, %v6190_v21  ;;  %v6192_v29 = vld [vmem:[%s9179_s3 + $0x40] sm:$0xff] (!%p6950_p6) }
 0x2ae   : > { %v7570_v33 = vpop.f32.mrb[53].mxu1  ;;  %v7551_v34 = vpop.f32.mrb[55].mxu0 }
 0x2af   : > { %v5961_v35 = vadd.f32 %v7549_v31, %v5921_v27  ;;  %v7571_v36 = vadd.f32 %v7570_v33, %v7569_v30  ;;  %v7572_v37 = vpop.f32.mrb[54].mxu1  ;;  %v6283_v27 = vld [vmem:[%s9181_s5 + $0x28] sm:$0xff] (!%p6950_p6)  ;;  %7754 = vmatpush3.bf16.msra.mxu0 (!%p6950_p6), %v7753_v28  ;;  %v6194_v33 = vld [vmem:[%s9179_s3 + $0x50] sm:$0xff] (!%p6950_p6)  ;;  %v6195_v34 = vld [vmem:[%s9179_s3 + $0x58] sm:$0xff] (!%p6950_p6) }
 0x2b0   : > { %v7573_v38 = vpop.f32.mrb[55].mxu1  ;;  %v6193_v30 = vld [vmem:[%s9179_s3 + $0x48] sm:$0xff] (!%p6950_p6)  ;;  %v7774_v31 = vpack.c.bf16 (!%p6950_p6), %v6283_v27, %v6282_v26  ;;  %7755 = vmatprep.subr.bf16.mxu0 (!%p6950_p6), %v8359_v5 }
 0x2b1   : > { %v6001_v39 = vadd.f32 %v7571_v36, %v5961_v35  ;;  %v7756_v32 = vpack.c.bf16 (!%p6950_p6), %v6193_v30, %v6192_v29  ;;  %v7759_v35 = vpack.c.bf16 (!%p6950_p6), %v6195_v34, %v6194_v33  ;;  %v6196_v36 = vld [vmem:[%s9179_s3 + $0x60] sm:$0xff] (!%p6950_p6)  ;;  %v6197_v37 = vld [vmem:[%s9179_s3 + $0x68] sm:$0xff] (!%p6950_p6) }
 0x2b2   : > { %7775 = vmatpush3.bf16.msra.mxu1 (!%p6950_p6), %v7774_v31  ;;  %v7762_v38 = vpack.c.bf16 (!%p6950_p6), %v6197_v37, %v6196_v36 }
 0x2b3   : > { %7776 = vmatprep.subr.bf16.mxu1 (!%p6950_p6), %v8359_v5  ;;  %7757 = vmatpush3.bf16.msra.mxu0 (!%p6950_p6), %v7756_v32 }
 0x2b4   : > { %7758 = vmatprep.subr.bf16.mxu0 (!%p6950_p6), %v8359_v5 }
 0x2b7   : > { %7760 = vmatpush3.bf16.msra.mxu0 (!%p6950_p6), %v7759_v35 }
 0x2b8   : > { %7761 = vmatprep.subr.bf16.mxu0 (!%p6950_p6), %v8359_v5 }
 0x2bb   : > { %7763 = vmatpush3.bf16.msra.mxu0 (!%p6950_p6), %v7762_v38 }
 0x2bc   : > { %7764 = vmatprep.subr.bf16.mxu0 (!%p6950_p6), %v8359_v5 }
 0x2cb   : > { %v7591_v40 = vpop.f32.mrb[56].mxu0 }
 0x2cc   : > { %v7592_v41 = vpop.f32.mrb[57].mxu0 }
 0x2cd   : > { %v7613_v43 = vpop.f32.mrb[56].mxu1  ;;  %v7593_v44 = vadd.f32 %v7592_v41, %v7591_v40  ;;  %v7594_v45 = vpop.f32.mrb[58].mxu0  ;;  %v6199_v40 = vld [vmem:[%s9179_s3 + $0x78] sm:$0xff] (!%p6950_p6) }
 0x2ce   : > { %v7614_v46 = vpop.f32.mrb[57].mxu1  ;;  %v7595_v47 = vpop.f32.mrb[59].mxu0 }
 0x2cf   : > { %v6041_v48 = vadd.f32 %v7593_v44, %v6001_v39  ;;  %v7615_v49 = vadd.f32 %v7614_v46, %v7613_v43  ;;  %v7616_v50 = vpop.f32.mrb[58].mxu1  ;;  %v6198_v39 = vld [vmem:[%s9179_s3 + $0x70] sm:$0xff] (!%p6950_p6)  ;;  %v6285_v44 = vld [vmem:[%s9181_s5 + $0x38] sm:$0xff] (!%p6950_p6)  ;;  %v6952_v46 = vld [vmem:[%s9180_s4] ss:$0 sm:$0xff] (!%p6950_p6) }
 0x2d0   : > { %v7617_v51 = vpop.f32.mrb[59].mxu1  ;;  %v7765_v41 = vpack.c.bf16 (!%p6950_p6), %v6199_v40, %v6198_v39  ;;  %v6284_v43 = vld [vmem:[%s9181_s5 + $0x30] sm:$0xff] (!%p6950_p6) }
 0x2d1   : > { %v6081_v52 = vadd.f32 %v7615_v49, %v6041_v48  ;;  %v7777_v45 = vpack.c.bf16 (!%p6950_p6), %v6285_v44, %v6284_v43  ;;  %v6953_v51 = vld [vmem:[%s9182_s6] ss:$0 sm:$0xff] (!%p6950_p6) }
 0x2d2   : > { %7766 = vmatpush3.bf16.msra.mxu0 (!%p6950_p6), %v7765_v41 }
 0x2d3   : > { %7778 = vmatpush3.bf16.msra.mxu1 (!%p6950_p6), %v7777_v45 }
 0x2eb   : > { %v7635_v53 = vpop.f32.mrb[60].mxu0 }
 0x2ec   : > { %v7636_v54 = vpop.f32.mrb[61].mxu0 }
 0x2ed   : > { %v7657_v57 = vpop.f32.mrb[60].mxu1  ;;  %v7637_v42 = vadd.f32 %v7636_v54, %v7635_v53  ;;  %v7638_v56 = vpop.f32.mrb[62].mxu0 }
 0x2ee   : > { %v7658_v58 = vpop.f32.mrb[61].mxu1  ;;  %v7639_v59 = vpop.f32.mrb[63].mxu0 }
 0x2ef   : > { %v6121_v60 = vadd.f32 %v7637_v42, %v6081_v52  ;;  %v7659_v55 = vadd.f32 %v7658_v58, %v7657_v57  ;;  %v7660_v61 = vpop.f32.mrb[62].mxu1  ;;  %6171 = sbr.rel (%p6950_p6) target bundleno = 1200 (0x4b0), region = 56 }
 0x2f0   : > { %v7661_v63 = vpop.f32.mrb[63].mxu1 }
 0x2f1   : > { %v6161_v0 = vadd.f32 %v7659_v55, %v6121_v60 }
 0x2f3   : > { %v6166_v1 = vadd.f32 %v6161_v0, %v317_v62 }
 0x2f5   : > { %6167 = vst [vmem:[#allocation2] sm:$0x3] %v6166_v1 }
 0x2fc   : > { %v6172_v12 = vld [vmem:[#allocation2] sm:$0x3] }
 0x2fd   : > { %v6180_v14 = vadd.f32 %v6951_v13, %v6172_v12 }
 0x2ff   : > { %v6181_v23 = vmax.f32 %v6180_v14, 0.0 }
 0x301   : > { %v6182_v25 = vpack.c.bf16 %v6181_v23, %v6181_v23  ;;  %7722 = vmatmul.mubr.f32.vlgmr.msra.gmra.mrb[0].mxu0 %v6181_v23 }
 0x303   : > { %6183 = vst [vmem:[%s9183_s7] sm:$0x1] %v6182_v25 }
 0x3d4   : > { %v6273_v47 = vpop.f32.mrb[0].mxu0 }
 0x3d5   : > { %v6274_v48 = vadd.f32 %v6952_v46, %v6273_v47  ;;  %v7723_v49 = vpop.f32.mrb[1].mxu0 }
 0x3d7   : > { %v6277_v50 = vmax.f32 %v6274_v48, 0.0 }
 0x3d9   : > { %7741 = vmatmul.mubr.msk.f32.vlgmr.msra.gmra.mrb[0].mxu1 %vm6293_vm1, %v6277_v50 }
 0x4ac   : > { %v6363_v52 = vpop.f32.mrb[0].mxu1 }
 0x4ad   : > { %v6364_v53 = vadd.f32 %v6953_v51, %v6363_v52  ;;  %v7742_v54 = vpop.f32.mrb[1].mxu1 }
 0x4af   : > { %6368 = vst.msk [vmem:[#allocation3] sm:$0x3] %vm6367_vm2, %v6364_v53 }
 0x4b0 PF: > { %p7783_p7 = scmp.eq.s32.totalorder %s8414_s28, 1  ;;  %s8362_s12 = smov [#allocation3]  }
 0x4b1   : > { %s6379_s13 = sshll.u32 %s8362_s12, 4  ;;  %s6380_s13 = int_to_ptr.vmem [resolvable:$true] %s6379_s13 }
 0x4b2   : > { %s8319_s14 = scalar_lea.vmem %s6380_s13, 32  ;;  %p8326_p11 = scmp.lt.s32.totalorder %s6380_s13, %s6380_s13 }
 0x4b3   : > { %p8320_p8 = scmp.ne.s32.totalorder %s6380_s13, %s8319_s14  ;;  %p8327_p12 = scmp.lt.s32.totalorder %s8319_s14, %s8319_s14 }
 0x4b5   : > { %p8321_p9 = pnand %p8320_p8, %p7783_p7  ;;  %p8328_p13 = por %p8327_p12, %p8326_p11 }
 0x4b7   : > { %p8322_p10 = pneg %p8321_p9 }
 0x4b9   : > { %p8329_p0 = pnand %p8328_p13, %p8322_p10 }
 0x4bb   : > { %8332 = shalt.err (!%p8329_p0)
}
 0x4bc   : > { %s8333_s17 = scalar_lea.hbm %s9184_s8, 32 }
 0x4bd   : > { %p8334_p1 = scmp.ne.s32.totalorder %s9184_s8, %s8333_s17  ;;  %p8339_p4 = scmp.lt.u32.totalorder %s8333_s17, %s9184_s8 }
 0x4bf   : > { %p8335_p2 = pnand %p8334_p1, %p7783_p7 }
 0x4c1   : > { %p8336_p3 = pneg %p8335_p2 }
 0x4c3   : > { %p8341_p5 = pnand %p8339_p4, %p8336_p3 }
 0x4c5   : > { %8344 = shalt.err (!%p8341_p5)
}
 0x4c6   : > { %7780 = dma.vmem_to_hbm [thread:$0]  (%p7783_p7), %s6380_s13, 32, %s9184_s8, [#allocation4]  }
 0x4c7   : > { %8350 = dma.done.wait (%p7783_p7), [#allocation4], 32  }
 0x4c8   : > { %8352 = vsyncadd (%p7783_p7), [#allocation4], 4294967264 }
 0x4c9 PF: > { %s20_s27 = sadd.s32 1, %s8355_s27  }
 0x4ca   : > { %p17_p6 = scmp.ge.s32.totalorder %s20_s27, 4  }
 0x4cc   :  { %19 = sbr.rel (!%p17_p6) target bundleno = 1 (0x1), region = 94 }
 0x4d3   :  { %6395 = vsyncpa [#allocation4], 1 }
 0x4d4   :  { %6397 = vsyncpa [#allocation4 + $0x1], 1 }

// kernel: wifi_detector_forward.10
= control target key start
LH: loop header
LB: loop body
LE: loop exit
PB: predicated region body
PF: predicated region fallthrough
CT: control target
= control target key end

     0   :  { %s1154_s12 = smov 0   ;;  %s1156_s13 = smov 0   ;;  %s1618_s0 = inlined_call_operand.vmem [shape: f32[32,64], index: 0, kind: input, shape index: {}]   ;;  %s1619_s1 = inlined_call_operand.vmem [shape: f32[64,2048], index: 1, kind: input, shape index: {}]   ;;  %s1620_s2 = inlined_call_operand.vmem [shape: f32[32,1], index: 2, kind: input, shape index: {}]   ;;  %s1621_s3 = inlined_call_operand.vmem [shape: f32[32,2048], index: 3, kind: output, shape index: {}]  }
   0x1   :  { %s1158_s14 = smov 0  }
   0x2 LB: > { %s983_s15 = sadd.s32 4294967295, %s1130_s14   ;;  %s1171_s16 = sadd.s32 1, %s1130_s14   ;;  %s1130_s14 = sphi %s1158_s14, %s1625_s14   ;;  %s1126_s13 = sphi %s1156_s13, %s1624_s13   ;;  %s1122_s12 = sphi %s1154_s12, %s1623_s12  }
   0x3   : > { %s38_s17 = ssub.s32 %s1130_s14, %s1171_s16  ;;  %s41_s18 = sadd.s32 1, %s1126_s13 }
   0x4   : > { %p39_p0 = scmp.eq.s32.totalorder %s38_s17, 0  ;;  %p48_p1 = scmp.ne.s32.totalorder %s1126_s13, %s1122_s12 }
   0x5   : > { %p49_p2 = scmp.eq.s32.totalorder %s1130_s14, 0  ;;  %p99_p3 = scmp.eq.s32.totalorder %s983_s15, 1 }
   0x6   : > { %s1182_s19 = scalar_select %p39_p0, %s1126_s13, %s41_s18  }
   0x7   : > { %p50_p4 = por %p49_p2, %p48_p1  ;;  %p1184_p5 = por %p99_p3, %p48_p1 }
   0x8   : > { %p986_p6 = scmp.ge.s32.totalorder %s1130_s14, 2 }
   0xa   : > { %127 = sbr.rel (%p986_p6) target bundleno = 53 (0x35), region = 24 }
  0x11   : > { %130 = sbr.rel (!%p50_p4) target bundleno = 53 (0x35), region = 28  ;;  %s132_s21 = sand.u32 (%p50_p4), 1, %s1126_s13  }
  0x12   : > { %s1014_s22 = sshll.u32 (%p50_p4), %s1130_s14, 6  ;;  %s987_s23 = sshll.u32 (%p50_p4), %s132_s21, 9 }
  0x13   : > { %s1194_s26 = scalar_lea.vmem (%p50_p4), %s1619_s1, %s1014_s22  ;;  %s1199_s27 = scalar_lea.vmem (%p50_p4), [#allocation2], %s987_s23 }
  0x14   : > { %v150_v0 = vld [vmem:[%s1194_s26] sm:$0xff] (%p50_p4)  ;;  %v152_v1 = vld [vmem:[%s1194_s26 + $0x8] sm:$0xff] (%p50_p4)  ;;  %v154_v2 = vld [vmem:[%s1194_s26 + $0x10] sm:$0xff] (%p50_p4) }
  0x15   : > { %151 = vst [vmem:[%s1199_s27] sm:$0xff] (%p50_p4), %v150_v0  ;;  %153 = vst [vmem:[%s1199_s27 + $0x8] sm:$0xff] (%p50_p4), %v152_v1  ;;  %v156_v3 = vld [vmem:[%s1194_s26 + $0x18] sm:$0xff] (%p50_p4)  ;;  %v158_v4 = vld [vmem:[%s1194_s26 + $0x20] sm:$0xff] (%p50_p4) }
  0x16   : > { %155 = vst [vmem:[%s1199_s27 + $0x10] sm:$0xff] (%p50_p4), %v154_v2  ;;  %v160_v5 = vld [vmem:[%s1194_s26 + $0x28] sm:$0xff] (%p50_p4)  ;;  %157 = vst [vmem:[%s1199_s27 + $0x18] sm:$0xff] (%p50_p4), %v156_v3  ;;  %v162_v6 = vld [vmem:[%s1194_s26 + $0x30] sm:$0xff] (%p50_p4) }
  0x17   : > { %159 = vst [vmem:[%s1199_s27 + $0x20] sm:$0xff] (%p50_p4), %v158_v4  ;;  %161 = vst [vmem:[%s1199_s27 + $0x28] sm:$0xff] (%p50_p4), %v160_v5  ;;  %v164_v7 = vld [vmem:[%s1194_s26 + $0x38] sm:$0xff] (%p50_p4)  ;;  %v166_v8 = vld [vmem:[%s1194_s26 + $0x80] sm:$0xff] (%p50_p4) }
  0x18   : > { %163 = vst [vmem:[%s1199_s27 + $0x30] sm:$0xff] %v162_v6  ;;  %165 = vst [vmem:[%s1199_s27 + $0x38] sm:$0xff] %v164_v7  ;;  %v168_v9 = vld [vmem:[%s1194_s26 + $0x88] sm:$0xff]  ;;  %v170_v10 = vld [vmem:[%s1194_s26 + $0x90] sm:$0xff] }
  0x19   : > { %167 = vst [vmem:[%s1199_s27 + $0x40] sm:$0xff] %v166_v8  ;;  %v172_v11 = vld [vmem:[%s1194_s26 + $0x98] sm:$0xff]  ;;  %169 = vst [vmem:[%s1199_s27 + $0x48] sm:$0xff] %v168_v9  ;;  %v174_v12 = vld [vmem:[%s1194_s26 + $0xa0] sm:$0xff] }
  0x1a   : > { %171 = vst [vmem:[%s1199_s27 + $0x50] sm:$0xff] %v170_v10  ;;  %173 = vst [vmem:[%s1199_s27 + $0x58] sm:$0xff] %v172_v11  ;;  %v176_v13 = vld [vmem:[%s1194_s26 + $0xa8] sm:$0xff]  ;;  %v178_v14 = vld [vmem:[%s1194_s26 + $0xb0] sm:$0xff] }
  0x1b   : > { %175 = vst [vmem:[%s1199_s27 + $0x60] sm:$0xff] %v174_v12  ;;  %177 = vst [vmem:[%s1199_s27 + $0x68] sm:$0xff] %v176_v13  ;;  %v180_v15 = vld [vmem:[%s1194_s26 + $0xb8] sm:$0xff]  ;;  %v182_v16 = vld [vmem:[%s1194_s26 + $0x100] sm:$0xff] }
  0x1c   : > { %179 = vst [vmem:[%s1199_s27 + $0x70] sm:$0xff] %v178_v14  ;;  %v184_v17 = vld [vmem:[%s1194_s26 + $0x108] sm:$0xff]  ;;  %181 = vst [vmem:[%s1199_s27 + $0x78] sm:$0xff] %v180_v15  ;;  %v186_v18 = vld [vmem:[%s1194_s26 + $0x110] sm:$0xff] }
  0x1d   : > { %183 = vst [vmem:[%s1199_s27 + $0x80] sm:$0xff] %v182_v16  ;;  %185 = vst [vmem:[%s1199_s27 + $0x88] sm:$0xff] %v184_v17  ;;  %v188_v19 = vld [vmem:[%s1194_s26 + $0x118] sm:$0xff]  ;;  %v190_v20 = vld [vmem:[%s1194_s26 + $0x120] sm:$0xff] }
  0x1e   : > { %187 = vst [vmem:[%s1199_s27 + $0x90] sm:$0xff] %v186_v18  ;;  %189 = vst [vmem:[%s1199_s27 + $0x98] sm:$0xff] %v188_v19  ;;  %v192_v21 = vld [vmem:[%s1194_s26 + $0x128] sm:$0xff]  ;;  %v194_v22 = vld [vmem:[%s1194_s26 + $0x130] sm:$0xff] }
  0x1f   : > { %191 = vst [vmem:[%s1199_s27 + $0xa0] sm:$0xff] %v190_v20  ;;  %v196_v23 = vld [vmem:[%s1194_s26 + $0x138] sm:$0xff]  ;;  %193 = vst [vmem:[%s1199_s27 + $0xa8] sm:$0xff] %v192_v21  ;;  %v198_v24 = vld [vmem:[%s1194_s26 + $0x180] sm:$0xff] }
  0x20   : > { %195 = vst [vmem:[%s1199_s27 + $0xb0] sm:$0xff] %v194_v22  ;;  %197 = vst [vmem:[%s1199_s27 + $0xb8] sm:$0xff] %v196_v23  ;;  %v200_v25 = vld [vmem:[%s1194_s26 + $0x188] sm:$0xff]  ;;  %v202_v26 = vld [vmem:[%s1194_s26 + $0x190] sm:$0xff] }
  0x21   : > { %199 = vst [vmem:[%s1199_s27 + $0xc0] sm:$0xff] %v198_v24  ;;  %201 = vst [vmem:[%s1199_s27 + $0xc8] sm:$0xff] %v200_v25  ;;  %v204_v27 = vld [vmem:[%s1194_s26 + $0x198] sm:$0xff]  ;;  %v206_v28 = vld [vmem:[%s1194_s26 + $0x1a0] sm:$0xff] }
  0x22   : > { %203 = vst [vmem:[%s1199_s27 + $0xd0] sm:$0xff] %v202_v26  ;;  %v208_v29 = vld [vmem:[%s1194_s26 + $0x1a8] sm:$0xff]  ;;  %205 = vst [vmem:[%s1199_s27 + $0xd8] sm:$0xff] %v204_v27  ;;  %v210_v30 = vld [vmem:[%s1194_s26 + $0x1b0] sm:$0xff] }
  0x23   : > { %207 = vst [vmem:[%s1199_s27 + $0xe0] sm:$0xff] %v206_v28  ;;  %209 = vst [vmem:[%s1199_s27 + $0xe8] sm:$0xff] %v208_v29  ;;  %v212_v31 = vld [vmem:[%s1194_s26 + $0x1b8] sm:$0xff]  ;;  %v214_v32 = vld [vmem:[%s1194_s26 + $0x200] sm:$0xff] }
  0x24   : > { %211 = vst [vmem:[%s1199_s27 + $0xf0] sm:$0xff] %v210_v30  ;;  %213 = vst [vmem:[%s1199_s27 + $0xf8] sm:$0xff] %v212_v31  ;;  %v216_v33 = vld [vmem:[%s1194_s26 + $0x208] sm:$0xff]  ;;  %v218_v34 = vld [vmem:[%s1194_s26 + $0x210] sm:$0xff] }
  0x25   : > { %215 = vst [vmem:[%s1199_s27 + $0x100] sm:$0xff] %v214_v32  ;;  %v220_v35 = vld [vmem:[%s1194_s26 + $0x218] sm:$0xff]  ;;  %217 = vst [vmem:[%s1199_s27 + $0x108] sm:$0xff] %v216_v33  ;;  %v222_v36 = vld [vmem:[%s1194_s26 + $0x220] sm:$0xff] }
  0x26   : > { %219 = vst [vmem:[%s1199_s27 + $0x110] sm:$0xff] %v218_v34  ;;  %221 = vst [vmem:[%s1199_s27 + $0x118] sm:$0xff] %v220_v35  ;;  %v224_v37 = vld [vmem:[%s1194_s26 + $0x228] sm:$0xff]  ;;  %v226_v38 = vld [vmem:[%s1194_s26 + $0x230] sm:$0xff] }
  0x27   : > { %223 = vst [vmem:[%s1199_s27 + $0x120] sm:$0xff] %v222_v36  ;;  %225 = vst [vmem:[%s1199_s27 + $0x128] sm:$0xff] %v224_v37  ;;  %v228_v39 = vld [vmem:[%s1194_s26 + $0x238] sm:$0xff]  ;;  %v230_v40 = vld [vmem:[%s1194_s26 + $0x280] sm:$0xff] }
  0x28   : > { %227 = vst [vmem:[%s1199_s27 + $0x130] sm:$0xff] %v226_v38  ;;  %v232_v41 = vld [vmem:[%s1194_s26 + $0x288] sm:$0xff]  ;;  %229 = vst [vmem:[%s1199_s27 + $0x138] sm:$0xff] %v228_v39  ;;  %v234_v42 = vld [vmem:[%s1194_s26 + $0x290] sm:$0xff] }
  0x29   : > { %231 = vst [vmem:[%s1199_s27 + $0x140] sm:$0xff] %v230_v40  ;;  %233 = vst [vmem:[%s1199_s27 + $0x148] sm:$0xff] %v232_v41  ;;  %v236_v43 = vld [vmem:[%s1194_s26 + $0x298] sm:$0xff]  ;;  %v238_v44 = vld [vmem:[%s1194_s26 + $0x2a0] sm:$0xff] }
  0x2a   : > { %235 = vst [vmem:[%s1199_s27 + $0x150] sm:$0xff] %v234_v42  ;;  %237 = vst [vmem:[%s1199_s27 + $0x158] sm:$0xff] %v236_v43  ;;  %v240_v45 = vld [vmem:[%s1194_s26 + $0x2a8] sm:$0xff]  ;;  %v242_v46 = vld [vmem:[%s1194_s26 + $0x2b0] sm:$0xff] }
  0x2b   : > { %239 = vst [vmem:[%s1199_s27 + $0x160] sm:$0xff] %v238_v44  ;;  %v244_v47 = vld [vmem:[%s1194_s26 + $0x2b8] sm:$0xff]  ;;  %241 = vst [vmem:[%s1199_s27 + $0x168] sm:$0xff] %v240_v45  ;;  %v246_v48 = vld [vmem:[%s1194_s26 + $0x300] sm:$0xff] }
  0x2c   : > { %243 = vst [vmem:[%s1199_s27 + $0x170] sm:$0xff] %v242_v46  ;;  %245 = vst [vmem:[%s1199_s27 + $0x178] sm:$0xff] %v244_v47  ;;  %v248_v49 = vld [vmem:[%s1194_s26 + $0x308] sm:$0xff]  ;;  %v250_v50 = vld [vmem:[%s1194_s26 + $0x310] sm:$0xff] }
  0x2d   : > { %247 = vst [vmem:[%s1199_s27 + $0x180] sm:$0xff] %v246_v48  ;;  %249 = vst [vmem:[%s1199_s27 + $0x188] sm:$0xff] %v248_v49  ;;  %v252_v51 = vld [vmem:[%s1194_s26 + $0x318] sm:$0xff]  ;;  %v254_v52 = vld [vmem:[%s1194_s26 + $0x320] sm:$0xff] }
  0x2e   : > { %251 = vst [vmem:[%s1199_s27 + $0x190] sm:$0xff] %v250_v50  ;;  %v256_v53 = vld [vmem:[%s1194_s26 + $0x328] sm:$0xff]  ;;  %253 = vst [vmem:[%s1199_s27 + $0x198] sm:$0xff] %v252_v51  ;;  %v258_v54 = vld [vmem:[%s1194_s26 + $0x330] sm:$0xff] }
  0x2f   : > { %255 = vst [vmem:[%s1199_s27 + $0x1a0] sm:$0xff] %v254_v52  ;;  %257 = vst [vmem:[%s1199_s27 + $0x1a8] sm:$0xff] %v256_v53  ;;  %v260_v55 = vld [vmem:[%s1194_s26 + $0x338] sm:$0xff]  ;;  %v262_v56 = vld [vmem:[%s1194_s26 + $0x380] sm:$0xff] }
  0x30   : > { %259 = vst [vmem:[%s1199_s27 + $0x1b0] sm:$0xff] %v258_v54  ;;  %261 = vst [vmem:[%s1199_s27 + $0x1b8] sm:$0xff] %v260_v55  ;;  %v264_v57 = vld [vmem:[%s1194_s26 + $0x388] sm:$0xff]  ;;  %v266_v58 = vld [vmem:[%s1194_s26 + $0x390] sm:$0xff] }
  0x31   : > { %263 = vst [vmem:[%s1199_s27 + $0x1c0] sm:$0xff] %v262_v56  ;;  %v268_v59 = vld [vmem:[%s1194_s26 + $0x398] sm:$0xff]  ;;  %265 = vst [vmem:[%s1199_s27 + $0x1c8] sm:$0xff] %v264_v57  ;;  %v270_v60 = vld [vmem:[%s1194_s26 + $0x3a0] sm:$0xff] }
  0x32   : > { %267 = vst [vmem:[%s1199_s27 + $0x1d0] sm:$0xff] %v266_v58  ;;  %269 = vst [vmem:[%s1199_s27 + $0x1d8] sm:$0xff] %v268_v59  ;;  %v272_v61 = vld [vmem:[%s1194_s26 + $0x3a8] sm:$0xff]  ;;  %v274_v62 = vld [vmem:[%s1194_s26 + $0x3b0] sm:$0xff] }
  0x33   : > { %271 = vst [vmem:[%s1199_s27 + $0x1e0] sm:$0xff] %v270_v60  ;;  %273 = vst [vmem:[%s1199_s27 + $0x1e8] sm:$0xff] %v272_v61  ;;  %v276_v63 = vld [vmem:[%s1194_s26 + $0x3b8] sm:$0xff] }
  0x34   : > { %275 = vst [vmem:[%s1199_s27 + $0x1f0] sm:$0xff] %v274_v62  ;;  %277 = vst [vmem:[%s1199_s27 + $0x1f8] sm:$0xff] %v276_v63 }
  0x35 PF: > { %p990_p7 = scmp.ge.s32.totalorder %s1130_s14, 1  ;;  %p282_p8 = scmp.lt.s32.totalorder %s1130_s14, 3 }
  0x37   : > { %p283_p9 = pnand %p990_p7, %p282_p8 }
  0x38   : > { %s289_s28 = sand.u32 (!%p283_p9), 1, %s1122_s12   ;;  %v1132_v0 = vmov (!%p283_p9), 0.0   ;;  %v381_v1 = vld [vmem:[%s1620_s2] sm:$0xff] (!%p283_p9)  ;;  %v1133_v2 = vmov (!%p283_p9), 0   ;;  %v383_v3 = vld [vmem:[%s1620_s2 + $0x10] sm:$0xff] (!%p283_p9)  ;;  %v382_v7 = vld [vmem:[%s1620_s2 + $0x8] sm:$0xff] (!%p283_p9) }
  0x39   : > { %286 = sbr.rel (%p283_p9) target bundleno = 334 (0x14e), region = 51  ;;  %s991_s29 = sshll.u32 (!%p283_p9), %s289_s28, 9  ;;  %482 = vmatprep.mubr.f32.mxu0 (!%p283_p9), %v1132_v0  ;;  %571 = vmatprep.mubr.f32.mxu1 (!%p283_p9), %v1132_v0  ;;  %v384_v17 = vld [vmem:[%s1620_s2 + $0x18] sm:$0xff] (!%p283_p9)  ;;  %vm405_vm0 = vcmask (!%p283_p9), 523264  }
  0x3a   : > { %1106 = vset.pattern.permute.xlu0 (!%p283_p9), %v1133_v2  ;;  %1107 = vset.pattern.permute.xlu1 (!%p283_p9), %v1133_v2  ;;  %s1339_s7 = scalar_lea.vmem (!%p283_p9), [#allocation2], %s991_s29  ;;  %s992_s27 = sshll.u32 (!%p283_p9), %s289_s28, 8 }
  0x3b   : > { %v318_v4 = vld [vmem:[%s1339_s7 + $0x8] sm:$0xff] (!%p283_p9)  ;;  %v320_v6 = vld [vmem:[%s1339_s7 + $0x18] sm:$0xff] (!%p283_p9)  ;;  %387 = vperm.xlu0 (!%p283_p9), %1106, %v381_v1   ;;  %397 = vperm.xlu1 (!%p283_p9), %1107, %v383_v3   ;;  %v317_v10 = vld [vmem:[%s1339_s7] sm:$0xff] (!%p283_p9)  ;;  %s1471_s12 = scalar_lea.vmem (!%p283_p9), [#allocation3], %s992_s27 }
  0x3c   : > { %v326_v5 = vld [vmem:[%s1339_s7 + $0x48] sm:$0xff] (!%p283_p9)  ;;  %v328_v9 = vld [vmem:[%s1339_s7 + $0x58] sm:$0xff] (!%p283_p9)  ;;  %v325_v11 = vld [vmem:[%s1339_s7 + $0x40] sm:$0xff] (!%p283_p9) }
  0x3d   : > { %v1016_v8 = vpack.c.bf16 (!%p283_p9), %v326_v5, %v318_v4  ;;  %v1032_v12 = vpack.c.bf16 (!%p283_p9), %v328_v9, %v320_v6  ;;  %v1018_v13 = vpack.c.bf16 (!%p283_p9), %v325_v11, %v317_v10  ;;  %v319_v14 = vld [vmem:[%s1339_s7 + $0x10] sm:$0xff] (!%p283_p9)  ;;  %v334_v16 = vld [vmem:[%s1339_s7 + $0x88] sm:$0xff] (!%p283_p9)  ;;  %v336_v20 = vld [vmem:[%s1339_s7 + $0x98] sm:$0xff] (!%p283_p9) }
  0x3e   : > { %v327_v15 = vld [vmem:[%s1339_s7 + $0x50] sm:$0xff] (!%p283_p9)  ;;  %v342_v19 = vld [vmem:[%s1339_s7 + $0xc8] sm:$0xff] (!%p283_p9)  ;;  %v344_v21 = vld [vmem:[%s1339_s7 + $0xd8] sm:$0xff] (!%p283_p9) }
  0x3f   : > { %1017 = vmatprep.subr.bf16.mxu0 (!%p283_p9), %v1016_v8  ;;  %v1034_v18 = vpack.c.bf16 (!%p283_p9), %v327_v15, %v319_v14  ;;  %1033 = vmatprep.subr.bf16.mxu1 (!%p283_p9), %v1032_v12  ;;  %v1020_v22 = vpack.c.bf16 (!%p283_p9), %v342_v19, %v334_v16  ;;  %v1036_v23 = vpack.c.bf16 (!%p283_p9), %v344_v21, %v336_v20  ;;  %v333_v24 = vld [vmem:[%s1339_s7 + $0x80] sm:$0xff] (!%p283_p9)  ;;  %v335_v26 = vld [vmem:[%s1339_s7 + $0x90] sm:$0xff] (!%p283_p9)  ;;  %v350_v29 = vld [vmem:[%s1339_s7 + $0x108] sm:$0xff] (!%p283_p9) }
  0x40   : > { %1019 = vmatpush1.bf16.msra.mxu0 %v1018_v13  ;;  %v341_v25 = vld [vmem:[%s1339_s7 + $0xc0] sm:$0xff]  ;;  %v343_v28 = vld [vmem:[%s1339_s7 + $0xd0] sm:$0xff]  ;;  %v358_v30 = vld [vmem:[%s1339_s7 + $0x148] sm:$0xff]  ;;  %392 = vperm.xlu0 %1106, %v382_v7   ;;  %s1015_s28 = sshll.u32 (%p1184_p5), %s983_s15, 6 }
  0x41   : > { %1035 = vmatpush1.bf16.msra.mxu1 %v1034_v18  ;;  %v1022_v27 = vpack.c.bf16 %v341_v25, %v333_v24  ;;  %1021 = vmatprep.subr.bf16.mxu0 %v1020_v22  ;;  %v1038_v31 = vpack.c.bf16 %v343_v28, %v335_v26  ;;  %v1024_v32 = vpack.c.bf16 %v358_v30, %v350_v29  ;;  %v352_v33 = vld [vmem:[%s1339_s7 + $0x118] sm:$0xff]  ;;  %v349_v35 = vld [vmem:[%s1339_s7 + $0x100] sm:$0xff]  ;;  %v351_v38 = vld [vmem:[%s1339_s7 + $0x110] sm:$0xff]  ;;  %s1545_s20 = scalar_lea.vmem (%p1184_p5), %s1621_s3, %s1015_s28 }
  0x42   : > { %1037 = vmatprep.subr.bf16.mxu1 %v1036_v23  ;;  %v360_v34 = vld [vmem:[%s1339_s7 + $0x158] sm:$0xff]  ;;  %v357_v37 = vld [vmem:[%s1339_s7 + $0x140] sm:$0xff]  ;;  %v359_v39 = vld [vmem:[%s1339_s7 + $0x150] sm:$0xff]  ;;  %402 = vperm.xlu1 %1107, %v384_v17  }
  0x43   : > { %v1040_v36 = vpack.c.bf16 %v360_v34, %v352_v33  ;;  %v1026_v40 = vpack.c.bf16 %v357_v37, %v349_v35  ;;  %v366_v41 = vld [vmem:[%s1339_s7 + $0x188] sm:$0xff]  ;;  %v368_v43 = vld [vmem:[%s1339_s7 + $0x198] sm:$0xff]  ;;  %v1042_v44 = vpack.c.bf16 %v359_v39, %v351_v38  ;;  %v365_v47 = vld [vmem:[%s1339_s7 + $0x180] sm:$0xff] }
  0x44   : > { %1023 = vmatpush1.bf16.msra.mxu0 %v1022_v27  ;;  %v374_v42 = vld [vmem:[%s1339_s7 + $0x1c8] sm:$0xff]  ;;  %v376_v46 = vld [vmem:[%s1339_s7 + $0x1d8] sm:$0xff]  ;;  %v373_v48 = vld [vmem:[%s1339_s7 + $0x1c0] sm:$0xff] }
  0x45   : > { %1039 = vmatpush1.bf16.msra.mxu1 %v1038_v31  ;;  %1025 = vmatprep.subr.bf16.mxu0 %v1024_v32  ;;  %v1028_v45 = vpack.c.bf16 %v374_v42, %v366_v41  ;;  %v1044_v49 = vpack.c.bf16 %v376_v46, %v368_v43  ;;  %v367_v50 = vld [vmem:[%s1339_s7 + $0x190] sm:$0xff]  ;;  %v322_v52 = vld [vmem:[%s1339_s7 + $0x28] sm:$0xff]  ;;  %v324_v54 = vld [vmem:[%s1339_s7 + $0x38] sm:$0xff]  ;;  %v1030_v56 = vpack.c.bf16 %v373_v48, %v365_v47 }
  0x46   : > { %1041 = vmatprep.subr.bf16.mxu1 %v1040_v36  ;;  %v375_v51 = vld [vmem:[%s1339_s7 + $0x1d0] sm:$0xff]  ;;  %v330_v53 = vld [vmem:[%s1339_s7 + $0x68] sm:$0xff]  ;;  %v332_v55 = vld [vmem:[%s1339_s7 + $0x78] sm:$0xff] }
  0x47   : > { %v1046_v57 = vpack.c.bf16 %v375_v51, %v367_v50  ;;  %v1048_v58 = vpack.c.bf16 %v330_v53, %v322_v52  ;;  %v321_v59 = vld [vmem:[%s1339_s7 + $0x20] sm:$0xff]  ;;  %v1064_v61 = vpack.c.bf16 %v332_v55, %v324_v54  ;;  %v323_v62 = vld [vmem:[%s1339_s7 + $0x30] sm:$0xff]  ;;  %v338_v1 = vld [vmem:[%s1339_s7 + $0xa8] sm:$0xff] }
  0x48   : > { %1027 = vmatpush1.bf16.msra.mxu0 %v1026_v40  ;;  %v329_v60 = vld [vmem:[%s1339_s7 + $0x60] sm:$0xff]  ;;  %v331_v63 = vld [vmem:[%s1339_s7 + $0x70] sm:$0xff]  ;;  %v346_v2 = vld [vmem:[%s1339_s7 + $0xe8] sm:$0xff] }
  0x49   : > { %1043 = vmatpush1.bf16.msra.mxu1 %v1042_v44  ;;  %1029 = vmatprep.subr.bf16.mxu0 %v1028_v45  ;;  %v1392_v3 = vld [vmem:[%s1618_s0] sm:$0xff]  ;;  %v1050_v4 = vpack.c.bf16 %v329_v60, %v321_v59  ;;  %v340_v5 = vld [vmem:[%s1339_s7 + $0xb8] sm:$0xff]  ;;  %v1066_v7 = vpack.c.bf16 %v331_v63, %v323_v62  ;;  %v1052_v10 = vpack.c.bf16 %v346_v2, %v338_v1  ;;  %v339_v11 = vld [vmem:[%s1339_s7 + $0xb0] sm:$0xff] }
  0x4a   : > { %1045 = vmatprep.subr.bf16.mxu1 %v1044_v49  ;;  %v348_v6 = vld [vmem:[%s1339_s7 + $0xf8] sm:$0xff]  ;;  %v337_v8 = vld [vmem:[%s1339_s7 + $0xa0] sm:$0xff]  ;;  %v347_v12 = vld [vmem:[%s1339_s7 + $0xf0] sm:$0xff] }
  0x4b   : > { %v345_v9 = vld [vmem:[%s1339_s7 + $0xe0] sm:$0xff]  ;;  %v1068_v13 = vpack.c.bf16 %v348_v6, %v340_v5  ;;  %v354_v14 = vld [vmem:[%s1339_s7 + $0x128] sm:$0xff]  ;;  %v356_v18 = vld [vmem:[%s1339_s7 + $0x138] sm:$0xff]  ;;  %v1070_v20 = vpack.c.bf16 %v347_v12, %v339_v11 }
  0x4c   : > { %1031 = vmatpush1.bf16.msra.mxu0 %v1030_v56  ;;  %v362_v15 = vld [vmem:[%s1339_s7 + $0x168] sm:$0xff]  ;;  %v1054_v17 = vpack.c.bf16 %v345_v9, %v337_v8  ;;  %v364_v19 = vld [vmem:[%s1339_s7 + $0x178] sm:$0xff]  ;;  %v353_v21 = vld [vmem:[%s1339_s7 + $0x120] sm:$0xff] }
  0x4d   : > { %1047 = vmatpush1.bf16.msra.mxu1 %v1046_v57  ;;  %1049 = vmatprep.subr.bf16.mxu0 %v1048_v58  ;;  %v314_v16 = vld [vmem:[%s1618_s0 + $0x8] sm:$0xff]  ;;  %v361_v22 = vld [vmem:[%s1339_s7 + $0x160] sm:$0xff]  ;;  %v1056_v23 = vpack.c.bf16 %v362_v15, %v354_v14  ;;  %v355_v24 = vld [vmem:[%s1339_s7 + $0x130] sm:$0xff]  ;;  %v1072_v26 = vpack.c.bf16 %v364_v19, %v356_v18 }
  0x4e   : > { %1065 = vmatprep.subr.bf16.mxu1 %v1064_v61  ;;  %v363_v25 = vld [vmem:[%s1339_s7 + $0x170] sm:$0xff]  ;;  %v370_v27 = vld [vmem:[%s1339_s7 + $0x1a8] sm:$0xff]  ;;  %v1058_v30 = vpack.c.bf16 %v361_v22, %v353_v21  ;;  %v372_v31 = vld [vmem:[%s1339_s7 + $0x1b8] sm:$0xff] }
  0x4f   : > { %993 = vmatmul.mubr.msk.f32.vlgmr.msra.gmra.mrb[0].mxu0 %vm405_vm0, %v1392_v3  ;;  %v378_v28 = vld [vmem:[%s1339_s7 + $0x1e8] sm:$0xff]  ;;  %v315_v29 = vld [vmem:[%s1618_s0 + $0x10] sm:$0xff]  ;;  %v380_v32 = vld [vmem:[%s1339_s7 + $0x1f8] sm:$0xff]  ;;  %v1074_v33 = vpack.c.bf16 %v363_v25, %v355_v24 }
  0x50   : > { %997 = vmatmul.mubr.msk.f32.vlgmr.msra.gmra.mrb[0].mxu1 %vm405_vm0, %v1392_v3  ;;  %1051 = vmatpush1.bf16.msra.mxu0 %v1050_v4  ;;  %v369_v34 = vld [vmem:[%s1339_s7 + $0x1a0] sm:$0xff]  ;;  %v1060_v36 = vpack.c.bf16 %v378_v28, %v370_v27  ;;  %v371_v37 = vld [vmem:[%s1339_s7 + $0x1b0] sm:$0xff]  ;;  %v1076_v39 = vpack.c.bf16 %v380_v32, %v372_v31  ;;  %v316_v40 = vld [vmem:[%s1618_s0 + $0x18] sm:$0xff] }
  0x51   : > { %1067 = vmatpush1.bf16.msra.mxu1 %v1066_v7  ;;  %488 = vmatprep.mubr.f32.mxu0 %v1132_v0  ;;  %v377_v35 = vld [vmem:[%s1339_s7 + $0x1e0] sm:$0xff]  ;;  %v379_v38 = vld [vmem:[%s1339_s7 + $0x1f0] sm:$0xff] }
  0x52   : > { %577 = vmatprep.mubr.f32.mxu1 %v1132_v0  ;;  %1053 = vmatprep.subr.bf16.mxu0 %v1052_v10  ;;  %v1062_v41 = vpack.c.bf16 %v377_v35, %v369_v34  ;;  %v1078_v42 = vpack.c.bf16 %v379_v38, %v371_v37 }
  0x53   : > { %994 = vmatmul.mubr.msk.f32.gmra.mrb[2].mxu0 %vm405_vm0, %v314_v16  ;;  %1069 = vmatprep.subr.bf16.mxu1 %v1068_v13 }
  0x54   : > { %998 = vmatmul.mubr.msk.f32.gmra.mrb[2].mxu1 %vm405_vm0, %v314_v16  ;;  %1055 = vmatpush1.bf16.msra.mxu0 %v1054_v17 }
  0x55   : > { %1071 = vmatpush1.bf16.msra.mxu1 %v1070_v20  ;;  %494 = vmatprep.mubr.f32.mxu0 %v1132_v0 }
  0x56   : > { %583 = vmatprep.mubr.f32.mxu1 %v1132_v0  ;;  %1057 = vmatprep.subr.bf16.mxu0 %v1056_v23 }
  0x57   : > { %995 = vmatmul.mubr.msk.f32.gmra.mrb[4].mxu0 %vm405_vm0, %v315_v29  ;;  %1073 = vmatprep.subr.bf16.mxu1 %v1072_v26 }
  0x58   : > { %999 = vmatmul.mubr.msk.f32.gmra.mrb[4].mxu1 %vm405_vm0, %v315_v29  ;;  %1059 = vmatpush1.bf16.msra.mxu0 %v1058_v30 }
  0x59   : > { %1075 = vmatpush1.bf16.msra.mxu1 %v1074_v33  ;;  %500 = vmatprep.mubr.f32.mxu0 %v1132_v0 }
  0x5a   : > { %589 = vmatprep.mubr.f32.mxu1 %v1132_v0  ;;  %1061 = vmatprep.subr.bf16.mxu0 %v1060_v36 }
  0x5b   : > { %996 = vmatmul.mubr.msk.f32.gmra.mrb[6].mxu0 %vm405_vm0, %v316_v40  ;;  %1077 = vmatprep.subr.bf16.mxu1 %v1076_v39 }
  0x5c   : > { %1000 = vmatmul.mubr.msk.f32.gmra.mrb[6].mxu1 %vm405_vm0, %v316_v40  ;;  %1063 = vmatpush1.bf16.msra.mxu0 %v1062_v41 }
  0x5d   : > { %1079 = vmatpush1.bf16.msra.mxu1 %v1078_v42  ;;  %660 = vmatprep.mubr.f32.mxu0 %v1132_v0 }
  0x5e   : > { %749 = vmatprep.mubr.f32.mxu1 %v1132_v0 }
  0x5f   : > { %1001 = vmatmul.mubr.msk.f32.vlgmr.msra.gmra.mrb[8].mxu0 %vm405_vm0, %v1392_v3 }
  0x60   : > { %1005 = vmatmul.mubr.msk.f32.vlgmr.msra.gmra.mrb[8].mxu1 %vm405_vm0, %v1392_v3  ;;  %666 = vmatprep.mubr.f32.mxu0 %v1132_v0 }
  0x61   : > { %755 = vmatprep.mubr.f32.mxu1 %v1132_v0 }
  0x63   : > { %1002 = vmatmul.mubr.msk.f32.gmra.mrb[10].mxu0 %vm405_vm0, %v314_v16 }
  0x64   : > { %1006 = vmatmul.mubr.msk.f32.gmra.mrb[10].mxu1 %vm405_vm0, %v314_v16  ;;  %672 = vmatprep.mubr.f32.mxu0 %v1132_v0 }
  0x65   : > { %761 = vmatprep.mubr.f32.mxu1 %v1132_v0 }
  0x67   : > { %1003 = vmatmul.mubr.msk.f32.gmra.mrb[12].mxu0 %vm405_vm0, %v315_v29 }
  0x68   : > { %1007 = vmatmul.mubr.msk.f32.gmra.mrb[12].mxu1 %vm405_vm0, %v315_v29  ;;  %678 = vmatprep.mubr.f32.mxu0 %v1132_v0 }
  0x69   : > { %767 = vmatprep.mubr.f32.mxu1 %v1132_v0 }
  0x6b   : > { %1004 = vmatmul.mubr.msk.f32.gmra.mrb[14].mxu0 %vm405_vm0, %v316_v40 }
  0x6c   : > { %1008 = vmatmul.mubr.msk.f32.gmra.mrb[14].mxu1 %vm405_vm0, %v316_v40 }
  0xba   : > { %v1459_v43 = vpop.permute.xlu0 %387  ;;  %v1469_v56 = vpop.permute.xlu1 %397 }
  0xbf   : > { %v1466_v51 = vpop.permute.xlu0 %392 }
  0xc1   : > { %v1487_v13 = vpop.permute.xlu1 %402 }
 0x122   : > { %v484_v44 = vpop.f32.mrb[0].mxu0 }
 0x123   : > { %v573_v45 = vpop.f32.mrb[0].mxu1  ;;  %v485_v46 = vadd.f32 %v484_v44, %v1459_v43  ;;  %v486_v47 = vpop.f32.mrb[1].mxu0 }
 0x124   : > { %v574_v48 = vadd.f32 %v573_v45, %v1459_v43  ;;  %v487_v49 = vadd.f32 %v486_v47, %v1459_v43  ;;  %v575_v50 = vpop.f32.mrb[1].mxu1 }
 0x125   : > { %v774_v0 = vmax.f32 %v485_v46, 0.0  ;;  %v576_v52 = vadd.f32 %v575_v50, %v1459_v43 }
 0x126   : > { %v776_v53 = vmax.f32 %v574_v48, 0.0  ;;  %v775_v54 = vmax.f32 %v487_v49, 0.0  ;;  %v490_v55 = vpop.f32.mrb[2].mxu0 }
 0x127   : > { %806 = vst [vmem:[%s1471_s12] sm:$0xff] %v774_v0  ;;  %v777_v57 = vmax.f32 %v576_v52, 0.0  ;;  %v579_v58 = vpop.f32.mrb[2].mxu1  ;;  %v491_v59 = vadd.f32 %v490_v55, %v1466_v51  ;;  %v492_v60 = vpop.f32.mrb[3].mxu0 }
 0x128   : > { %808 = vst [vmem:[%s1471_s12 + $0x10] sm:$0xff] %v776_v53  ;;  %807 = vst [vmem:[%s1471_s12 + $0x8] sm:$0xff] %v775_v54  ;;  %v580_v61 = vadd.f32 %v579_v58, %v1466_v51  ;;  %v493_v62 = vadd.f32 %v492_v60, %v1466_v51  ;;  %v581_v63 = vpop.f32.mrb[3].mxu1 }
 0x129   : > { %809 = vst [vmem:[%s1471_s12 + $0x18] sm:$0xff] %v777_v57  ;;  %v782_v1 = vmax.f32 %v491_v59, 0.0  ;;  %v582_v2 = vadd.f32 %v581_v63, %v1466_v51 }
 0x12a   : > { %v784_v3 = vmax.f32 %v580_v61, 0.0  ;;  %v783_v4 = vmax.f32 %v493_v62, 0.0  ;;  %v496_v5 = vpop.f32.mrb[4].mxu0 }
 0x12b   : > { %814 = vst [vmem:[%s1471_s12 + $0x40] sm:$0xff] %v782_v1  ;;  %v785_v6 = vmax.f32 %v582_v2, 0.0  ;;  %v585_v7 = vpop.f32.mrb[4].mxu1  ;;  %v497_v8 = vadd.f32 %v496_v5, %v1469_v56  ;;  %v498_v9 = vpop.f32.mrb[5].mxu0 }
 0x12c   : > { %816 = vst [vmem:[%s1471_s12 + $0x50] sm:$0xff] %v784_v3  ;;  %815 = vst [vmem:[%s1471_s12 + $0x48] sm:$0xff] %v783_v4  ;;  %v586_v10 = vadd.f32 %v585_v7, %v1469_v56  ;;  %v499_v11 = vadd.f32 %v498_v9, %v1469_v56  ;;  %v587_v12 = vpop.f32.mrb[5].mxu1 }
 0x12d   : > { %817 = vst [vmem:[%s1471_s12 + $0x58] sm:$0xff] %v785_v6  ;;  %v790_v14 = vmax.f32 %v497_v8, 0.0  ;;  %v588_v15 = vadd.f32 %v587_v12, %v1469_v56 }
 0x12e   : > { %v792_v16 = vmax.f32 %v586_v10, 0.0  ;;  %v791_v17 = vmax.f32 %v499_v11, 0.0  ;;  %v502_v18 = vpop.f32.mrb[6].mxu0 }
 0x12f   : > { %822 = vst [vmem:[%s1471_s12 + $0x80] sm:$0xff] %v790_v14  ;;  %v793_v19 = vmax.f32 %v588_v15, 0.0  ;;  %v591_v20 = vpop.f32.mrb[6].mxu1  ;;  %v503_v21 = vadd.f32 %v502_v18, %v1487_v13  ;;  %v504_v22 = vpop.f32.mrb[7].mxu0 }
 0x130   : > { %824 = vst [vmem:[%s1471_s12 + $0x90] sm:$0xff] %v792_v16  ;;  %823 = vst [vmem:[%s1471_s12 + $0x88] sm:$0xff] %v791_v17  ;;  %v592_v23 = vadd.f32 %v591_v20, %v1487_v13  ;;  %v505_v24 = vadd.f32 %v504_v22, %v1487_v13  ;;  %v593_v25 = vpop.f32.mrb[7].mxu1  ;;  %v862_v16 = vld [vmem:[%s1471_s12 + $0x8] sm:$0xff] (%p1184_p5)  ;;  %v864_v17 = vld [vmem:[%s1471_s12 + $0x10] sm:$0xff] (%p1184_p5) }
 0x131   : > { %825 = vst [vmem:[%s1471_s12 + $0x98] sm:$0xff] %v793_v19  ;;  %v798_v26 = vmax.f32 %v503_v21, 0.0  ;;  %v594_v27 = vadd.f32 %v593_v25, %v1487_v13  ;;  %v866_v18 = vld [vmem:[%s1471_s12 + $0x18] sm:$0xff] (%p1184_p5)  ;;  %863 = vst [vmem:[%s1545_s20 + $0x8] sm:$0xff] (%p1184_p5), %v862_v16 }
 0x132   : > { %v800_v28 = vmax.f32 %v592_v23, 0.0  ;;  %v799_v29 = vmax.f32 %v505_v24, 0.0  ;;  %v662_v30 = vpop.f32.mrb[8].mxu0  ;;  %865 = vst [vmem:[%s1545_s20 + $0x10] sm:$0xff] (%p1184_p5), %v864_v17  ;;  %867 = vst [vmem:[%s1545_s20 + $0x18] sm:$0xff] (%p1184_p5), %v866_v18  ;;  %v876_v23 = vld [vmem:[%s1471_s12 + $0x40] sm:$0xff] (%p1184_p5) }
 0x133   : > { %830 = vst [vmem:[%s1471_s12 + $0xc0] sm:$0xff] %v798_v26  ;;  %v801_v31 = vmax.f32 %v594_v27, 0.0  ;;  %v663_v32 = vadd.f32 %v662_v30, %v1459_v43  ;;  %v751_v33 = vpop.f32.mrb[8].mxu1  ;;  %v664_v34 = vpop.f32.mrb[9].mxu0  ;;  %877 = vst [vmem:[%s1545_s20 + $0x80] sm:$0xff] (%p1184_p5), %v876_v23  ;;  %v878_v24 = vld [vmem:[%s1471_s12 + $0x48] sm:$0xff] (%p1184_p5) }
 0x134   : > { %832 = vst [vmem:[%s1471_s12 + $0xd0] sm:$0xff] %v800_v28  ;;  %831 = vst [vmem:[%s1471_s12 + $0xc8] sm:$0xff] %v799_v29  ;;  %v752_v35 = vadd.f32 %v751_v33, %v1459_v43  ;;  %v665_v36 = vadd.f32 %v664_v34, %v1459_v43  ;;  %v753_v37 = vpop.f32.mrb[9].mxu1  ;;  %v880_v25 = vld [vmem:[%s1471_s12 + $0x50] sm:$0xff] (%p1184_p5)  ;;  %v882_v26 = vld [vmem:[%s1471_s12 + $0x58] sm:$0xff] (%p1184_p5) }
 0x135   : > { %833 = vst [vmem:[%s1471_s12 + $0xd8] sm:$0xff] %v801_v31  ;;  %v778_v38 = vmax.f32 %v663_v32, 0.0  ;;  %v754_v39 = vadd.f32 %v753_v37, %v1459_v43  ;;  %879 = vst [vmem:[%s1545_s20 + $0x88] sm:$0xff] (%p1184_p5), %v878_v24 }
 0x136   : > { %v780_v40 = vmax.f32 %v752_v35, 0.0  ;;  %v779_v41 = vmax.f32 %v665_v36, 0.0  ;;  %v668_v42 = vpop.f32.mrb[10].mxu0  ;;  %881 = vst [vmem:[%s1545_s20 + $0x90] sm:$0xff] (%p1184_p5), %v880_v25  ;;  %883 = vst [vmem:[%s1545_s20 + $0x98] sm:$0xff] (%p1184_p5), %v882_v26  ;;  %v892_v31 = vld [vmem:[%s1471_s12 + $0x80] sm:$0xff] (%p1184_p5) }
 0x137   : > { %810 = vst [vmem:[%s1471_s12 + $0x20] sm:$0xff] %v778_v38  ;;  %v781_v44 = vmax.f32 %v754_v39, 0.0  ;;  %v669_v45 = vadd.f32 %v668_v42, %v1466_v51  ;;  %v757_v46 = vpop.f32.mrb[10].mxu1  ;;  %v670_v47 = vpop.f32.mrb[11].mxu0  ;;  %v894_v32 = vld [vmem:[%s1471_s12 + $0x88] sm:$0xff] (%p1184_p5)  ;;  %893 = vst [vmem:[%s1545_s20 + $0x100] sm:$0xff] (%p1184_p5), %v892_v31 }
 0x138   : > { %812 = vst [vmem:[%s1471_s12 + $0x30] sm:$0xff] %v780_v40  ;;  %811 = vst [vmem:[%s1471_s12 + $0x28] sm:$0xff] %v779_v41  ;;  %v758_v48 = vadd.f32 %v757_v46, %v1466_v51  ;;  %v671_v49 = vadd.f32 %v670_v47, %v1466_v51  ;;  %v759_v50 = vpop.f32.mrb[11].mxu1  ;;  %v896_v33 = vld [vmem:[%s1471_s12 + $0x90] sm:$0xff] (%p1184_p5)  ;;  %v898_v34 = vld [vmem:[%s1471_s12 + $0x98] sm:$0xff] (%p1184_p5) }
 0x139   : > { %813 = vst [vmem:[%s1471_s12 + $0x38] sm:$0xff] %v781_v44  ;;  %v786_v43 = vmax.f32 %v669_v45, 0.0  ;;  %v760_v0 = vadd.f32 %v759_v50, %v1466_v51  ;;  %895 = vst [vmem:[%s1545_s20 + $0x108] sm:$0xff] (%p1184_p5), %v894_v32 }
 0x13a   : > { %v788_v52 = vmax.f32 %v758_v48, 0.0  ;;  %v787_v53 = vmax.f32 %v671_v49, 0.0  ;;  %v674_v54 = vpop.f32.mrb[12].mxu0  ;;  %897 = vst [vmem:[%s1545_s20 + $0x110] sm:$0xff] (%p1184_p5), %v896_v33  ;;  %899 = vst [vmem:[%s1545_s20 + $0x118] sm:$0xff] (%p1184_p5), %v898_v34  ;;  %v908_v39 = vld [vmem:[%s1471_s12 + $0xc0] sm:$0xff] (%p1184_p5) }
 0x13b   : > { %818 = vst [vmem:[%s1471_s12 + $0x60] sm:$0xff] %v786_v43  ;;  %v789_v55 = vmax.f32 %v760_v0, 0.0  ;;  %v675_v57 = vadd.f32 %v674_v54, %v1469_v56  ;;  %v763_v58 = vpop.f32.mrb[12].mxu1  ;;  %v676_v59 = vpop.f32.mrb[13].mxu0  ;;  %v910_v40 = vld [vmem:[%s1471_s12 + $0xc8] sm:$0xff] (%p1184_p5)  ;;  %v912_v41 = vld [vmem:[%s1471_s12 + $0xd0] sm:$0xff] (%p1184_p5) }
 0x13c   : > { %820 = vst [vmem:[%s1471_s12 + $0x70] sm:$0xff] %v788_v52  ;;  %819 = vst [vmem:[%s1471_s12 + $0x68] sm:$0xff] %v787_v53  ;;  %v764_v60 = vadd.f32 %v763_v58, %v1469_v56  ;;  %v677_v61 = vadd.f32 %v676_v59, %v1469_v56  ;;  %v765_v62 = vpop.f32.mrb[13].mxu1  ;;  %v914_v42 = vld [vmem:[%s1471_s12 + $0xd8] sm:$0xff] (%p1184_p5) }
 0x13d   : > { %821 = vst [vmem:[%s1471_s12 + $0x78] sm:$0xff] %v789_v55  ;;  %v794_v51 = vmax.f32 %v675_v57, 0.0  ;;  %v766_v63 = vadd.f32 %v765_v62, %v1469_v56  ;;  %909 = vst [vmem:[%s1545_s20 + $0x180] sm:$0xff] (%p1184_p5), %v908_v39 }
 0x13e   : > { %v796_v1 = vmax.f32 %v764_v60, 0.0  ;;  %v795_v2 = vmax.f32 %v677_v61, 0.0  ;;  %v680_v3 = vpop.f32.mrb[14].mxu0  ;;  %v868_v19 = vld [vmem:[%s1471_s12 + $0x20] sm:$0xff] (%p1184_p5)  ;;  %911 = vst [vmem:[%s1545_s20 + $0x188] sm:$0xff] (%p1184_p5), %v910_v40  ;;  %913 = vst [vmem:[%s1545_s20 + $0x190] sm:$0xff] (%p1184_p5), %v912_v41 }
 0x13f   : > { %826 = vst [vmem:[%s1471_s12 + $0xa0] sm:$0xff] %v794_v51  ;;  %v797_v4 = vmax.f32 %v766_v63, 0.0  ;;  %v681_v5 = vadd.f32 %v680_v3, %v1487_v13  ;;  %v769_v6 = vpop.f32.mrb[14].mxu1  ;;  %v682_v7 = vpop.f32.mrb[15].mxu0  ;;  %844 = sbr.rel (!%p1184_p5) target bundleno = 334 (0x14e), region = 59  ;;  %v870_v20 = vld [vmem:[%s1471_s12 + $0x28] sm:$0xff] (%p1184_p5) }
 0x140   : > { %828 = vst [vmem:[%s1471_s12 + $0xb0] sm:$0xff] %v796_v1  ;;  %827 = vst [vmem:[%s1471_s12 + $0xa8] sm:$0xff] %v795_v2  ;;  %v770_v8 = vadd.f32 %v769_v6, %v1487_v13  ;;  %v683_v9 = vadd.f32 %v682_v7, %v1487_v13  ;;  %v771_v56 = vpop.f32.mrb[15].mxu1  ;;  %v872_v21 = vld [vmem:[%s1471_s12 + $0x30] sm:$0xff] (%p1184_p5)  ;;  %v874_v22 = vld [vmem:[%s1471_s12 + $0x38] sm:$0xff] (%p1184_p5) }
 0x141   : > { %829 = vst [vmem:[%s1471_s12 + $0xb8] sm:$0xff] %v797_v4  ;;  %v802_v10 = vmax.f32 %v681_v5, 0.0  ;;  %v772_v11 = vadd.f32 %v771_v56, %v1487_v13  ;;  %v860_v13 = vld [vmem:[%s1471_s12] sm:$0xff] (%p1184_p5)  ;;  %869 = vst [vmem:[%s1545_s20 + $0x20] sm:$0xff] (%p1184_p5), %v868_v19 }
 0x142   : > { %v804_v12 = vmax.f32 %v770_v8, 0.0  ;;  %v803_v14 = vmax.f32 %v683_v9, 0.0  ;;  %861 = vst [vmem:[%s1545_s20] sm:$0xff] (%p1184_p5), %v860_v13  ;;  %871 = vst [vmem:[%s1545_s20 + $0x28] sm:$0xff] (%p1184_p5), %v870_v20  ;;  %v884_v27 = vld [vmem:[%s1471_s12 + $0x60] sm:$0xff] (%p1184_p5) }
 0x143   : > { %834 = vst [vmem:[%s1471_s12 + $0xe0] sm:$0xff] %v802_v10  ;;  %v805_v15 = vmax.f32 %v772_v11, 0.0  ;;  %873 = vst [vmem:[%s1545_s20 + $0x30] sm:$0xff] (%p1184_p5), %v872_v21  ;;  %v886_v28 = vld [vmem:[%s1471_s12 + $0x68] sm:$0xff] (%p1184_p5)  ;;  %v888_v29 = vld [vmem:[%s1471_s12 + $0x70] sm:$0xff] (%p1184_p5) }
 0x144   : > { %836 = vst [vmem:[%s1471_s12 + $0xf0] sm:$0xff] %v804_v12  ;;  %835 = vst [vmem:[%s1471_s12 + $0xe8] sm:$0xff] %v803_v14  ;;  %v890_v30 = vld [vmem:[%s1471_s12 + $0x78] sm:$0xff] (%p1184_p5) }
 0x145   : > { %837 = vst [vmem:[%s1471_s12 + $0xf8] sm:$0xff] %v805_v15  ;;  %875 = vst [vmem:[%s1545_s20 + $0x38] sm:$0xff] (%p1184_p5), %v874_v22 }
 0x146   : > { %885 = vst [vmem:[%s1545_s20 + $0xa0] sm:$0xff] %v884_v27  ;;  %887 = vst [vmem:[%s1545_s20 + $0xa8] sm:$0xff] %v886_v28  ;;  %v900_v35 = vld [vmem:[%s1471_s12 + $0xa0] sm:$0xff] }
 0x147   : > { %889 = vst [vmem:[%s1545_s20 + $0xb0] sm:$0xff] %v888_v29  ;;  %891 = vst [vmem:[%s1545_s20 + $0xb8] sm:$0xff] %v890_v30  ;;  %v902_v36 = vld [vmem:[%s1471_s12 + $0xa8] sm:$0xff]  ;;  %v904_v37 = vld [vmem:[%s1471_s12 + $0xb0] sm:$0xff] }
 0x148   : > { %901 = vst [vmem:[%s1545_s20 + $0x120] sm:$0xff] %v900_v35  ;;  %v906_v38 = vld [vmem:[%s1471_s12 + $0xb8] sm:$0xff]  ;;  %903 = vst [vmem:[%s1545_s20 + $0x128] sm:$0xff] %v902_v36 }
 0x149   : > { %905 = vst [vmem:[%s1545_s20 + $0x130] sm:$0xff] %v904_v37  ;;  %907 = vst [vmem:[%s1545_s20 + $0x138] sm:$0xff] %v906_v38 }
 0x14a   : > { %v916_v44 = vld [vmem:[%s1471_s12 + $0xe0] sm:$0xff]  ;;  %915 = vst [vmem:[%s1545_s20 + $0x198] sm:$0xff] %v914_v42 }
 0x14b   : > { %v918_v45 = vld [vmem:[%s1471_s12 + $0xe8] sm:$0xff]  ;;  %917 = vst [vmem:[%s1545_s20 + $0x1a0] sm:$0xff] %v916_v44  ;;  %v920_v46 = vld [vmem:[%s1471_s12 + $0xf0] sm:$0xff] }
 0x14c   : > { %919 = vst [vmem:[%s1545_s20 + $0x1a8] sm:$0xff] %v918_v45  ;;  %v922_v47 = vld [vmem:[%s1471_s12 + $0xf8] sm:$0xff]  ;;  %921 = vst [vmem:[%s1545_s20 + $0x1b0] sm:$0xff] %v920_v46 }
 0x14d   : > { %923 = vst [vmem:[%s1545_s20 + $0x1b8] sm:$0xff] %v922_v47 }
 0x14e PF: > { %p10_p10 = scmp.ge.s32.totalorder %s1171_s16, 4   ;;  %s1623_s12 = smov %s1126_s13 }
 0x14f   : > { %s1624_s13 = smov %s1182_s19  ;;  %s1625_s14 = smov %s1171_s16 }
 0x150   :  { %12 = sbr.rel (!%p10_p10) target bundleno = 2 (0x2), region = 113 }

// kernel: wifi_detector_forward.11
= control target key start
LH: loop header
LB: loop body
LE: loop exit
PB: predicated region body
PF: predicated region fallthrough
CT: control target
= control target key end

     0   :  { %s2447_s12 = smov 0   ;;  %s2449_s13 = smov 0   ;;  %s3001_s0 = inlined_call_operand.vmem [shape: f32[4,32], index: 0, kind: input, shape index: {}]   ;;  %s3002_s1 = inlined_call_operand.vmem [shape: f32[32,8192], index: 1, kind: input, shape index: {}]   ;;  %s3003_s2 = inlined_call_operand.vmem [shape: f32[4,1], index: 2, kind: input, shape index: {}]   ;;  %s3004_s3 = inlined_call_operand.vmem [shape: f32[4,8192], index: 3, kind: output, shape index: {}]  }
   0x1   :  { %s2451_s14 = smov 0  }
   0x2 LB: > { %s2056_s15 = sadd.s32 4294967295, %s2423_s14   ;;  %s2464_s16 = sadd.s32 1, %s2423_s14   ;;  %s2423_s14 = sphi %s2451_s14, %s3007_s14   ;;  %s2419_s13 = sphi %s2449_s13, %s3006_s13   ;;  %s2415_s12 = sphi %s2447_s12, %s3005_s12  }
   0x3   : > { %s38_s17 = ssub.s32 %s2423_s14, %s2464_s16  ;;  %s41_s18 = sadd.s32 1, %s2419_s13 }
   0x4   : > { %p39_p0 = scmp.eq.s32.totalorder %s38_s17, 0  ;;  %p48_p1 = scmp.ne.s32.totalorder %s2419_s13, %s2415_s12 }
   0x5   : > { %p49_p2 = scmp.eq.s32.totalorder %s2423_s14, 0  ;;  %p2059_p4 = scmp.ge.s32.totalorder %s2423_s14, 2 }
   0x6   : > { %s2473_s19 = scalar_select %p39_p0, %s2419_s13, %s41_s18  }
   0x7   : > { %p50_p3 = por %p49_p2, %p48_p1  ;;  %127 = sbr.rel (%p2059_p4) target bundleno = 82 (0x52), region = 24 }
   0xe   : > { %130 = sbr.rel (!%p50_p3) target bundleno = 82 (0x52), region = 28  ;;  %s132_s20 = sand.u32 (%p50_p3), 1, %s2419_s13  }
   0xf   : > { %s2117_s21 = sshll.u32 (%p50_p3), %s2423_s14, 8  ;;  %s2060_s22 = sshll.u32 (%p50_p3), %s132_s20, 10 }
  0x10   : > { %s2481_s25 = scalar_lea.vmem (%p50_p3), %s3002_s1, %s2117_s21  ;;  %s2486_s26 = scalar_lea.vmem (%p50_p3), [#allocation2], %s2060_s22 }
  0x11   : > { %v150_v0 = vld [vmem:[%s2481_s25] sm:$0xff] (%p50_p3)  ;;  %v152_v1 = vld [vmem:[%s2481_s25 + $0x8] sm:$0xff] (%p50_p3)  ;;  %v154_v2 = vld [vmem:[%s2481_s25 + $0x10] sm:$0xff] (%p50_p3) }
  0x12   : > { %151 = vst [vmem:[%s2486_s26] sm:$0xff] (%p50_p3), %v150_v0  ;;  %153 = vst [vmem:[%s2486_s26 + $0x8] sm:$0xff] (%p50_p3), %v152_v1  ;;  %v156_v3 = vld [vmem:[%s2481_s25 + $0x18] sm:$0xff] (%p50_p3)  ;;  %v158_v4 = vld [vmem:[%s2481_s25 + $0x20] sm:$0xff] (%p50_p3) }
  0x13   : > { %155 = vst [vmem:[%s2486_s26 + $0x10] sm:$0xff] (%p50_p3), %v154_v2  ;;  %v160_v5 = vld [vmem:[%s2481_s25 + $0x28] sm:$0xff] (%p50_p3)  ;;  %157 = vst [vmem:[%s2486_s26 + $0x18] sm:$0xff] (%p50_p3), %v156_v3  ;;  %v162_v6 = vld [vmem:[%s2481_s25 + $0x30] sm:$0xff] (%p50_p3) }
  0x14   : > { %159 = vst [vmem:[%s2486_s26 + $0x20] sm:$0xff] (%p50_p3), %v158_v4  ;;  %161 = vst [vmem:[%s2486_s26 + $0x28] sm:$0xff] (%p50_p3), %v160_v5  ;;  %v164_v7 = vld [vmem:[%s2481_s25 + $0x38] sm:$0xff] (%p50_p3)  ;;  %v166_v8 = vld [vmem:[%s2481_s25 + $0x40] sm:$0xff] (%p50_p3) }
  0x15   : > { %163 = vst [vmem:[%s2486_s26 + $0x30] sm:$0xff] %v162_v6  ;;  %165 = vst [vmem:[%s2486_s26 + $0x38] sm:$0xff] %v164_v7  ;;  %v168_v9 = vld [vmem:[%s2481_s25 + $0x48] sm:$0xff]  ;;  %v170_v10 = vld [vmem:[%s2481_s25 + $0x50] sm:$0xff] }
  0x16   : > { %167 = vst [vmem:[%s2486_s26 + $0x40] sm:$0xff] %v166_v8  ;;  %v172_v11 = vld [vmem:[%s2481_s25 + $0x58] sm:$0xff]  ;;  %169 = vst [vmem:[%s2486_s26 + $0x48] sm:$0xff] %v168_v9  ;;  %v174_v12 = vld [vmem:[%s2481_s25 + $0x60] sm:$0xff] }
  0x17   : > { %171 = vst [vmem:[%s2486_s26 + $0x50] sm:$0xff] %v170_v10  ;;  %173 = vst [vmem:[%s2486_s26 + $0x58] sm:$0xff] %v172_v11  ;;  %v176_v13 = vld [vmem:[%s2481_s25 + $0x68] sm:$0xff]  ;;  %v178_v14 = vld [vmem:[%s2481_s25 + $0x70] sm:$0xff] }
  0x18   : > { %175 = vst [vmem:[%s2486_s26 + $0x60] sm:$0xff] %v174_v12  ;;  %177 = vst [vmem:[%s2486_s26 + $0x68] sm:$0xff] %v176_v13  ;;  %v180_v15 = vld [vmem:[%s2481_s25 + $0x78] sm:$0xff]  ;;  %v182_v16 = vld [vmem:[%s2481_s25 + $0x80] sm:$0xff] }
  0x19   : > { %179 = vst [vmem:[%s2486_s26 + $0x70] sm:$0xff] %v178_v14  ;;  %v184_v17 = vld [vmem:[%s2481_s25 + $0x88] sm:$0xff]  ;;  %181 = vst [vmem:[%s2486_s26 + $0x78] sm:$0xff] %v180_v15  ;;  %v186_v18 = vld [vmem:[%s2481_s25 + $0x90] sm:$0xff] }
  0x1a   : > { %183 = vst [vmem:[%s2486_s26 + $0x80] sm:$0xff] %v182_v16  ;;  %185 = vst [vmem:[%s2486_s26 + $0x88] sm:$0xff] %v184_v17  ;;  %v188_v19 = vld [vmem:[%s2481_s25 + $0x98] sm:$0xff]  ;;  %v190_v20 = vld [vmem:[%s2481_s25 + $0xa0] sm:$0xff] }
  0x1b   : > { %187 = vst [vmem:[%s2486_s26 + $0x90] sm:$0xff] %v186_v18  ;;  %189 = vst [vmem:[%s2486_s26 + $0x98] sm:$0xff] %v188_v19  ;;  %v192_v21 = vld [vmem:[%s2481_s25 + $0xa8] sm:$0xff]  ;;  %v194_v22 = vld [vmem:[%s2481_s25 + $0xb0] sm:$0xff] }
  0x1c   : > { %191 = vst [vmem:[%s2486_s26 + $0xa0] sm:$0xff] %v190_v20  ;;  %v196_v23 = vld [vmem:[%s2481_s25 + $0xb8] sm:$0xff]  ;;  %193 = vst [vmem:[%s2486_s26 + $0xa8] sm:$0xff] %v192_v21  ;;  %v198_v24 = vld [vmem:[%s2481_s25 + $0xc0] sm:$0xff] }
  0x1d   : > { %195 = vst [vmem:[%s2486_s26 + $0xb0] sm:$0xff] %v194_v22  ;;  %197 = vst [vmem:[%s2486_s26 + $0xb8] sm:$0xff] %v196_v23  ;;  %v200_v25 = vld [vmem:[%s2481_s25 + $0xc8] sm:$0xff]  ;;  %v202_v26 = vld [vmem:[%s2481_s25 + $0xd0] sm:$0xff] }
  0x1e   : > { %199 = vst [vmem:[%s2486_s26 + $0xc0] sm:$0xff] %v198_v24  ;;  %201 = vst [vmem:[%s2486_s26 + $0xc8] sm:$0xff] %v200_v25  ;;  %v204_v27 = vld [vmem:[%s2481_s25 + $0xd8] sm:$0xff]  ;;  %v206_v28 = vld [vmem:[%s2481_s25 + $0xe0] sm:$0xff] }
  0x1f   : > { %203 = vst [vmem:[%s2486_s26 + $0xd0] sm:$0xff] %v202_v26  ;;  %v208_v29 = vld [vmem:[%s2481_s25 + $0xe8] sm:$0xff]  ;;  %205 = vst [vmem:[%s2486_s26 + $0xd8] sm:$0xff] %v204_v27  ;;  %v210_v30 = vld [vmem:[%s2481_s25 + $0xf0] sm:$0xff] }
  0x20   : > { %207 = vst [vmem:[%s2486_s26 + $0xe0] sm:$0xff] %v206_v28  ;;  %209 = vst [vmem:[%s2486_s26 + $0xe8] sm:$0xff] %v208_v29  ;;  %v212_v31 = vld [vmem:[%s2481_s25 + $0xf8] sm:$0xff]  ;;  %v214_v32 = vld [vmem:[%s2481_s25 + $0x200] sm:$0xff] }
  0x21   : > { %211 = vst [vmem:[%s2486_s26 + $0xf0] sm:$0xff] %v210_v30  ;;  %213 = vst [vmem:[%s2486_s26 + $0xf8] sm:$0xff] %v212_v31  ;;  %v216_v33 = vld [vmem:[%s2481_s25 + $0x208] sm:$0xff]  ;;  %v218_v34 = vld [vmem:[%s2481_s25 + $0x210] sm:$0xff] }
  0x22   : > { %215 = vst [vmem:[%s2486_s26 + $0x100] sm:$0xff] %v214_v32  ;;  %v220_v35 = vld [vmem:[%s2481_s25 + $0x218] sm:$0xff]  ;;  %217 = vst [vmem:[%s2486_s26 + $0x108] sm:$0xff] %v216_v33  ;;  %v222_v36 = vld [vmem:[%s2481_s25 + $0x220] sm:$0xff] }
  0x23   : > { %219 = vst [vmem:[%s2486_s26 + $0x110] sm:$0xff] %v218_v34  ;;  %221 = vst [vmem:[%s2486_s26 + $0x118] sm:$0xff] %v220_v35  ;;  %v224_v37 = vld [vmem:[%s2481_s25 + $0x228] sm:$0xff]  ;;  %v226_v38 = vld [vmem:[%s2481_s25 + $0x230] sm:$0xff] }
  0x24   : > { %223 = vst [vmem:[%s2486_s26 + $0x120] sm:$0xff] %v222_v36  ;;  %225 = vst [vmem:[%s2486_s26 + $0x128] sm:$0xff] %v224_v37  ;;  %v228_v39 = vld [vmem:[%s2481_s25 + $0x238] sm:$0xff]  ;;  %v230_v40 = vld [vmem:[%s2481_s25 + $0x240] sm:$0xff] }
  0x25   : > { %227 = vst [vmem:[%s2486_s26 + $0x130] sm:$0xff] %v226_v38  ;;  %v232_v41 = vld [vmem:[%s2481_s25 + $0x248] sm:$0xff]  ;;  %229 = vst [vmem:[%s2486_s26 + $0x138] sm:$0xff] %v228_v39  ;;  %v234_v42 = vld [vmem:[%s2481_s25 + $0x250] sm:$0xff] }
  0x26   : > { %231 = vst [vmem:[%s2486_s26 + $0x140] sm:$0xff] %v230_v40  ;;  %233 = vst [vmem:[%s2486_s26 + $0x148] sm:$0xff] %v232_v41  ;;  %v236_v43 = vld [vmem:[%s2481_s25 + $0x258] sm:$0xff]  ;;  %v238_v44 = vld [vmem:[%s2481_s25 + $0x260] sm:$0xff] }
  0x27   : > { %235 = vst [vmem:[%s2486_s26 + $0x150] sm:$0xff] %v234_v42  ;;  %237 = vst [vmem:[%s2486_s26 + $0x158] sm:$0xff] %v236_v43  ;;  %v240_v45 = vld [vmem:[%s2481_s25 + $0x268] sm:$0xff]  ;;  %v242_v46 = vld [vmem:[%s2481_s25 + $0x270] sm:$0xff] }
  0x28   : > { %239 = vst [vmem:[%s2486_s26 + $0x160] sm:$0xff] %v238_v44  ;;  %v244_v47 = vld [vmem:[%s2481_s25 + $0x278] sm:$0xff]  ;;  %241 = vst [vmem:[%s2486_s26 + $0x168] sm:$0xff] %v240_v45  ;;  %v246_v48 = vld [vmem:[%s2481_s25 + $0x280] sm:$0xff] }
  0x29   : > { %243 = vst [vmem:[%s2486_s26 + $0x170] sm:$0xff] %v242_v46  ;;  %245 = vst [vmem:[%s2486_s26 + $0x178] sm:$0xff] %v244_v47  ;;  %v248_v49 = vld [vmem:[%s2481_s25 + $0x288] sm:$0xff]  ;;  %v250_v50 = vld [vmem:[%s2481_s25 + $0x290] sm:$0xff] }
  0x2a   : > { %247 = vst [vmem:[%s2486_s26 + $0x180] sm:$0xff] %v246_v48  ;;  %249 = vst [vmem:[%s2486_s26 + $0x188] sm:$0xff] %v248_v49  ;;  %v252_v51 = vld [vmem:[%s2481_s25 + $0x298] sm:$0xff]  ;;  %v254_v52 = vld [vmem:[%s2481_s25 + $0x2a0] sm:$0xff] }
  0x2b   : > { %251 = vst [vmem:[%s2486_s26 + $0x190] sm:$0xff] %v250_v50  ;;  %v256_v53 = vld [vmem:[%s2481_s25 + $0x2a8] sm:$0xff]  ;;  %253 = vst [vmem:[%s2486_s26 + $0x198] sm:$0xff] %v252_v51  ;;  %v258_v54 = vld [vmem:[%s2481_s25 + $0x2b0] sm:$0xff] }
  0x2c   : > { %255 = vst [vmem:[%s2486_s26 + $0x1a0] sm:$0xff] %v254_v52  ;;  %257 = vst [vmem:[%s2486_s26 + $0x1a8] sm:$0xff] %v256_v53  ;;  %v260_v55 = vld [vmem:[%s2481_s25 + $0x2b8] sm:$0xff]  ;;  %v262_v56 = vld [vmem:[%s2481_s25 + $0x2c0] sm:$0xff] }
  0x2d   : > { %259 = vst [vmem:[%s2486_s26 + $0x1b0] sm:$0xff] %v258_v54  ;;  %261 = vst [vmem:[%s2486_s26 + $0x1b8] sm:$0xff] %v260_v55  ;;  %v264_v57 = vld [vmem:[%s2481_s25 + $0x2c8] sm:$0xff]  ;;  %v266_v58 = vld [vmem:[%s2481_s25 + $0x2d0] sm:$0xff] }
  0x2e   : > { %263 = vst [vmem:[%s2486_s26 + $0x1c0] sm:$0xff] %v262_v56  ;;  %v268_v59 = vld [vmem:[%s2481_s25 + $0x2d8] sm:$0xff]  ;;  %265 = vst [vmem:[%s2486_s26 + $0x1c8] sm:$0xff] %v264_v57  ;;  %v270_v60 = vld [vmem:[%s2481_s25 + $0x2e0] sm:$0xff] }
  0x2f   : > { %267 = vst [vmem:[%s2486_s26 + $0x1d0] sm:$0xff] %v266_v58  ;;  %269 = vst [vmem:[%s2486_s26 + $0x1d8] sm:$0xff] %v268_v59  ;;  %v272_v61 = vld [vmem:[%s2481_s25 + $0x2e8] sm:$0xff]  ;;  %v274_v62 = vld [vmem:[%s2481_s25 + $0x2f0] sm:$0xff] }
  0x30   : > { %271 = vst [vmem:[%s2486_s26 + $0x1e0] sm:$0xff] %v270_v60  ;;  %273 = vst [vmem:[%s2486_s26 + $0x1e8] sm:$0xff] %v272_v61  ;;  %v276_v63 = vld [vmem:[%s2481_s25 + $0x2f8] sm:$0xff]  ;;  %v278_v0 = vld [vmem:[%s2481_s25 + $0x400] sm:$0xff] }
  0x31   : > { %275 = vst [vmem:[%s2486_s26 + $0x1f0] sm:$0xff] %v274_v62  ;;  %v280_v1 = vld [vmem:[%s2481_s25 + $0x408] sm:$0xff]  ;;  %277 = vst [vmem:[%s2486_s26 + $0x1f8] sm:$0xff] %v276_v63  ;;  %v282_v2 = vld [vmem:[%s2481_s25 + $0x410] sm:$0xff] }
  0x32   : > { %279 = vst [vmem:[%s2486_s26 + $0x200] sm:$0xff] %v278_v0  ;;  %281 = vst [vmem:[%s2486_s26 + $0x208] sm:$0xff] %v280_v1  ;;  %v284_v3 = vld [vmem:[%s2481_s25 + $0x418] sm:$0xff]  ;;  %v286_v4 = vld [vmem:[%s2481_s25 + $0x420] sm:$0xff] }
  0x33   : > { %283 = vst [vmem:[%s2486_s26 + $0x210] sm:$0xff] %v282_v2  ;;  %285 = vst [vmem:[%s2486_s26 + $0x218] sm:$0xff] %v284_v3  ;;  %v288_v5 = vld [vmem:[%s2481_s25 + $0x428] sm:$0xff]  ;;  %v290_v6 = vld [vmem:[%s2481_s25 + $0x430] sm:$0xff] }
  0x34   : > { %287 = vst [vmem:[%s2486_s26 + $0x220] sm:$0xff] %v286_v4  ;;  %v292_v7 = vld [vmem:[%s2481_s25 + $0x438] sm:$0xff]  ;;  %289 = vst [vmem:[%s2486_s26 + $0x228] sm:$0xff] %v288_v5  ;;  %v294_v8 = vld [vmem:[%s2481_s25 + $0x440] sm:$0xff] }
  0x35   : > { %291 = vst [vmem:[%s2486_s26 + $0x230] sm:$0xff] %v290_v6  ;;  %293 = vst [vmem:[%s2486_s26 + $0x238] sm:$0xff] %v292_v7  ;;  %v296_v9 = vld [vmem:[%s2481_s25 + $0x448] sm:$0xff]  ;;  %v298_v10 = vld [vmem:[%s2481_s25 + $0x450] sm:$0xff] }
  0x36   : > { %295 = vst [vmem:[%s2486_s26 + $0x240] sm:$0xff] %v294_v8  ;;  %297 = vst [vmem:[%s2486_s26 + $0x248] sm:$0xff] %v296_v9  ;;  %v300_v11 = vld [vmem:[%s2481_s25 + $0x458] sm:$0xff]  ;;  %v302_v12 = vld [vmem:[%s2481_s25 + $0x460] sm:$0xff] }
  0x37   : > { %299 = vst [vmem:[%s2486_s26 + $0x250] sm:$0xff] %v298_v10  ;;  %v304_v13 = vld [vmem:[%s2481_s25 + $0x468] sm:$0xff]  ;;  %301 = vst [vmem:[%s2486_s26 + $0x258] sm:$0xff] %v300_v11  ;;  %v306_v14 = vld [vmem:[%s2481_s25 + $0x470] sm:$0xff] }
  0x38   : > { %303 = vst [vmem:[%s2486_s26 + $0x260] sm:$0xff] %v302_v12  ;;  %305 = vst [vmem:[%s2486_s26 + $0x268] sm:$0xff] %v304_v13  ;;  %v308_v15 = vld [vmem:[%s2481_s25 + $0x478] sm:$0xff]  ;;  %v310_v16 = vld [vmem:[%s2481_s25 + $0x480] sm:$0xff] }
  0x39   : > { %307 = vst [vmem:[%s2486_s26 + $0x270] sm:$0xff] %v306_v14  ;;  %309 = vst [vmem:[%s2486_s26 + $0x278] sm:$0xff] %v308_v15  ;;  %v312_v17 = vld [vmem:[%s2481_s25 + $0x488] sm:$0xff]  ;;  %v314_v18 = vld [vmem:[%s2481_s25 + $0x490] sm:$0xff] }
  0x3a   : > { %311 = vst [vmem:[%s2486_s26 + $0x280] sm:$0xff] %v310_v16  ;;  %v316_v19 = vld [vmem:[%s2481_s25 + $0x498] sm:$0xff]  ;;  %313 = vst [vmem:[%s2486_s26 + $0x288] sm:$0xff] %v312_v17  ;;  %v318_v20 = vld [vmem:[%s2481_s25 + $0x4a0] sm:$0xff] }
  0x3b   : > { %315 = vst [vmem:[%s2486_s26 + $0x290] sm:$0xff] %v314_v18  ;;  %317 = vst [vmem:[%s2486_s26 + $0x298] sm:$0xff] %v316_v19  ;;  %v320_v21 = vld [vmem:[%s2481_s25 + $0x4a8] sm:$0xff]  ;;  %v322_v22 = vld [vmem:[%s2481_s25 + $0x4b0] sm:$0xff] }
  0x3c   : > { %319 = vst [vmem:[%s2486_s26 + $0x2a0] sm:$0xff] %v318_v20  ;;  %321 = vst [vmem:[%s2486_s26 + $0x2a8] sm:$0xff] %v320_v21  ;;  %v324_v23 = vld [vmem:[%s2481_s25 + $0x4b8] sm:$0xff]  ;;  %v326_v24 = vld [vmem:[%s2481_s25 + $0x4c0] sm:$0xff] }
  0x3d   : > { %323 = vst [vmem:[%s2486_s26 + $0x2b0] sm:$0xff] %v322_v22  ;;  %v328_v25 = vld [vmem:[%s2481_s25 + $0x4c8] sm:$0xff]  ;;  %325 = vst [vmem:[%s2486_s26 + $0x2b8] sm:$0xff] %v324_v23  ;;  %v330_v26 = vld [vmem:[%s2481_s25 + $0x4d0] sm:$0xff] }
  0x3e   : > { %327 = vst [vmem:[%s2486_s26 + $0x2c0] sm:$0xff] %v326_v24  ;;  %329 = vst [vmem:[%s2486_s26 + $0x2c8] sm:$0xff] %v328_v25  ;;  %v332_v27 = vld [vmem:[%s2481_s25 + $0x4d8] sm:$0xff]  ;;  %v334_v28 = vld [vmem:[%s2481_s25 + $0x4e0] sm:$0xff] }
  0x3f   : > { %331 = vst [vmem:[%s2486_s26 + $0x2d0] sm:$0xff] %v330_v26  ;;  %333 = vst [vmem:[%s2486_s26 + $0x2d8] sm:$0xff] %v332_v27  ;;  %v336_v29 = vld [vmem:[%s2481_s25 + $0x4e8] sm:$0xff]  ;;  %v338_v30 = vld [vmem:[%s2481_s25 + $0x4f0] sm:$0xff] }
  0x40   : > { %335 = vst [vmem:[%s2486_s26 + $0x2e0] sm:$0xff] %v334_v28  ;;  %v340_v31 = vld [vmem:[%s2481_s25 + $0x4f8] sm:$0xff]  ;;  %337 = vst [vmem:[%s2486_s26 + $0x2e8] sm:$0xff] %v336_v29  ;;  %v342_v32 = vld [vmem:[%s2481_s25 + $0x600] sm:$0xff] }
  0x41   : > { %339 = vst [vmem:[%s2486_s26 + $0x2f0] sm:$0xff] %v338_v30  ;;  %341 = vst [vmem:[%s2486_s26 + $0x2f8] sm:$0xff] %v340_v31  ;;  %v344_v33 = vld [vmem:[%s2481_s25 + $0x608] sm:$0xff]  ;;  %v346_v34 = vld [vmem:[%s2481_s25 + $0x610] sm:$0xff] }
  0x42   : > { %343 = vst [vmem:[%s2486_s26 + $0x300] sm:$0xff] %v342_v32  ;;  %345 = vst [vmem:[%s2486_s26 + $0x308] sm:$0xff] %v344_v33  ;;  %v348_v35 = vld [vmem:[%s2481_s25 + $0x618] sm:$0xff]  ;;  %v350_v36 = vld [vmem:[%s2481_s25 + $0x620] sm:$0xff] }
  0x43   : > { %347 = vst [vmem:[%s2486_s26 + $0x310] sm:$0xff] %v346_v34  ;;  %v352_v37 = vld [vmem:[%s2481_s25 + $0x628] sm:$0xff]  ;;  %349 = vst [vmem:[%s2486_s26 + $0x318] sm:$0xff] %v348_v35  ;;  %v354_v38 = vld [vmem:[%s2481_s25 + $0x630] sm:$0xff] }
  0x44   : > { %351 = vst [vmem:[%s2486_s26 + $0x320] sm:$0xff] %v350_v36  ;;  %353 = vst [vmem:[%s2486_s26 + $0x328] sm:$0xff] %v352_v37  ;;  %v356_v39 = vld [vmem:[%s2481_s25 + $0x638] sm:$0xff]  ;;  %v358_v40 = vld [vmem:[%s2481_s25 + $0x640] sm:$0xff] }
  0x45   : > { %355 = vst [vmem:[%s2486_s26 + $0x330] sm:$0xff] %v354_v38  ;;  %357 = vst [vmem:[%s2486_s26 + $0x338] sm:$0xff] %v356_v39  ;;  %v360_v41 = vld [vmem:[%s2481_s25 + $0x648] sm:$0xff]  ;;  %v362_v42 = vld [vmem:[%s2481_s25 + $0x650] sm:$0xff] }
  0x46   : > { %359 = vst [vmem:[%s2486_s26 + $0x340] sm:$0xff] %v358_v40  ;;  %v364_v43 = vld [vmem:[%s2481_s25 + $0x658] sm:$0xff]  ;;  %361 = vst [vmem:[%s2486_s26 + $0x348] sm:$0xff] %v360_v41  ;;  %v366_v44 = vld [vmem:[%s2481_s25 + $0x660] sm:$0xff] }
  0x47   : > { %363 = vst [vmem:[%s2486_s26 + $0x350] sm:$0xff] %v362_v42  ;;  %365 = vst [vmem:[%s2486_s26 + $0x358] sm:$0xff] %v364_v43  ;;  %v368_v45 = vld [vmem:[%s2481_s25 + $0x668] sm:$0xff]  ;;  %v370_v46 = vld [vmem:[%s2481_s25 + $0x670] sm:$0xff] }
  0x48   : > { %367 = vst [vmem:[%s2486_s26 + $0x360] sm:$0xff] %v366_v44  ;;  %369 = vst [vmem:[%s2486_s26 + $0x368] sm:$0xff] %v368_v45  ;;  %v372_v47 = vld [vmem:[%s2481_s25 + $0x678] sm:$0xff]  ;;  %v374_v48 = vld [vmem:[%s2481_s25 + $0x680] sm:$0xff] }
  0x49   : > { %371 = vst [vmem:[%s2486_s26 + $0x370] sm:$0xff] %v370_v46  ;;  %v376_v49 = vld [vmem:[%s2481_s25 + $0x688] sm:$0xff]  ;;  %373 = vst [vmem:[%s2486_s26 + $0x378] sm:$0xff] %v372_v47  ;;  %v378_v50 = vld [vmem:[%s2481_s25 + $0x690] sm:$0xff] }
  0x4a   : > { %375 = vst [vmem:[%s2486_s26 + $0x380] sm:$0xff] %v374_v48  ;;  %377 = vst [vmem:[%s2486_s26 + $0x388] sm:$0xff] %v376_v49  ;;  %v380_v51 = vld [vmem:[%s2481_s25 + $0x698] sm:$0xff]  ;;  %v382_v52 = vld [vmem:[%s2481_s25 + $0x6a0] sm:$0xff] }
  0x4b   : > { %379 = vst [vmem:[%s2486_s26 + $0x390] sm:$0xff] %v378_v50  ;;  %381 = vst [vmem:[%s2486_s26 + $0x398] sm:$0xff] %v380_v51  ;;  %v384_v53 = vld [vmem:[%s2481_s25 + $0x6a8] sm:$0xff]  ;;  %v386_v54 = vld [vmem:[%s2481_s25 + $0x6b0] sm:$0xff] }
  0x4c   : > { %383 = vst [vmem:[%s2486_s26 + $0x3a0] sm:$0xff] %v382_v52  ;;  %v388_v55 = vld [vmem:[%s2481_s25 + $0x6b8] sm:$0xff]  ;;  %385 = vst [vmem:[%s2486_s26 + $0x3a8] sm:$0xff] %v384_v53  ;;  %v390_v56 = vld [vmem:[%s2481_s25 + $0x6c0] sm:$0xff] }
  0x4d   : > { %387 = vst [vmem:[%s2486_s26 + $0x3b0] sm:$0xff] %v386_v54  ;;  %389 = vst [vmem:[%s2486_s26 + $0x3b8] sm:$0xff] %v388_v55  ;;  %v392_v57 = vld [vmem:[%s2481_s25 + $0x6c8] sm:$0xff]  ;;  %v394_v58 = vld [vmem:[%s2481_s25 + $0x6d0] sm:$0xff] }
  0x4e   : > { %391 = vst [vmem:[%s2486_s26 + $0x3c0] sm:$0xff] %v390_v56  ;;  %393 = vst [vmem:[%s2486_s26 + $0x3c8] sm:$0xff] %v392_v57  ;;  %v396_v59 = vld [vmem:[%s2481_s25 + $0x6d8] sm:$0xff]  ;;  %v398_v60 = vld [vmem:[%s2481_s25 + $0x6e0] sm:$0xff] }
  0x4f   : > { %395 = vst [vmem:[%s2486_s26 + $0x3d0] sm:$0xff] %v394_v58  ;;  %v400_v61 = vld [vmem:[%s2481_s25 + $0x6e8] sm:$0xff]  ;;  %397 = vst [vmem:[%s2486_s26 + $0x3d8] sm:$0xff] %v396_v59  ;;  %v402_v62 = vld [vmem:[%s2481_s25 + $0x6f0] sm:$0xff] }
  0x50   : > { %399 = vst [vmem:[%s2486_s26 + $0x3e0] sm:$0xff] %v398_v60  ;;  %401 = vst [vmem:[%s2486_s26 + $0x3e8] sm:$0xff] %v400_v61  ;;  %v404_v63 = vld [vmem:[%s2481_s25 + $0x6f8] sm:$0xff] }
  0x51   : > { %403 = vst [vmem:[%s2486_s26 + $0x3f0] sm:$0xff] %v402_v62  ;;  %405 = vst [vmem:[%s2486_s26 + $0x3f8] sm:$0xff] %v404_v63 }
  0x52 PF: > { %p2063_p5 = scmp.ge.s32.totalorder %s2423_s14, 1  ;;  %p410_p6 = scmp.lt.s32.totalorder %s2423_s14, 3 }
  0x54   : > { %p411_p7 = pnand %p2063_p5, %p410_p6 }
  0x55   : > { %s417_s27 = sand.u32 (!%p411_p7), 1, %s2415_s12   ;;  %v2425_v0 = vmov (!%p411_p7), 0.0   ;;  %v576_v1 = vld [vmem:[%s3003_s2] sm:$0xf] (!%p411_p7)  ;;  %v2426_v2 = vmov (!%p411_p7), 0   ;;  %vm582_vm0 = vcmask (!%p411_p7), 261120  }
  0x56   : > { %414 = sbr.rel (%p411_p7) target bundleno = 405 (0x195), region = 51  ;;  %s2064_s28 = sshll.u32 (!%p411_p7), %s417_s27, 10  ;;  %650 = vmatprep.mubr.f32.mxu0 (!%p411_p7), %v2425_v0  ;;  %721 = vmatprep.mubr.f32.mxu1 (!%p411_p7), %v2425_v0  ;;  %v2772_v29 = vld [vmem:[%s3001_s0] sm:$0xf] (!%p411_p7) }
  0x57   : > { %2272 = vset.pattern.permute.xlu0 (!%p411_p7), %v2426_v2  ;;  %s2749_s4 = scalar_lea.vmem (!%p411_p7), [#allocation2], %s2064_s28  ;;  %s2065_s7 = sshll.u32 (!%p411_p7), %s2056_s15, 5 }
  0x58   : > { %v449_v3 = vld [vmem:[%s2749_s4 + $0x8] sm:$0xff] (!%p411_p7)  ;;  %v451_v5 = vld [vmem:[%s2749_s4 + $0x18] sm:$0xff] (!%p411_p7)  ;;  %579 = vperm.xlu0 (!%p411_p7), %2272, %v576_v1   ;;  %v448_v8 = vld [vmem:[%s2749_s4] sm:$0xff] (!%p411_p7)  ;;  %p442_p8 = scmp.lt.s32.totalorder (!%p411_p7), %s2065_s7, 63 }
  0x59   : > { %v481_v4 = vld [vmem:[%s2749_s4 + $0x108] sm:$0xff] (!%p411_p7)  ;;  %v483_v7 = vld [vmem:[%s2749_s4 + $0x118] sm:$0xff] (!%p411_p7)  ;;  %v480_v9 = vld [vmem:[%s2749_s4 + $0x100] sm:$0xff] (!%p411_p7) }
  0x5a   : > { %v2118_v6 = vpack.c.bf16 (!%p411_p7), %v481_v4, %v449_v3  ;;  %v2126_v10 = vpack.c.bf16 (!%p411_p7), %v483_v7, %v451_v5  ;;  %v2120_v11 = vpack.c.bf16 (!%p411_p7), %v480_v9, %v448_v8  ;;  %v450_v12 = vld [vmem:[%s2749_s4 + $0x10] sm:$0xff] (!%p411_p7)  ;;  %v513_v14 = vld [vmem:[%s2749_s4 + $0x208] sm:$0xff] (!%p411_p7)  ;;  %v515_v17 = vld [vmem:[%s2749_s4 + $0x218] sm:$0xff] (!%p411_p7) }
  0x5b   : > { %v482_v13 = vld [vmem:[%s2749_s4 + $0x110] sm:$0xff] (!%p411_p7)  ;;  %v545_v16 = vld [vmem:[%s2749_s4 + $0x308] sm:$0xff] (!%p411_p7)  ;;  %v547_v18 = vld [vmem:[%s2749_s4 + $0x318] sm:$0xff] (!%p411_p7) }
  0x5c   : > { %2119 = vmatprep.subr.bf16.mxu0 (!%p411_p7), %v2118_v6  ;;  %v2128_v15 = vpack.c.bf16 (!%p411_p7), %v482_v13, %v450_v12  ;;  %2127 = vmatprep.subr.bf16.mxu1 (!%p411_p7), %v2126_v10  ;;  %v2122_v19 = vpack.c.bf16 (!%p411_p7), %v545_v16, %v513_v14  ;;  %v2130_v20 = vpack.c.bf16 (!%p411_p7), %v547_v18, %v515_v17  ;;  %v512_v21 = vld [vmem:[%s2749_s4 + $0x200] sm:$0xff] (!%p411_p7)  ;;  %v514_v23 = vld [vmem:[%s2749_s4 + $0x210] sm:$0xff] (!%p411_p7)  ;;  %v453_v26 = vld [vmem:[%s2749_s4 + $0x28] sm:$0xff] (!%p411_p7) }
  0x5d   : > { %2121 = vmatpush1.bf16.msra.mxu0 %v2120_v11  ;;  %v544_v22 = vld [vmem:[%s2749_s4 + $0x300] sm:$0xff]  ;;  %v546_v25 = vld [vmem:[%s2749_s4 + $0x310] sm:$0xff]  ;;  %v485_v27 = vld [vmem:[%s2749_s4 + $0x128] sm:$0xff]  ;;  %s3009_s7 = smov (!%p442_p8, %s2065_s7), 63 }
  0x5e   : > { %2129 = vmatpush1.bf16.msra.mxu1 %v2128_v15  ;;  %v2124_v24 = vpack.c.bf16 %v544_v22, %v512_v21  ;;  %2123 = vmatprep.subr.bf16.mxu0 %v2122_v19  ;;  %v2132_v28 = vpack.c.bf16 %v546_v25, %v514_v23  ;;  %v2134_v30 = vpack.c.bf16 %v485_v27, %v453_v26  ;;  %v455_v31 = vld [vmem:[%s2749_s4 + $0x38] sm:$0xff]  ;;  %v452_v33 = vld [vmem:[%s2749_s4 + $0x20] sm:$0xff]  ;;  %v454_v36 = vld [vmem:[%s2749_s4 + $0x30] sm:$0xff]  ;;  %s2066_s8 = sshll.u32 %s3009_s7, 2 }
  0x5f   : > { %2131 = vmatprep.subr.bf16.mxu1 %v2130_v20  ;;  %v487_v32 = vld [vmem:[%s2749_s4 + $0x138] sm:$0xff]  ;;  %v484_v35 = vld [vmem:[%s2749_s4 + $0x120] sm:$0xff]  ;;  %v486_v37 = vld [vmem:[%s2749_s4 + $0x130] sm:$0xff]  ;;  %s2957_s11 = scalar_lea.vmem %s3004_s3, %s2066_s8 }
  0x60   : > { %v2142_v34 = vpack.c.bf16 %v487_v32, %v455_v31  ;;  %v2136_v38 = vpack.c.bf16 %v484_v35, %v452_v33  ;;  %v517_v39 = vld [vmem:[%s2749_s4 + $0x228] sm:$0xff]  ;;  %v519_v41 = vld [vmem:[%s2749_s4 + $0x238] sm:$0xff]  ;;  %v2144_v42 = vpack.c.bf16 %v486_v37, %v454_v36  ;;  %v516_v45 = vld [vmem:[%s2749_s4 + $0x220] sm:$0xff] }
  0x61   : > { %2125 = vmatpush1.bf16.msra.mxu0 %v2124_v24  ;;  %v549_v40 = vld [vmem:[%s2749_s4 + $0x328] sm:$0xff]  ;;  %v551_v44 = vld [vmem:[%s2749_s4 + $0x338] sm:$0xff]  ;;  %v548_v46 = vld [vmem:[%s2749_s4 + $0x320] sm:$0xff] }
  0x62   : > { %2133 = vmatpush1.bf16.msra.mxu1 %v2132_v28  ;;  %2135 = vmatprep.subr.bf16.mxu0 %v2134_v30  ;;  %v2138_v43 = vpack.c.bf16 %v549_v40, %v517_v39  ;;  %v2146_v47 = vpack.c.bf16 %v551_v44, %v519_v41  ;;  %v518_v48 = vld [vmem:[%s2749_s4 + $0x230] sm:$0xff]  ;;  %v457_v50 = vld [vmem:[%s2749_s4 + $0x48] sm:$0xff]  ;;  %v459_v52 = vld [vmem:[%s2749_s4 + $0x58] sm:$0xff]  ;;  %v2140_v54 = vpack.c.bf16 %v548_v46, %v516_v45 }
  0x63   : > { %2143 = vmatprep.subr.bf16.mxu1 %v2142_v34  ;;  %v550_v49 = vld [vmem:[%s2749_s4 + $0x330] sm:$0xff]  ;;  %v489_v51 = vld [vmem:[%s2749_s4 + $0x148] sm:$0xff]  ;;  %v491_v53 = vld [vmem:[%s2749_s4 + $0x158] sm:$0xff] }
  0x64   : > { %2067 = vmatmul.mubr.msk.f32.vlgmr.msra.gmra.mrb[0].mxu0 %vm582_vm0, %v2772_v29  ;;  %v2148_v55 = vpack.c.bf16 %v550_v49, %v518_v48  ;;  %v2150_v56 = vpack.c.bf16 %v489_v51, %v457_v50  ;;  %v456_v57 = vld [vmem:[%s2749_s4 + $0x40] sm:$0xff]  ;;  %v458_v59 = vld [vmem:[%s2749_s4 + $0x50] sm:$0xff]  ;;  %v2158_v60 = vpack.c.bf16 %v491_v53, %v459_v52  ;;  %v521_v62 = vld [vmem:[%s2749_s4 + $0x248] sm:$0xff] }
  0x65   : > { %2068 = vmatmul.mubr.msk.f32.vlgmr.msra.gmra.mrb[0].mxu1 %vm582_vm0, %v2772_v29  ;;  %2137 = vmatpush1.bf16.msra.mxu0 %v2136_v38  ;;  %v488_v58 = vld [vmem:[%s2749_s4 + $0x140] sm:$0xff]  ;;  %v490_v61 = vld [vmem:[%s2749_s4 + $0x150] sm:$0xff]  ;;  %v553_v63 = vld [vmem:[%s2749_s4 + $0x348] sm:$0xff] }
  0x66   : > { %2145 = vmatpush1.bf16.msra.mxu1 %v2144_v42  ;;  %2139 = vmatprep.subr.bf16.mxu0 %v2138_v43  ;;  %v523_v1 = vld [vmem:[%s2749_s4 + $0x258] sm:$0xff]  ;;  %v2152_v3 = vpack.c.bf16 %v488_v58, %v456_v57  ;;  %v2160_v4 = vpack.c.bf16 %v490_v61, %v458_v59  ;;  %v2154_v5 = vpack.c.bf16 %v553_v63, %v521_v62  ;;  %v520_v6 = vld [vmem:[%s2749_s4 + $0x240] sm:$0xff]  ;;  %v522_v8 = vld [vmem:[%s2749_s4 + $0x250] sm:$0xff] }
  0x67   : > { %2147 = vmatprep.subr.bf16.mxu1 %v2146_v47  ;;  %792 = vmatprep.mubr.f32.mxu0 %v2425_v0  ;;  %v555_v2 = vld [vmem:[%s2749_s4 + $0x358] sm:$0xff]  ;;  %v552_v7 = vld [vmem:[%s2749_s4 + $0x340] sm:$0xff]  ;;  %v554_v10 = vld [vmem:[%s2749_s4 + $0x350] sm:$0xff] }
  0x68   : > { %863 = vmatprep.mubr.f32.mxu1 %v2425_v0  ;;  %v2162_v9 = vpack.c.bf16 %v555_v2, %v523_v1  ;;  %v461_v11 = vld [vmem:[%s2749_s4 + $0x68] sm:$0xff]  ;;  %v463_v13 = vld [vmem:[%s2749_s4 + $0x78] sm:$0xff]  ;;  %v2156_v15 = vpack.c.bf16 %v552_v7, %v520_v6  ;;  %v2164_v16 = vpack.c.bf16 %v554_v10, %v522_v8  ;;  %v460_v18 = vld [vmem:[%s2749_s4 + $0x60] sm:$0xff] }
  0x69   : > { %2141 = vmatpush1.bf16.msra.mxu0 %v2140_v54  ;;  %v493_v12 = vld [vmem:[%s2749_s4 + $0x168] sm:$0xff]  ;;  %v495_v14 = vld [vmem:[%s2749_s4 + $0x178] sm:$0xff]  ;;  %v492_v19 = vld [vmem:[%s2749_s4 + $0x160] sm:$0xff] }
  0x6a   : > { %2149 = vmatpush1.bf16.msra.mxu1 %v2148_v55  ;;  %2151 = vmatprep.subr.bf16.mxu0 %v2150_v56  ;;  %v2166_v17 = vpack.c.bf16 %v493_v12, %v461_v11  ;;  %v462_v20 = vld [vmem:[%s2749_s4 + $0x70] sm:$0xff]  ;;  %v2174_v21 = vpack.c.bf16 %v495_v14, %v463_v13  ;;  %v525_v23 = vld [vmem:[%s2749_s4 + $0x268] sm:$0xff]  ;;  %v527_v25 = vld [vmem:[%s2749_s4 + $0x278] sm:$0xff]  ;;  %v2168_v27 = vpack.c.bf16 %v492_v19, %v460_v18 }
  0x6b   : > { %2159 = vmatprep.subr.bf16.mxu1 %v2158_v60  ;;  %v494_v22 = vld [vmem:[%s2749_s4 + $0x170] sm:$0xff]  ;;  %v557_v24 = vld [vmem:[%s2749_s4 + $0x368] sm:$0xff]  ;;  %v559_v26 = vld [vmem:[%s2749_s4 + $0x378] sm:$0xff] }
  0x6c   : > { %2069 = vmatmul.mubr.msk.f32.vlgmr.msra.gmra.mrb[2].mxu0 %vm582_vm0, %v2772_v29  ;;  %v2176_v28 = vpack.c.bf16 %v494_v22, %v462_v20  ;;  %v2170_v30 = vpack.c.bf16 %v557_v24, %v525_v23  ;;  %v524_v31 = vld [vmem:[%s2749_s4 + $0x260] sm:$0xff]  ;;  %v526_v33 = vld [vmem:[%s2749_s4 + $0x270] sm:$0xff]  ;;  %v2178_v34 = vpack.c.bf16 %v559_v26, %v527_v25  ;;  %v465_v36 = vld [vmem:[%s2749_s4 + $0x88] sm:$0xff] }
  0x6d   : > { %2070 = vmatmul.mubr.msk.f32.vlgmr.msra.gmra.mrb[2].mxu1 %vm582_vm0, %v2772_v29  ;;  %2153 = vmatpush1.bf16.msra.mxu0 %v2152_v3  ;;  %v556_v32 = vld [vmem:[%s2749_s4 + $0x360] sm:$0xff]  ;;  %v558_v35 = vld [vmem:[%s2749_s4 + $0x370] sm:$0xff]  ;;  %v497_v37 = vld [vmem:[%s2749_s4 + $0x188] sm:$0xff] }
  0x6e   : > { %2161 = vmatpush1.bf16.msra.mxu1 %v2160_v4  ;;  %2155 = vmatprep.subr.bf16.mxu0 %v2154_v5  ;;  %v467_v38 = vld [vmem:[%s2749_s4 + $0x98] sm:$0xff]  ;;  %v2172_v40 = vpack.c.bf16 %v556_v32, %v524_v31  ;;  %v2180_v41 = vpack.c.bf16 %v558_v35, %v526_v33  ;;  %v2182_v42 = vpack.c.bf16 %v497_v37, %v465_v36  ;;  %v464_v43 = vld [vmem:[%s2749_s4 + $0x80] sm:$0xff]  ;;  %v466_v45 = vld [vmem:[%s2749_s4 + $0x90] sm:$0xff] }
  0x6f   : > { %2163 = vmatprep.subr.bf16.mxu1 %v2162_v9  ;;  %934 = vmatprep.mubr.f32.mxu0 %v2425_v0  ;;  %v499_v39 = vld [vmem:[%s2749_s4 + $0x198] sm:$0xff]  ;;  %v496_v44 = vld [vmem:[%s2749_s4 + $0x180] sm:$0xff]  ;;  %v498_v47 = vld [vmem:[%s2749_s4 + $0x190] sm:$0xff] }
  0x70   : > { %1005 = vmatprep.mubr.f32.mxu1 %v2425_v0  ;;  %v2190_v46 = vpack.c.bf16 %v499_v39, %v467_v38  ;;  %v529_v48 = vld [vmem:[%s2749_s4 + $0x288] sm:$0xff]  ;;  %v531_v50 = vld [vmem:[%s2749_s4 + $0x298] sm:$0xff]  ;;  %v2184_v52 = vpack.c.bf16 %v496_v44, %v464_v43  ;;  %v2192_v53 = vpack.c.bf16 %v498_v47, %v466_v45  ;;  %v528_v55 = vld [vmem:[%s2749_s4 + $0x280] sm:$0xff] }
  0x71   : > { %2157 = vmatpush1.bf16.msra.mxu0 %v2156_v15  ;;  %v561_v49 = vld [vmem:[%s2749_s4 + $0x388] sm:$0xff]  ;;  %v563_v51 = vld [vmem:[%s2749_s4 + $0x398] sm:$0xff]  ;;  %v560_v56 = vld [vmem:[%s2749_s4 + $0x380] sm:$0xff] }
  0x72   : > { %2165 = vmatpush1.bf16.msra.mxu1 %v2164_v16  ;;  %2167 = vmatprep.subr.bf16.mxu0 %v2166_v17  ;;  %v2186_v54 = vpack.c.bf16 %v561_v49, %v529_v48  ;;  %v530_v57 = vld [vmem:[%s2749_s4 + $0x290] sm:$0xff]  ;;  %v2194_v58 = vpack.c.bf16 %v563_v51, %v531_v50  ;;  %v469_v60 = vld [vmem:[%s2749_s4 + $0xa8] sm:$0xff]  ;;  %v471_v62 = vld [vmem:[%s2749_s4 + $0xb8] sm:$0xff]  ;;  %v2188_v1 = vpack.c.bf16 %v560_v56, %v528_v55 }
  0x73   : > { %2175 = vmatprep.subr.bf16.mxu1 %v2174_v21  ;;  %v562_v59 = vld [vmem:[%s2749_s4 + $0x390] sm:$0xff]  ;;  %v501_v61 = vld [vmem:[%s2749_s4 + $0x1a8] sm:$0xff]  ;;  %v503_v63 = vld [vmem:[%s2749_s4 + $0x1b8] sm:$0xff] }
  0x74   : > { %2071 = vmatmul.mubr.msk.f32.vlgmr.msra.gmra.mrb[4].mxu0 %vm582_vm0, %v2772_v29  ;;  %v2196_v2 = vpack.c.bf16 %v562_v59, %v530_v57  ;;  %v2198_v3 = vpack.c.bf16 %v501_v61, %v469_v60  ;;  %v468_v4 = vld [vmem:[%s2749_s4 + $0xa0] sm:$0xff]  ;;  %v470_v6 = vld [vmem:[%s2749_s4 + $0xb0] sm:$0xff]  ;;  %v2206_v7 = vpack.c.bf16 %v503_v63, %v471_v62  ;;  %v533_v9 = vld [vmem:[%s2749_s4 + $0x2a8] sm:$0xff] }
  0x75   : > { %2072 = vmatmul.mubr.msk.f32.vlgmr.msra.gmra.mrb[4].mxu1 %vm582_vm0, %v2772_v29  ;;  %2169 = vmatpush1.bf16.msra.mxu0 %v2168_v27  ;;  %v500_v5 = vld [vmem:[%s2749_s4 + $0x1a0] sm:$0xff]  ;;  %v502_v8 = vld [vmem:[%s2749_s4 + $0x1b0] sm:$0xff]  ;;  %v565_v10 = vld [vmem:[%s2749_s4 + $0x3a8] sm:$0xff] }
  0x76   : > { %2177 = vmatpush1.bf16.msra.mxu1 %v2176_v28  ;;  %2171 = vmatprep.subr.bf16.mxu0 %v2170_v30  ;;  %v535_v11 = vld [vmem:[%s2749_s4 + $0x2b8] sm:$0xff]  ;;  %v2200_v13 = vpack.c.bf16 %v500_v5, %v468_v4  ;;  %v2208_v14 = vpack.c.bf16 %v502_v8, %v470_v6  ;;  %v2202_v15 = vpack.c.bf16 %v565_v10, %v533_v9  ;;  %v532_v16 = vld [vmem:[%s2749_s4 + $0x2a0] sm:$0xff]  ;;  %v534_v18 = vld [vmem:[%s2749_s4 + $0x2b0] sm:$0xff] }
  0x77   : > { %2179 = vmatprep.subr.bf16.mxu1 %v2178_v34  ;;  %1076 = vmatprep.mubr.f32.mxu0 %v2425_v0  ;;  %v567_v12 = vld [vmem:[%s2749_s4 + $0x3b8] sm:$0xff]  ;;  %v564_v17 = vld [vmem:[%s2749_s4 + $0x3a0] sm:$0xff]  ;;  %v566_v20 = vld [vmem:[%s2749_s4 + $0x3b0] sm:$0xff] }
  0x78   : > { %1147 = vmatprep.mubr.f32.mxu1 %v2425_v0  ;;  %v2210_v19 = vpack.c.bf16 %v567_v12, %v535_v11  ;;  %v473_v21 = vld [vmem:[%s2749_s4 + $0xc8] sm:$0xff]  ;;  %v475_v23 = vld [vmem:[%s2749_s4 + $0xd8] sm:$0xff]  ;;  %v2204_v25 = vpack.c.bf16 %v564_v17, %v532_v16  ;;  %v2212_v26 = vpack.c.bf16 %v566_v20, %v534_v18  ;;  %v472_v28 = vld [vmem:[%s2749_s4 + $0xc0] sm:$0xff] }
  0x79   : > { %2173 = vmatpush1.bf16.msra.mxu0 %v2172_v40  ;;  %v505_v22 = vld [vmem:[%s2749_s4 + $0x1c8] sm:$0xff]  ;;  %v507_v24 = vld [vmem:[%s2749_s4 + $0x1d8] sm:$0xff]  ;;  %v504_v30 = vld [vmem:[%s2749_s4 + $0x1c0] sm:$0xff] }
  0x7a   : > { %2181 = vmatpush1.bf16.msra.mxu1 %v2180_v41  ;;  %2183 = vmatprep.subr.bf16.mxu0 %v2182_v42  ;;  %v2214_v27 = vpack.c.bf16 %v505_v22, %v473_v21  ;;  %v474_v31 = vld [vmem:[%s2749_s4 + $0xd0] sm:$0xff]  ;;  %v2222_v32 = vpack.c.bf16 %v507_v24, %v475_v23  ;;  %v537_v34 = vld [vmem:[%s2749_s4 + $0x2c8] sm:$0xff]  ;;  %v539_v36 = vld [vmem:[%s2749_s4 + $0x2d8] sm:$0xff]  ;;  %v2216_v38 = vpack.c.bf16 %v504_v30, %v472_v28 }
  0x7b   : > { %2191 = vmatprep.subr.bf16.mxu1 %v2190_v46  ;;  %v506_v33 = vld [vmem:[%s2749_s4 + $0x1d0] sm:$0xff]  ;;  %v569_v35 = vld [vmem:[%s2749_s4 + $0x3c8] sm:$0xff]  ;;  %v571_v37 = vld [vmem:[%s2749_s4 + $0x3d8] sm:$0xff] }
  0x7c   : > { %2073 = vmatmul.mubr.msk.f32.vlgmr.msra.gmra.mrb[6].mxu0 %vm582_vm0, %v2772_v29  ;;  %v2224_v39 = vpack.c.bf16 %v506_v33, %v474_v31  ;;  %v2218_v40 = vpack.c.bf16 %v569_v35, %v537_v34  ;;  %v536_v41 = vld [vmem:[%s2749_s4 + $0x2c0] sm:$0xff]  ;;  %v538_v43 = vld [vmem:[%s2749_s4 + $0x2d0] sm:$0xff]  ;;  %v2226_v44 = vpack.c.bf16 %v571_v37, %v539_v36  ;;  %v477_v46 = vld [vmem:[%s2749_s4 + $0xe8] sm:$0xff] }
  0x7d   : > { %2074 = vmatmul.mubr.msk.f32.vlgmr.msra.gmra.mrb[6].mxu1 %vm582_vm0, %v2772_v29  ;;  %2185 = vmatpush1.bf16.msra.mxu0 %v2184_v52  ;;  %v568_v42 = vld [vmem:[%s2749_s4 + $0x3c0] sm:$0xff]  ;;  %v570_v45 = vld [vmem:[%s2749_s4 + $0x3d0] sm:$0xff]  ;;  %v509_v47 = vld [vmem:[%s2749_s4 + $0x1e8] sm:$0xff] }
  0x7e   : > { %2193 = vmatpush1.bf16.msra.mxu1 %v2192_v53  ;;  %2187 = vmatprep.subr.bf16.mxu0 %v2186_v54  ;;  %v479_v48 = vld [vmem:[%s2749_s4 + $0xf8] sm:$0xff]  ;;  %v2220_v50 = vpack.c.bf16 %v568_v42, %v536_v41  ;;  %v2228_v51 = vpack.c.bf16 %v570_v45, %v538_v43  ;;  %v2230_v52 = vpack.c.bf16 %v509_v47, %v477_v46  ;;  %v476_v53 = vld [vmem:[%s2749_s4 + $0xe0] sm:$0xff]  ;;  %v478_v55 = vld [vmem:[%s2749_s4 + $0xf0] sm:$0xff] }
  0x7f   : > { %2195 = vmatprep.subr.bf16.mxu1 %v2194_v58  ;;  %1218 = vmatprep.mubr.f32.mxu0 %v2425_v0  ;;  %v511_v49 = vld [vmem:[%s2749_s4 + $0x1f8] sm:$0xff]  ;;  %v508_v54 = vld [vmem:[%s2749_s4 + $0x1e0] sm:$0xff]  ;;  %v510_v57 = vld [vmem:[%s2749_s4 + $0x1f0] sm:$0xff] }
  0x80   : > { %1289 = vmatprep.mubr.f32.mxu1 %v2425_v0  ;;  %v2238_v56 = vpack.c.bf16 %v511_v49, %v479_v48  ;;  %v541_v58 = vld [vmem:[%s2749_s4 + $0x2e8] sm:$0xff]  ;;  %v543_v60 = vld [vmem:[%s2749_s4 + $0x2f8] sm:$0xff]  ;;  %v2232_v62 = vpack.c.bf16 %v508_v54, %v476_v53  ;;  %v2240_v63 = vpack.c.bf16 %v510_v57, %v478_v55  ;;  %v542_v5 = vld [vmem:[%s2749_s4 + $0x2f0] sm:$0xff] }
  0x81   : > { %2189 = vmatpush1.bf16.msra.mxu0 %v2188_v1  ;;  %v573_v59 = vld [vmem:[%s2749_s4 + $0x3e8] sm:$0xff]  ;;  %v575_v61 = vld [vmem:[%s2749_s4 + $0x3f8] sm:$0xff]  ;;  %v574_v6 = vld [vmem:[%s2749_s4 + $0x3f0] sm:$0xff] }
  0x82   : > { %2197 = vmatpush1.bf16.msra.mxu1 %v2196_v2  ;;  %2199 = vmatprep.subr.bf16.mxu0 %v2198_v3  ;;  %v2234_v1 = vpack.c.bf16 %v573_v59, %v541_v58  ;;  %v540_v2 = vld [vmem:[%s2749_s4 + $0x2e0] sm:$0xff]  ;;  %v2242_v4 = vpack.c.bf16 %v575_v61, %v543_v60  ;;  %v2244_v8 = vpack.c.bf16 %v574_v6, %v542_v5 }
  0x83   : > { %2207 = vmatprep.subr.bf16.mxu1 %v2206_v7  ;;  %v572_v3 = vld [vmem:[%s2749_s4 + $0x3e0] sm:$0xff] }
  0x84   : > { %2075 = vmatmul.mubr.msk.f32.vlgmr.msra.gmra.mrb[8].mxu0 %vm582_vm0, %v2772_v29  ;;  %v2236_v7 = vpack.c.bf16 %v572_v3, %v540_v2 }
  0x85   : > { %2076 = vmatmul.mubr.msk.f32.vlgmr.msra.gmra.mrb[8].mxu1 %vm582_vm0, %v2772_v29  ;;  %2201 = vmatpush1.bf16.msra.mxu0 %v2200_v13 }
  0x86   : > { %2209 = vmatpush1.bf16.msra.mxu1 %v2208_v14  ;;  %2203 = vmatprep.subr.bf16.mxu0 %v2202_v15 }
  0x87   : > { %2211 = vmatprep.subr.bf16.mxu1 %v2210_v19  ;;  %1360 = vmatprep.mubr.f32.mxu0 %v2425_v0 }
  0x88   : > { %1431 = vmatprep.mubr.f32.mxu1 %v2425_v0 }
  0x89   : > { %2205 = vmatpush1.bf16.msra.mxu0 %v2204_v25 }
  0x8a   : > { %2213 = vmatpush1.bf16.msra.mxu1 %v2212_v26  ;;  %2215 = vmatprep.subr.bf16.mxu0 %v2214_v27 }
  0x8b   : > { %2223 = vmatprep.subr.bf16.mxu1 %v2222_v32 }
  0x8c   : > { %2077 = vmatmul.mubr.msk.f32.vlgmr.msra.gmra.mrb[10].mxu0 %vm582_vm0, %v2772_v29 }
  0x8d   : > { %2078 = vmatmul.mubr.msk.f32.vlgmr.msra.gmra.mrb[10].mxu1 %vm582_vm0, %v2772_v29  ;;  %2217 = vmatpush1.bf16.msra.mxu0 %v2216_v38 }
  0x8e   : > { %2225 = vmatpush1.bf16.msra.mxu1 %v2224_v39  ;;  %2219 = vmatprep.subr.bf16.mxu0 %v2218_v40 }
  0x8f   : > { %2227 = vmatprep.subr.bf16.mxu1 %v2226_v44  ;;  %1502 = vmatprep.mubr.f32.mxu0 %v2425_v0 }
  0x90   : > { %1573 = vmatprep.mubr.f32.mxu1 %v2425_v0 }
  0x91   : > { %2221 = vmatpush1.bf16.msra.mxu0 %v2220_v50 }
  0x92   : > { %2229 = vmatpush1.bf16.msra.mxu1 %v2228_v51  ;;  %2231 = vmatprep.subr.bf16.mxu0 %v2230_v52 }
  0x93   : > { %2239 = vmatprep.subr.bf16.mxu1 %v2238_v56 }
  0x94   : > { %2079 = vmatmul.mubr.msk.f32.vlgmr.msra.gmra.mrb[12].mxu0 %vm582_vm0, %v2772_v29 }
  0x95   : > { %2080 = vmatmul.mubr.msk.f32.vlgmr.msra.gmra.mrb[12].mxu1 %vm582_vm0, %v2772_v29  ;;  %2233 = vmatpush1.bf16.msra.mxu0 %v2232_v62 }
  0x96   : > { %2241 = vmatpush1.bf16.msra.mxu1 %v2240_v63  ;;  %2235 = vmatprep.subr.bf16.mxu0 %v2234_v1 }
  0x97   : > { %2243 = vmatprep.subr.bf16.mxu1 %v2242_v4  ;;  %1644 = vmatprep.mubr.f32.mxu0 %v2425_v0 }
  0x98   : > { %1715 = vmatprep.mubr.f32.mxu1 %v2425_v0 }
  0x99   : > { %2237 = vmatpush1.bf16.msra.mxu0 %v2236_v7 }
  0x9a   : > { %2245 = vmatpush1.bf16.msra.mxu1 %v2244_v8 }
  0x9c   : > { %2081 = vmatmul.mubr.msk.f32.vlgmr.msra.gmra.mrb[14].mxu0 %vm582_vm0, %v2772_v29 }
  0x9d   : > { %2082 = vmatmul.mubr.msk.f32.vlgmr.msra.gmra.mrb[14].mxu1 %vm582_vm0, %v2772_v29 }
  0xd7   : > { %v2930_v9 = vpop.permute.xlu0 %579 }
 0x137   : > { %v652_v10 = vpop.f32.mrb[0].mxu0 }
 0x138   : > { %v723_v11 = vpop.f32.mrb[0].mxu1  ;;  %v653_v12 = vadd.f32 %v652_v10, %v2930_v9  ;;  %v654_v13 = vpop.f32.mrb[1].mxu0 }
 0x139   : > { %v655_v14 = vadd.f32 %v654_v13, %v2930_v9  ;;  %v724_v15 = vadd.f32 %v723_v11, %v2930_v9  ;;  %v725_v0 = vpop.f32.mrb[1].mxu1 }
 0x13a   : > { %v2083_v16 = vmul.f32 -1.442695, %v653_v12  ;;  %v726_v17 = vadd.f32 %v725_v0, %v2930_v9 }
 0x13b   : > { %v2084_v18 = vmul.f32 -1.442695, %v655_v14  ;;  %v2085_v19 = vmul.f32 -1.442695, %v724_v15 }
 0x13c   : > { %2273 = vpow2.f32 %v2083_v16  ;;  %v2086_v20 = vmul.f32 -1.442695, %v726_v17 }
 0x13d   : > { %2275 = vpow2.f32 %v2084_v18 }
 0x13e   : > { %2277 = vpow2.f32 %v2085_v19 }
 0x13f   : > { %2279 = vpow2.f32 %v2086_v20  ;;  %v794_v29 = vpop.f32.mrb[2].mxu0 }
 0x140   : > { %v795_v21 = vadd.f32 %v794_v29, %v2930_v9  ;;  %v865_v22 = vpop.f32.mrb[2].mxu1  ;;  %v796_v23 = vpop.f32.mrb[3].mxu0 }
 0x141   : > { %v866_v24 = vadd.f32 %v865_v22, %v2930_v9  ;;  %v797_v25 = vadd.f32 %v796_v23, %v2930_v9  ;;  %v867_v26 = vpop.f32.mrb[3].mxu1 }
 0x142   : > { %v2087_v27 = vmul.f32 -1.442695, %v795_v21  ;;  %v868_v28 = vadd.f32 %v867_v26, %v2930_v9 }
 0x143   : > { %v2089_v30 = vmul.f32 -1.442695, %v866_v24  ;;  %v2088_v31 = vmul.f32 -1.442695, %v797_v25 }
 0x144   : > { %2281 = vpow2.f32 %v2087_v27  ;;  %v2090_v32 = vmul.f32 -1.442695, %v868_v28 }
 0x145   : > { %2283 = vpow2.f32 %v2089_v30 }
 0x146   : > { %v2274_v33 = vpop.eup %2273  ;;  %2285 = vpow2.f32 %v2088_v31 }
 0x147   : > { %v2276_v34 = vpop.eup %2275  ;;  %v1818_v35 = vadd.f32 1.0, %v2274_v33  ;;  %2287 = vpow2.f32 %v2090_v32  ;;  %v936_v36 = vpop.f32.mrb[4].mxu0 }
 0x148   : > { %v2278_v37 = vpop.eup %2277  ;;  %v1819_v38 = vadd.f32 1.0, %v2276_v34  ;;  %v937_v39 = vadd.f32 %v936_v36, %v2930_v9  ;;  %v1007_v40 = vpop.f32.mrb[4].mxu1 }
 0x149   : > { %v938_v41 = vpop.f32.mrb[5].mxu0  ;;  %v2280_v42 = vpop.eup %2279  ;;  %2289 = vrcp.f32 %v1818_v35  ;;  %v1820_v43 = vadd.f32 1.0, %v2278_v37  ;;  %v1008_v44 = vadd.f32 %v1007_v40, %v2930_v9 }
 0x14a   : > { %v939_v45 = vadd.f32 %v938_v41, %v2930_v9  ;;  %v1009_v46 = vpop.f32.mrb[5].mxu1  ;;  %2291 = vrcp.f32 %v1819_v38  ;;  %v1821_v47 = vadd.f32 1.0, %v2280_v42  ;;  %v2091_v48 = vmul.f32 -1.442695, %v937_v39 }
 0x14b   : > { %v1010_v49 = vadd.f32 %v1009_v46, %v2930_v9  ;;  %2293 = vrcp.f32 %v1820_v43  ;;  %v2093_v50 = vmul.f32 -1.442695, %v1008_v44 }
 0x14c   : > { %v2092_v51 = vmul.f32 -1.442695, %v939_v45  ;;  %2295 = vrcp.f32 %v1821_v47 }
 0x14d   : > { %v2094_v52 = vmul.f32 -1.442695, %v1010_v49  ;;  %2297 = vpow2.f32 %v2091_v48 }
 0x14e   : > { %v2282_v53 = vpop.eup %2281  ;;  %2299 = vpow2.f32 %v2093_v50 }
 0x14f   : > { %v2284_v54 = vpop.eup %2283  ;;  %v1822_v55 = vadd.f32 1.0, %v2282_v53  ;;  %2301 = vpow2.f32 %v2092_v51  ;;  %v1078_v56 = vpop.f32.mrb[6].mxu0 }
 0x150   : > { %v2286_v57 = vpop.eup %2285  ;;  %v1824_v58 = vadd.f32 1.0, %v2284_v54  ;;  %2303 = vpow2.f32 %v2094_v52  ;;  %v1079_v59 = vadd.f32 %v1078_v56, %v2930_v9  ;;  %v1149_v60 = vpop.f32.mrb[6].mxu1 }
 0x151   : > { %v1080_v61 = vpop.f32.mrb[7].mxu0  ;;  %v2288_v62 = vpop.eup %2287  ;;  %2305 = vrcp.f32 %v1822_v55  ;;  %v1823_v63 = vadd.f32 1.0, %v2286_v57  ;;  %v1150_v1 = vadd.f32 %v1149_v60, %v2930_v9 }
 0x152   : > { %v1081_v2 = vadd.f32 %v1080_v61, %v2930_v9  ;;  %v1151_v3 = vpop.f32.mrb[7].mxu1  ;;  %2307 = vrcp.f32 %v1824_v58  ;;  %v1825_v4 = vadd.f32 1.0, %v2288_v62  ;;  %v2095_v5 = vmul.f32 -1.442695, %v1079_v59 }
 0x153   : > { %v1152_v6 = vadd.f32 %v1151_v3, %v2930_v9  ;;  %v2290_v7 = vpop.eup %2289  ;;  %2309 = vrcp.f32 %v1823_v63  ;;  %v2097_v8 = vmul.f32 -1.442695, %v1150_v1 }
 0x154   : > { %v2096_v10 = vmul.f32 -1.442695, %v1081_v2  ;;  %v2292_v11 = vpop.eup %2291  ;;  %2311 = vrcp.f32 %v1825_v4 }
 0x155   : > { %v2098_v12 = vmul.f32 -1.442695, %v1152_v6  ;;  %v2294_v13 = vpop.eup %2293  ;;  %v1946_v14 = vcombine.low %v2290_v7, %v2292_v11  ;;  %2313 = vpow2.f32 %v2095_v5 }
 0x156   : > { %v2296_v15 = vpop.eup %2295  ;;  %2315 = vpow2.f32 %v2097_v8 }
 0x157   : > { %v2298_v0 = vpop.eup %2297  ;;  %1978 = vst [vmem:[%s2957_s11] sm:$0xff] %v1946_v14  ;;  %v1947_v16 = vcombine.low %v2294_v13, %v2296_v15  ;;  %2317 = vpow2.f32 %v2096_v10  ;;  %v1220_v17 = vpop.f32.mrb[8].mxu0 }
 0x158   : > { %v2300_v18 = vpop.eup %2299  ;;  %v1826_v19 = vadd.f32 1.0, %v2298_v0  ;;  %2319 = vpow2.f32 %v2098_v12  ;;  %v1221_v20 = vadd.f32 %v1220_v17, %v2930_v9  ;;  %v1291_v29 = vpop.f32.mrb[8].mxu1 }
 0x159   : > { %v1222_v21 = vpop.f32.mrb[9].mxu0  ;;  %v2302_v22 = vpop.eup %2301  ;;  %1979 = vst [vmem:[%s2957_s11 + $0x8] sm:$0xff] %v1947_v16  ;;  %v1828_v23 = vadd.f32 1.0, %v2300_v18  ;;  %v1292_v24 = vadd.f32 %v1291_v29, %v2930_v9 }
 0x15a   : > { %v1223_v25 = vadd.f32 %v1222_v21, %v2930_v9  ;;  %v1293_v26 = vpop.f32.mrb[9].mxu1  ;;  %v2304_v27 = vpop.eup %2303  ;;  %2321 = vrcp.f32 %v1826_v19  ;;  %v1827_v28 = vadd.f32 1.0, %v2302_v22  ;;  %v2099_v30 = vmul.f32 -1.442695, %v1221_v20 }
 0x15b   : > { %v1294_v31 = vadd.f32 %v1293_v26, %v2930_v9  ;;  %v2306_v32 = vpop.eup %2305  ;;  %2323 = vrcp.f32 %v1828_v23  ;;  %v1829_v33 = vadd.f32 1.0, %v2304_v27  ;;  %v2101_v34 = vmul.f32 -1.442695, %v1292_v24 }
 0x15c   : > { %v2308_v35 = vpop.eup %2307  ;;  %2325 = vrcp.f32 %v1827_v28  ;;  %v2100_v36 = vmul.f32 -1.442695, %v1223_v25 }
 0x15d   : > { %v2310_v37 = vpop.eup %2309  ;;  %2327 = vrcp.f32 %v1829_v33  ;;  %v2102_v38 = vmul.f32 -1.442695, %v1294_v31 }
 0x15e   : > { %v2312_v39 = vpop.eup %2311  ;;  %v1948_v40 = vcombine.low %v2306_v32, %v2310_v37  ;;  %2329 = vpow2.f32 %v2099_v30 }
 0x15f   : > { %v2314_v41 = vpop.eup %2313  ;;  %v1949_v42 = vcombine.low %v2308_v35, %v2312_v39  ;;  %2331 = vpow2.f32 %v2101_v34  ;;  %v1362_v43 = vpop.f32.mrb[10].mxu0 }
 0x160   : > { %v2316_v44 = vpop.eup %2315  ;;  %1980 = vst [vmem:[%s2957_s11 + $0x10] sm:$0xff] %v1948_v40  ;;  %v1830_v45 = vadd.f32 1.0, %v2314_v41  ;;  %2333 = vpow2.f32 %v2100_v36  ;;  %v1363_v46 = vadd.f32 %v1362_v43, %v2930_v9  ;;  %v1433_v47 = vpop.f32.mrb[10].mxu1 }
 0x161   : > { %v1364_v48 = vpop.f32.mrb[11].mxu0  ;;  %v2318_v49 = vpop.eup %2317  ;;  %1981 = vst [vmem:[%s2957_s11 + $0x18] sm:$0xff] %v1949_v42  ;;  %v1832_v50 = vadd.f32 1.0, %v2316_v44  ;;  %2335 = vpow2.f32 %v2102_v38  ;;  %v1434_v51 = vadd.f32 %v1433_v47, %v2930_v9 }
 0x162   : > { %v1365_v52 = vadd.f32 %v1364_v48, %v2930_v9  ;;  %v1435_v53 = vpop.f32.mrb[11].mxu1  ;;  %v2320_v54 = vpop.eup %2319  ;;  %2337 = vrcp.f32 %v1830_v45  ;;  %v1831_v55 = vadd.f32 1.0, %v2318_v49  ;;  %v2103_v56 = vmul.f32 -1.442695, %v1363_v46 }
 0x163   : > { %v1436_v57 = vadd.f32 %v1435_v53, %v2930_v9  ;;  %2339 = vrcp.f32 %v1832_v50  ;;  %v1833_v58 = vadd.f32 1.0, %v2320_v54  ;;  %v2105_v59 = vmul.f32 -1.442695, %v1434_v51 }
 0x164   : > { %v2322_v60 = vpop.eup %2321  ;;  %2341 = vrcp.f32 %v1831_v55  ;;  %v2104_v61 = vmul.f32 -1.442695, %v1365_v52 }
 0x165   : > { %v2324_v62 = vpop.eup %2323  ;;  %2343 = vrcp.f32 %v1833_v58  ;;  %v2106_v63 = vmul.f32 -1.442695, %v1436_v57 }
 0x166   : > { %v2326_v1 = vpop.eup %2325  ;;  %2345 = vpow2.f32 %v2103_v56 }
 0x167   : > { %v2328_v2 = vpop.eup %2327  ;;  %v1950_v3 = vcombine.low %v2322_v60, %v2326_v1  ;;  %2347 = vpow2.f32 %v2105_v59  ;;  %v1504_v4 = vpop.f32.mrb[12].mxu0 }
 0x168   : > { %v2330_v5 = vpop.eup %2329  ;;  %v1951_v6 = vcombine.low %v2324_v62, %v2328_v2  ;;  %2349 = vpow2.f32 %v2104_v61  ;;  %v1505_v7 = vadd.f32 %v1504_v4, %v2930_v9  ;;  %v1575_v8 = vpop.f32.mrb[12].mxu1 }
 0x169   : > { %v1506_v10 = vpop.f32.mrb[13].mxu0  ;;  %v2332_v11 = vpop.eup %2331  ;;  %1982 = vst [vmem:[%s2957_s11 + $0x20] sm:$0xff] %v1950_v3  ;;  %v1834_v12 = vadd.f32 1.0, %v2330_v5  ;;  %2351 = vpow2.f32 %v2106_v63  ;;  %v1576_v13 = vadd.f32 %v1575_v8, %v2930_v9 }
 0x16a   : > { %v1507_v14 = vadd.f32 %v1506_v10, %v2930_v9  ;;  %v1577_v15 = vpop.f32.mrb[13].mxu1  ;;  %v2334_v0 = vpop.eup %2333  ;;  %1983 = vst [vmem:[%s2957_s11 + $0x28] sm:$0xff] %v1951_v6  ;;  %v1836_v16 = vadd.f32 1.0, %v2332_v11  ;;  %v2107_v20 = vmul.f32 -1.442695, %v1505_v7 }
 0x16b   : > { %v1578_v17 = vadd.f32 %v1577_v15, %v2930_v9  ;;  %v2336_v18 = vpop.eup %2335  ;;  %2353 = vrcp.f32 %v1834_v12  ;;  %v1835_v19 = vadd.f32 1.0, %v2334_v0  ;;  %v2109_v22 = vmul.f32 -1.442695, %v1576_v13 }
 0x16c   : > { %v2338_v29 = vpop.eup %2337  ;;  %2355 = vrcp.f32 %v1836_v16  ;;  %v1837_v21 = vadd.f32 1.0, %v2336_v18  ;;  %v2108_v24 = vmul.f32 -1.442695, %v1507_v14 }
 0x16d   : > { %v2340_v23 = vpop.eup %2339  ;;  %2357 = vrcp.f32 %v1835_v19  ;;  %v2110_v26 = vmul.f32 -1.442695, %v1578_v17 }
 0x16e   : > { %v2342_v25 = vpop.eup %2341  ;;  %2359 = vrcp.f32 %v1837_v21 }
 0x16f   : > { %v2344_v27 = vpop.eup %2343  ;;  %v1952_v28 = vcombine.low %v2338_v29, %v2342_v25  ;;  %2361 = vpow2.f32 %v2107_v20  ;;  %v1646_v30 = vpop.f32.mrb[14].mxu0 }
 0x170   : > { %v2346_v31 = vpop.eup %2345  ;;  %v1953_v32 = vcombine.low %v2340_v23, %v2344_v27  ;;  %2363 = vpow2.f32 %v2109_v22  ;;  %v1647_v33 = vadd.f32 %v1646_v30, %v2930_v9  ;;  %v1717_v34 = vpop.f32.mrb[14].mxu1 }
 0x171   : > { %v1648_v35 = vpop.f32.mrb[15].mxu0  ;;  %v2348_v36 = vpop.eup %2347  ;;  %1984 = vst [vmem:[%s2957_s11 + $0x30] sm:$0xff] %v1952_v28  ;;  %v1838_v37 = vadd.f32 1.0, %v2346_v31  ;;  %2365 = vpow2.f32 %v2108_v24  ;;  %v1718_v38 = vadd.f32 %v1717_v34, %v2930_v9 }
 0x172   : > { %v1649_v39 = vadd.f32 %v1648_v35, %v2930_v9  ;;  %v1719_v40 = vpop.f32.mrb[15].mxu1  ;;  %v2350_v41 = vpop.eup %2349  ;;  %1985 = vst [vmem:[%s2957_s11 + $0x38] sm:$0xff] %v1953_v32  ;;  %v1840_v42 = vadd.f32 1.0, %v2348_v36  ;;  %2367 = vpow2.f32 %v2110_v26  ;;  %v2111_v46 = vmul.f32 -1.442695, %v1647_v33 }
 0x173   : > { %v1720_v43 = vadd.f32 %v1719_v40, %v2930_v9  ;;  %v2352_v44 = vpop.eup %2351  ;;  %2369 = vrcp.f32 %v1838_v37  ;;  %v1839_v45 = vadd.f32 1.0, %v2350_v41  ;;  %v2113_v48 = vmul.f32 -1.442695, %v1718_v38 }
 0x174   : > { %2371 = vrcp.f32 %v1840_v42  ;;  %v1841_v47 = vadd.f32 1.0, %v2352_v44  ;;  %v2112_v50 = vmul.f32 -1.442695, %v1649_v39 }
 0x175   : > { %v2354_v49 = vpop.eup %2353  ;;  %2373 = vrcp.f32 %v1839_v45  ;;  %v2114_v52 = vmul.f32 -1.442695, %v1720_v43 }
 0x176   : > { %v2356_v51 = vpop.eup %2355  ;;  %2375 = vrcp.f32 %v1841_v47 }
 0x177   : > { %v2358_v53 = vpop.eup %2357  ;;  %2377 = vpow2.f32 %v2111_v46 }
 0x178   : > { %v2360_v54 = vpop.eup %2359  ;;  %v1954_v55 = vcombine.low %v2354_v49, %v2358_v53  ;;  %2379 = vpow2.f32 %v2113_v48 }
 0x179   : > { %v2362_v9 = vpop.eup %2361  ;;  %v1955_v56 = vcombine.low %v2356_v51, %v2360_v54  ;;  %2381 = vpow2.f32 %v2112_v50 }
 0x17a   : > { %v2364_v57 = vpop.eup %2363  ;;  %1986 = vst [vmem:[%s2957_s11 + $0x40] sm:$0xff] %v1954_v55  ;;  %v1842_v58 = vadd.f32 1.0, %v2362_v9  ;;  %2383 = vpow2.f32 %v2114_v52 }
 0x17b   : > { %v2366_v59 = vpop.eup %2365  ;;  %1987 = vst [vmem:[%s2957_s11 + $0x48] sm:$0xff] %v1955_v56  ;;  %v1844_v60 = vadd.f32 1.0, %v2364_v57 }
 0x17c   : > { %v2368_v61 = vpop.eup %2367  ;;  %2385 = vrcp.f32 %v1842_v58  ;;  %v1843_v62 = vadd.f32 1.0, %v2366_v59 }
 0x17d   : > { %v2370_v63 = vpop.eup %2369  ;;  %2387 = vrcp.f32 %v1844_v60  ;;  %v1845_v1 = vadd.f32 1.0, %v2368_v61 }
 0x17e   : > { %v2372_v2 = vpop.eup %2371  ;;  %2389 = vrcp.f32 %v1843_v62 }
 0x17f   : > { %v2374_v3 = vpop.eup %2373  ;;  %2391 = vrcp.f32 %v1845_v1 }
 0x180   : > { %v2376_v4 = vpop.eup %2375  ;;  %v1956_v5 = vcombine.low %v2370_v63, %v2374_v3 }
 0x181   : > { %v2378_v6 = vpop.eup %2377  ;;  %v1957_v7 = vcombine.low %v2372_v2, %v2376_v4 }
 0x182   : > { %v2380_v8 = vpop.eup %2379  ;;  %1988 = vst [vmem:[%s2957_s11 + $0x50] sm:$0xff] %v1956_v5  ;;  %v1846_v10 = vadd.f32 1.0, %v2378_v6 }
 0x183   : > { %v2382_v11 = vpop.eup %2381  ;;  %1989 = vst [vmem:[%s2957_s11 + $0x58] sm:$0xff] %v1957_v7  ;;  %v1848_v12 = vadd.f32 1.0, %v2380_v8 }
 0x184   : > { %v2384_v13 = vpop.eup %2383  ;;  %2393 = vrcp.f32 %v1846_v10  ;;  %v1847_v14 = vadd.f32 1.0, %v2382_v11 }
 0x185   : > { %2395 = vrcp.f32 %v1848_v12  ;;  %v1849_v15 = vadd.f32 1.0, %v2384_v13 }
 0x186   : > { %v2386_v0 = vpop.eup %2385  ;;  %2397 = vrcp.f32 %v1847_v14 }
 0x187   : > { %v2388_v16 = vpop.eup %2387  ;;  %2399 = vrcp.f32 %v1849_v15 }
 0x188   : > { %v2390_v17 = vpop.eup %2389 }
 0x189   : > { %v2392_v18 = vpop.eup %2391  ;;  %v1958_v19 = vcombine.low %v2386_v0, %v2390_v17 }
 0x18a   : > { %v1959_v20 = vcombine.low %v2388_v16, %v2392_v18 }
 0x18b   : > { %1990 = vst [vmem:[%s2957_s11 + $0x60] sm:$0xff] %v1958_v19 }
 0x18c   : > { %1991 = vst [vmem:[%s2957_s11 + $0x68] sm:$0xff] %v1959_v20 }
 0x18e   : > { %v2394_v29 = vpop.eup %2393 }
 0x18f   : > { %v2396_v21 = vpop.eup %2395 }
 0x190   : > { %v2398_v22 = vpop.eup %2397 }
 0x191   : > { %v2400_v23 = vpop.eup %2399  ;;  %v1960_v24 = vcombine.low %v2394_v29, %v2398_v22 }
 0x192   : > { %v1961_v25 = vcombine.low %v2396_v21, %v2400_v23 }
 0x193   : > { %1992 = vst [vmem:[%s2957_s11 + $0x70] sm:$0xff] %v1960_v24 }
 0x194   : > { %1993 = vst [vmem:[%s2957_s11 + $0x78] sm:$0xff] %v1961_v25 }
 0x195 PF: > { %p10_p9 = scmp.ge.s32.totalorder %s2464_s16, 4   ;;  %s3005_s12 = smov %s2419_s13 }
 0x196   : > { %s3006_s13 = smov %s2473_s19  ;;  %s3007_s14 = smov %s2464_s16 }
 0x197   :  { %12 = sbr.rel (!%p10_p9) target bundleno = 2 (0x2), region = 90 }

</bundles_post_ra>
